<compile_context>
chip_gen: v7x
topology: tpu7x:2x2x1
jax: 0.10.0
libtpu: 0.0.40
codegen_flags: <defaults>
</compile_context>

<pallas_src>
import math

import jax
import jax.numpy as jnp
from jax import lax
from jax.experimental import pallas as pl
from jax.experimental.pallas import tpu as pltpu

_BN_EPS = 1e-5


def _round_up(x, m):
    return ((x + m - 1) // m) * m


def _layer_defs(in_channels):
    # (name, Ci, Co, K, pad) -- matches Encoder_v6 exactly.
    return [
        ("conv1", in_channels, 6, 201, 25),
        ("conv2", 6, 6, 51, 25),
        ("conv3", 6, 6, 51, 25),
        ("conv4", 6, 6, 51, 0),
    ]


# ---------------------------------------------------------------------------
# Fused Pallas kernel: the whole 4-layer encoder in one invocation.
# ---------------------------------------------------------------------------
def _encoder_kernel(x_ref, w1, w2, w3, w4, b1, b2, b3, b4, o_ref):
    h = x_ref[...]                                        # (bn, in_pad) bf16
    # Static (fully unrolled) loop over the 4 layers; activations stay in VMEM.
    for w_ref, b_ref in ((w1, b1), (w2, b2), (w3, b3), (w4, b4)):
        # bf16 operands on the MXU, f32 accumulation.
        h = jnp.dot(h.astype(jnp.bfloat16), w_ref[...],
                    preferred_element_type=jnp.float32)
        # f32 bias + ReLU epilogue (kept f32: v5e has no bf16 VPU path).
        h = jnp.maximum(h + b_ref[...], 0.0)
        # TODO(synk): nn.Dropout(p=0.5) is eval-mode identity (no RNG masking).
    o_ref[...] = h


def encoder_forward(fused, x_ncw):
    """x_ncw: (N, in_channels, L) f32 -> (N, 6, L_out) f32 (eval-mode forward)."""
    N, Ci, L = x_ncw.shape
    in_real, in_pad = fused[0]["in_real"], fused[0]["in_pad"]
    assert in_real == L * Ci, (in_real, L * Ci)

    # NCW -> NLC -> flat (N, L*Ci): channels fastest.  bf16 in the wrapper: halves
    # the input-block DMA and removes the in-kernel layer-1 cast (same quantization).
    x_flat = jnp.transpose(x_ncw, (0, 2, 1)).reshape(N, in_real).astype(jnp.bfloat16)

    # Large, sublane-aligned M block; pad the batch up to a multiple of bn.
    bn = min(_round_up(N, 16), 256)
    N_pad = _round_up(N, bn)
    if N_pad != N or in_pad != in_real:
        x_flat = jnp.pad(x_flat, ((0, N_pad - N), (0, in_pad - in_real)))
    grid = (N_pad // bn,)

    out_real, out_pad = fused[-1]["out_real"], fused[-1]["out_pad"]
    L_out, Co = fused[-1]["L_out"], fused[-1]["Co"]

    def _call(single_buffer_weights):
        const_kwargs = (dict(pipeline_mode=pl.Buffered(1))
                        if single_buffer_weights else {})
        in_specs = [pl.BlockSpec((bn, in_pad), lambda i: (i, 0))]
        in_specs += [pl.BlockSpec(f["W"].shape, lambda i: (0, 0), **const_kwargs)
                     for f in fused]
        in_specs += [pl.BlockSpec(f["b"].shape, lambda i: (0, 0), **const_kwargs)
                     for f in fused]
        return pl.pallas_call(
            _encoder_kernel,
            out_shape=jax.ShapeDtypeStruct((N_pad, out_pad), jnp.float32),
            grid=grid,
            in_specs=in_specs,
            out_specs=pl.BlockSpec((bn, out_pad), lambda i: (i, 0)),
            compiler_params=pltpu.CompilerParams(
                dimension_semantics=("parallel",)),      # >=2 blocks -> 2 TCs on v7x
        )(x_flat, *(f["W"] for f in fused), *(f["b"] for f in fused))

    try:
        out_flat = _call(True)      # single-buffered constant weights (saves ~3 MB VMEM)
    except Exception:
        out_flat = _call(False)     # portable fallback: default double buffering

    # Drop batch / lane padding: flat (N, L_out*Co) -> (N, L_out, Co) -> NCW.
    out_flat = out_flat[:N, :out_real]
    return jnp.transpose(out_flat.reshape(N, L_out, Co), (0, 2, 1))


# ---------------------------------------------------------------------------
# Parameter construction (PyTorch-like init + "pretrained-like" BN stats) and
# one-time fusion into lane-padded Toeplitz matmul weights (all hoisted to init).
# ---------------------------------------------------------------------------
def init_raw_params(key, in_channels):
    params = []
    keys = iter(jax.random.split(key, 6 * len(_layer_defs(in_channels))))
    for name, ci, co, k, pad in _layer_defs(in_channels):
        bound = 1.0 / math.sqrt(ci * k)
        w = jax.random.uniform(next(keys), (co, ci, k), jnp.float32, -bound, bound)
        b = jax.random.uniform(next(keys), (co,), jnp.float32, -bound, bound)
        # Eval-mode BatchNorm parameters / running stats (non-trivial values so the
        # BN fold is actually exercised by the correctness check).
        gamma = jax.random.uniform(next(keys), (co,), jnp.float32, 0.5, 1.5)
        beta = 0.1 * jax.random.normal(next(keys), (co,), jnp.float32)
        mean = 0.1 * jax.random.normal(next(keys), (co,), jnp.float32)
        var = jax.random.uniform(next(keys), (co,), jnp.float32, 0.5, 1.5)
        params.append(dict(name=name, w=w, b=b, gamma=gamma, beta=beta,
                           mean=mean, var=var, pad=pad))
    return params


def _toeplitz_conv_matrix(w_oik, pad, L_in):
    """Conv1d(stride=1) as a dense banded matmul matrix.

    w_oik: (Co, Ci, K) effective conv weight.  Returns (L_in*Ci, L_out*Co) with
    W[li*Ci+ci, lo*Co+co] = w[co, ci, li-lo+pad] if 0 <= li-lo+pad < K else 0.
    Zero padding is implicit (out-of-range input positions simply have no row).
    """
    Co, Ci, K = w_oik.shape
    L_out = L_in + 2 * pad - K + 1
    w_kio = jnp.transpose(w_oik, (2, 1, 0))                  # (K, Ci, Co)
    li = jnp.arange(L_in)[:, None]
    lo = jnp.arange(L_out)[None, :]
    k = li - lo + pad                                        # (L_in, L_out)
    valid = (k >= 0) & (k < K)
    w_full = w_kio[jnp.clip(k, 0, K - 1)]                    # (L_in, L_out, Ci, Co)
    w_full = jnp.where(valid[:, :, None, None], w_full, 0.0)
    return jnp.transpose(w_full, (0, 2, 1, 3)).reshape(L_in * Ci, L_out * Co)


def build_fused_params(raw_params, L_in):
    """Fold eval-mode BN into each conv; build bf16 Toeplitz weights padded so every
    layer's input/output width is a 128-lane multiple (zero cols/rows, exact math)."""
    fused = []
    L = L_in
    in_real = L_in * raw_params[0]["w"].shape[1]
    in_pad = _round_up(in_real, 128)
    for p in raw_params:
        scale = p["gamma"] / jnp.sqrt(p["var"] + _BN_EPS)            # (Co,)
        w_eff = p["w"] * scale[:, None, None]                        # (Co,Ci,K)
        b_eff = (p["b"] - p["mean"]) * scale + p["beta"]             # (Co,)
        Co, Ci, K = p["w"].shape
        L_out = L + 2 * p["pad"] - K + 1
        out_real = L_out * Co
        out_pad = _round_up(out_real, 128)
        W = _toeplitz_conv_matrix(w_eff, p["pad"], L)                # (in_real,out_real)
        W_full = jnp.zeros((in_pad, out_pad), jnp.float32)
        W_full = W_full.at[:in_real, :out_real].set(W)
        b_flat = jnp.zeros((1, out_pad), jnp.float32)
        b_flat = b_flat.at[0, :out_real].set(jnp.tile(b_eff, L_out))
        fused.append(dict(W=W_full.astype(jnp.bfloat16), b=b_flat,
                          L_out=L_out, Co=Co,
                          in_real=in_real, in_pad=in_pad,
                          out_real=out_real, out_pad=out_pad))
        L = L_out
        in_real, in_pad = out_real, out_pad
    return fused


# ---------------------------------------------------------------------------
# Pure-JAX references for correctness checks.
# ---------------------------------------------------------------------------
def ref_forward(raw_params, x_ncw):
    """f32 HIGHEST conv + eval-mode BN + ReLU: the PyTorch forward semantics."""
    x = jnp.transpose(x_ncw, (0, 2, 1)).astype(jnp.float32)          # NLC
    for p in raw_params:
        w_hio = jnp.transpose(p["w"], (2, 1, 0))                     # (K, Ci, Co)
        x = lax.conv_general_dilated(
            x, w_hio, window_strides=(1,), padding=[(p["pad"], p["pad"])],
            dimension_numbers=("NHC", "HIO", "NHC"),
            precision=lax.Precision.HIGHEST) + p["b"][None, None, :]
        x = (x - p["mean"]) / jnp.sqrt(p["var"] + _BN_EPS) * p["gamma"] + p["beta"]
        x = jnp.maximum(x, 0.0)
    return jnp.transpose(x, (0, 2, 1))


def ref_forward_fused_math(fused, x_ncw):
    """Identical math to the Pallas kernel (bf16 operands, f32 accum), on XLA."""
    N, Ci, L = x_ncw.shape
    h = jnp.transpose(x_ncw, (0, 2, 1)).reshape(N, L * Ci).astype(jnp.bfloat16)
    h = jnp.pad(h, ((0, 0), (0, fused[0]["in_pad"] - fused[0]["in_real"])))
    for f in fused:
        h = jnp.dot(h.astype(jnp.bfloat16), f["W"],
                    preferred_element_type=jnp.float32)
        h = jnp.maximum(h + f["b"], 0.0)
    L_out, Co = fused[-1]["L_out"], fused[-1]["Co"]
    h = h[:, :fused[-1]["out_real"]]
    return jnp.transpose(h.reshape(N, L_out, Co), (0, 2, 1))


if __name__ == "__main__":
    key = jax.random.PRNGKey(0)
    k_param, k_x = jax.random.split(key)

    in_channels, N, L = 3, 2, 256            # L must cover the 201-tap conv1
    raw = init_raw_params(k_param, in_channels)
    fused = build_fused_params(raw, L)
    x = jax.random.normal(k_x, (N, in_channels, L), jnp.float32)

    out = jax.block_until_ready(encoder_forward(fused, x))
    L_final = fused[-1]["L_out"]             # 256 -> 106 -> 106 -> 106 -> 56
    assert out.shape == (N, 6, L_final), out.shape

    # (1) Tight implementation check vs the identical bf16 matmul math on XLA.
    ref_bf16 = jax.block_until_ready(ref_forward_fused_math(fused, x))
    err_impl = float(jnp.max(jnp.abs(out - ref_bf16)))
    assert jnp.allclose(out, ref_bf16, atol=2e-3, rtol=2e-3), err_impl

    # (2) Semantics check vs the f32 HIGHEST conv + BN + ReLU reference
    #     (tolerance absorbs the intentional bf16 MXU-operand quantization).
    ref = jax.block_until_ready(ref_forward(raw, x))
    err_sem = float(jnp.max(jnp.abs(out - ref)))
    assert jnp.allclose(out, ref, atol=5e-2, rtol=5e-2), err_sem

    print("KERNEL_OK")
</pallas_src>

<mosaic_0001>
module attributes {stable_mosaic.version = 11 : i64} {
  func.func @_encoder_kernel(%arg0: i32, %arg1: memref<16x768xbf16, #tpu.memory_space<vmem>>, %arg2: memref<768x640xbf16, #tpu.memory_space<vmem>>, %arg3: memref<640x640xbf16, #tpu.memory_space<vmem>>, %arg4: memref<640x640xbf16, #tpu.memory_space<vmem>>, %arg5: memref<640x384xbf16, #tpu.memory_space<vmem>>, %arg6: memref<1x640xf32, #tpu.memory_space<vmem>>, %arg7: memref<1x640xf32, #tpu.memory_space<vmem>>, %arg8: memref<1x640xf32, #tpu.memory_space<vmem>>, %arg9: memref<1x384xf32, #tpu.memory_space<vmem>>, %arg10: memref<16x384xf32, #tpu.memory_space<vmem>>) attributes {dimension_semantics = [#tpu.dimension_semantics<parallel>], iteration_bounds = array<i64: 1>, scalar_prefetch = 0 : i64, scratch_operands = 0 : i64, tpu.core_type = #tpu.core_type<tc>, window_params = [{transform_indices = @transform_0, window_bounds = array<i64: 16, 768>}, {pipeline_mode = #tpu.pipeline_mode<synchronous>, transform_indices = @transform_1, window_bounds = array<i64: 768, 640>}, {pipeline_mode = #tpu.pipeline_mode<synchronous>, transform_indices = @transform_2, window_bounds = array<i64: 640, 640>}, {pipeline_mode = #tpu.pipeline_mode<synchronous>, transform_indices = @transform_3, window_bounds = array<i64: 640, 640>}, {pipeline_mode = #tpu.pipeline_mode<synchronous>, transform_indices = @transform_4, window_bounds = array<i64: 640, 384>}, {pipeline_mode = #tpu.pipeline_mode<synchronous>, transform_indices = @transform_5, window_bounds = array<i64: 1, 640>}, {pipeline_mode = #tpu.pipeline_mode<synchronous>, transform_indices = @transform_6, window_bounds = array<i64: 1, 640>}, {pipeline_mode = #tpu.pipeline_mode<synchronous>, transform_indices = @transform_7, window_bounds = array<i64: 1, 640>}, {pipeline_mode = #tpu.pipeline_mode<synchronous>, transform_indices = @transform_8, window_bounds = array<i64: 1, 384>}, {transform_indices = @transform_9, window_bounds = array<i64: 16, 384>}]} {
    %c0 = arith.constant 0 : index
    %c0_0 = arith.constant 0 : index
    %0 = vector.load %arg1[%c0, %c0_0] : memref<16x768xbf16, #tpu.memory_space<vmem>>, vector<16x768xbf16>
    %c0_1 = arith.constant 0 : index
    %c0_2 = arith.constant 0 : index
    %1 = vector.load %arg2[%c0_1, %c0_2] : memref<768x640xbf16, #tpu.memory_space<vmem>>, vector<768x640xbf16>
    %cst = arith.constant dense<0.000000e+00> : vector<16x640xf32>
    %2 = tpu.matmul %0, %1, %cst {dimension_numbers = #tpu.dot_dimension_numbers<[1], [0], [0], [1], [0, 0, 1, 1], [], []>} : vector<16x768xbf16>, vector<768x640xbf16>, vector<16x640xf32> -> vector<16x640xf32>
    %c0_3 = arith.constant 0 : index
    %c0_4 = arith.constant 0 : index
    %3 = vector.load %arg6[%c0_3, %c0_4] : memref<1x640xf32, #tpu.memory_space<vmem>>, vector<1x640xf32>
    %4 = vector.broadcast %3 : vector<1x640xf32> to vector<16x640xf32>
    %5 = arith.addf %2, %4 : vector<16x640xf32>
    %cst_5 = arith.constant 0.000000e+00 : f32
    %6 = vector.broadcast %cst_5 : f32 to vector<16x640xf32>
    %7 = arith.maximumf %5, %6 : vector<16x640xf32>
    %8 = arith.truncf %7 : vector<16x640xf32> to vector<16x640xbf16>
    %c0_6 = arith.constant 0 : index
    %c0_7 = arith.constant 0 : index
    %9 = vector.load %arg3[%c0_6, %c0_7] : memref<640x640xbf16, #tpu.memory_space<vmem>>, vector<640x640xbf16>
    %cst_8 = arith.constant dense<0.000000e+00> : vector<16x640xf32>
    %10 = tpu.matmul %8, %9, %cst_8 {dimension_numbers = #tpu.dot_dimension_numbers<[1], [0], [0], [1], [0, 0, 1, 1], [], []>} : vector<16x640xbf16>, vector<640x640xbf16>, vector<16x640xf32> -> vector<16x640xf32>
    %c0_9 = arith.constant 0 : index
    %c0_10 = arith.constant 0 : index
    %11 = vector.load %arg7[%c0_9, %c0_10] : memref<1x640xf32, #tpu.memory_space<vmem>>, vector<1x640xf32>
    %12 = vector.broadcast %11 : vector<1x640xf32> to vector<16x640xf32>
    %13 = arith.addf %10, %12 : vector<16x640xf32>
    %cst_11 = arith.constant 0.000000e+00 : f32
    %14 = vector.broadcast %cst_11 : f32 to vector<16x640xf32>
    %15 = arith.maximumf %13, %14 : vector<16x640xf32>
    %16 = arith.truncf %15 : vector<16x640xf32> to vector<16x640xbf16>
    %c0_12 = arith.constant 0 : index
    %c0_13 = arith.constant 0 : index
    %17 = vector.load %arg4[%c0_12, %c0_13] : memref<640x640xbf16, #tpu.memory_space<vmem>>, vector<640x640xbf16>
    %cst_14 = arith.constant dense<0.000000e+00> : vector<16x640xf32>
    %18 = tpu.matmul %16, %17, %cst_14 {dimension_numbers = #tpu.dot_dimension_numbers<[1], [0], [0], [1], [0, 0, 1, 1], [], []>} : vector<16x640xbf16>, vector<640x640xbf16>, vector<16x640xf32> -> vector<16x640xf32>
    %c0_15 = arith.constant 0 : index
    %c0_16 = arith.constant 0 : index
    %19 = vector.load %arg8[%c0_15, %c0_16] : memref<1x640xf32, #tpu.memory_space<vmem>>, vector<1x640xf32>
    %20 = vector.broadcast %19 : vector<1x640xf32> to vector<16x640xf32>
    %21 = arith.addf %18, %20 : vector<16x640xf32>
    %cst_17 = arith.constant 0.000000e+00 : f32
    %22 = vector.broadcast %cst_17 : f32 to vector<16x640xf32>
    %23 = arith.maximumf %21, %22 : vector<16x640xf32>
    %24 = arith.truncf %23 : vector<16x640xf32> to vector<16x640xbf16>
    %c0_18 = arith.constant 0 : index
    %c0_19 = arith.constant 0 : index
    %25 = vector.load %arg5[%c0_18, %c0_19] : memref<640x384xbf16, #tpu.memory_space<vmem>>, vector<640x384xbf16>
    %cst_20 = arith.constant dense<0.000000e+00> : vector<16x384xf32>
    %26 = tpu.matmul %24, %25, %cst_20 {dimension_numbers = #tpu.dot_dimension_numbers<[1], [0], [0], [1], [0, 0, 1, 1], [], []>} : vector<16x640xbf16>, vector<640x384xbf16>, vector<16x384xf32> -> vector<16x384xf32>
    %c0_21 = arith.constant 0 : index
    %c0_22 = arith.constant 0 : index
    %27 = vector.load %arg9[%c0_21, %c0_22] : memref<1x384xf32, #tpu.memory_space<vmem>>, vector<1x384xf32>
    %28 = vector.broadcast %27 : vector<1x384xf32> to vector<16x384xf32>
    %29 = arith.addf %26, %28 : vector<16x384xf32>
    %cst_23 = arith.constant 0.000000e+00 : f32
    %30 = vector.broadcast %cst_23 : f32 to vector<16x384xf32>
    %31 = arith.maximumf %29, %30 : vector<16x384xf32>
    %c0_24 = arith.constant 0 : index
    %c0_25 = arith.constant 0 : index
    %32 = vector.load %arg10[%c0_24, %c0_25] : memref<16x384xf32, #tpu.memory_space<vmem>>, vector<16x384xf32>
    tpu.vector_store %arg10[%c0_24, %c0_25], %31 {strides = array<i32>} : memref<16x384xf32, #tpu.memory_space<vmem>>, vector<16x384xf32>,
    return
  }
  func.func @transform_0(%arg0: i32) -> (i32, i32) {
    %c0_i32 = arith.constant 0 : i32
    %c0_i32_0 = arith.constant 0 : i32
    return %arg0, %c0_i32 : i32, i32
  }
  func.func @transform_1(%arg0: i32) -> (i32, i32) {
    %c0_i32 = arith.constant 0 : i32
    %c0_i32_0 = arith.constant 0 : i32
    %c0_i32_1 = arith.constant 0 : i32
    return %c0_i32, %c0_i32_0 : i32, i32
  }
  func.func @transform_2(%arg0: i32) -> (i32, i32) {
    %c0_i32 = arith.constant 0 : i32
    %c0_i32_0 = arith.constant 0 : i32
    %c0_i32_1 = arith.constant 0 : i32
    return %c0_i32, %c0_i32_0 : i32, i32
  }
  func.func @transform_3(%arg0: i32) -> (i32, i32) {
    %c0_i32 = arith.constant 0 : i32
    %c0_i32_0 = arith.constant 0 : i32
    %c0_i32_1 = arith.constant 0 : i32
    return %c0_i32, %c0_i32_0 : i32, i32
  }
  func.func @transform_4(%arg0: i32) -> (i32, i32) {
    %c0_i32 = arith.constant 0 : i32
    %c0_i32_0 = arith.constant 0 : i32
    %c0_i32_1 = arith.constant 0 : i32
    return %c0_i32, %c0_i32_0 : i32, i32
  }
  func.func @transform_5(%arg0: i32) -> (i32, i32) {
    %c0_i32 = arith.constant 0 : i32
    %c0_i32_0 = arith.constant 0 : i32
    %c0_i32_1 = arith.constant 0 : i32
    return %c0_i32, %c0_i32_0 : i32, i32
  }
  func.func @transform_6(%arg0: i32) -> (i32, i32) {
    %c0_i32 = arith.constant 0 : i32
    %c0_i32_0 = arith.constant 0 : i32
    %c0_i32_1 = arith.constant 0 : i32
    return %c0_i32, %c0_i32_0 : i32, i32
  }
  func.func @transform_7(%arg0: i32) -> (i32, i32) {
    %c0_i32 = arith.constant 0 : i32
    %c0_i32_0 = arith.constant 0 : i32
    %c0_i32_1 = arith.constant 0 : i32
    return %c0_i32, %c0_i32_0 : i32, i32
  }
  func.func @transform_8(%arg0: i32) -> (i32, i32) {
    %c0_i32 = arith.constant 0 : i32
    %c0_i32_0 = arith.constant 0 : i32
    %c0_i32_1 = arith.constant 0 : i32
    return %c0_i32, %c0_i32_0 : i32, i32
  }
  func.func @transform_9(%arg0: i32) -> (i32, i32) {
    %c0_i32 = arith.constant 0 : i32
    %c0_i32_0 = arith.constant 0 : i32
    return %arg0, %c0_i32 : i32, i32
  }
}

module attributes {stable_mosaic.version = 11 : i64} {
  func.func @_encoder_kernel(%arg0: i32, %arg1: memref<16x768xbf16, #tpu.memory_space<vmem>>, %arg2: memref<768x640xbf16, #tpu.memory_space<vmem>>, %arg3: memref<640x640xbf16, #tpu.memory_space<vmem>>, %arg4: memref<640x640xbf16, #tpu.memory_space<vmem>>, %arg5: memref<640x384xbf16, #tpu.memory_space<vmem>>, %arg6: memref<1x640xf32, #tpu.memory_space<vmem>>, %arg7: memref<1x640xf32, #tpu.memory_space<vmem>>, %arg8: memref<1x640xf32, #tpu.memory_space<vmem>>, %arg9: memref<1x384xf32, #tpu.memory_space<vmem>>, %arg10: memref<16x384xf32, #tpu.memory_space<vmem>>) attributes {dimension_semantics = [#tpu.dimension_semantics<parallel>], iteration_bounds = array<i64: 1>, scalar_prefetch = 0 : i64, scratch_operands = 0 : i64, tpu.core_type = #tpu.core_type<tc>, window_params = [{transform_indices = @transform_0, window_bounds = array<i64: 16, 768>}, {pipeline_mode = #tpu.pipeline_mode<synchronous>, transform_indices = @transform_1, window_bounds = array<i64: 768, 640>}, {pipeline_mode = #tpu.pipeline_mode<synchronous>, transform_indices = @transform_2, window_bounds = array<i64: 640, 640>}, {pipeline_mode = #tpu.pipeline_mode<synchronous>, transform_indices = @transform_3, window_bounds = array<i64: 640, 640>}, {pipeline_mode = #tpu.pipeline_mode<synchronous>, transform_indices = @transform_4, window_bounds = array<i64: 640, 384>}, {pipeline_mode = #tpu.pipeline_mode<synchronous>, transform_indices = @transform_5, window_bounds = array<i64: 1, 640>}, {pipeline_mode = #tpu.pipeline_mode<synchronous>, transform_indices = @transform_6, window_bounds = array<i64: 1, 640>}, {pipeline_mode = #tpu.pipeline_mode<synchronous>, transform_indices = @transform_7, window_bounds = array<i64: 1, 640>}, {pipeline_mode = #tpu.pipeline_mode<synchronous>, transform_indices = @transform_8, window_bounds = array<i64: 1, 384>}, {transform_indices = @transform_9, window_bounds = array<i64: 16, 384>}]} {
    %c0 = arith.constant 0 : index
    %c0_0 = arith.constant 0 : index
    %0 = vector.load %arg1[%c0, %c0_0] : memref<16x768xbf16, #tpu.memory_space<vmem>>, vector<16x768xbf16>
    %c0_1 = arith.constant 0 : index
    %c0_2 = arith.constant 0 : index
    %1 = vector.load %arg2[%c0_1, %c0_2] : memref<768x640xbf16, #tpu.memory_space<vmem>>, vector<768x640xbf16>
    %cst = arith.constant dense<0.000000e+00> : vector<16x640xf32>
    %2 = tpu.matmul %0, %1, %cst {dimension_numbers = #tpu.dot_dimension_numbers<[1], [0], [0], [1], [0, 0, 1, 1], [], []>} : vector<16x768xbf16>, vector<768x640xbf16>, vector<16x640xf32> -> vector<16x640xf32>
    %c0_3 = arith.constant 0 : index
    %c0_4 = arith.constant 0 : index
    %3 = vector.load %arg6[%c0_3, %c0_4] : memref<1x640xf32, #tpu.memory_space<vmem>>, vector<1x640xf32>
    %4 = vector.broadcast %3 : vector<1x640xf32> to vector<16x640xf32>
    %5 = arith.addf %2, %4 : vector<16x640xf32>
    %cst_5 = arith.constant 0.000000e+00 : f32
    %6 = vector.broadcast %cst_5 : f32 to vector<16x640xf32>
    %7 = arith.maximumf %5, %6 : vector<16x640xf32>
    %8 = arith.truncf %7 : vector<16x640xf32> to vector<16x640xbf16>
    %c0_6 = arith.constant 0 : index
    %c0_7 = arith.constant 0 : index
    %9 = vector.load %arg3[%c0_6, %c0_7] : memref<640x640xbf16, #tpu.memory_space<vmem>>, vector<640x640xbf16>
    %cst_8 = arith.constant dense<0.000000e+00> : vector<16x640xf32>
    %10 = tpu.matmul %8, %9, %cst_8 {dimension_numbers = #tpu.dot_dimension_numbers<[1], [0], [0], [1], [0, 0, 1, 1], [], []>} : vector<16x640xbf16>, vector<640x640xbf16>, vector<16x640xf32> -> vector<16x640xf32>
    %c0_9 = arith.constant 0 : index
    %c0_10 = arith.constant 0 : index
    %11 = vector.load %arg7[%c0_9, %c0_10] : memref<1x640xf32, #tpu.memory_space<vmem>>, vector<1x640xf32>
    %12 = vector.broadcast %11 : vector<1x640xf32> to vector<16x640xf32>
    %13 = arith.addf %10, %12 : vector<16x640xf32>
    %cst_11 = arith.constant 0.000000e+00 : f32
    %14 = vector.broadcast %cst_11 : f32 to vector<16x640xf32>
    %15 = arith.maximumf %13, %14 : vector<16x640xf32>
    %16 = arith.truncf %15 : vector<16x640xf32> to vector<16x640xbf16>
    %c0_12 = arith.constant 0 : index
    %c0_13 = arith.constant 0 : index
    %17 = vector.load %arg4[%c0_12, %c0_13] : memref<640x640xbf16, #tpu.memory_space<vmem>>, vector<640x640xbf16>
    %cst_14 = arith.constant dense<0.000000e+00> : vector<16x640xf32>
    %18 = tpu.matmul %16, %17, %cst_14 {dimension_numbers = #tpu.dot_dimension_numbers<[1], [0], [0], [1], [0, 0, 1, 1], [], []>} : vector<16x640xbf16>, vector<640x640xbf16>, vector<16x640xf32> -> vector<16x640xf32>
    %c0_15 = arith.constant 0 : index
    %c0_16 = arith.constant 0 : index
    %19 = vector.load %arg8[%c0_15, %c0_16] : memref<1x640xf32, #tpu.memory_space<vmem>>, vector<1x640xf32>
    %20 = vector.broadcast %19 : vector<1x640xf32> to vector<16x640xf32>
    %21 = arith.addf %18, %20 : vector<16x640xf32>
    %cst_17 = arith.constant 0.000000e+00 : f32
    %22 = vector.broadcast %cst_17 : f32 to vector<16x640xf32>
    %23 = arith.maximumf %21, %22 : vector<16x640xf32>
    %24 = arith.truncf %23 : vector<16x640xf32> to vector<16x640xbf16>
    %c0_18 = arith.constant 0 : index
    %c0_19 = arith.constant 0 : index
    %25 = vector.load %arg5[%c0_18, %c0_19] : memref<640x384xbf16, #tpu.memory_space<vmem>>, vector<640x384xbf16>
    %cst_20 = arith.constant dense<0.000000e+00> : vector<16x384xf32>
    %26 = tpu.matmul %24, %25, %cst_20 {dimension_numbers = #tpu.dot_dimension_numbers<[1], [0], [0], [1], [0, 0, 1, 1], [], []>} : vector<16x640xbf16>, vector<640x384xbf16>, vector<16x384xf32> -> vector<16x384xf32>
    %c0_21 = arith.constant 0 : index
    %c0_22 = arith.constant 0 : index
    %27 = vector.load %arg9[%c0_21, %c0_22] : memref<1x384xf32, #tpu.memory_space<vmem>>, vector<1x384xf32>
    %28 = vector.broadcast %27 : vector<1x384xf32> to vector<16x384xf32>
    %29 = arith.addf %26, %28 : vector<16x384xf32>
    %cst_23 = arith.constant 0.000000e+00 : f32
    %30 = vector.broadcast %cst_23 : f32 to vector<16x384xf32>
    %31 = arith.maximumf %29, %30 : vector<16x384xf32>
    %c0_24 = arith.constant 0 : index
    %c0_25 = arith.constant 0 : index
    %32 = vector.load %arg10[%c0_24, %c0_25] : memref<16x384xf32, #tpu.memory_space<vmem>>, vector<16x384xf32>
    tpu.vector_store %arg10[%c0_24, %c0_25], %31 {strides = array<i32>} : memref<16x384xf32, #tpu.memory_space<vmem>>, vector<16x384xf32>,
    return
  }
  func.func @transform_0(%arg0: i32) -> (i32, i32) {
    %c0_i32 = arith.constant 0 : i32
    %c0_i32_0 = arith.constant 0 : i32
    return %arg0, %c0_i32 : i32, i32
  }
  func.func @transform_1(%arg0: i32) -> (i32, i32) {
    %c0_i32 = arith.constant 0 : i32
    %c0_i32_0 = arith.constant 0 : i32
    %c0_i32_1 = arith.constant 0 : i32
    return %c0_i32, %c0_i32_0 : i32, i32
  }
  func.func @transform_2(%arg0: i32) -> (i32, i32) {
    %c0_i32 = arith.constant 0 : i32
    %c0_i32_0 = arith.constant 0 : i32
    %c0_i32_1 = arith.constant 0 : i32
    return %c0_i32, %c0_i32_0 : i32, i32
  }
  func.func @transform_3(%arg0: i32) -> (i32, i32) {
    %c0_i32 = arith.constant 0 : i32
    %c0_i32_0 = arith.constant 0 : i32
    %c0_i32_1 = arith.constant 0 : i32
    return %c0_i32, %c0_i32_0 : i32, i32
  }
  func.func @transform_4(%arg0: i32) -> (i32, i32) {
    %c0_i32 = arith.constant 0 : i32
    %c0_i32_0 = arith.constant 0 : i32
    %c0_i32_1 = arith.constant 0 : i32
    return %c0_i32, %c0_i32_0 : i32, i32
  }
  func.func @transform_5(%arg0: i32) -> (i32, i32) {
    %c0_i32 = arith.constant 0 : i32
    %c0_i32_0 = arith.constant 0 : i32
    %c0_i32_1 = arith.constant 0 : i32
    return %c0_i32, %c0_i32_0 : i32, i32
  }
  func.func @transform_6(%arg0: i32) -> (i32, i32) {
    %c0_i32 = arith.constant 0 : i32
    %c0_i32_0 = arith.constant 0 : i32
    %c0_i32_1 = arith.constant 0 : i32
    return %c0_i32, %c0_i32_0 : i32, i32
  }
  func.func @transform_7(%arg0: i32) -> (i32, i32) {
    %c0_i32 = arith.constant 0 : i32
    %c0_i32_0 = arith.constant 0 : i32
    %c0_i32_1 = arith.constant 0 : i32
    return %c0_i32, %c0_i32_0 : i32, i32
  }
  func.func @transform_8(%arg0: i32) -> (i32, i32) {
    %c0_i32 = arith.constant 0 : i32
    %c0_i32_0 = arith.constant 0 : i32
    %c0_i32_1 = arith.constant 0 : i32
    return %c0_i32, %c0_i32_0 : i32, i32
  }
  func.func @transform_9(%arg0: i32) -> (i32, i32) {
    %c0_i32 = arith.constant 0 : i32
    %c0_i32_0 = arith.constant 0 : i32
    return %arg0, %c0_i32 : i32, i32
  }
}

</mosaic_0001>

<bundles_post_ra>
// kernel: tpu_custom_call.1
= control target key start
LH: loop header
LB: loop body
LE: loop exit
PB: predicated region body
PF: predicated region fallthrough
CT: control target
= control target key end

     0   :  { %14 = vsyncpa [#allocation3], 0  ;;  %s9292_s0 = inlined_call_operand.hbm [shape: bf16[16,768], index: 0, kind: input, shape index: {}]   ;;  %s9293_s1 = inlined_call_operand.hbm [shape: bf16[768,640], index: 1, kind: input, shape index: {}]   ;;  %s9294_s2 = inlined_call_operand.hbm [shape: bf16[640,640], index: 2, kind: input, shape index: {}]   ;;  %s9295_s3 = inlined_call_operand.hbm [shape: bf16[640,640], index: 3, kind: input, shape index: {}]   ;;  %s9296_s4 = inlined_call_operand.hbm [shape: bf16[640,384], index: 4, kind: input, shape index: {}]   ;;  %s9297_s5 = inlined_call_operand.vmem [shape: f32[1,640], index: 5, kind: input, shape index: {}]   ;;  %s9298_s6 = inlined_call_operand.vmem [shape: f32[1,640], index: 6, kind: input, shape index: {}]   ;;  %s9299_s7 = inlined_call_operand.vmem [shape: f32[1,640], index: 7, kind: input, shape index: {}]   ;;  %s9300_s8 = inlined_call_operand.vmem [shape: f32[1,384], index: 8, kind: input, shape index: {}]   ;;  %s9301_s9 = inlined_call_operand.hbm [shape: f32[16,384], index: 9, kind: output, shape index: {}]  }
   0x1   :  { %15 = vsyncpa [#allocation6], 0 }
   0x2   :  { %16 = vsyncpa [#allocation9], 0 }
   0x3   :  { %17 = vsyncpa [#allocation4], 0  ;;  %s8960_s30 = smov [#allocation5]   ;;  %s8820_s13 = scalar_lea.hbm %s9293_s1, 30720 }
   0x4   :  { %s35_s10 = sshll.u32 %s8960_s30, 4  ;;  %p8821_p0 = scmp.ne.s32.totalorder %s9293_s1, %s8820_s13  ;;  %s36_s10 = int_to_ptr.vmem [resolvable:$true] %s35_s10 }
   0x5   :  { %p8824_p1 = scmp.lt.u32.totalorder %s8820_s13, %s9293_s1 }
   0x7   :  { %p8826_p2 = pnand %p8824_p1, %p8821_p0 }
   0x9   :  { %8829 = shalt.err (!%p8826_p2)
}
   0xa   :  { %s8830_s18 = scalar_lea.vmem %s36_s10, 30720  ;;  %p8835_p4 = scmp.lt.s32.totalorder %s36_s10, %s36_s10 }
   0xb   :  { %p8831_p3 = scmp.ne.s32.totalorder %s36_s10, %s8830_s18  ;;  %p8836_p5 = scmp.lt.s32.totalorder %s8830_s18, %s8830_s18 }
   0xd   :  { %p8837_p6 = por %p8836_p5, %p8835_p4 }
   0xf   :  { %p8838_p7 = pnand %p8837_p6, %p8831_p3 }
  0x11   :  { %8841 = shalt.err (!%p8838_p7)
}
  0x12   :  { %s8961_s19 = smov 320   ;;  %s8962_s20 = smov 20  }
  0x13   :  { %41 = dma.hbm_to_vmem [thread:$0]  %s9293_s1, 30720, %s36_s10, [#allocation6], %s8961_s19, %s8961_s19, %s8962_s20  }
  0x14   :  { %s8963_s23 = smov [#allocation8]   ;;  %s8964_s25 = smov [#allocation2]  }
  0x15   :  { %s59_s24 = sshll.u32 %s8963_s23, 4  ;;  %s23_s26 = sshll.u32 %s8964_s25, 4  ;;  %s60_s24 = int_to_ptr.vmem [resolvable:$true] %s59_s24  ;;  %s24_s26 = int_to_ptr.vmem [resolvable:$true] %s23_s26 }
  0x16   :  { %s8842_s29 = scalar_lea.hbm %s9295_s3, 25600 }
  0x17   :  { %p8843_p8 = scmp.ne.s32.totalorder %s9295_s3, %s8842_s29  ;;  %p8846_p9 = scmp.lt.u32.totalorder %s8842_s29, %s9295_s3 }
  0x19   :  { %p8848_p10 = pnand %p8846_p9, %p8843_p8 }
  0x1b   :  { %8851 = shalt.err (!%p8848_p10)
}
  0x1c   :  { %s8852_s1 = scalar_lea.vmem %s60_s24, 25600  ;;  %p8857_p12 = scmp.lt.s32.totalorder %s60_s24, %s60_s24 }
  0x1d   :  { %p8853_p11 = scmp.ne.s32.totalorder %s60_s24, %s8852_s1  ;;  %p8858_p13 = scmp.lt.s32.totalorder %s8852_s1, %s8852_s1 }
  0x1f   :  { %p8859_p0 = por %p8858_p13, %p8857_p12 }
  0x21   :  { %p8860_p1 = pnand %p8859_p0, %p8853_p11 }
  0x23   :  { %8863 = shalt.err (!%p8860_p1)
}
  0x24   :  { %65 = dma.hbm_to_vmem [thread:$0]  %s9295_s3, 25600, %s60_s24, [#allocation9], %s8961_s19, %s8961_s19, %s8962_s20  }
  0x25   :  { %s8864_s17 = scalar_lea.hbm %s9292_s0, 768 }
  0x26   :  { %p8865_p2 = scmp.ne.s32.totalorder %s9292_s0, %s8864_s17  ;;  %p8868_p3 = scmp.lt.u32.totalorder %s8864_s17, %s9292_s0 }
  0x28   :  { %p8870_p4 = pnand %p8868_p3, %p8865_p2 }
  0x2a   :  { %8873 = shalt.err (!%p8870_p4)
}
  0x2b   :  { %s8874_s25 = scalar_lea.vmem %s24_s26, 768  ;;  %p8879_p6 = scmp.lt.s32.totalorder %s24_s26, %s24_s26 }
  0x2c   :  { %p8875_p5 = scmp.ne.s32.totalorder %s24_s26, %s8874_s25  ;;  %p8880_p7 = scmp.lt.s32.totalorder %s8874_s25, %s8874_s25 }
  0x2e   :  { %p8881_p8 = por %p8880_p7, %p8879_p6 }
  0x30   :  { %p8882_p9 = pnand %p8881_p8, %p8875_p5 }
  0x32   :  { %8885 = shalt.err (!%p8882_p9)
}
  0x33   :  { %s8965_s3 = smov 384   ;;  %s8966_s24 = smov 24  }
  0x34   :  { %29 = dma.hbm_to_vmem [thread:$0]  %s9292_s0, 768, %s24_s26, [#allocation3], %s8965_s3, %s8965_s3, %s8966_s24  }
  0x35   :  { %s8967_s29 = smov [#allocation7]   ;;  %s8968_s11 = smov [#allocation10]  }
  0x36   :  { %s47_s30 = sshll.u32 %s8967_s29, 4  ;;  %s71_s12 = sshll.u32 %s8968_s11, 4  ;;  %s48_s30 = int_to_ptr.vmem [resolvable:$true] %s47_s30  ;;  %s72_s12 = int_to_ptr.vmem [resolvable:$true] %s71_s12 }
  0x37   :  { %s8886_s10 = scalar_lea.hbm %s9294_s2, 25600 }
  0x38   :  { %p8887_p10 = scmp.ne.s32.totalorder %s9294_s2, %s8886_s10  ;;  %p8890_p11 = scmp.lt.u32.totalorder %s8886_s10, %s9294_s2 }
  0x3a   :  { %p8892_p12 = pnand %p8890_p11, %p8887_p10 }
  0x3c   :  { %8895 = shalt.err (!%p8892_p12)
}
  0x3d   :  { %s8896_s0 = scalar_lea.vmem %s48_s30, 25600  ;;  %p8901_p0 = scmp.lt.s32.totalorder %s48_s30, %s48_s30 }
  0x3e   :  { %p8897_p13 = scmp.ne.s32.totalorder %s48_s30, %s8896_s0  ;;  %p8902_p1 = scmp.lt.s32.totalorder %s8896_s0, %s8896_s0 }
  0x40   :  { %p8903_p2 = por %p8902_p1, %p8901_p0 }
  0x42   :  { %p8904_p3 = pnand %p8903_p2, %p8897_p13 }
  0x44   :  { %8907 = shalt.err (!%p8904_p3)
}
  0x45   :  { %53 = dma.hbm_to_vmem [thread:$0]  %s9294_s2, 25600, %s48_s30, [#allocation6], %s8961_s19, %s8961_s19, %s8962_s20  }
  0x46   :  { %s8908_s23 = scalar_lea.hbm %s9296_s4, 15360 }
  0x47   :  { %p8909_p4 = scmp.ne.s32.totalorder %s9296_s4, %s8908_s23  ;;  %p8912_p5 = scmp.lt.u32.totalorder %s8908_s23, %s9296_s4 }
  0x49   :  { %p8914_p6 = pnand %p8912_p5, %p8909_p4 }
  0x4b   :  { %8917 = shalt.err (!%p8914_p6)
}
  0x4c   :  { %s8918_s11 = scalar_lea.vmem %s72_s12, 15360  ;;  %p8923_p8 = scmp.lt.s32.totalorder %s72_s12, %s72_s12 }
  0x4d   :  { %p8919_p7 = scmp.ne.s32.totalorder %s72_s12, %s8918_s11  ;;  %p8924_p9 = scmp.lt.s32.totalorder %s8918_s11, %s8918_s11 }
  0x4f   :  { %p8925_p10 = por %p8924_p9, %p8923_p8 }
  0x51   :  { %p8926_p11 = pnand %p8925_p10, %p8919_p7 }
  0x53   :  { %8929 = shalt.err (!%p8926_p11)
}
  0x54   :  { %s8969_s2 = smov 192   ;;  %s8970_s19 = smov 12  }
  0x55   :  { %77 = dma.hbm_to_vmem [thread:$0]  %s9296_s4, 15360, %s72_s12, [#allocation9], %s8969_s2, %s8969_s2, %s8970_s19  }
  0x56   :  { %8952 = dma.done.wait [#allocation3], 768  }
  0x57   :  { %8953 = vsyncadd [#allocation3], 4294966528 }
  0x58   :  { %8954 = dma.done.wait [#allocation6], 56320  }
  0x59   :  { %8955 = vsyncadd [#allocation6], 4294910976 }
  0x5a   :  { %8956 = dma.done.wait [#allocation9], 40960  }
  0x5b   :  { %8957 = vsyncadd [#allocation9], 4294926336  ;;  %v7753_v0 = vld [vmem:[#allocation5 + $0x4] ss:$20 sps:$4 sm:$0xff]   ;;  %v7755_v1 = vld [vmem:[#allocation5 + $0xc] ss:$20 sps:$4 sm:$0xff]  }
  0x5c   :  { %1701 = vmatprep.subr.bf16.mxu0 %v7753_v0  ;;  %v7757_v2 = vld [vmem:[#allocation5] ss:$20 sps:$4 sm:$0xff]   ;;  %v7758_v3 = vld [vmem:[#allocation5 + $0x8] ss:$20 sps:$4 sm:$0xff]   ;;  %1830 = vmatprep.subr.bf16.mxu1 %v7755_v1  ;;  %v7764_v7 = vld [vmem:[#allocation5 + $0x30] ss:$20 sps:$4 sm:$0xff]  }
  0x5d   :  { %v7759_v4 = vld [vmem:[#allocation5 + $0x2c] ss:$20 sps:$4 sm:$0xff]   ;;  %1702 = vmatpush1.bf16.msra.mxu0 %v7757_v2  ;;  %1831 = vmatpush1.bf16.msra.mxu1 %v7758_v3  ;;  %v7761_v5 = vld [vmem:[#allocation5 + $0x34] ss:$20 sps:$4 sm:$0xff]   ;;  %v7767_v9 = vld [vmem:[#allocation5 + $0x5c] ss:$20 sps:$4 sm:$0xff]  }
  0x5e   :  { %v7763_v6 = vld [vmem:[#allocation5 + $0x28] ss:$20 sps:$4 sm:$0xff]   ;;  %1703 = vmatprep.subr.bf16.mxu0 %v7759_v4  ;;  %1832 = vmatprep.subr.bf16.mxu1 %v7761_v5  ;;  %v7769_v10 = vld [vmem:[#allocation5 + $0x50] ss:$20 sps:$4 sm:$0xff]   ;;  %v7770_v11 = vld [vmem:[#allocation5 + $0x58] ss:$20 sps:$4 sm:$0xff]  }
  0x5f   :  { %v7765_v8 = vld [vmem:[#allocation5 + $0x54] ss:$20 sps:$4 sm:$0xff]   ;;  %v7771_v12 = vld [vmem:[#allocation5 + $0x7c] ss:$20 sps:$4 sm:$0xff]   ;;  %v7773_v13 = vld [vmem:[#allocation5 + $0x84] ss:$20 sps:$4 sm:$0xff]  }
  0x60   :  { %v7775_v14 = vld [vmem:[#allocation5 + $0x78] ss:$20 sps:$4 sm:$0xff]   ;;  %v7776_v15 = vld [vmem:[#allocation5 + $0x80] ss:$20 sps:$4 sm:$0xff]   ;;  %v7782_v19 = vld [vmem:[#allocation5 + $0xa8] ss:$20 sps:$4 sm:$0xff]  }
  0x61   :  { %1704 = vmatpush1.bf16.msra.mxu0 %v7763_v6  ;;  %1833 = vmatpush1.bf16.msra.mxu1 %v7764_v7  ;;  %v7777_v16 = vld [vmem:[#allocation5 + $0xa4] ss:$20 sps:$4 sm:$0xff]   ;;  %v7779_v17 = vld [vmem:[#allocation5 + $0xac] ss:$20 sps:$4 sm:$0xff]   ;;  %v7785_v21 = vld [vmem:[#allocation5 + $0xd4] ss:$20 sps:$4 sm:$0xff]  }
  0x62   :  { %1705 = vmatprep.subr.bf16.mxu0 %v7765_v8  ;;  %1834 = vmatprep.subr.bf16.mxu1 %v7767_v9  ;;  %v7781_v18 = vld [vmem:[#allocation5 + $0xa0] ss:$20 sps:$4 sm:$0xff]   ;;  %v7787_v22 = vld [vmem:[#allocation5 + $0xc8] ss:$20 sps:$4 sm:$0xff]   ;;  %v7788_v23 = vld [vmem:[#allocation5 + $0xd0] ss:$20 sps:$4 sm:$0xff]  }
  0x63   :  { %v7783_v20 = vld [vmem:[#allocation5 + $0xcc] ss:$20 sps:$4 sm:$0xff]   ;;  %v7789_v24 = vld [vmem:[#allocation5 + $0xf4] ss:$20 sps:$4 sm:$0xff]   ;;  %v7791_v25 = vld [vmem:[#allocation5 + $0xfc] ss:$20 sps:$4 sm:$0xff]  }
  0x64   :  { %v7793_v26 = vld [vmem:[#allocation5 + $0xf0] ss:$20 sps:$4 sm:$0xff]   ;;  %v7794_v27 = vld [vmem:[#allocation5 + $0xf8] ss:$20 sps:$4 sm:$0xff]   ;;  %v7800_v31 = vld [vmem:[#allocation5 + $0x120] ss:$20 sps:$4 sm:$0xff]  }
  0x65   :  { %1706 = vmatpush1.bf16.msra.mxu0 %v7769_v10  ;;  %1835 = vmatpush1.bf16.msra.mxu1 %v7770_v11  ;;  %v7795_v28 = vld [vmem:[#allocation5 + $0x11c] ss:$20 sps:$4 sm:$0xff]   ;;  %v7797_v29 = vld [vmem:[#allocation5 + $0x124] ss:$20 sps:$4 sm:$0xff]   ;;  %v7803_v33 = vld [vmem:[#allocation5 + $0x14c] ss:$20 sps:$4 sm:$0xff]  }
  0x66   :  { %1707 = vmatprep.subr.bf16.mxu0 %v7771_v12  ;;  %1836 = vmatprep.subr.bf16.mxu1 %v7773_v13  ;;  %v7799_v30 = vld [vmem:[#allocation5 + $0x118] ss:$20 sps:$4 sm:$0xff]   ;;  %v7805_v34 = vld [vmem:[#allocation5 + $0x140] ss:$20 sps:$4 sm:$0xff]   ;;  %v7806_v35 = vld [vmem:[#allocation5 + $0x148] ss:$20 sps:$4 sm:$0xff]  }
  0x67   :  { %v7801_v32 = vld [vmem:[#allocation5 + $0x144] ss:$20 sps:$4 sm:$0xff]   ;;  %v7807_v36 = vld [vmem:[#allocation5 + $0x16c] ss:$20 sps:$4 sm:$0xff]   ;;  %v7809_v37 = vld [vmem:[#allocation5 + $0x174] ss:$20 sps:$4 sm:$0xff]  }
  0x68   :  { %v7811_v38 = vld [vmem:[#allocation5 + $0x168] ss:$20 sps:$4 sm:$0xff]   ;;  %v7812_v39 = vld [vmem:[#allocation5 + $0x170] ss:$20 sps:$4 sm:$0xff]   ;;  %v7818_v43 = vld [vmem:[#allocation5 + $0x198] ss:$20 sps:$4 sm:$0xff]  }
  0x69   :  { %1708 = vmatpush1.bf16.msra.mxu0 %v7775_v14  ;;  %1837 = vmatpush1.bf16.msra.mxu1 %v7776_v15  ;;  %v7813_v40 = vld [vmem:[#allocation5 + $0x194] ss:$20 sps:$4 sm:$0xff]   ;;  %v7815_v41 = vld [vmem:[#allocation5 + $0x19c] ss:$20 sps:$4 sm:$0xff]   ;;  %v7821_v45 = vld [vmem:[#allocation5 + $0x1c4] ss:$20 sps:$4 sm:$0xff]  }
  0x6a   :  { %1709 = vmatprep.subr.bf16.mxu0 %v7777_v16  ;;  %1838 = vmatprep.subr.bf16.mxu1 %v7779_v17  ;;  %v7817_v42 = vld [vmem:[#allocation5 + $0x190] ss:$20 sps:$4 sm:$0xff]   ;;  %v7823_v46 = vld [vmem:[#allocation5 + $0x1b8] ss:$20 sps:$4 sm:$0xff]   ;;  %v7824_v48 = vld [vmem:[#allocation5 + $0x1c0] ss:$20 sps:$4 sm:$0xff]  }
  0x6b   :  { %v7819_v44 = vld [vmem:[#allocation5 + $0x1bc] ss:$20 sps:$4 sm:$0xff]   ;;  %v7849_v47 = vld [vmem:[#allocation2 + $0x4] ss:$24 sps:$4 sm:$0xff]   ;;  %v7825_v49 = vld [vmem:[#allocation5 + $0x1e4] ss:$20 sps:$4 sm:$0xff]  }
  0x6c   :  { %v7827_v50 = vld [vmem:[#allocation5 + $0x1ec] ss:$20 sps:$4 sm:$0xff]   ;;  %1733 = vmatprep.mubr.bf16.mxu0 %v7849_v47  ;;  %1862 = vmatprep.mubr.bf16.mxu1 %v7849_v47  ;;  %v7830_v52 = vld [vmem:[#allocation5 + $0x1e8] ss:$20 sps:$4 sm:$0xff]   ;;  %v7836_v56 = vld [vmem:[#allocation5 + $0x210] ss:$20 sps:$4 sm:$0xff]  }
  0x6d   :  { %1710 = vmatpush1.bf16.msra.mxu0 %v7781_v18  ;;  %1839 = vmatpush1.bf16.msra.mxu1 %v7782_v19  ;;  %v7829_v51 = vld [vmem:[#allocation5 + $0x1e0] ss:$20 sps:$4 sm:$0xff]   ;;  %v7835_v55 = vld [vmem:[#allocation5 + $0x208] ss:$20 sps:$4 sm:$0xff]   ;;  %v7841_v59 = vld [vmem:[#allocation5 + $0x230] ss:$20 sps:$4 sm:$0xff]  }
  0x6e   :  { %1711 = vmatprep.subr.bf16.mxu0 %v7783_v20  ;;  %1840 = vmatprep.subr.bf16.mxu1 %v7785_v21  ;;  %v7831_v53 = vld [vmem:[#allocation5 + $0x20c] ss:$20 sps:$4 sm:$0xff]   ;;  %v7833_v54 = vld [vmem:[#allocation5 + $0x214] ss:$20 sps:$4 sm:$0xff]   ;;  %v7839_v58 = vld [vmem:[#allocation5 + $0x23c] ss:$20 sps:$4 sm:$0xff]  }
  0x6f   :  { %v7837_v57 = vld [vmem:[#allocation5 + $0x234] ss:$20 sps:$4 sm:$0xff]   ;;  %v7842_v60 = vld [vmem:[#allocation5 + $0x238] ss:$20 sps:$4 sm:$0xff]   ;;  %v7843_v61 = vld [vmem:[#allocation5 + $0x25c] ss:$20 sps:$4 sm:$0xff]  }
  0x70   :  { %v7845_v62 = vld [vmem:[#allocation5 + $0x264] ss:$20 sps:$4 sm:$0xff]   ;;  %v7848_v0 = vld [vmem:[#allocation5 + $0x260] ss:$20 sps:$4 sm:$0xff]   ;;  %v7854_v4 = vld [vmem:[#allocation5 + $0x288] ss:$20 sps:$4 sm:$0xff]  }
  0x71   :  { %1712 = vmatpush1.bf16.msra.mxu0 %v7787_v22  ;;  %1841 = vmatpush1.bf16.msra.mxu1 %v7788_v23  ;;  %v7847_v63 = vld [vmem:[#allocation5 + $0x258] ss:$20 sps:$4 sm:$0xff]   ;;  %v7851_v3 = vld [vmem:[#allocation5 + $0x280] ss:$20 sps:$4 sm:$0xff]   ;;  %v7857_v5 = vld [vmem:[#allocation2] ss:$24 sps:$4 sm:$0xff]  }
  0x72   :  { %1713 = vmatprep.subr.bf16.mxu0 %v7789_v24  ;;  %1842 = vmatprep.subr.bf16.mxu1 %v7791_v25  ;;  %v7853_v1 = vld [vmem:[#allocation5 + $0x284] ss:$20 sps:$4 sm:$0xff]   ;;  %v7856_v2 = vld [vmem:[#allocation5 + $0x28c] ss:$20 sps:$4 sm:$0xff]   ;;  %v7863_v7 = vld [vmem:[#allocation5 + $0x2b4] ss:$20 sps:$4 sm:$0xff]  }
  0x73   :  { %v7860_v6 = vld [vmem:[#allocation5 + $0x2ac] ss:$20 sps:$4 sm:$0xff]   ;;  %v7858_v8 = vld [vmem:[#allocation5 + $0x2a8] ss:$20 sps:$4 sm:$0xff]   ;;  %v7861_v9 = vld [vmem:[#allocation5 + $0x2b0] ss:$20 sps:$4 sm:$0xff]  }
  0x74   :  { %v7866_v10 = vld [vmem:[#allocation5 + $0x2d4] ss:$20 sps:$4 sm:$0xff]   ;;  %v7869_v11 = vld [vmem:[#allocation5 + $0x2dc] ss:$20 sps:$4 sm:$0xff]   ;;  %v7867_v13 = vld [vmem:[#allocation5 + $0x2d8] ss:$20 sps:$4 sm:$0xff]  }
  0x75   :  { %1714 = vmatpush1.bf16.msra.mxu0 %v7793_v26  ;;  %1843 = vmatpush1.bf16.msra.mxu1 %v7794_v27  ;;  %v7864_v12 = vld [vmem:[#allocation5 + $0x2d0] ss:$20 sps:$4 sm:$0xff]   ;;  %v7870_v16 = vld [vmem:[#allocation5 + $0x2f8] ss:$20 sps:$4 sm:$0xff]   ;;  %v7873_v17 = vld [vmem:[#allocation5 + $0x300] ss:$20 sps:$4 sm:$0xff]  }
  0x76   :  { %1715 = vmatprep.subr.bf16.mxu0 %v7795_v28  ;;  %1844 = vmatprep.subr.bf16.mxu1 %v7797_v29  ;;  %v7872_v14 = vld [vmem:[#allocation5 + $0x2fc] ss:$20 sps:$4 sm:$0xff]   ;;  %v7875_v15 = vld [vmem:[#allocation5 + $0x304] ss:$20 sps:$4 sm:$0xff]   ;;  %v7881_v19 = vld [vmem:[#allocation5 + $0x32c] ss:$20 sps:$4 sm:$0xff]  }
  0x77   :  { %v7878_v18 = vld [vmem:[#allocation5 + $0x324] ss:$20 sps:$4 sm:$0xff]   ;;  %v7876_v20 = vld [vmem:[#allocation5 + $0x320] ss:$20 sps:$4 sm:$0xff]   ;;  %v7879_v21 = vld [vmem:[#allocation5 + $0x328] ss:$20 sps:$4 sm:$0xff]  }
  0x78   :  { %v7884_v22 = vld [vmem:[#allocation5 + $0x34c] ss:$20 sps:$4 sm:$0xff]   ;;  %v7887_v23 = vld [vmem:[#allocation5 + $0x354] ss:$20 sps:$4 sm:$0xff]   ;;  %v7885_v25 = vld [vmem:[#allocation5 + $0x350] ss:$20 sps:$4 sm:$0xff]  }
  0x79   :  { %1716 = vmatpush1.bf16.msra.mxu0 %v7799_v30  ;;  %1845 = vmatpush1.bf16.msra.mxu1 %v7800_v31  ;;  %v7882_v24 = vld [vmem:[#allocation5 + $0x348] ss:$20 sps:$4 sm:$0xff]   ;;  %v7888_v28 = vld [vmem:[#allocation5 + $0x370] ss:$20 sps:$4 sm:$0xff]   ;;  %v7891_v29 = vld [vmem:[#allocation5 + $0x378] ss:$20 sps:$4 sm:$0xff]  }
  0x7a   :  { %1717 = vmatprep.subr.bf16.mxu0 %v7801_v32  ;;  %1846 = vmatprep.subr.bf16.mxu1 %v7803_v33  ;;  %v7890_v26 = vld [vmem:[#allocation5 + $0x374] ss:$20 sps:$4 sm:$0xff]   ;;  %v7893_v27 = vld [vmem:[#allocation5 + $0x37c] ss:$20 sps:$4 sm:$0xff]   ;;  %v7899_v32 = vld [vmem:[#allocation5 + $0x3a4] ss:$20 sps:$4 sm:$0xff]  }
  0x7b   :  { %v9097_v30 = vld [vmem:[#allocation2 + $0xc] ss:$24 sps:$4 sm:$0xff]   ;;  %v7894_v33 = vld [vmem:[#allocation5 + $0x398] ss:$20 sps:$4 sm:$0xff]   ;;  %vm8973_vm0 = vmmov 0  }
  0x7c   :  { %v7896_v31 = vld [vmem:[#allocation5 + $0x39c] ss:$20 sps:$4 sm:$0xff]  }
  0x7d   :  { %1718 = vmatpush1.bf16.msra.mxu0 %v7805_v34  ;;  %1847 = vmatpush1.bf16.msra.mxu1 %v7806_v35  ;;  %v7897_v34 = vld [vmem:[#allocation5 + $0x3a0] ss:$20 sps:$4 sm:$0xff]   ;;  %v7902_v35 = vld [vmem:[#allocation5 + $0x3c4] ss:$20 sps:$4 sm:$0xff]   ;;  %v7920_v47 = vld [vmem:[#allocation5 + $0x43c] ss:$20 sps:$4 sm:$0xff]  }
  0x7e   :  { %1719 = vmatprep.subr.bf16.mxu0 %v7807_v36  ;;  %1848 = vmatprep.subr.bf16.mxu1 %v7809_v37  ;;  %v7905_v36 = vld [vmem:[#allocation5 + $0x3cc] ss:$20 sps:$4 sm:$0xff]  }
  0x7f   :  { %v7900_v37 = vld [vmem:[#allocation5 + $0x3c0] ss:$20 sps:$4 sm:$0xff]  }
  0x81   :  { %1720 = vmatpush1.bf16.msra.mxu0 %v7811_v38  ;;  %1849 = vmatpush1.bf16.msra.mxu1 %v7812_v39  ;;  %v7903_v38 = vld [vmem:[#allocation5 + $0x3c8] ss:$20 sps:$4 sm:$0xff]   ;;  %v7908_v39 = vld [vmem:[#allocation5 + $0x3ec] ss:$20 sps:$4 sm:$0xff]  }
  0x82   :  { %1721 = vmatprep.subr.bf16.mxu0 %v7813_v40  ;;  %1850 = vmatprep.subr.bf16.mxu1 %v7815_v41  ;;  %v7911_v40 = vld [vmem:[#allocation5 + $0x3f4] ss:$20 sps:$4 sm:$0xff]  }
  0x83   :  { %v7906_v41 = vld [vmem:[#allocation5 + $0x3e8] ss:$20 sps:$4 sm:$0xff]  }
  0x85   :  { %1722 = vmatpush1.bf16.msra.mxu0 %v7817_v42  ;;  %1851 = vmatpush1.bf16.msra.mxu1 %v7818_v43  ;;  %v7909_v42 = vld [vmem:[#allocation5 + $0x3f0] ss:$20 sps:$4 sm:$0xff]   ;;  %v7914_v43 = vld [vmem:[#allocation5 + $0x414] ss:$20 sps:$4 sm:$0xff]  }
  0x86   :  { %1723 = vmatprep.subr.bf16.mxu0 %v7819_v44  ;;  %1852 = vmatprep.subr.bf16.mxu1 %v7821_v45  ;;  %v7917_v44 = vld [vmem:[#allocation5 + $0x41c] ss:$20 sps:$4 sm:$0xff]  }
  0x87   :  { %v7912_v45 = vld [vmem:[#allocation5 + $0x410] ss:$20 sps:$4 sm:$0xff]  }
  0x89   :  { %1724 = vmatpush1.bf16.msra.mxu0 %v7823_v46  ;;  %1853 = vmatpush1.bf16.msra.mxu1 %v7824_v48  ;;  %v7915_v46 = vld [vmem:[#allocation5 + $0x418] ss:$20 sps:$4 sm:$0xff]  }
  0x8a   :  { %1725 = vmatprep.subr.bf16.mxu0 %v7825_v49  ;;  %1854 = vmatprep.subr.bf16.mxu1 %v7827_v50  ;;  %v7923_v48 = vld [vmem:[#allocation5 + $0x444] ss:$20 sps:$4 sm:$0xff]   ;;  %v7921_v50 = vld [vmem:[#allocation5 + $0x440] ss:$20 sps:$4 sm:$0xff]  }
  0x8b   :  { %v7918_v49 = vld [vmem:[#allocation5 + $0x438] ss:$20 sps:$4 sm:$0xff]  }
  0x8d   :  { %1726 = vmatpush1.bf16.msra.mxu0 %v7829_v51  ;;  %1855 = vmatpush1.bf16.msra.mxu1 %v7830_v52  ;;  %v7926_v51 = vld [vmem:[#allocation5 + $0x464] ss:$20 sps:$4 sm:$0xff]   ;;  %v7929_v52 = vld [vmem:[#allocation5 + $0x46c] ss:$20 sps:$4 sm:$0xff]  }
  0x8e   :  { %1727 = vmatprep.subr.bf16.mxu0 %v7831_v53  ;;  %1856 = vmatprep.subr.bf16.mxu1 %v7833_v54  ;;  %v7924_v53 = vld [vmem:[#allocation5 + $0x460] ss:$20 sps:$4 sm:$0xff]   ;;  %v7927_v54 = vld [vmem:[#allocation5 + $0x468] ss:$20 sps:$4 sm:$0xff]  }
  0x91   :  { %1728 = vmatpush1.bf16.msra.mxu0 %v7835_v55  ;;  %1857 = vmatpush1.bf16.msra.mxu1 %v7836_v56  ;;  %v7932_v55 = vld [vmem:[#allocation5 + $0x48c] ss:$20 sps:$4 sm:$0xff]   ;;  %v7935_v56 = vld [vmem:[#allocation5 + $0x494] ss:$20 sps:$4 sm:$0xff]  }
  0x92   :  { %1729 = vmatprep.subr.bf16.mxu0 %v7837_v57  ;;  %1858 = vmatprep.subr.bf16.mxu1 %v7839_v58  ;;  %v7930_v57 = vld [vmem:[#allocation5 + $0x488] ss:$20 sps:$4 sm:$0xff]   ;;  %v7933_v58 = vld [vmem:[#allocation5 + $0x490] ss:$20 sps:$4 sm:$0xff]  }
  0x95   :  { %1730 = vmatpush1.bf16.msra.mxu0 %v7841_v59  ;;  %1859 = vmatpush1.bf16.msra.mxu1 %v7842_v60  ;;  %v7938_v59 = vld [vmem:[#allocation5 + $0x4b4] ss:$20 sps:$4 sm:$0xff]   ;;  %v7941_v60 = vld [vmem:[#allocation5 + $0x4bc] ss:$20 sps:$4 sm:$0xff]  }
  0x96   :  { %1731 = vmatprep.subr.bf16.mxu0 %v7843_v61  ;;  %1860 = vmatprep.subr.bf16.mxu1 %v7845_v62  ;;  %v7936_v61 = vld [vmem:[#allocation5 + $0x4b0] ss:$20 sps:$4 sm:$0xff]   ;;  %v7939_v62 = vld [vmem:[#allocation5 + $0x4b8] ss:$20 sps:$4 sm:$0xff]  }
  0x99   :  { %1732 = vmatpush1.bf16.msra.mxu0 %v7847_v63  ;;  %1861 = vmatpush1.bf16.msra.mxu1 %v7848_v0  ;;  %v7944_v63 = vld [vmem:[#allocation5 + $0x4dc] ss:$20 sps:$4 sm:$0xff]   ;;  %v7947_v0 = vld [vmem:[#allocation5 + $0x4e4] ss:$20 sps:$4 sm:$0xff]  }
  0x9a   :  { %1744 = vmatprep.subr.bf16.mxu0 %v7853_v1  ;;  %1873 = vmatprep.subr.bf16.mxu1 %v7856_v2  ;;  %v7942_v1 = vld [vmem:[#allocation5 + $0x4d8] ss:$20 sps:$4 sm:$0xff]   ;;  %v7945_v2 = vld [vmem:[#allocation5 + $0x4e0] ss:$20 sps:$4 sm:$0xff]  }
  0x9c   :  { %1734 = vmatmul.mubr.bf16.vlgmr.msra.gmra.mrb[0].mxu0 %v7857_v5  ;;  %1863 = vmatmul.mubr.bf16.vlgmr.msra.gmra.mrb[0].mxu1 %v7857_v5  ;;  %v9101_v5 = vld [vmem:[#allocation2 + $0x8] ss:$24 sps:$4 sm:$0xff]  }
  0x9d   :  { %1745 = vmatpush1.bf16.msra.mxu0 %v7851_v3  ;;  %1874 = vmatpush1.bf16.msra.mxu1 %v7854_v4  ;;  %v7953_v3 = vld [vmem:[#allocation5 + $0x504] ss:$20 sps:$4 sm:$0xff]   ;;  %v7956_v4 = vld [vmem:[#allocation5 + $0x50c] ss:$20 sps:$4 sm:$0xff]  }
  0x9e   :  { %1746 = vmatprep.subr.bf16.mxu0 %v7860_v6  ;;  %1875 = vmatprep.subr.bf16.mxu1 %v7863_v7  ;;  %v7951_v6 = vld [vmem:[#allocation5 + $0x500] ss:$20 sps:$4 sm:$0xff]   ;;  %v7954_v7 = vld [vmem:[#allocation5 + $0x508] ss:$20 sps:$4 sm:$0xff]  }
  0x9f   :  { %1776 = vmatprep.mubr.bf16.mxu0 %v9097_v30  ;;  %1905 = vmatprep.mubr.bf16.mxu1 %v9097_v30 }
  0xa1   :  { %1747 = vmatpush1.bf16.msra.mxu0 %v7858_v8  ;;  %1876 = vmatpush1.bf16.msra.mxu1 %v7861_v9  ;;  %v7959_v8 = vld [vmem:[#allocation5 + $0x52c] ss:$20 sps:$4 sm:$0xff]   ;;  %v7962_v9 = vld [vmem:[#allocation5 + $0x534] ss:$20 sps:$4 sm:$0xff]  }
  0xa2   :  { %1748 = vmatprep.subr.bf16.mxu0 %v7866_v10  ;;  %1877 = vmatprep.subr.bf16.mxu1 %v7869_v11  ;;  %v7957_v10 = vld [vmem:[#allocation5 + $0x528] ss:$20 sps:$4 sm:$0xff]   ;;  %v7960_v11 = vld [vmem:[#allocation5 + $0x530] ss:$20 sps:$4 sm:$0xff]  }
  0xa5   :  { %1749 = vmatpush1.bf16.msra.mxu0 %v7864_v12  ;;  %1878 = vmatpush1.bf16.msra.mxu1 %v7867_v13  ;;  %v9105_v12 = vld [vmem:[#allocation2 + $0x14] ss:$24 sps:$4 sm:$0xff]   ;;  %v7965_v13 = vld [vmem:[#allocation5 + $0x554] ss:$20 sps:$4 sm:$0xff]  }
  0xa6   :  { %1750 = vmatprep.subr.bf16.mxu0 %v7872_v14  ;;  %1879 = vmatprep.subr.bf16.mxu1 %v7875_v15  ;;  %v7968_v14 = vld [vmem:[#allocation5 + $0x55c] ss:$20 sps:$4 sm:$0xff]  }
  0xa7   :  { %v7963_v15 = vld [vmem:[#allocation5 + $0x550] ss:$20 sps:$4 sm:$0xff]  }
  0xa9   :  { %1751 = vmatpush1.bf16.msra.mxu0 %v7870_v16  ;;  %1880 = vmatpush1.bf16.msra.mxu1 %v7873_v17  ;;  %v7966_v16 = vld [vmem:[#allocation5 + $0x558] ss:$20 sps:$4 sm:$0xff]   ;;  %v7971_v17 = vld [vmem:[#allocation5 + $0x57c] ss:$20 sps:$4 sm:$0xff]  }
  0xaa   :  { %1752 = vmatprep.subr.bf16.mxu0 %v7878_v18  ;;  %1881 = vmatprep.subr.bf16.mxu1 %v7881_v19  ;;  %v7974_v18 = vld [vmem:[#allocation5 + $0x584] ss:$20 sps:$4 sm:$0xff]  }
  0xab   :  { %v7969_v19 = vld [vmem:[#allocation5 + $0x578] ss:$20 sps:$4 sm:$0xff]  }
  0xad   :  { %1753 = vmatpush1.bf16.msra.mxu0 %v7876_v20  ;;  %1882 = vmatpush1.bf16.msra.mxu1 %v7879_v21  ;;  %v7972_v20 = vld [vmem:[#allocation5 + $0x580] ss:$20 sps:$4 sm:$0xff]   ;;  %v7977_v21 = vld [vmem:[#allocation5 + $0x5a4] ss:$20 sps:$4 sm:$0xff]  }
  0xae   :  { %1754 = vmatprep.subr.bf16.mxu0 %v7884_v22  ;;  %1883 = vmatprep.subr.bf16.mxu1 %v7887_v23  ;;  %v7980_v22 = vld [vmem:[#allocation5 + $0x5ac] ss:$20 sps:$4 sm:$0xff]  }
  0xaf   :  { %v7975_v23 = vld [vmem:[#allocation5 + $0x5a0] ss:$20 sps:$4 sm:$0xff]  }
  0xb1   :  { %1755 = vmatpush1.bf16.msra.mxu0 %v7882_v24  ;;  %1884 = vmatpush1.bf16.msra.mxu1 %v7885_v25  ;;  %v7978_v24 = vld [vmem:[#allocation5 + $0x5a8] ss:$20 sps:$4 sm:$0xff]   ;;  %v7983_v25 = vld [vmem:[#allocation5 + $0x5cc] ss:$20 sps:$4 sm:$0xff]  }
  0xb2   :  { %1756 = vmatprep.subr.bf16.mxu0 %v7890_v26  ;;  %1885 = vmatprep.subr.bf16.mxu1 %v7893_v27  ;;  %v7986_v26 = vld [vmem:[#allocation5 + $0x5d4] ss:$20 sps:$4 sm:$0xff]  }
  0xb3   :  { %v7981_v27 = vld [vmem:[#allocation5 + $0x5c8] ss:$20 sps:$4 sm:$0xff]  }
  0xb5   :  { %1757 = vmatpush1.bf16.msra.mxu0 %v7888_v28  ;;  %1886 = vmatpush1.bf16.msra.mxu1 %v7891_v29  ;;  %v7984_v28 = vld [vmem:[#allocation5 + $0x5d0] ss:$20 sps:$4 sm:$0xff]   ;;  %v7989_v29 = vld [vmem:[#allocation5 + $0x5f4] ss:$20 sps:$4 sm:$0xff]  }
  0xb6   :  { %1758 = vmatprep.subr.bf16.mxu0 %v7896_v31  ;;  %1887 = vmatprep.subr.bf16.mxu1 %v7899_v32  ;;  %v7992_v31 = vld [vmem:[#allocation5 + $0x5fc] ss:$20 sps:$4 sm:$0xff]  }
  0xb7   :  { %v7987_v32 = vld [vmem:[#allocation5 + $0x5f0] ss:$20 sps:$4 sm:$0xff]  }
  0xb9   :  { %1759 = vmatpush1.bf16.msra.mxu0 %v7894_v33  ;;  %1888 = vmatpush1.bf16.msra.mxu1 %v7897_v34  ;;  %v7990_v33 = vld [vmem:[#allocation5 + $0x5f8] ss:$20 sps:$4 sm:$0xff]   ;;  %v7995_v34 = vld [vmem:[#allocation5 + $0x61c] ss:$20 sps:$4 sm:$0xff]  }
  0xba   :  { %1760 = vmatprep.subr.bf16.mxu0 %v7902_v35  ;;  %1889 = vmatprep.subr.bf16.mxu1 %v7905_v36  ;;  %v7998_v35 = vld [vmem:[#allocation5 + $0x624] ss:$20 sps:$4 sm:$0xff]  }
  0xbb   :  { %v7993_v36 = vld [vmem:[#allocation5 + $0x618] ss:$20 sps:$4 sm:$0xff]  }
  0xbd   :  { %1761 = vmatpush1.bf16.msra.mxu0 %v7900_v37  ;;  %1890 = vmatpush1.bf16.msra.mxu1 %v7903_v38  ;;  %v7996_v37 = vld [vmem:[#allocation5 + $0x620] ss:$20 sps:$4 sm:$0xff]   ;;  %v8001_v38 = vld [vmem:[#allocation5 + $0x644] ss:$20 sps:$4 sm:$0xff]  }
  0xbe   :  { %1762 = vmatprep.subr.bf16.mxu0 %v7908_v39  ;;  %1891 = vmatprep.subr.bf16.mxu1 %v7911_v40  ;;  %v8004_v39 = vld [vmem:[#allocation5 + $0x64c] ss:$20 sps:$4 sm:$0xff]  }
  0xbf   :  { %v7999_v40 = vld [vmem:[#allocation5 + $0x640] ss:$20 sps:$4 sm:$0xff]  }
  0xc1   :  { %1763 = vmatpush1.bf16.msra.mxu0 %v7906_v41  ;;  %1892 = vmatpush1.bf16.msra.mxu1 %v7909_v42  ;;  %v8002_v41 = vld [vmem:[#allocation5 + $0x648] ss:$20 sps:$4 sm:$0xff]   ;;  %v8007_v42 = vld [vmem:[#allocation5 + $0x66c] ss:$20 sps:$4 sm:$0xff]  }
  0xc2   :  { %1764 = vmatprep.subr.bf16.mxu0 %v7914_v43  ;;  %1893 = vmatprep.subr.bf16.mxu1 %v7917_v44  ;;  %v8010_v43 = vld [vmem:[#allocation5 + $0x674] ss:$20 sps:$4 sm:$0xff]  }
  0xc3   :  { %v8005_v44 = vld [vmem:[#allocation5 + $0x668] ss:$20 sps:$4 sm:$0xff]  }
  0xc5   :  { %1765 = vmatpush1.bf16.msra.mxu0 %v7912_v45  ;;  %1894 = vmatpush1.bf16.msra.mxu1 %v7915_v46  ;;  %v8008_v45 = vld [vmem:[#allocation5 + $0x670] ss:$20 sps:$4 sm:$0xff]   ;;  %v8013_v46 = vld [vmem:[#allocation5 + $0x694] ss:$20 sps:$4 sm:$0xff]  }
  0xc6   :  { %1766 = vmatprep.subr.bf16.mxu0 %v7920_v47  ;;  %1895 = vmatprep.subr.bf16.mxu1 %v7923_v48  ;;  %v8016_v47 = vld [vmem:[#allocation5 + $0x69c] ss:$20 sps:$4 sm:$0xff]  }
  0xc7   :  { %v8011_v48 = vld [vmem:[#allocation5 + $0x690] ss:$20 sps:$4 sm:$0xff]  }
  0xc9   :  { %1767 = vmatpush1.bf16.msra.mxu0 %v7918_v49  ;;  %1896 = vmatpush1.bf16.msra.mxu1 %v7921_v50  ;;  %v8014_v49 = vld [vmem:[#allocation5 + $0x698] ss:$20 sps:$4 sm:$0xff]   ;;  %v8019_v50 = vld [vmem:[#allocation5 + $0x6bc] ss:$20 sps:$4 sm:$0xff]  }
  0xca   :  { %1768 = vmatprep.subr.bf16.mxu0 %v7926_v51  ;;  %1897 = vmatprep.subr.bf16.mxu1 %v7929_v52  ;;  %v8022_v51 = vld [vmem:[#allocation5 + $0x6c4] ss:$20 sps:$4 sm:$0xff]  }
  0xcb   :  { %v8017_v52 = vld [vmem:[#allocation5 + $0x6b8] ss:$20 sps:$4 sm:$0xff]  }
  0xcd   :  { %1769 = vmatpush1.bf16.msra.mxu0 %v7924_v53  ;;  %1898 = vmatpush1.bf16.msra.mxu1 %v7927_v54  ;;  %v8020_v53 = vld [vmem:[#allocation5 + $0x6c0] ss:$20 sps:$4 sm:$0xff]   ;;  %v8025_v54 = vld [vmem:[#allocation5 + $0x6e4] ss:$20 sps:$4 sm:$0xff]  }
  0xce   :  { %1770 = vmatprep.subr.bf16.mxu0 %v7932_v55  ;;  %1899 = vmatprep.subr.bf16.mxu1 %v7935_v56  ;;  %v8028_v55 = vld [vmem:[#allocation5 + $0x6ec] ss:$20 sps:$4 sm:$0xff]  }
  0xcf   :  { %v8023_v56 = vld [vmem:[#allocation5 + $0x6e0] ss:$20 sps:$4 sm:$0xff]  }
  0xd1   :  { %1771 = vmatpush1.bf16.msra.mxu0 %v7930_v57  ;;  %1900 = vmatpush1.bf16.msra.mxu1 %v7933_v58  ;;  %v8026_v57 = vld [vmem:[#allocation5 + $0x6e8] ss:$20 sps:$4 sm:$0xff]   ;;  %v8031_v58 = vld [vmem:[#allocation5 + $0x70c] ss:$20 sps:$4 sm:$0xff]  }
  0xd2   :  { %1772 = vmatprep.subr.bf16.mxu0 %v7938_v59  ;;  %1901 = vmatprep.subr.bf16.mxu1 %v7941_v60  ;;  %v8034_v59 = vld [vmem:[#allocation5 + $0x714] ss:$20 sps:$4 sm:$0xff]  }
  0xd3   :  { %v8029_v60 = vld [vmem:[#allocation5 + $0x708] ss:$20 sps:$4 sm:$0xff]  }
  0xd5   :  { %1773 = vmatpush1.bf16.msra.mxu0 %v7936_v61  ;;  %1902 = vmatpush1.bf16.msra.mxu1 %v7939_v62  ;;  %v8032_v61 = vld [vmem:[#allocation5 + $0x710] ss:$20 sps:$4 sm:$0xff]   ;;  %v8037_v62 = vld [vmem:[#allocation5 + $0x734] ss:$20 sps:$4 sm:$0xff]  }
  0xd6   :  { %1774 = vmatprep.subr.bf16.mxu0 %v7944_v63  ;;  %1903 = vmatprep.subr.bf16.mxu1 %v7947_v0  ;;  %v8040_v63 = vld [vmem:[#allocation5 + $0x73c] ss:$20 sps:$4 sm:$0xff]  }
  0xd7   :  { %v8035_v0 = vld [vmem:[#allocation5 + $0x730] ss:$20 sps:$4 sm:$0xff]  }
  0xd9   :  { %1775 = vmatpush1.bf16.msra.mxu0 %v7942_v1  ;;  %1904 = vmatpush1.bf16.msra.mxu1 %v7945_v2  ;;  %v8038_v1 = vld [vmem:[#allocation5 + $0x738] ss:$20 sps:$4 sm:$0xff]   ;;  %v8043_v2 = vld [vmem:[#allocation5 + $0x75c] ss:$20 sps:$4 sm:$0xff]  }
  0xda   :  { %1787 = vmatprep.subr.bf16.mxu0 %v7953_v3  ;;  %1916 = vmatprep.subr.bf16.mxu1 %v7956_v4  ;;  %v8046_v3 = vld [vmem:[#allocation5 + $0x764] ss:$20 sps:$4 sm:$0xff]  }
  0xdb   :  { %v8041_v4 = vld [vmem:[#allocation5 + $0x758] ss:$20 sps:$4 sm:$0xff]  }
  0xdc   :  { %1777 = vmatmul.mubr.bf16.vlgmr.msra.gmra.mrb[0].mxu0 %v9101_v5  ;;  %1906 = vmatmul.mubr.bf16.vlgmr.msra.gmra.mrb[0].mxu1 %v9101_v5 }
  0xdd   :  { %1788 = vmatpush1.bf16.msra.mxu0 %v7951_v6  ;;  %1917 = vmatpush1.bf16.msra.mxu1 %v7954_v7  ;;  %v8044_v6 = vld [vmem:[#allocation5 + $0x760] ss:$20 sps:$4 sm:$0xff]   ;;  %v8050_v7 = vld [vmem:[#allocation5 + $0x150] ss:$20 sps:$4 sm:$0xff]  }
  0xde   :  { %1789 = vmatprep.subr.bf16.mxu0 %v7959_v8  ;;  %1918 = vmatprep.subr.bf16.mxu1 %v7962_v9  ;;  %v8066_v8 = vld [vmem:[#allocation5 + $0x3d0] ss:$20 sps:$4 sm:$0xff]   ;;  %v9109_v9 = vld [vmem:[#allocation2 + $0x10] ss:$24 sps:$4 sm:$0xff]  }
  0xdf   :  { %1819 = vmatprep.mubr.bf16.mxu0 %v9105_v12  ;;  %1948 = vmatprep.mubr.bf16.mxu1 %v9105_v12 }
  0xe1   :  { %1790 = vmatpush1.bf16.msra.mxu0 %v7957_v10  ;;  %1919 = vmatpush1.bf16.msra.mxu1 %v7960_v11  ;;  %v8051_v10 = vld [vmem:[#allocation5 + $0x10] ss:$20 sps:$4 sm:$0xff]  }
  0xe2   :  { %1791 = vmatprep.subr.bf16.mxu0 %v7965_v13  ;;  %1920 = vmatprep.subr.bf16.mxu1 %v7968_v14  ;;  %v8067_v11 = vld [vmem:[#allocation5 + $0x290] ss:$20 sps:$4 sm:$0xff]   ;;  %v8052_v13 = vld [vmem:[#allocation5 + $0x178] ss:$20 sps:$4 sm:$0xff]  }
  0xe3   :  { %v8070_v14 = vld [vmem:[#allocation5 + $0x3f8] ss:$20 sps:$4 sm:$0xff]  }
  0xe5   :  { %1792 = vmatpush1.bf16.msra.mxu0 %v7963_v15  ;;  %1921 = vmatpush1.bf16.msra.mxu1 %v7966_v16  ;;  %v8053_v15 = vld [vmem:[#allocation5 + $0x38] ss:$20 sps:$4 sm:$0xff]   ;;  %v8054_v16 = vld [vmem:[#allocation5 + $0x1a0] ss:$20 sps:$4 sm:$0xff]  }
  0xe6   :  { %1793 = vmatprep.subr.bf16.mxu0 %v7971_v17  ;;  %1922 = vmatprep.subr.bf16.mxu1 %v7974_v18  ;;  %v8071_v17 = vld [vmem:[#allocation5 + $0x2b8] ss:$20 sps:$4 sm:$0xff]  }
  0xe7   :  { %v8818_v18 = vld [vmem:[#allocation2 + $0x4] ss:$24 sps:$4 sm:$0xff]  }
  0xe9   :  { %1794 = vmatpush1.bf16.msra.mxu0 %v7969_v19  ;;  %1923 = vmatpush1.bf16.msra.mxu1 %v7972_v20  ;;  %v8074_v19 = vld [vmem:[#allocation5 + $0x420] ss:$20 sps:$4 sm:$0xff]  }
  0xea   :  { %1795 = vmatprep.subr.bf16.mxu0 %v7977_v21  ;;  %1924 = vmatprep.subr.bf16.mxu1 %v7980_v22  ;;  %v8055_v20 = vld [vmem:[#allocation5 + $0x60] ss:$20 sps:$4 sm:$0xff]   ;;  %v8056_v21 = vld [vmem:[#allocation5 + $0x1c8] ss:$20 sps:$4 sm:$0xff]  }
  0xeb   :  { %v8075_v22 = vld [vmem:[#allocation5 + $0x2e0] ss:$20 sps:$4 sm:$0xff]  }
  0xed   :  { %1796 = vmatpush1.bf16.msra.mxu0 %v7975_v23  ;;  %1925 = vmatpush1.bf16.msra.mxu1 %v7978_v24  ;;  %v8078_v23 = vld [vmem:[#allocation5 + $0x448] ss:$20 sps:$4 sm:$0xff]  }
  0xee   :  { %1797 = vmatprep.subr.bf16.mxu0 %v7983_v25  ;;  %1926 = vmatprep.subr.bf16.mxu1 %v7986_v26  ;;  %v8057_v24 = vld [vmem:[#allocation5 + $0x88] ss:$20 sps:$4 sm:$0xff]   ;;  %v8058_v25 = vld [vmem:[#allocation5 + $0x1f0] ss:$20 sps:$4 sm:$0xff]  }
  0xef   :  { %v8079_v26 = vld [vmem:[#allocation5 + $0x308] ss:$20 sps:$4 sm:$0xff]  }
  0xf1   :  { %1798 = vmatpush1.bf16.msra.mxu0 %v7981_v27  ;;  %1927 = vmatpush1.bf16.msra.mxu1 %v7984_v28  ;;  %v8082_v27 = vld [vmem:[#allocation5 + $0x470] ss:$20 sps:$4 sm:$0xff]  }
  0xf2   :  { %1799 = vmatprep.subr.bf16.mxu0 %v7989_v29  ;;  %1928 = vmatprep.subr.bf16.mxu1 %v7992_v31  ;;  %v8059_v28 = vld [vmem:[#allocation5 + $0xb0] ss:$20 sps:$4 sm:$0xff]   ;;  %v8060_v29 = vld [vmem:[#allocation5 + $0x218] ss:$20 sps:$4 sm:$0xff]  }
  0xf3   :  { %v8086_v31 = vld [vmem:[#allocation5 + $0x498] ss:$20 sps:$4 sm:$0xff]  }
  0xf5   :  { %1800 = vmatpush1.bf16.msra.mxu0 %v7987_v32  ;;  %1929 = vmatpush1.bf16.msra.mxu1 %v7990_v33  ;;  %v8061_v32 = vld [vmem:[#allocation5 + $0xd8] ss:$20 sps:$4 sm:$0xff]   ;;  %v8062_v33 = vld [vmem:[#allocation5 + $0x240] ss:$20 sps:$4 sm:$0xff]  }
  0xf6   :  { %1801 = vmatprep.subr.bf16.mxu0 %v7995_v34  ;;  %1930 = vmatprep.subr.bf16.mxu1 %v7998_v35  ;;  %v8087_v34 = vld [vmem:[#allocation5 + $0x358] ss:$20 sps:$4 sm:$0xff]   ;;  %v8090_v35 = vld [vmem:[#allocation5 + $0x4c0] ss:$20 sps:$4 sm:$0xff]  }
  0xf9   :  { %1802 = vmatpush1.bf16.msra.mxu0 %v7993_v36  ;;  %1931 = vmatpush1.bf16.msra.mxu1 %v7996_v37  ;;  %v8063_v36 = vld [vmem:[#allocation5 + $0x100] ss:$20 sps:$4 sm:$0xff]  }
  0xfa   :  { %1803 = vmatprep.subr.bf16.mxu0 %v8001_v38  ;;  %1932 = vmatprep.subr.bf16.mxu1 %v8004_v39  ;;  %v8091_v37 = vld [vmem:[#allocation5 + $0x380] ss:$20 sps:$4 sm:$0xff]   ;;  %v8064_v38 = vld [vmem:[#allocation5 + $0x268] ss:$20 sps:$4 sm:$0xff]  }
  0xfb   :  { %v8094_v39 = vld [vmem:[#allocation5 + $0x4e8] ss:$20 sps:$4 sm:$0xff]  }
  0xfd   :  { %1804 = vmatpush1.bf16.msra.mxu0 %v7999_v40  ;;  %1933 = vmatpush1.bf16.msra.mxu1 %v8002_v41  ;;  %v8065_v40 = vld [vmem:[#allocation5 + $0x128] ss:$20 sps:$4 sm:$0xff]  }
  0xfe   :  { %1805 = vmatprep.subr.bf16.mxu0 %v8007_v42  ;;  %1934 = vmatprep.subr.bf16.mxu1 %v8010_v43  ;;  %v8095_v41 = vld [vmem:[#allocation5 + $0x3a8] ss:$20 sps:$4 sm:$0xff]   ;;  %v8068_v42 = vld [vmem:[#allocation5 + $0x650] ss:$20 sps:$4 sm:$0xff]  }
  0xff   :  { %v8100_v43 = vld [vmem:[#allocation7 + $0x4] ss:$20 sps:$4 sm:$0xff]  }
 0x101   :  { %1806 = vmatpush1.bf16.msra.mxu0 %v8005_v44  ;;  %1935 = vmatpush1.bf16.msra.mxu1 %v8008_v45  ;;  %v8069_v44 = vld [vmem:[#allocation5 + $0x510] ss:$20 sps:$4 sm:$0xff]   ;;  %v8072_v45 = vld [vmem:[#allocation5 + $0x678] ss:$20 sps:$4 sm:$0xff]  }
 0x102   :  { %1807 = vmatprep.subr.bf16.mxu0 %v8013_v46  ;;  %1936 = vmatprep.subr.bf16.mxu1 %v8016_v47  ;;  %v8098_v46 = vld [vmem:[#allocation7] ss:$20 sps:$4 sm:$0xff]  }
 0x103   :  { %v8106_v47 = vld [vmem:[#allocation7 + $0x2c] ss:$20 sps:$4 sm:$0xff]  }
 0x105   :  { %1808 = vmatpush1.bf16.msra.mxu0 %v8011_v48  ;;  %1937 = vmatpush1.bf16.msra.mxu1 %v8014_v49  ;;  %v8073_v48 = vld [vmem:[#allocation5 + $0x538] ss:$20 sps:$4 sm:$0xff]   ;;  %v8819_v49 = vld [vmem:[#allocation2] ss:$24 sps:$4 sm:$0xff]  }
 0x106   :  { %1809 = vmatprep.subr.bf16.mxu0 %v8019_v50  ;;  %1938 = vmatprep.subr.bf16.mxu1 %v8022_v51  ;;  %v8076_v50 = vld [vmem:[#allocation5 + $0x6a0] ss:$20 sps:$4 sm:$0xff]   ;;  %v8104_v51 = vld [vmem:[#allocation7 + $0x28] ss:$20 sps:$4 sm:$0xff]  }
 0x109   :  { %1810 = vmatpush1.bf16.msra.mxu0 %v8017_v52  ;;  %1939 = vmatpush1.bf16.msra.mxu1 %v8020_v53  ;;  %v8112_v52 = vld [vmem:[#allocation7 + $0x54] ss:$20 sps:$4 sm:$0xff]  }
 0x10a   :  { %1811 = vmatprep.subr.bf16.mxu0 %v8025_v54  ;;  %1940 = vmatprep.subr.bf16.mxu1 %v8028_v55  ;;  %v8077_v53 = vld [vmem:[#allocation5 + $0x560] ss:$20 sps:$4 sm:$0xff]   ;;  %v8080_v54 = vld [vmem:[#allocation5 + $0x6c8] ss:$20 sps:$4 sm:$0xff]   ;;  %v8110_v55 = vld [vmem:[#allocation7 + $0x50] ss:$20 sps:$4 sm:$0xff]  }
 0x10d   :  { %1812 = vmatpush1.bf16.msra.mxu0 %v8023_v56  ;;  %1941 = vmatpush1.bf16.msra.mxu1 %v8026_v57  ;;  %v8118_v56 = vld [vmem:[#allocation7 + $0x7c] ss:$20 sps:$4 sm:$0xff]  }
 0x10e   :  { %1813 = vmatprep.subr.bf16.mxu0 %v8031_v58  ;;  %1942 = vmatprep.subr.bf16.mxu1 %v8034_v59  ;;  %v8081_v57 = vld [vmem:[#allocation5 + $0x588] ss:$20 sps:$4 sm:$0xff]   ;;  %v8084_v58 = vld [vmem:[#allocation5 + $0x6f0] ss:$20 sps:$4 sm:$0xff]   ;;  %v8116_v59 = vld [vmem:[#allocation7 + $0x78] ss:$20 sps:$4 sm:$0xff]  }
 0x111   :  { %1814 = vmatpush1.bf16.msra.mxu0 %v8029_v60  ;;  %1943 = vmatpush1.bf16.msra.mxu1 %v8032_v61  ;;  %v8088_v60 = vld [vmem:[#allocation5 + $0x718] ss:$20 sps:$4 sm:$0xff]   ;;  %v8122_v61 = vld [vmem:[#allocation7 + $0xa0] ss:$20 sps:$4 sm:$0xff]  }
 0x112   :  { %1815 = vmatprep.subr.bf16.mxu0 %v8037_v62  ;;  %1944 = vmatprep.subr.bf16.mxu1 %v8040_v63  ;;  %v8130_v62 = vld [vmem:[#allocation7 + $0xcc] ss:$20 sps:$4 sm:$0xff]  }
 0x113   :  { %v8089_v63 = vld [vmem:[#allocation5 + $0x5d8] ss:$20 sps:$4 sm:$0xff]  }
 0x115   :  { %1816 = vmatpush1.bf16.msra.mxu0 %v8035_v0  ;;  %1945 = vmatpush1.bf16.msra.mxu1 %v8038_v1  ;;  %v8092_v0 = vld [vmem:[#allocation5 + $0x740] ss:$20 sps:$4 sm:$0xff]   ;;  %v8128_v1 = vld [vmem:[#allocation7 + $0xc8] ss:$20 sps:$4 sm:$0xff]  }
 0x116   :  { %1817 = vmatprep.subr.bf16.mxu0 %v8043_v2  ;;  %1946 = vmatprep.subr.bf16.mxu1 %v8046_v3  ;;  %v8136_v2 = vld [vmem:[#allocation7 + $0xf4] ss:$20 sps:$4 sm:$0xff]  }
 0x117   :  { %v8093_v3 = vld [vmem:[#allocation5 + $0x600] ss:$20 sps:$4 sm:$0xff]  }
 0x119   :  { %1818 = vmatpush1.bf16.msra.mxu0 %v8041_v4  ;;  %1947 = vmatpush1.bf16.msra.mxu1 %v8044_v6  ;;  %v8096_v4 = vld [vmem:[#allocation5 + $0x768] ss:$20 sps:$4 sm:$0xff]   ;;  %v8134_v6 = vld [vmem:[#allocation7 + $0xf0] ss:$20 sps:$4 sm:$0xff]  }
 0x11a   :  { %7369 = vmatprep.subr.bf16.mxu0 %v8050_v7  ;;  %7391 = vmatprep.subr.bf16.mxu1 %v8066_v8  ;;  %v8142_v7 = vld [vmem:[#allocation7 + $0x11c] ss:$20 sps:$4 sm:$0xff]  }
 0x11b   :  { %v8097_v8 = vld [vmem:[#allocation5 + $0x628] ss:$20 sps:$4 sm:$0xff]  }
 0x11c   :  { %1820 = vmatmul.mubr.bf16.vlgmr.msra.gmra.mrb[0].mxu0 %v9109_v9  ;;  %1949 = vmatmul.mubr.bf16.vlgmr.msra.gmra.mrb[0].mxu1 %v9109_v9 }
 0x11d   :  { %7370 = vmatpush3.bf16.msra.mxu0 %v8051_v10  ;;  %7392 = vmatpush3.bf16.msra.mxu1 %v8067_v11  ;;  %v8103_v10 = vld [vmem:[#allocation7 + $0xc] ss:$20 sps:$4 sm:$0xff]  }
 0x11e   :  { %7371 = vmatprep.subr.bf16.mxu0 %v8052_v13  ;;  %1991 = vmatprep.mubr.bf16.mxu0 %v8818_v18  ;;  %v8140_v11 = vld [vmem:[#allocation7 + $0x118] ss:$20 sps:$4 sm:$0xff]   ;;  %v8107_v18 = vld [vmem:[#allocation7 + $0x30] ss:$20 sps:$4 sm:$0xff]  }
 0x11f   :  { %7393 = vmatprep.subr.bf16.mxu1 %v8070_v14  ;;  %2032 = vmatprep.mubr.bf16.mxu1 %v9097_v30  ;;  %v8083_v30 = vld [vmem:[#allocation5 + $0x330] ss:$20 sps:$4 sm:$0xff]   ;;  %v8101_v14 = vld [vmem:[#allocation7 + $0x8] ss:$20 sps:$4 sm:$0xff]  }
 0x120   :  { %v8148_v13 = vld [vmem:[#allocation7 + $0x144] ss:$20 sps:$4 sm:$0xff]  }
 0x121   :  { %7372 = vmatpush3.bf16.msra.mxu0 %v8053_v15  ;;  %7394 = vmatpush3.bf16.msra.mxu1 %v8071_v17  ;;  %v8109_v15 = vld [vmem:[#allocation7 + $0x34] ss:$20 sps:$4 sm:$0xff]   ;;  %v8154_v17 = vld [vmem:[#allocation7 + $0x16c] ss:$20 sps:$4 sm:$0xff]  }
 0x122   :  { %7373 = vmatprep.subr.bf16.mxu0 %v8054_v16  ;;  %7395 = vmatprep.subr.bf16.mxu1 %v8074_v19  ;;  %v8146_v16 = vld [vmem:[#allocation7 + $0x140] ss:$20 sps:$4 sm:$0xff]   ;;  %v8115_v19 = vld [vmem:[#allocation7 + $0x5c] ss:$20 sps:$4 sm:$0xff]  }
 0x125   :  { %7374 = vmatpush3.bf16.msra.mxu0 %v8055_v20  ;;  %7396 = vmatpush3.bf16.msra.mxu1 %v8075_v22  ;;  %v8152_v20 = vld [vmem:[#allocation7 + $0x168] ss:$20 sps:$4 sm:$0xff]   ;;  %v8113_v22 = vld [vmem:[#allocation7 + $0x58] ss:$20 sps:$4 sm:$0xff]  }
 0x126   :  { %7375 = vmatprep.subr.bf16.mxu0 %v8056_v21  ;;  %7397 = vmatprep.subr.bf16.mxu1 %v8078_v23  ;;  %v8160_v21 = vld [vmem:[#allocation7 + $0x194] ss:$20 sps:$4 sm:$0xff]   ;;  %v8121_v23 = vld [vmem:[#allocation7 + $0x84] ss:$20 sps:$4 sm:$0xff]  }
 0x129   :  { %7376 = vmatpush3.bf16.msra.mxu0 %v8057_v24  ;;  %7398 = vmatpush3.bf16.msra.mxu1 %v8079_v26  ;;  %v8158_v24 = vld [vmem:[#allocation7 + $0x190] ss:$20 sps:$4 sm:$0xff]   ;;  %v8119_v26 = vld [vmem:[#allocation7 + $0x80] ss:$20 sps:$4 sm:$0xff]  }
 0x12a   :  { %7377 = vmatprep.subr.bf16.mxu0 %v8058_v25  ;;  %7399 = vmatprep.subr.bf16.mxu1 %v8082_v27  ;;  %v8166_v25 = vld [vmem:[#allocation7 + $0x1bc] ss:$20 sps:$4 sm:$0xff]   ;;  %v8127_v27 = vld [vmem:[#allocation7 + $0xac] ss:$20 sps:$4 sm:$0xff]  }
 0x12d   :  { %7378 = vmatpush3.bf16.msra.mxu0 %v8059_v28  ;;  %7400 = vmatpush3.bf16.msra.mxu1 %v8083_v30  ;;  %v8164_v28 = vld [vmem:[#allocation7 + $0x1b8] ss:$20 sps:$4 sm:$0xff]   ;;  %v8133_v30 = vld [vmem:[#allocation7 + $0xd4] ss:$20 sps:$4 sm:$0xff]  }
 0x12e   :  { %7379 = vmatprep.subr.bf16.mxu0 %v8060_v29  ;;  %7401 = vmatprep.subr.bf16.mxu1 %v8086_v31  ;;  %v8125_v29 = vld [vmem:[#allocation7 + $0xa8] ss:$20 sps:$4 sm:$0xff]   ;;  %v8170_v31 = vld [vmem:[#allocation7 + $0x1e0] ss:$20 sps:$4 sm:$0xff]  }
 0x131   :  { %7380 = vmatpush3.bf16.msra.mxu0 %v8061_v32  ;;  %7402 = vmatpush3.bf16.msra.mxu1 %v8087_v34  ;;  %v8178_v32 = vld [vmem:[#allocation7 + $0x20c] ss:$20 sps:$4 sm:$0xff]   ;;  %v8139_v34 = vld [vmem:[#allocation7 + $0xfc] ss:$20 sps:$4 sm:$0xff]  }
 0x132   :  { %7381 = vmatprep.subr.bf16.mxu0 %v8062_v33  ;;  %7403 = vmatprep.subr.bf16.mxu1 %v8090_v35  ;;  %v8131_v33 = vld [vmem:[#allocation7 + $0xd0] ss:$20 sps:$4 sm:$0xff]   ;;  %v8176_v35 = vld [vmem:[#allocation7 + $0x208] ss:$20 sps:$4 sm:$0xff]  }
 0x135   :  { %7382 = vmatpush3.bf16.msra.mxu0 %v8063_v36  ;;  %7404 = vmatpush3.bf16.msra.mxu1 %v8091_v37  ;;  %v8137_v36 = vld [vmem:[#allocation7 + $0xf8] ss:$20 sps:$4 sm:$0xff]   ;;  %v8184_v37 = vld [vmem:[#allocation7 + $0x234] ss:$20 sps:$4 sm:$0xff]  }
 0x136   :  { %7383 = vmatprep.subr.bf16.mxu0 %v8064_v38  ;;  %7405 = vmatprep.subr.bf16.mxu1 %v8094_v39  ;;  %v8145_v38 = vld [vmem:[#allocation7 + $0x124] ss:$20 sps:$4 sm:$0xff]  }
 0x137   :  { %v8182_v39 = vld [vmem:[#allocation7 + $0x230] ss:$20 sps:$4 sm:$0xff]  }
 0x139   :  { %7384 = vmatpush3.bf16.msra.mxu0 %v8065_v40  ;;  %7406 = vmatpush3.bf16.msra.mxu1 %v8095_v41  ;;  %v8143_v40 = vld [vmem:[#allocation7 + $0x120] ss:$20 sps:$4 sm:$0xff]   ;;  %v8190_v41 = vld [vmem:[#allocation7 + $0x25c] ss:$20 sps:$4 sm:$0xff]  }
 0x13a   :  { %7413 = vmatprep.subr.bf16.mxu0 %v8068_v42  ;;  %3404 = vmatprep.subr.bf16.mxu1 %v8100_v43  ;;  %v8151_v42 = vld [vmem:[#allocation7 + $0x14c] ss:$20 sps:$4 sm:$0xff]  }
 0x13b   :  { %v8188_v43 = vld [vmem:[#allocation7 + $0x258] ss:$20 sps:$4 sm:$0xff]  }
 0x13c   :  { %1992 = vmatmul.mubr.bf16.vlgmr.msra.gmra.mrb[4].mxu0 %v8819_v49  ;;  %2033 = vmatmul.mubr.bf16.vlgmr.msra.gmra.mrb[4].mxu1 %v9101_v5  ;;  %v8124_v5 = vld [vmem:[#allocation7 + $0xa4] ss:$20 sps:$4 sm:$0xff]  }
 0x13d   :  { %7414 = vmatpush3.bf16.msra.mxu0 %v8069_v44  ;;  %2073 = vmatprep.mubr.bf16.mxu0 %v9105_v12  ;;  %v8085_v12 = vld [vmem:[#allocation5 + $0x5b0] ss:$20 sps:$4 sm:$0xff]   ;;  %v8161_v49 = vld [vmem:[#allocation7 + $0x198] ss:$20 sps:$4 sm:$0xff]  }
 0x13e   :  { %7415 = vmatprep.subr.bf16.mxu0 %v8072_v45  ;;  %3405 = vmatpush1.bf16.msra.mxu1 %v8098_v46  ;;  %v8196_v44 = vld [vmem:[#allocation7 + $0x284] ss:$20 sps:$4 sm:$0xff]   ;;  %v8149_v45 = vld [vmem:[#allocation7 + $0x148] ss:$20 sps:$4 sm:$0xff]  }
 0x13f   :  { %3406 = vmatprep.subr.bf16.mxu1 %v8106_v47  ;;  %v8157_v46 = vld [vmem:[#allocation7 + $0x174] ss:$20 sps:$4 sm:$0xff]   ;;  %v8155_v47 = vld [vmem:[#allocation7 + $0x170] ss:$20 sps:$4 sm:$0xff]  }
 0x141   :  { %7416 = vmatpush3.bf16.msra.mxu0 %v8073_v48  ;;  %v8163_v48 = vld [vmem:[#allocation7 + $0x19c] ss:$20 sps:$4 sm:$0xff]  }
 0x142   :  { %7417 = vmatprep.subr.bf16.mxu0 %v8076_v50  ;;  %3407 = vmatpush1.bf16.msra.mxu1 %v8104_v51  ;;  %v8169_v50 = vld [vmem:[#allocation7 + $0x1c4] ss:$20 sps:$4 sm:$0xff]   ;;  %v8167_v51 = vld [vmem:[#allocation7 + $0x1c0] ss:$20 sps:$4 sm:$0xff]  }
 0x143   :  { %3408 = vmatprep.subr.bf16.mxu1 %v8112_v52  ;;  %v8175_v52 = vld [vmem:[#allocation7 + $0x1ec] ss:$20 sps:$4 sm:$0xff]  }
 0x145   :  { %7418 = vmatpush3.bf16.msra.mxu0 %v8077_v53  ;;  %v8173_v53 = vld [vmem:[#allocation7 + $0x1e8] ss:$20 sps:$4 sm:$0xff]  }
 0x146   :  { %7419 = vmatprep.subr.bf16.mxu0 %v8080_v54  ;;  %3409 = vmatpush1.bf16.msra.mxu1 %v8110_v55  ;;  %v8181_v54 = vld [vmem:[#allocation7 + $0x214] ss:$20 sps:$4 sm:$0xff]   ;;  %v8179_v55 = vld [vmem:[#allocation7 + $0x210] ss:$20 sps:$4 sm:$0xff]  }
 0x147   :  { %3410 = vmatprep.subr.bf16.mxu1 %v8118_v56  ;;  %v8187_v56 = vld [vmem:[#allocation7 + $0x23c] ss:$20 sps:$4 sm:$0xff]  }
 0x149   :  { %7420 = vmatpush3.bf16.msra.mxu0 %v8081_v57  ;;  %v8185_v57 = vld [vmem:[#allocation7 + $0x238] ss:$20 sps:$4 sm:$0xff]  }
 0x14a   :  { %7421 = vmatprep.subr.bf16.mxu0 %v8084_v58  ;;  %3411 = vmatpush1.bf16.msra.mxu1 %v8116_v59  ;;  %v8193_v58 = vld [vmem:[#allocation7 + $0x264] ss:$20 sps:$4 sm:$0xff]   ;;  %v8191_v59 = vld [vmem:[#allocation7 + $0x260] ss:$20 sps:$4 sm:$0xff]  }
 0x14b   :  { %3412 = vmatprep.subr.bf16.mxu1 %v8124_v5  ;;  %v8199_v5 = vld [vmem:[#allocation7 + $0x28c] ss:$20 sps:$4 sm:$0xff]  }
 0x14d   :  { %7422 = vmatpush3.bf16.msra.mxu0 %v8085_v12  ;;  %v398_v12 = vlaneseq }
 0x14e   :  { %7423 = vmatprep.subr.bf16.mxu0 %v8088_v60  ;;  %3413 = vmatpush1.bf16.msra.mxu1 %v8122_v61  ;;  %v9122_v61 = vld [vmem:[%s9297_s5] sm:$0x1f] }
 0x14f   :  { %3414 = vmatprep.subr.bf16.mxu1 %v8130_v62  ;;  %v9117_v60 = vshrl.u32 %v398_v12, 7  ;;  %v8230_v12 = vld [vmem:[#allocation7 + $0x370] ss:$20 sps:$4 sm:$0xff]  }
 0x151   :  { %7424 = vmatpush3.bf16.msra.mxu0 %v8089_v63  ;;  %v9125_v62 = vsub.s32 0, %v9117_v60  ;;  %v9128_v63 = vsub.s32 2, %v9117_v60 }
 0x152   :  { %7425 = vmatprep.subr.bf16.mxu0 %v8092_v0  ;;  %3415 = vmatpush1.bf16.msra.mxu1 %v8128_v1  ;;  %v9131_v0 = vsub.s32 1, %v9117_v60  ;;  %v9134_v1 = vsub.s32 3, %v9117_v60 }
 0x153   :  { %3416 = vmatprep.subr.bf16.mxu1 %v8136_v2  ;;  %v401_v2 = vrot.slane %v9122_v61, %v9125_v62 }
 0x155   :  { %7426 = vmatpush3.bf16.msra.mxu0 %v8093_v3  ;;  %v409_v3 = vrot.slane %v9122_v61, %v9128_v63 }
 0x156   :  { %7427 = vmatprep.subr.bf16.mxu0 %v8096_v4  ;;  %3417 = vmatpush1.bf16.msra.mxu1 %v8134_v6  ;;  %v405_v4 = vrot.slane %v9122_v61, %v9131_v0  ;;  %v413_v6 = vrot.slane %v9122_v61, %v9134_v1 }
 0x157   :  { %3418 = vmatprep.subr.bf16.mxu1 %v8142_v7 }
 0x159   :  { %7428 = vmatpush3.bf16.msra.mxu0 %v8097_v8 }
 0x15a   :  { %3533 = vmatprep.subr.bf16.mxu0 %v8103_v10  ;;  %3419 = vmatpush1.bf16.msra.mxu1 %v8140_v11 }
 0x15b   :  { %3420 = vmatprep.subr.bf16.mxu1 %v8148_v13 }
 0x15c   :  { %2074 = vmatmul.mubr.bf16.vlgmr.msra.gmra.mrb[8].mxu0 %v9109_v9  ;;  %v8172_v9 = vld [vmem:[#allocation7 + $0x1e4] ss:$20 sps:$4 sm:$0xff]  }
 0x15d   :  { %3534 = vmatpush1.bf16.msra.mxu0 %v8101_v14 }
 0x15e   :  { %3535 = vmatprep.subr.bf16.mxu0 %v8109_v15  ;;  %3421 = vmatpush1.bf16.msra.mxu1 %v8146_v16 }
 0x15f   :  { %3422 = vmatprep.subr.bf16.mxu1 %v8154_v17 }
 0x161   :  { %3536 = vmatpush1.bf16.msra.mxu0 %v8107_v18 }
 0x162   :  { %3537 = vmatprep.subr.bf16.mxu0 %v8115_v19  ;;  %3423 = vmatpush1.bf16.msra.mxu1 %v8152_v20 }
 0x163   :  { %3424 = vmatprep.subr.bf16.mxu1 %v8160_v21 }
 0x165   :  { %3538 = vmatpush1.bf16.msra.mxu0 %v8113_v22 }
 0x166   :  { %3539 = vmatprep.subr.bf16.mxu0 %v8121_v23  ;;  %3425 = vmatpush1.bf16.msra.mxu1 %v8158_v24 }
 0x167   :  { %3426 = vmatprep.subr.bf16.mxu1 %v8166_v25 }
 0x169   :  { %3540 = vmatpush1.bf16.msra.mxu0 %v8119_v26 }
 0x16a   :  { %3541 = vmatprep.subr.bf16.mxu0 %v8127_v27  ;;  %3427 = vmatpush1.bf16.msra.mxu1 %v8164_v28 }
 0x16b   :  { %3428 = vmatprep.subr.bf16.mxu1 %v8172_v9 }
 0x16d   :  { %3542 = vmatpush1.bf16.msra.mxu0 %v8125_v29 }
 0x16e   :  { %3543 = vmatprep.subr.bf16.mxu0 %v8133_v30  ;;  %3429 = vmatpush1.bf16.msra.mxu1 %v8170_v31 }
 0x16f   :  { %3430 = vmatprep.subr.bf16.mxu1 %v8178_v32  ;;  %v8194_v32 = vld [vmem:[#allocation7 + $0x280] ss:$20 sps:$4 sm:$0xff]  }
 0x171   :  { %3544 = vmatpush1.bf16.msra.mxu0 %v8131_v33 }
 0x172   :  { %3545 = vmatprep.subr.bf16.mxu0 %v8139_v34  ;;  %3431 = vmatpush1.bf16.msra.mxu1 %v8176_v35  ;;  %v8197_v35 = vld [vmem:[#allocation7 + $0x288] ss:$20 sps:$4 sm:$0xff]  }
 0x173   :  { %3432 = vmatprep.subr.bf16.mxu1 %v8184_v37 }
 0x175   :  { %3546 = vmatpush1.bf16.msra.mxu0 %v8137_v36 }
 0x176   :  { %3547 = vmatprep.subr.bf16.mxu0 %v8145_v38  ;;  %3433 = vmatpush1.bf16.msra.mxu1 %v8182_v39  ;;  %v8202_v38 = vld [vmem:[#allocation7 + $0x2ac] ss:$20 sps:$4 sm:$0xff]   ;;  %v8205_v39 = vld [vmem:[#allocation7 + $0x2b4] ss:$20 sps:$4 sm:$0xff]  }
 0x177   :  { %3434 = vmatprep.subr.bf16.mxu1 %v8190_v41  ;;  %v8203_v41 = vld [vmem:[#allocation7 + $0x2b0] ss:$20 sps:$4 sm:$0xff]  }
 0x179   :  { %3548 = vmatpush1.bf16.msra.mxu0 %v8143_v40  ;;  %v8200_v40 = vld [vmem:[#allocation7 + $0x2a8] ss:$20 sps:$4 sm:$0xff]  }
 0x17a   :  { %3549 = vmatprep.subr.bf16.mxu0 %v8151_v42  ;;  %3435 = vmatpush1.bf16.msra.mxu1 %v8188_v43  ;;  %v8208_v42 = vld [vmem:[#allocation7 + $0x2d4] ss:$20 sps:$4 sm:$0xff]   ;;  %v8211_v43 = vld [vmem:[#allocation7 + $0x2dc] ss:$20 sps:$4 sm:$0xff]  }
 0x17b   :  { %3447 = vmatprep.subr.bf16.mxu1 %v8196_v44  ;;  %v8206_v44 = vld [vmem:[#allocation7 + $0x2d0] ss:$20 sps:$4 sm:$0xff]  }
 0x17d   :  { %3550 = vmatpush1.bf16.msra.mxu0 %v8149_v45  ;;  %v8209_v45 = vld [vmem:[#allocation7 + $0x2d8] ss:$20 sps:$4 sm:$0xff]  }
 0x17e   :  { %3551 = vmatprep.subr.bf16.mxu0 %v8157_v46  ;;  %v8214_v46 = vld [vmem:[#allocation7 + $0x2fc] ss:$20 sps:$4 sm:$0xff]  }
 0x181   :  { %3552 = vmatpush1.bf16.msra.mxu0 %v8155_v47  ;;  %v8217_v47 = vld [vmem:[#allocation7 + $0x304] ss:$20 sps:$4 sm:$0xff]  }
 0x182   :  { %3553 = vmatprep.subr.bf16.mxu0 %v8163_v48  ;;  %v8212_v48 = vld [vmem:[#allocation7 + $0x2f8] ss:$20 sps:$4 sm:$0xff]  }
 0x185   :  { %3554 = vmatpush1.bf16.msra.mxu0 %v8161_v49  ;;  %v8215_v49 = vld [vmem:[#allocation7 + $0x300] ss:$20 sps:$4 sm:$0xff]  }
 0x186   :  { %3555 = vmatprep.subr.bf16.mxu0 %v8169_v50  ;;  %v8220_v50 = vld [vmem:[#allocation7 + $0x324] ss:$20 sps:$4 sm:$0xff]  }
 0x189   :  { %3556 = vmatpush1.bf16.msra.mxu0 %v8167_v51  ;;  %v8223_v51 = vld [vmem:[#allocation7 + $0x32c] ss:$20 sps:$4 sm:$0xff]  }
 0x18a   :  { %3557 = vmatprep.subr.bf16.mxu0 %v8175_v52  ;;  %v8218_v52 = vld [vmem:[#allocation7 + $0x320] ss:$20 sps:$4 sm:$0xff]  }
 0x18d   :  { %3558 = vmatpush1.bf16.msra.mxu0 %v8173_v53  ;;  %v8221_v53 = vld [vmem:[#allocation7 + $0x328] ss:$20 sps:$4 sm:$0xff]  }
 0x18e   :  { %3559 = vmatprep.subr.bf16.mxu0 %v8181_v54  ;;  %v8226_v54 = vld [vmem:[#allocation7 + $0x34c] ss:$20 sps:$4 sm:$0xff]  }
 0x191   :  { %3560 = vmatpush1.bf16.msra.mxu0 %v8179_v55  ;;  %v8229_v55 = vld [vmem:[#allocation7 + $0x354] ss:$20 sps:$4 sm:$0xff]  }
 0x192   :  { %3561 = vmatprep.subr.bf16.mxu0 %v8187_v56  ;;  %v8224_v56 = vld [vmem:[#allocation7 + $0x348] ss:$20 sps:$4 sm:$0xff]  }
 0x195   :  { %3562 = vmatpush1.bf16.msra.mxu0 %v8185_v57  ;;  %v8227_v57 = vld [vmem:[#allocation7 + $0x350] ss:$20 sps:$4 sm:$0xff]  }
 0x196   :  { %3563 = vmatprep.subr.bf16.mxu0 %v8193_v58  ;;  %v8232_v58 = vld [vmem:[#allocation7 + $0x374] ss:$20 sps:$4 sm:$0xff]  }
 0x199   :  { %3564 = vmatpush1.bf16.msra.mxu0 %v8191_v59  ;;  %v9159_v59 = vsub.s32 4, %v9117_v60 }
 0x19a   :  { %3576 = vmatprep.subr.bf16.mxu0 %v8199_v5  ;;  %v8235_v5 = vld [vmem:[#allocation7 + $0x37c] ss:$20 sps:$4 sm:$0xff]  }
 0x1ef   :  { %v1821_v7 = vpop.f32.mrb[0].mxu0  ;;  %v1950_v8 = vpop.f32.mrb[0].mxu1 }
 0x1f0   :  { %v7654_v10 = vadd.f32 %v1821_v7, %v401_v2  ;;  %v7658_v11 = vadd.f32 %v1950_v8, %v409_v3  ;;  %v1823_v13 = vpop.f32.mrb[1].mxu0  ;;  %v1952_v14 = vpop.f32.mrb[1].mxu1  ;;  %v8241_v8 = vld [vmem:[#allocation7 + $0x3a4] ss:$20 sps:$4 sm:$0xff]  }
 0x1f1   :  { %v7655_v15 = vadd.f32 %v1823_v13, %v405_v4  ;;  %v7659_v16 = vadd.f32 %v1952_v14, %v413_v6  ;;  %v1825_v17 = vpop.f32.mrb[2].mxu0  ;;  %v1954_v18 = vpop.f32.mrb[2].mxu1  ;;  %v8239_v13 = vld [vmem:[#allocation7 + $0x3a0] ss:$20 sps:$4 sm:$0xff]  }
 0x1f2   :  { %v7656_v19 = vadd.f32 %v1825_v17, %v401_v2  ;;  %v7660_v20 = vadd.f32 %v1954_v18, %v409_v3  ;;  %v1827_v21 = vpop.f32.mrb[3].mxu0  ;;  %v1956_v22 = vpop.f32.mrb[3].mxu1  ;;  %v2082_v25 = vmax.f32 %v7654_v10, 0.0  ;;  %v2084_v26 = vmax.f32 %v7658_v11, 0.0  ;;  %v8233_v2 = vld [vmem:[#allocation7 + $0x378] ss:$20 sps:$4 sm:$0xff]  }
 0x1f3   :  { %v7657_v23 = vadd.f32 %v1827_v21, %v405_v4  ;;  %v7661_v24 = vadd.f32 %v1956_v22, %v413_v6  ;;  %v2083_v9 = vmax.f32 %v7655_v15, 0.0  ;;  %v2085_v29 = vmax.f32 %v7659_v16, 0.0  ;;  %v8238_v3 = vld [vmem:[#allocation7 + $0x39c] ss:$20 sps:$4 sm:$0xff]   ;;  %v8236_v11 = vld [vmem:[#allocation7 + $0x398] ss:$20 sps:$4 sm:$0xff]  }
 0x1f4   :  { %v2087_v27 = vmax.f32 %v7656_v19, 0.0  ;;  %v2089_v28 = vmax.f32 %v7660_v20, 0.0  ;;  %v417_v6 = vrot.slane %v9122_v61, %v9159_v59  ;;  %v8244_v18 = vld [vmem:[#allocation7 + $0x3c4] ss:$20 sps:$4 sm:$0xff]  }
 0x1f5   :  { %v2088_v30 = vmax.f32 %v7657_v23, 0.0  ;;  %v2090_v31 = vmax.f32 %v7661_v24, 0.0  ;;  %v8247_v23 = vld [vmem:[#allocation7 + $0x3cc] ss:$20 sps:$4 sm:$0xff]  }
 0x1f6   :  { %v9144_v33 = vpack.c.bf16 %v2087_v27, %v2082_v25  ;;  %v9146_v34 = vpack.c.bf16 %v2089_v28, %v2084_v26  ;;  %v8242_v24 = vld [vmem:[#allocation7 + $0x3c0] ss:$20 sps:$4 sm:$0xff]   ;;  %v8245_v25 = vld [vmem:[#allocation7 + $0x3c8] ss:$20 sps:$4 sm:$0xff]  }
 0x1f7   :  { %v9148_v36 = vpack.c.bf16 %v2088_v30, %v2083_v9  ;;  %v9150_v37 = vpack.c.bf16 %v2090_v31, %v2085_v29  ;;  %v8250_v28 = vld [vmem:[#allocation7 + $0x3ec] ss:$20 sps:$4 sm:$0xff]   ;;  %v8253_v9 = vld [vmem:[#allocation7 + $0x3f4] ss:$20 sps:$4 sm:$0xff]   ;;  %v8251_v31 = vld [vmem:[#allocation7 + $0x3f0] ss:$20 sps:$4 sm:$0xff]  }
 0x1f8   :  { %v8248_v30 = vld [vmem:[#allocation7 + $0x3e8] ss:$20 sps:$4 sm:$0xff]  }
 0x1f9   :  { %3436 = vmatprep.mubr.bf16.mxu1 %v9148_v36  ;;  %3565 = vmatprep.mubr.bf16.mxu0 %v9148_v36 }
 0x1fa   :  { %3437 = vmatmul.mubr.bf16.vlgmr.msra.gmra.mrb[8].mxu1 %v9144_v33  ;;  %3566 = vmatmul.mubr.bf16.vlgmr.msra.gmra.mrb[12].mxu0 %v9144_v33 }
 0x1fb   :  { %3448 = vmatpush1.bf16.msra.mxu1 %v8194_v32  ;;  %3577 = vmatpush1.bf16.msra.mxu0 %v8197_v35  ;;  %v8256_v32 = vld [vmem:[#allocation7 + $0x414] ss:$20 sps:$4 sm:$0xff]   ;;  %v8259_v35 = vld [vmem:[#allocation7 + $0x41c] ss:$20 sps:$4 sm:$0xff]  }
 0x1fc   :  { %3479 = vmatprep.mubr.bf16.mxu1 %v9150_v37  ;;  %3608 = vmatprep.mubr.bf16.mxu0 %v9150_v37 }
 0x1fd   :  { %3449 = vmatprep.subr.bf16.mxu1 %v8202_v38  ;;  %3578 = vmatprep.subr.bf16.mxu0 %v8205_v39  ;;  %v8254_v38 = vld [vmem:[#allocation7 + $0x410] ss:$20 sps:$4 sm:$0xff]   ;;  %v8257_v39 = vld [vmem:[#allocation7 + $0x418] ss:$20 sps:$4 sm:$0xff]  }
 0x1ff   :  { %3450 = vmatpush1.bf16.msra.mxu1 %v8200_v40  ;;  %3579 = vmatpush1.bf16.msra.mxu0 %v8203_v41  ;;  %v8262_v40 = vld [vmem:[#allocation7 + $0x43c] ss:$20 sps:$4 sm:$0xff]   ;;  %v8265_v41 = vld [vmem:[#allocation7 + $0x444] ss:$20 sps:$4 sm:$0xff]  }
 0x200   :  { %3451 = vmatprep.subr.bf16.mxu1 %v8208_v42  ;;  %3580 = vmatprep.subr.bf16.mxu0 %v8211_v43  ;;  %v8260_v42 = vld [vmem:[#allocation7 + $0x438] ss:$20 sps:$4 sm:$0xff]   ;;  %v8263_v43 = vld [vmem:[#allocation7 + $0x440] ss:$20 sps:$4 sm:$0xff]  }
 0x203   :  { %3452 = vmatpush1.bf16.msra.mxu1 %v8206_v44  ;;  %3581 = vmatpush1.bf16.msra.mxu0 %v8209_v45  ;;  %v8268_v44 = vld [vmem:[#allocation7 + $0x464] ss:$20 sps:$4 sm:$0xff]   ;;  %v8271_v45 = vld [vmem:[#allocation7 + $0x46c] ss:$20 sps:$4 sm:$0xff]  }
 0x204   :  { %3453 = vmatprep.subr.bf16.mxu1 %v8214_v46  ;;  %3582 = vmatprep.subr.bf16.mxu0 %v8217_v47  ;;  %v8266_v46 = vld [vmem:[#allocation7 + $0x460] ss:$20 sps:$4 sm:$0xff]   ;;  %v8269_v47 = vld [vmem:[#allocation7 + $0x468] ss:$20 sps:$4 sm:$0xff]  }
 0x207   :  { %3454 = vmatpush1.bf16.msra.mxu1 %v8212_v48  ;;  %3583 = vmatpush1.bf16.msra.mxu0 %v8215_v49  ;;  %v8274_v48 = vld [vmem:[#allocation7 + $0x48c] ss:$20 sps:$4 sm:$0xff]   ;;  %v8277_v49 = vld [vmem:[#allocation7 + $0x494] ss:$20 sps:$4 sm:$0xff]  }
 0x208   :  { %3455 = vmatprep.subr.bf16.mxu1 %v8220_v50  ;;  %3584 = vmatprep.subr.bf16.mxu0 %v8223_v51  ;;  %v8272_v50 = vld [vmem:[#allocation7 + $0x488] ss:$20 sps:$4 sm:$0xff]   ;;  %v8275_v51 = vld [vmem:[#allocation7 + $0x490] ss:$20 sps:$4 sm:$0xff]  }
 0x20b   :  { %3456 = vmatpush1.bf16.msra.mxu1 %v8218_v52  ;;  %3585 = vmatpush1.bf16.msra.mxu0 %v8221_v53  ;;  %v8280_v52 = vld [vmem:[#allocation7 + $0x4b4] ss:$20 sps:$4 sm:$0xff]   ;;  %v8283_v53 = vld [vmem:[#allocation7 + $0x4bc] ss:$20 sps:$4 sm:$0xff]  }
 0x20c   :  { %3457 = vmatprep.subr.bf16.mxu1 %v8226_v54  ;;  %3586 = vmatprep.subr.bf16.mxu0 %v8229_v55  ;;  %v8278_v55 = vld [vmem:[#allocation7 + $0x4b0] ss:$20 sps:$4 sm:$0xff]  }
 0x20f   :  { %3458 = vmatpush1.bf16.msra.mxu1 %v8224_v56  ;;  %3587 = vmatpush1.bf16.msra.mxu0 %v8227_v57  ;;  %v7385_v4 = vpop.f32.mrb[4].mxu0  ;;  %v7407_v7 = vpop.f32.mrb[4].mxu1  ;;  %v8281_v56 = vld [vmem:[#allocation7 + $0x4b8] ss:$20 sps:$4 sm:$0xff]  }
 0x210   :  { %3459 = vmatprep.subr.bf16.mxu1 %v8232_v58  ;;  %3588 = vmatprep.subr.bf16.mxu0 %v8235_v5  ;;  %v7386_v60 = vpop.f32.mrb[5].mxu0  ;;  %v7408_v10 = vpop.f32.mrb[5].mxu1  ;;  %v8286_v58 = vld [vmem:[#allocation7 + $0x4dc] ss:$20 sps:$4 sm:$0xff]   ;;  %v8289_v5 = vld [vmem:[#allocation7 + $0x4e4] ss:$20 sps:$4 sm:$0xff]  }
 0x211   :  { %v7387_v14 = vadd.f32 %v7386_v60, %v7385_v4  ;;  %v7388_v15 = vpop.f32.mrb[6].mxu0  ;;  %v7409_v16 = vadd.f32 %v7408_v10, %v7407_v7  ;;  %v7410_v17 = vpop.f32.mrb[6].mxu1  ;;  %v8284_v7 = vld [vmem:[#allocation7 + $0x4d8] ss:$20 sps:$4 sm:$0xff]  }
 0x212   :  { %v7389_v19 = vpop.f32.mrb[7].mxu0  ;;  %v7411_v20 = vpop.f32.mrb[7].mxu1  ;;  %v8292_v60 = vld [vmem:[#allocation7 + $0x504] ss:$20 sps:$4 sm:$0xff]   ;;  %v8295_v10 = vld [vmem:[#allocation7 + $0x50c] ss:$20 sps:$4 sm:$0xff]  }
 0x213   :  { %3460 = vmatpush1.bf16.msra.mxu1 %v8230_v12  ;;  %3589 = vmatpush1.bf16.msra.mxu0 %v8233_v2  ;;  %v1994_v21 = vadd.f32 %v7387_v14, %v417_v6  ;;  %v7390_v22 = vadd.f32 %v7389_v19, %v7388_v15  ;;  %v7412_v61 = vadd.f32 %v7411_v20, %v7410_v17  ;;  %v8290_v15 = vld [vmem:[#allocation7 + $0x500] ss:$20 sps:$4 sm:$0xff]   ;;  %v8296_v20 = vld [vmem:[#allocation7 + $0x528] ss:$20 sps:$4 sm:$0xff]  }
 0x214   :  { %3461 = vmatprep.subr.bf16.mxu1 %v8238_v3  ;;  %3590 = vmatprep.subr.bf16.mxu0 %v8241_v8  ;;  %v8287_v8 = vld [vmem:[#allocation7 + $0x4e0] ss:$20 sps:$4 sm:$0xff]  }
 0x215   :  { %v1997_v26 = vadd.f32 %v7390_v22, %v417_v6  ;;  %v2035_v27 = vadd.f32 %v7409_v16, %v1994_v21  ;;  %v8293_v16 = vld [vmem:[#allocation7 + $0x508] ss:$20 sps:$4 sm:$0xff]   ;;  %v8298_v17 = vld [vmem:[#allocation7 + $0x52c] ss:$20 sps:$4 sm:$0xff]   ;;  %v8299_v21 = vld [vmem:[#allocation7 + $0x530] ss:$20 sps:$4 sm:$0xff]  }
 0x216   :  { %v8304_v22 = vld [vmem:[#allocation7 + $0x554] ss:$20 sps:$4 sm:$0xff]  }
 0x217   :  { %3462 = vmatpush1.bf16.msra.mxu1 %v8236_v11  ;;  %3591 = vmatpush1.bf16.msra.mxu0 %v8239_v13  ;;  %v9163_v29 = vadd.f32 %v7412_v61, %v1997_v26  ;;  %v8307_v61 = vld [vmem:[#allocation7 + $0x55c] ss:$20 sps:$4 sm:$0xff]  }
 0x218   :  { %3463 = vmatprep.subr.bf16.mxu1 %v8244_v18  ;;  %3592 = vmatprep.subr.bf16.mxu0 %v8247_v23  ;;  %v8301_v18 = vld [vmem:[#allocation7 + $0x534] ss:$20 sps:$4 sm:$0xff]   ;;  %v8971_v23 = vmov 0   ;;  %v8310_v26 = vld [vmem:[#allocation7 + $0x57c] ss:$20 sps:$4 sm:$0xff]  }
 0x21b   :  { %3464 = vmatpush1.bf16.msra.mxu1 %v8242_v24  ;;  %3593 = vmatpush1.bf16.msra.mxu0 %v8245_v25  ;;  %v8302_v24 = vld [vmem:[#allocation7 + $0x550] ss:$20 sps:$4 sm:$0xff]   ;;  %v8305_v25 = vld [vmem:[#allocation7 + $0x558] ss:$20 sps:$4 sm:$0xff]  }
 0x21c   :  { %3465 = vmatprep.subr.bf16.mxu1 %v8250_v28  ;;  %3594 = vmatprep.subr.bf16.mxu0 %v8253_v9  ;;  %v8308_v28 = vld [vmem:[#allocation7 + $0x578] ss:$20 sps:$4 sm:$0xff]   ;;  %v8311_v9 = vld [vmem:[#allocation7 + $0x580] ss:$20 sps:$4 sm:$0xff]  }
 0x21f   :  { %3466 = vmatpush1.bf16.msra.mxu1 %v8248_v30  ;;  %3595 = vmatpush1.bf16.msra.mxu0 %v8251_v31  ;;  %v8319_v30 = vld [vmem:[#allocation7 + $0x5ac] ss:$20 sps:$4 sm:$0xff]  }
 0x220   :  { %3467 = vmatprep.subr.bf16.mxu1 %v8256_v32  ;;  %3596 = vmatprep.subr.bf16.mxu0 %v8259_v35  ;;  %v8314_v31 = vld [vmem:[#allocation7 + $0x5a0] ss:$20 sps:$4 sm:$0xff]   ;;  %v8317_v32 = vld [vmem:[#allocation7 + $0x5a8] ss:$20 sps:$4 sm:$0xff]  }
 0x221   :  { %v8322_v35 = vld [vmem:[#allocation7 + $0x5cc] ss:$20 sps:$4 sm:$0xff]  }
 0x223   :  { %3468 = vmatpush1.bf16.msra.mxu1 %v8254_v38  ;;  %3597 = vmatpush1.bf16.msra.mxu0 %v8257_v39  ;;  %v8325_v38 = vld [vmem:[#allocation7 + $0x5d4] ss:$20 sps:$4 sm:$0xff]  }
 0x224   :  { %3469 = vmatprep.subr.bf16.mxu1 %v8262_v40  ;;  %3598 = vmatprep.subr.bf16.mxu0 %v8265_v41  ;;  %v8320_v39 = vld [vmem:[#allocation7 + $0x5c8] ss:$20 sps:$4 sm:$0xff]   ;;  %v8323_v40 = vld [vmem:[#allocation7 + $0x5d0] ss:$20 sps:$4 sm:$0xff]  }
 0x225   :  { %v8328_v41 = vld [vmem:[#allocation7 + $0x5f4] ss:$20 sps:$4 sm:$0xff]  }
 0x227   :  { %3470 = vmatpush1.bf16.msra.mxu1 %v8260_v42  ;;  %3599 = vmatpush1.bf16.msra.mxu0 %v8263_v43  ;;  %v8331_v42 = vld [vmem:[#allocation7 + $0x5fc] ss:$20 sps:$4 sm:$0xff]  }
 0x228   :  { %3471 = vmatprep.subr.bf16.mxu1 %v8268_v44  ;;  %3600 = vmatprep.subr.bf16.mxu0 %v8271_v45  ;;  %v8326_v43 = vld [vmem:[#allocation7 + $0x5f0] ss:$20 sps:$4 sm:$0xff]   ;;  %v8329_v44 = vld [vmem:[#allocation7 + $0x5f8] ss:$20 sps:$4 sm:$0xff]  }
 0x229   :  { %v8334_v45 = vld [vmem:[#allocation7 + $0x61c] ss:$20 sps:$4 sm:$0xff]  }
 0x22b   :  { %3472 = vmatpush1.bf16.msra.mxu1 %v8266_v46  ;;  %3601 = vmatpush1.bf16.msra.mxu0 %v8269_v47  ;;  %v8337_v46 = vld [vmem:[#allocation7 + $0x624] ss:$20 sps:$4 sm:$0xff]  }
 0x22c   :  { %3473 = vmatprep.subr.bf16.mxu1 %v8274_v48  ;;  %3602 = vmatprep.subr.bf16.mxu0 %v8277_v49  ;;  %v8332_v47 = vld [vmem:[#allocation7 + $0x618] ss:$20 sps:$4 sm:$0xff]   ;;  %v8335_v48 = vld [vmem:[#allocation7 + $0x620] ss:$20 sps:$4 sm:$0xff]   ;;  %v8338_v49 = vld [vmem:[#allocation7 + $0x150] ss:$20 sps:$4 sm:$0xff]  }
 0x22f   :  { %3474 = vmatpush1.bf16.msra.mxu1 %v8272_v50  ;;  %3603 = vmatpush1.bf16.msra.mxu0 %v8275_v51  ;;  %v7429_v54 = vpop.f32.mrb[8].mxu0  ;;  %v8339_v50 = vld [vmem:[#allocation7 + $0x3d0] ss:$20 sps:$4 sm:$0xff]  }
 0x230   :  { %v7430_v57 = vpop.f32.mrb[9].mxu0  ;;  %3475 = vmatprep.subr.bf16.mxu1 %v8280_v52  ;;  %3604 = vmatprep.subr.bf16.mxu0 %v8283_v53  ;;  %v8340_v51 = vld [vmem:[#allocation7 + $0x10] ss:$20 sps:$4 sm:$0xff]   ;;  %v8342_v53 = vld [vmem:[#allocation7 + $0x178] ss:$20 sps:$4 sm:$0xff]  }
 0x231   :  { %v7431_v12 = vadd.f32 %v7430_v57, %v7429_v54  ;;  %v7432_v2 = vpop.f32.mrb[10].mxu0  ;;  %v8341_v52 = vld [vmem:[#allocation7 + $0x290] ss:$20 sps:$4 sm:$0xff]   ;;  %v8343_v54 = vld [vmem:[#allocation7 + $0x3f8] ss:$20 sps:$4 sm:$0xff]  }
 0x232   :  { %v7433_v3 = vpop.f32.mrb[11].mxu0  ;;  %v8346_v57 = vld [vmem:[#allocation7 + $0x1a0] ss:$20 sps:$4 sm:$0xff]  }
 0x233   :  { %v2076_v4 = vadd.f32 %v7431_v12, %v2035_v27  ;;  %v7434_v6 = vadd.f32 %v7433_v3, %v7432_v2  ;;  %3476 = vmatpush1.bf16.msra.mxu1 %v8278_v55  ;;  %3605 = vmatpush1.bf16.msra.mxu0 %v8281_v56  ;;  %v8313_v27 = vld [vmem:[#allocation7 + $0x584] ss:$20 sps:$4 sm:$0xff]   ;;  %v8349_v12 = vld [vmem:[#allocation7 + $0x2e0] ss:$20 sps:$4 sm:$0xff]   ;;  %v8350_v2 = vld [vmem:[#allocation7 + $0x1c8] ss:$20 sps:$4 sm:$0xff]  }
 0x234   :  { %3477 = vmatprep.subr.bf16.mxu1 %v8286_v58  ;;  %3606 = vmatprep.subr.bf16.mxu0 %v8289_v5  ;;  %v8344_v55 = vld [vmem:[#allocation7 + $0x38] ss:$20 sps:$4 sm:$0xff]   ;;  %v8347_v58 = vld [vmem:[#allocation7 + $0x420] ss:$20 sps:$4 sm:$0xff]   ;;  %v8351_v3 = vld [vmem:[#allocation7 + $0x448] ss:$20 sps:$4 sm:$0xff]  }
 0x235   :  { %v2086_v11 = vmax.f32 %v2076_v4, 0.0  ;;  %v2079_v13 = vadd.f32 %v7434_v6, %v9163_v29  ;;  %v8316_v29 = vld [vmem:[#allocation7 + $0x5a4] ss:$20 sps:$4 sm:$0xff]   ;;  %v8348_v5 = vld [vmem:[#allocation7 + $0x60] ss:$20 sps:$4 sm:$0xff]  }
 0x236   :  { %v8345_v56 = vld [vmem:[#allocation7 + $0x2b8] ss:$20 sps:$4 sm:$0xff]   ;;  %v8352_v4 = vld [vmem:[#allocation7 + $0x88] ss:$20 sps:$4 sm:$0xff]   ;;  %v8354_v6 = vld [vmem:[#allocation7 + $0x1f0] ss:$20 sps:$4 sm:$0xff]  }
 0x237   :  { %v2091_v14 = vmax.f32 %v2079_v13, 0.0  ;;  %3478 = vmatpush1.bf16.msra.mxu1 %v8284_v7  ;;  %3607 = vmatpush1.bf16.msra.mxu0 %v8287_v8  ;;  %v8356_v7 = vld [vmem:[#allocation7 + $0xb0] ss:$20 sps:$4 sm:$0xff]   ;;  %v8361_v13 = vld [vmem:[#allocation7 + $0x358] ss:$20 sps:$4 sm:$0xff]  }
 0x238   :  { %3490 = vmatprep.subr.bf16.mxu1 %v8292_v60  ;;  %3619 = vmatprep.subr.bf16.mxu0 %v8295_v10  ;;  %v8357_v8 = vld [vmem:[#allocation7 + $0x330] ss:$20 sps:$4 sm:$0xff]   ;;  %v8358_v60 = vld [vmem:[#allocation7 + $0x218] ss:$20 sps:$4 sm:$0xff]  }
 0x239   :  { %v9166_v19 = vpack.c.bf16 %v2091_v14, %v2086_v11  ;;  %v8359_v10 = vld [vmem:[#allocation7 + $0x498] ss:$20 sps:$4 sm:$0xff]   ;;  %v8362_v14 = vld [vmem:[#allocation7 + $0x240] ss:$20 sps:$4 sm:$0xff]  }
 0x23a   :  { %3480 = vmatmul.mubr.bf16.vlgmr.msra.gmra.mrb[8].mxu1 %v9146_v34  ;;  %3609 = vmatmul.mubr.bf16.vlgmr.msra.gmra.mrb[12].mxu0 %v9146_v34  ;;  %v8360_v11 = vld [vmem:[#allocation7 + $0xd8] ss:$20 sps:$4 sm:$0xff]  }
 0x23b   :  { %3491 = vmatpush1.bf16.msra.mxu1 %v8290_v15  ;;  %3620 = vmatpush1.bf16.msra.mxu0 %v8293_v16  ;;  %v8363_v15 = vld [vmem:[#allocation7 + $0x4c0] ss:$20 sps:$4 sm:$0xff]  }
 0x23c   :  { %3492 = vmatprep.subr.bf16.mxu1 %v8298_v17  ;;  %3621 = vmatprep.subr.bf16.mxu0 %v8301_v18  ;;  %v8364_v16 = vld [vmem:[#allocation7 + $0x100] ss:$20 sps:$4 sm:$0xff]   ;;  %v8366_v18 = vld [vmem:[#allocation7 + $0x268] ss:$20 sps:$4 sm:$0xff]  }
 0x23d   :  { %3522 = vmatprep.mubr.bf16.mxu1 %v8971_v23  ;;  %3651 = vmatprep.mubr.bf16.mxu0 %v8971_v23  ;;  %v8365_v17 = vld [vmem:[#allocation7 + $0x380] ss:$20 sps:$4 sm:$0xff]  }
 0x23f   :  { %3493 = vmatpush1.bf16.msra.mxu1 %v8296_v20  ;;  %3622 = vmatpush1.bf16.msra.mxu0 %v8299_v21  ;;  %v8367_v20 = vld [vmem:[#allocation7 + $0x4e8] ss:$20 sps:$4 sm:$0xff]  }
 0x240   :  { %3494 = vmatprep.subr.bf16.mxu1 %v8304_v22  ;;  %3623 = vmatprep.subr.bf16.mxu0 %v8307_v61  ;;  %v8368_v21 = vld [vmem:[#allocation7 + $0x128] ss:$20 sps:$4 sm:$0xff]   ;;  %v8380_v61 = vld [vmem:[#allocation8 + $0x4] ss:$20 sps:$4 sm:$0xff]  }
 0x241   :  { %v8369_v22 = vld [vmem:[#allocation7 + $0x3a8] ss:$20 sps:$4 sm:$0xff]  }
 0x243   :  { %3495 = vmatpush1.bf16.msra.mxu1 %v8302_v24  ;;  %3624 = vmatpush1.bf16.msra.mxu0 %v8305_v25  ;;  %v8370_v24 = vld [vmem:[#allocation7 + $0x510] ss:$20 sps:$4 sm:$0xff]   ;;  %v8972_v25 = vmov 0.0  }
 0x244   :  { %3496 = vmatprep.subr.bf16.mxu1 %v8310_v26  ;;  %3625 = vmatprep.subr.bf16.mxu0 %v8313_v27  ;;  %v8378_v26 = vld [vmem:[#allocation8] ss:$20 sps:$4 sm:$0xff]  }
 0x245   :  { %v8386_v27 = vld [vmem:[#allocation8 + $0x2c] ss:$20 sps:$4 sm:$0xff]  }
 0x247   :  { %3497 = vmatpush1.bf16.msra.mxu1 %v8308_v28  ;;  %3626 = vmatpush1.bf16.msra.mxu0 %v8311_v9  ;;  %v8371_v28 = vld [vmem:[#allocation7 + $0x538] ss:$20 sps:$4 sm:$0xff]   ;;  %v8384_v9 = vld [vmem:[#allocation8 + $0x28] ss:$20 sps:$4 sm:$0xff]  }
 0x248   :  { %3498 = vmatprep.subr.bf16.mxu1 %v8316_v29  ;;  %3627 = vmatprep.subr.bf16.mxu0 %v8319_v30  ;;  %v8392_v29 = vld [vmem:[#allocation8 + $0x54] ss:$20 sps:$4 sm:$0xff]  }
 0x249   :  { %v8372_v30 = vld [vmem:[#allocation7 + $0x560] ss:$20 sps:$4 sm:$0xff]  }
 0x24b   :  { %3499 = vmatpush1.bf16.msra.mxu1 %v8314_v31  ;;  %3628 = vmatpush1.bf16.msra.mxu0 %v8317_v32  ;;  %v8373_v31 = vld [vmem:[#allocation7 + $0x588] ss:$20 sps:$4 sm:$0xff]   ;;  %v8396_v32 = vld [vmem:[#allocation8 + $0x78] ss:$20 sps:$4 sm:$0xff]  }
 0x24c   :  { %3500 = vmatprep.subr.bf16.mxu1 %v8322_v35  ;;  %3629 = vmatprep.subr.bf16.mxu0 %v8325_v38  ;;  %v8404_v35 = vld [vmem:[#allocation8 + $0xa4] ss:$20 sps:$4 sm:$0xff]  }
 0x24d   :  { %v8374_v38 = vld [vmem:[#allocation7 + $0x5b0] ss:$20 sps:$4 sm:$0xff]  }
 0x24f   :  { %3501 = vmatpush1.bf16.msra.mxu1 %v8320_v39  ;;  %3630 = vmatpush1.bf16.msra.mxu0 %v8323_v40  ;;  %v8402_v39 = vld [vmem:[#allocation8 + $0xa0] ss:$20 sps:$4 sm:$0xff]  }
 0x250   :  { %3502 = vmatprep.subr.bf16.mxu1 %v8328_v41  ;;  %3631 = vmatprep.subr.bf16.mxu0 %v8331_v42  ;;  %v8410_v40 = vld [vmem:[#allocation8 + $0xcc] ss:$20 sps:$4 sm:$0xff]   ;;  %v8408_v42 = vld [vmem:[#allocation8 + $0xc8] ss:$20 sps:$4 sm:$0xff]  }
 0x251   :  { %v8375_v41 = vld [vmem:[#allocation7 + $0x5d8] ss:$20 sps:$4 sm:$0xff]  }
 0x253   :  { %3503 = vmatpush1.bf16.msra.mxu1 %v8326_v43  ;;  %3632 = vmatpush1.bf16.msra.mxu0 %v8329_v44  ;;  %v8416_v43 = vld [vmem:[#allocation8 + $0xf4] ss:$20 sps:$4 sm:$0xff]  }
 0x254   :  { %3504 = vmatprep.subr.bf16.mxu1 %v8334_v45  ;;  %3633 = vmatprep.subr.bf16.mxu0 %v8337_v46  ;;  %v8376_v44 = vld [vmem:[#allocation7 + $0x600] ss:$20 sps:$4 sm:$0xff]   ;;  %v8414_v45 = vld [vmem:[#allocation8 + $0xf0] ss:$20 sps:$4 sm:$0xff]  }
 0x255   :  { %v8422_v46 = vld [vmem:[#allocation8 + $0x11c] ss:$20 sps:$4 sm:$0xff]  }
 0x257   :  { %3505 = vmatpush1.bf16.msra.mxu1 %v8332_v47  ;;  %3634 = vmatpush1.bf16.msra.mxu0 %v8335_v48  ;;  %v8377_v47 = vld [vmem:[#allocation7 + $0x628] ss:$20 sps:$4 sm:$0xff]   ;;  %v8383_v48 = vld [vmem:[#allocation8 + $0xc] ss:$20 sps:$4 sm:$0xff]  }
 0x258   :  { %7435 = vmatprep.subr.bf16.mxu1 %v8338_v49  ;;  %7457 = vmatprep.subr.bf16.mxu0 %v8339_v50  ;;  %v8420_v49 = vld [vmem:[#allocation8 + $0x118] ss:$20 sps:$4 sm:$0xff]  }
 0x259   :  { %v8428_v50 = vld [vmem:[#allocation8 + $0x144] ss:$20 sps:$4 sm:$0xff]  }
 0x25a   :  { %3523 = vmatmul.mubr.bf16.vlgmr.msra.gmra.mrb[8].mxu1 %v9166_v19  ;;  %3652 = vmatmul.mubr.bf16.vlgmr.msra.gmra.mrb[12].mxu0 %v9166_v19 }
 0x25b   :  { %7436 = vmatpush3.bf16.msra.mxu1 %v8340_v51  ;;  %3694 = vmatprep.mubr.bf16.mxu1 %v9148_v36  ;;  %v8353_v36 = vld [vmem:[#allocation7 + $0x308] ss:$20 sps:$4 sm:$0xff]  }
 0x25c   :  { %7458 = vmatpush3.bf16.msra.mxu0 %v8341_v52  ;;  %3735 = vmatprep.mubr.bf16.mxu0 %v9150_v37  ;;  %v8355_v37 = vld [vmem:[#allocation7 + $0x470] ss:$20 sps:$4 sm:$0xff]   ;;  %v8381_v51 = vld [vmem:[#allocation8 + $0x8] ss:$20 sps:$4 sm:$0xff]  }
 0x25d   :  { %7437 = vmatprep.subr.bf16.mxu1 %v8342_v53  ;;  %7459 = vmatprep.subr.bf16.mxu0 %v8343_v54  ;;  %v8389_v52 = vld [vmem:[#allocation8 + $0x34] ss:$20 sps:$4 sm:$0xff]   ;;  %v8434_v54 = vld [vmem:[#allocation8 + $0x16c] ss:$20 sps:$4 sm:$0xff]  }
 0x25e   :  { %v8426_v53 = vld [vmem:[#allocation8 + $0x140] ss:$20 sps:$4 sm:$0xff]  }
 0x25f   :  { %7438 = vmatpush3.bf16.msra.mxu1 %v8344_v55  ;;  %v8387_v55 = vld [vmem:[#allocation8 + $0x30] ss:$20 sps:$4 sm:$0xff]  }
 0x260   :  { %7460 = vmatpush3.bf16.msra.mxu0 %v8345_v56  ;;  %7439 = vmatprep.subr.bf16.mxu1 %v8346_v57  ;;  %v8395_v56 = vld [vmem:[#allocation8 + $0x5c] ss:$20 sps:$4 sm:$0xff]  }
 0x261   :  { %7461 = vmatprep.subr.bf16.mxu0 %v8347_v58  ;;  %v8432_v57 = vld [vmem:[#allocation8 + $0x168] ss:$20 sps:$4 sm:$0xff]  }
 0x262   :  { %v8440_v58 = vld [vmem:[#allocation8 + $0x194] ss:$20 sps:$4 sm:$0xff]  }
 0x263   :  { %7440 = vmatpush3.bf16.msra.mxu1 %v8348_v5  ;;  %v8393_v5 = vld [vmem:[#allocation8 + $0x58] ss:$20 sps:$4 sm:$0xff]  }
 0x264   :  { %7462 = vmatpush3.bf16.msra.mxu0 %v8349_v12  ;;  %7441 = vmatprep.subr.bf16.mxu1 %v8350_v2  ;;  %v8401_v12 = vld [vmem:[#allocation8 + $0x84] ss:$20 sps:$4 sm:$0xff]  }
 0x265   :  { %7463 = vmatprep.subr.bf16.mxu0 %v8351_v3  ;;  %v8438_v2 = vld [vmem:[#allocation8 + $0x190] ss:$20 sps:$4 sm:$0xff]  }
 0x266   :  { %v8446_v3 = vld [vmem:[#allocation8 + $0x1bc] ss:$20 sps:$4 sm:$0xff]  }
 0x267   :  { %7442 = vmatpush3.bf16.msra.mxu1 %v8352_v4  ;;  %v8407_v4 = vld [vmem:[#allocation8 + $0xac] ss:$20 sps:$4 sm:$0xff]  }
 0x268   :  { %7464 = vmatpush3.bf16.msra.mxu0 %v8353_v36  ;;  %7443 = vmatprep.subr.bf16.mxu1 %v8354_v6  ;;  %v8444_v36 = vld [vmem:[#allocation8 + $0x1b8] ss:$20 sps:$4 sm:$0xff]  }
 0x269   :  { %7465 = vmatprep.subr.bf16.mxu0 %v8355_v37  ;;  %v8452_v6 = vld [vmem:[#allocation8 + $0x1e4] ss:$20 sps:$4 sm:$0xff]   ;;  %v8405_v37 = vld [vmem:[#allocation8 + $0xa8] ss:$20 sps:$4 sm:$0xff]  }
 0x26b   :  { %7444 = vmatpush3.bf16.msra.mxu1 %v8356_v7  ;;  %v8413_v7 = vld [vmem:[#allocation8 + $0xd4] ss:$20 sps:$4 sm:$0xff]  }
 0x26c   :  { %7466 = vmatpush3.bf16.msra.mxu0 %v8357_v8  ;;  %7445 = vmatprep.subr.bf16.mxu1 %v8358_v60  ;;  %v8450_v8 = vld [vmem:[#allocation8 + $0x1e0] ss:$20 sps:$4 sm:$0xff]  }
 0x26d   :  { %7467 = vmatprep.subr.bf16.mxu0 %v8359_v10  ;;  %v8458_v60 = vld [vmem:[#allocation8 + $0x20c] ss:$20 sps:$4 sm:$0xff]   ;;  %v8411_v10 = vld [vmem:[#allocation8 + $0xd0] ss:$20 sps:$4 sm:$0xff]  }
 0x26f   :  { %7446 = vmatpush3.bf16.msra.mxu1 %v8360_v11  ;;  %v8419_v11 = vld [vmem:[#allocation8 + $0xfc] ss:$20 sps:$4 sm:$0xff]  }
 0x270   :  { %7468 = vmatpush3.bf16.msra.mxu0 %v8361_v13  ;;  %7447 = vmatprep.subr.bf16.mxu1 %v8362_v14  ;;  %v8456_v13 = vld [vmem:[#allocation8 + $0x208] ss:$20 sps:$4 sm:$0xff]  }
 0x271   :  { %7469 = vmatprep.subr.bf16.mxu0 %v8363_v15  ;;  %v8464_v14 = vld [vmem:[#allocation8 + $0x234] ss:$20 sps:$4 sm:$0xff]   ;;  %v8417_v15 = vld [vmem:[#allocation8 + $0xf8] ss:$20 sps:$4 sm:$0xff]  }
 0x273   :  { %7448 = vmatpush3.bf16.msra.mxu1 %v8364_v16  ;;  %v8425_v16 = vld [vmem:[#allocation8 + $0x124] ss:$20 sps:$4 sm:$0xff]  }
 0x274   :  { %7470 = vmatpush3.bf16.msra.mxu0 %v8365_v17  ;;  %7449 = vmatprep.subr.bf16.mxu1 %v8366_v18  ;;  %v8462_v17 = vld [vmem:[#allocation8 + $0x230] ss:$20 sps:$4 sm:$0xff]  }
 0x275   :  { %7471 = vmatprep.subr.bf16.mxu0 %v8367_v20  ;;  %v8470_v18 = vld [vmem:[#allocation8 + $0x25c] ss:$20 sps:$4 sm:$0xff]   ;;  %v8423_v20 = vld [vmem:[#allocation8 + $0x120] ss:$20 sps:$4 sm:$0xff]  }
 0x277   :  { %7450 = vmatpush3.bf16.msra.mxu1 %v8368_v21  ;;  %v8431_v21 = vld [vmem:[#allocation8 + $0x14c] ss:$20 sps:$4 sm:$0xff]  }
 0x278   :  { %7472 = vmatpush3.bf16.msra.mxu0 %v8369_v22  ;;  %7594 = vmatprep.subr.bf16.mxu1 %v8972_v25  ;;  %v8468_v22 = vld [vmem:[#allocation8 + $0x258] ss:$20 sps:$4 sm:$0xff]  }
 0x279   :  { %5107 = vmatprep.subr.bf16.mxu0 %v8380_v61  ;;  %v8476_v61 = vld [vmem:[#allocation8 + $0x284] ss:$20 sps:$4 sm:$0xff]  }
 0x27a   :  { %3695 = vmatmul.mubr.bf16.vlgmr.msra.gmra.mrb[12].mxu1 %v9144_v33  ;;  %v8390_v33 = vld [vmem:[#allocation8 + $0x50] ss:$20 sps:$4 sm:$0xff]  }
 0x27b   :  { %3736 = vmatmul.mubr.bf16.vlgmr.msra.gmra.mrb[16].mxu0 %v9146_v34  ;;  %7595 = vmatpush3.bf16.msra.mxu1 %v8370_v24  ;;  %v8398_v34 = vld [vmem:[#allocation8 + $0x7c] ss:$20 sps:$4 sm:$0xff]  }
 0x27c   :  { %7596 = vmatprep.subr.bf16.mxu1 %v8972_v25  ;;  %7610 = vmatprep.mubr.msk.bf16.mxu1 %vm8973_vm0, %v8972_v25  ;;  %v8429_v24 = vld [vmem:[#allocation8 + $0x148] ss:$20 sps:$4 sm:$0xff]  }
 0x27d   :  { %5108 = vmatpush1.bf16.msra.mxu0 %v8378_v26  ;;  %v8437_v26 = vld [vmem:[#allocation8 + $0x174] ss:$20 sps:$4 sm:$0xff]  }
 0x27e   :  { %5109 = vmatprep.subr.bf16.mxu0 %v8386_v27  ;;  %v8435_v27 = vld [vmem:[#allocation8 + $0x170] ss:$20 sps:$4 sm:$0xff]  }
 0x27f   :  { %7597 = vmatpush3.bf16.msra.mxu1 %v8371_v28  ;;  %v8443_v28 = vld [vmem:[#allocation8 + $0x19c] ss:$20 sps:$4 sm:$0xff]  }
 0x280   :  { %7598 = vmatprep.subr.bf16.mxu1 %v8972_v25 }
 0x281   :  { %5110 = vmatpush1.bf16.msra.mxu0 %v8384_v9  ;;  %v8441_v9 = vld [vmem:[#allocation8 + $0x198] ss:$20 sps:$4 sm:$0xff]  }
 0x282   :  { %5111 = vmatprep.subr.bf16.mxu0 %v8392_v29  ;;  %v8449_v29 = vld [vmem:[#allocation8 + $0x1c4] ss:$20 sps:$4 sm:$0xff]  }
 0x283   :  { %7599 = vmatpush3.bf16.msra.mxu1 %v8372_v30  ;;  %v8447_v30 = vld [vmem:[#allocation8 + $0x1c0] ss:$20 sps:$4 sm:$0xff]  }
 0x284   :  { %7600 = vmatprep.subr.bf16.mxu1 %v8972_v25 }
 0x285   :  { %5112 = vmatpush1.bf16.msra.mxu0 %v8390_v33  ;;  %v8455_v33 = vld [vmem:[#allocation8 + $0x1ec] ss:$20 sps:$4 sm:$0xff]  }
 0x286   :  { %5113 = vmatprep.subr.bf16.mxu0 %v8398_v34  ;;  %v8453_v34 = vld [vmem:[#allocation8 + $0x1e8] ss:$20 sps:$4 sm:$0xff]  }
 0x287   :  { %7601 = vmatpush3.bf16.msra.mxu1 %v8373_v31  ;;  %v8461_v31 = vld [vmem:[#allocation8 + $0x214] ss:$20 sps:$4 sm:$0xff]  }
 0x288   :  { %7602 = vmatprep.subr.bf16.mxu1 %v8972_v25 }
 0x289   :  { %5114 = vmatpush1.bf16.msra.mxu0 %v8396_v32  ;;  %v8459_v32 = vld [vmem:[#allocation8 + $0x210] ss:$20 sps:$4 sm:$0xff]  }
 0x28a   :  { %5115 = vmatprep.subr.bf16.mxu0 %v8404_v35  ;;  %v8467_v35 = vld [vmem:[#allocation8 + $0x23c] ss:$20 sps:$4 sm:$0xff]  }
 0x28b   :  { %7603 = vmatpush3.bf16.msra.mxu1 %v8374_v38  ;;  %v8465_v38 = vld [vmem:[#allocation8 + $0x238] ss:$20 sps:$4 sm:$0xff]  }
 0x28c   :  { %7604 = vmatprep.subr.bf16.mxu1 %v8972_v25 }
 0x28d   :  { %5116 = vmatpush1.bf16.msra.mxu0 %v8402_v39  ;;  %v8473_v39 = vld [vmem:[#allocation8 + $0x264] ss:$20 sps:$4 sm:$0xff]  }
 0x28e   :  { %5117 = vmatprep.subr.bf16.mxu0 %v8410_v40  ;;  %v8471_v40 = vld [vmem:[#allocation8 + $0x260] ss:$20 sps:$4 sm:$0xff]  }
 0x28f   :  { %7605 = vmatpush3.bf16.msra.mxu1 %v8375_v41  ;;  %v8479_v41 = vld [vmem:[#allocation8 + $0x28c] ss:$20 sps:$4 sm:$0xff]  }
 0x290   :  { %7606 = vmatprep.subr.bf16.mxu1 %v8972_v25 }
 0x291   :  { %5118 = vmatpush1.bf16.msra.mxu0 %v8408_v42  ;;  %v9192_v42 = vld [vmem:[%s9298_s6] sm:$0x1f] }
 0x292   :  { %5119 = vmatprep.subr.bf16.mxu0 %v8416_v43  ;;  %v2342_v43 = vrot.slane %v9192_v42, %v9125_v62 }
 0x293   :  { %7607 = vmatpush3.bf16.msra.mxu1 %v8376_v44  ;;  %v2350_v44 = vrot.slane %v9192_v42, %v9128_v63 }
 0x294   :  { %7608 = vmatprep.subr.bf16.mxu1 %v8972_v25 }
 0x295   :  { %5120 = vmatpush1.bf16.msra.mxu0 %v8414_v45  ;;  %v2346_v45 = vrot.slane %v9192_v42, %v9131_v0 }
 0x296   :  { %5121 = vmatprep.subr.bf16.mxu0 %v8422_v46  ;;  %v2354_v46 = vrot.slane %v9192_v42, %v9134_v1 }
 0x297   :  { %7609 = vmatpush3.bf16.msra.mxu1 %v8377_v47 }
 0x298   :  { %5236 = vmatprep.subr.bf16.mxu1 %v8383_v48 }
 0x299   :  { %5122 = vmatpush1.bf16.msra.mxu0 %v8420_v49 }
 0x29a   :  { %7611 = vmatmul.mubr.bf16.vlgmr.msra.gmra.mrb[16].mxu1 %v9166_v19  ;;  %5123 = vmatprep.subr.bf16.mxu0 %v8428_v50  ;;  %v8399_v19 = vld [vmem:[#allocation8 + $0x80] ss:$20 sps:$4 sm:$0xff]  }
 0x29b   :  { %5237 = vmatpush1.bf16.msra.mxu1 %v8381_v51 }
 0x29c   :  { %5238 = vmatprep.subr.bf16.mxu1 %v8389_v52 }
 0x29d   :  { %5124 = vmatpush1.bf16.msra.mxu0 %v8426_v53 }
 0x29e   :  { %5125 = vmatprep.subr.bf16.mxu0 %v8434_v54 }
 0x29f   :  { %5239 = vmatpush1.bf16.msra.mxu1 %v8387_v55 }
 0x2a0   :  { %5240 = vmatprep.subr.bf16.mxu1 %v8395_v56 }
 0x2a1   :  { %5126 = vmatpush1.bf16.msra.mxu0 %v8432_v57 }
 0x2a2   :  { %5127 = vmatprep.subr.bf16.mxu0 %v8440_v58 }
 0x2a3   :  { %5241 = vmatpush1.bf16.msra.mxu1 %v8393_v5 }
 0x2a4   :  { %5242 = vmatprep.subr.bf16.mxu1 %v8401_v12 }
 0x2a5   :  { %5128 = vmatpush1.bf16.msra.mxu0 %v8438_v2 }
 0x2a6   :  { %5129 = vmatprep.subr.bf16.mxu0 %v8446_v3 }
 0x2a7   :  { %5243 = vmatpush1.bf16.msra.mxu1 %v8399_v19 }
 0x2a8   :  { %5244 = vmatprep.subr.bf16.mxu1 %v8407_v4 }
 0x2a9   :  { %5130 = vmatpush1.bf16.msra.mxu0 %v8444_v36 }
 0x2aa   :  { %5131 = vmatprep.subr.bf16.mxu0 %v8452_v6 }
 0x2ab   :  { %5245 = vmatpush1.bf16.msra.mxu1 %v8405_v37 }
 0x2ac   :  { %5246 = vmatprep.subr.bf16.mxu1 %v8413_v7 }
 0x2ad   :  { %5132 = vmatpush1.bf16.msra.mxu0 %v8450_v8 }
 0x2ae   :  { %5133 = vmatprep.subr.bf16.mxu0 %v8458_v60 }
 0x2af   :  { %5247 = vmatpush1.bf16.msra.mxu1 %v8411_v10 }
 0x2b0   :  { %5248 = vmatprep.subr.bf16.mxu1 %v8419_v11 }
 0x2b1   :  { %5134 = vmatpush1.bf16.msra.mxu0 %v8456_v13 }
 0x2b2   :  { %5135 = vmatprep.subr.bf16.mxu0 %v8464_v14 }
 0x2b3   :  { %5249 = vmatpush1.bf16.msra.mxu1 %v8417_v15  ;;  %v8474_v15 = vld [vmem:[#allocation8 + $0x280] ss:$20 sps:$4 sm:$0xff]  }
 0x2b4   :  { %5250 = vmatprep.subr.bf16.mxu1 %v8425_v16  ;;  %v8477_v16 = vld [vmem:[#allocation8 + $0x288] ss:$20 sps:$4 sm:$0xff]  }
 0x2b5   :  { %5136 = vmatpush1.bf16.msra.mxu0 %v8462_v17  ;;  %v8482_v17 = vld [vmem:[#allocation8 + $0x2ac] ss:$20 sps:$4 sm:$0xff]  }
 0x2b6   :  { %5137 = vmatprep.subr.bf16.mxu0 %v8470_v18  ;;  %v8485_v18 = vld [vmem:[#allocation8 + $0x2b4] ss:$20 sps:$4 sm:$0xff]  }
 0x2b7   :  { %5251 = vmatpush1.bf16.msra.mxu1 %v8423_v20  ;;  %v8480_v20 = vld [vmem:[#allocation8 + $0x2a8] ss:$20 sps:$4 sm:$0xff]  }
 0x2b8   :  { %5252 = vmatprep.subr.bf16.mxu1 %v8431_v21  ;;  %v8483_v21 = vld [vmem:[#allocation8 + $0x2b0] ss:$20 sps:$4 sm:$0xff]  }
 0x2b9   :  { %5138 = vmatpush1.bf16.msra.mxu0 %v8468_v22  ;;  %v8488_v22 = vld [vmem:[#allocation8 + $0x2d4] ss:$20 sps:$4 sm:$0xff]  }
 0x2ba   :  { %5150 = vmatprep.subr.bf16.mxu0 %v8476_v61  ;;  %v8491_v61 = vld [vmem:[#allocation8 + $0x2dc] ss:$20 sps:$4 sm:$0xff]  }
 0x2bb   :  { %5253 = vmatpush1.bf16.msra.mxu1 %v8429_v24  ;;  %v8486_v24 = vld [vmem:[#allocation8 + $0x2d0] ss:$20 sps:$4 sm:$0xff]  }
 0x2bc   :  { %5254 = vmatprep.subr.bf16.mxu1 %v8437_v26  ;;  %v8489_v26 = vld [vmem:[#allocation8 + $0x2d8] ss:$20 sps:$4 sm:$0xff]  }
 0x2bf   :  { %5255 = vmatpush1.bf16.msra.mxu1 %v8435_v27  ;;  %v8494_v27 = vld [vmem:[#allocation8 + $0x2fc] ss:$20 sps:$4 sm:$0xff]  }
 0x2c0   :  { %5256 = vmatprep.subr.bf16.mxu1 %v8443_v28  ;;  %v8497_v28 = vld [vmem:[#allocation8 + $0x304] ss:$20 sps:$4 sm:$0xff]  }
 0x2c3   :  { %5257 = vmatpush1.bf16.msra.mxu1 %v8441_v9  ;;  %v8492_v9 = vld [vmem:[#allocation8 + $0x2f8] ss:$20 sps:$4 sm:$0xff]  }
 0x2c4   :  { %5258 = vmatprep.subr.bf16.mxu1 %v8449_v29  ;;  %v8495_v29 = vld [vmem:[#allocation8 + $0x300] ss:$20 sps:$4 sm:$0xff]  }
 0x2c7   :  { %5259 = vmatpush1.bf16.msra.mxu1 %v8447_v30  ;;  %v8500_v30 = vld [vmem:[#allocation8 + $0x324] ss:$20 sps:$4 sm:$0xff]  }
 0x2c8   :  { %5260 = vmatprep.subr.bf16.mxu1 %v8455_v33  ;;  %v8503_v33 = vld [vmem:[#allocation8 + $0x32c] ss:$20 sps:$4 sm:$0xff]  }
 0x2cb   :  { %5261 = vmatpush1.bf16.msra.mxu1 %v8453_v34  ;;  %v8498_v34 = vld [vmem:[#allocation8 + $0x320] ss:$20 sps:$4 sm:$0xff]  }
 0x2cc   :  { %5262 = vmatprep.subr.bf16.mxu1 %v8461_v31  ;;  %v8501_v31 = vld [vmem:[#allocation8 + $0x328] ss:$20 sps:$4 sm:$0xff]  }
 0x2cf   :  { %5263 = vmatpush1.bf16.msra.mxu1 %v8459_v32  ;;  %v8506_v32 = vld [vmem:[#allocation8 + $0x34c] ss:$20 sps:$4 sm:$0xff]  }
 0x2d0   :  { %5264 = vmatprep.subr.bf16.mxu1 %v8467_v35  ;;  %v8509_v35 = vld [vmem:[#allocation8 + $0x354] ss:$20 sps:$4 sm:$0xff]  }
 0x2d3   :  { %5265 = vmatpush1.bf16.msra.mxu1 %v8465_v38  ;;  %v8504_v38 = vld [vmem:[#allocation8 + $0x348] ss:$20 sps:$4 sm:$0xff]  }
 0x2d4   :  { %5266 = vmatprep.subr.bf16.mxu1 %v8473_v39  ;;  %v8507_v39 = vld [vmem:[#allocation8 + $0x350] ss:$20 sps:$4 sm:$0xff]  }
 0x2d7   :  { %5267 = vmatpush1.bf16.msra.mxu1 %v8471_v40  ;;  %v8512_v40 = vld [vmem:[#allocation8 + $0x374] ss:$20 sps:$4 sm:$0xff]  }
 0x2d8   :  { %5279 = vmatprep.subr.bf16.mxu1 %v8479_v41  ;;  %v8515_v41 = vld [vmem:[#allocation8 + $0x37c] ss:$20 sps:$4 sm:$0xff]  }
 0x32d   :  { %v3524_v47 = vpop.f32.mrb[8].mxu1  ;;  %v3653_v48 = vpop.f32.mrb[12].mxu0 }
 0x32e   :  { %v7662_v49 = vadd.f32 %v3524_v47, %v2342_v43  ;;  %v7666_v50 = vadd.f32 %v3653_v48, %v2350_v44  ;;  %v3526_v51 = vpop.f32.mrb[9].mxu1  ;;  %v3655_v52 = vpop.f32.mrb[13].mxu0 }
 0x32f   :  { %v7663_v53 = vadd.f32 %v3526_v51, %v2346_v45  ;;  %v7667_v54 = vadd.f32 %v3655_v52, %v2354_v46  ;;  %v3528_v55 = vpop.f32.mrb[10].mxu1  ;;  %v3657_v56 = vpop.f32.mrb[14].mxu0 }
 0x330   :  { %v7664_v57 = vadd.f32 %v3528_v55, %v2342_v43  ;;  %v7668_v58 = vadd.f32 %v3657_v56, %v2350_v44  ;;  %v3530_v5 = vpop.f32.mrb[11].mxu1  ;;  %v3659_v12 = vpop.f32.mrb[15].mxu0  ;;  %v3785_v19 = vmax.f32 %v7662_v49, 0.0  ;;  %v3787_v4 = vmax.f32 %v7666_v50, 0.0  ;;  %v8518_v49 = vld [vmem:[#allocation8 + $0x39c] ss:$20 sps:$4 sm:$0xff]  }
 0x331   :  { %v7665_v2 = vadd.f32 %v3530_v5, %v2346_v45  ;;  %v7669_v3 = vadd.f32 %v3659_v12, %v2354_v46  ;;  %v3786_v37 = vmax.f32 %v7663_v53, 0.0  ;;  %v3788_v7 = vmax.f32 %v7667_v54, 0.0  ;;  %v8510_v45 = vld [vmem:[#allocation8 + $0x370] ss:$20 sps:$4 sm:$0xff]   ;;  %v8513_v46 = vld [vmem:[#allocation8 + $0x378] ss:$20 sps:$4 sm:$0xff]  }
 0x332   :  { %v3790_v36 = vmax.f32 %v7664_v57, 0.0  ;;  %v3792_v6 = vmax.f32 %v7668_v58, 0.0  ;;  %v2358_v44 = vrot.slane %v9192_v42, %v9159_v59  ;;  %v8521_v50 = vld [vmem:[#allocation8 + $0x3a4] ss:$20 sps:$4 sm:$0xff]   ;;  %v8519_v12 = vld [vmem:[#allocation8 + $0x3a0] ss:$20 sps:$4 sm:$0xff]  }
 0x333   :  { %v3791_v8 = vmax.f32 %v7665_v2, 0.0  ;;  %v3793_v60 = vmax.f32 %v7669_v3, 0.0  ;;  %v8516_v42 = vld [vmem:[#allocation8 + $0x398] ss:$20 sps:$4 sm:$0xff]  }
 0x334   :  { %v9202_v10 = vpack.c.bf16 %v3790_v36, %v3785_v19  ;;  %v9204_v11 = vpack.c.bf16 %v3792_v6, %v3787_v4  ;;  %v8524_v3 = vld [vmem:[#allocation8 + $0x3c4] ss:$20 sps:$4 sm:$0xff]   ;;  %v8527_v19 = vld [vmem:[#allocation8 + $0x3cc] ss:$20 sps:$4 sm:$0xff]  }
 0x335   :  { %v9206_v13 = vpack.c.bf16 %v3791_v8, %v3786_v37  ;;  %v9208_v14 = vpack.c.bf16 %v3793_v60, %v3788_v7  ;;  %v8522_v6 = vld [vmem:[#allocation8 + $0x3c0] ss:$20 sps:$4 sm:$0xff]   ;;  %v8525_v37 = vld [vmem:[#allocation8 + $0x3c8] ss:$20 sps:$4 sm:$0xff]  }
 0x336   :  { %v8530_v8 = vld [vmem:[#allocation8 + $0x3ec] ss:$20 sps:$4 sm:$0xff]   ;;  %v8533_v60 = vld [vmem:[#allocation8 + $0x3f4] ss:$20 sps:$4 sm:$0xff]  }
 0x337   :  { %5139 = vmatprep.mubr.bf16.mxu0 %v9206_v13  ;;  %5268 = vmatprep.mubr.bf16.mxu1 %v9206_v13 }
 0x338   :  { %5140 = vmatmul.mubr.bf16.vlgmr.msra.gmra.mrb[20].mxu0 %v9202_v10  ;;  %5269 = vmatmul.mubr.bf16.vlgmr.msra.gmra.mrb[20].mxu1 %v9202_v10 }
 0x339   :  { %5151 = vmatpush1.bf16.msra.mxu0 %v8474_v15  ;;  %5280 = vmatpush1.bf16.msra.mxu1 %v8477_v16  ;;  %v8528_v15 = vld [vmem:[#allocation8 + $0x3e8] ss:$20 sps:$4 sm:$0xff]   ;;  %v8531_v16 = vld [vmem:[#allocation8 + $0x3f0] ss:$20 sps:$4 sm:$0xff]  }
 0x33a   :  { %5182 = vmatprep.mubr.bf16.mxu0 %v9208_v14  ;;  %5311 = vmatprep.mubr.bf16.mxu1 %v9208_v14 }
 0x33b   :  { %5152 = vmatprep.subr.bf16.mxu0 %v8482_v17  ;;  %5281 = vmatprep.subr.bf16.mxu1 %v8485_v18  ;;  %v8536_v17 = vld [vmem:[#allocation8 + $0x414] ss:$20 sps:$4 sm:$0xff]   ;;  %v8539_v18 = vld [vmem:[#allocation8 + $0x41c] ss:$20 sps:$4 sm:$0xff]  }
 0x33d   :  { %5153 = vmatpush1.bf16.msra.mxu0 %v8480_v20  ;;  %5282 = vmatpush1.bf16.msra.mxu1 %v8483_v21  ;;  %v8534_v20 = vld [vmem:[#allocation8 + $0x410] ss:$20 sps:$4 sm:$0xff]   ;;  %v8537_v21 = vld [vmem:[#allocation8 + $0x418] ss:$20 sps:$4 sm:$0xff]  }
 0x33e   :  { %5154 = vmatprep.subr.bf16.mxu0 %v8488_v22  ;;  %5283 = vmatprep.subr.bf16.mxu1 %v8491_v61  ;;  %v8542_v22 = vld [vmem:[#allocation8 + $0x43c] ss:$20 sps:$4 sm:$0xff]   ;;  %v8545_v61 = vld [vmem:[#allocation8 + $0x444] ss:$20 sps:$4 sm:$0xff]  }
 0x341   :  { %5155 = vmatpush1.bf16.msra.mxu0 %v8486_v24  ;;  %5284 = vmatpush1.bf16.msra.mxu1 %v8489_v26  ;;  %v8540_v24 = vld [vmem:[#allocation8 + $0x438] ss:$20 sps:$4 sm:$0xff]   ;;  %v8543_v26 = vld [vmem:[#allocation8 + $0x440] ss:$20 sps:$4 sm:$0xff]  }
 0x342   :  { %5156 = vmatprep.subr.bf16.mxu0 %v8494_v27  ;;  %5285 = vmatprep.subr.bf16.mxu1 %v8497_v28  ;;  %v8548_v27 = vld [vmem:[#allocation8 + $0x464] ss:$20 sps:$4 sm:$0xff]   ;;  %v8551_v28 = vld [vmem:[#allocation8 + $0x46c] ss:$20 sps:$4 sm:$0xff]  }
 0x345   :  { %5157 = vmatpush1.bf16.msra.mxu0 %v8492_v9  ;;  %5286 = vmatpush1.bf16.msra.mxu1 %v8495_v29  ;;  %v8546_v9 = vld [vmem:[#allocation8 + $0x460] ss:$20 sps:$4 sm:$0xff]   ;;  %v8549_v29 = vld [vmem:[#allocation8 + $0x468] ss:$20 sps:$4 sm:$0xff]  }
 0x346   :  { %5158 = vmatprep.subr.bf16.mxu0 %v8500_v30  ;;  %5287 = vmatprep.subr.bf16.mxu1 %v8503_v33  ;;  %v8554_v30 = vld [vmem:[#allocation8 + $0x48c] ss:$20 sps:$4 sm:$0xff]   ;;  %v8557_v33 = vld [vmem:[#allocation8 + $0x494] ss:$20 sps:$4 sm:$0xff]  }
 0x349   :  { %5159 = vmatpush1.bf16.msra.mxu0 %v8498_v34  ;;  %5288 = vmatpush1.bf16.msra.mxu1 %v8501_v31  ;;  %v8552_v34 = vld [vmem:[#allocation8 + $0x488] ss:$20 sps:$4 sm:$0xff]   ;;  %v8555_v31 = vld [vmem:[#allocation8 + $0x490] ss:$20 sps:$4 sm:$0xff]  }
 0x34a   :  { %5160 = vmatprep.subr.bf16.mxu0 %v8506_v32  ;;  %5289 = vmatprep.subr.bf16.mxu1 %v8509_v35  ;;  %v8560_v32 = vld [vmem:[#allocation8 + $0x4b4] ss:$20 sps:$4 sm:$0xff]   ;;  %v8563_v35 = vld [vmem:[#allocation8 + $0x4bc] ss:$20 sps:$4 sm:$0xff]  }
 0x34d   :  { %5161 = vmatpush1.bf16.msra.mxu0 %v8504_v38  ;;  %5290 = vmatpush1.bf16.msra.mxu1 %v8507_v39  ;;  %v7451_v43 = vpop.f32.mrb[12].mxu1  ;;  %v8558_v39 = vld [vmem:[#allocation8 + $0x4b0] ss:$20 sps:$4 sm:$0xff]  }
 0x34e   :  { %v7473_v47 = vpop.f32.mrb[16].mxu0  ;;  %v7452_v48 = vpop.f32.mrb[13].mxu1  ;;  %5162 = vmatprep.subr.bf16.mxu0 %v8512_v40  ;;  %5291 = vmatprep.subr.bf16.mxu1 %v8515_v41  ;;  %v8561_v40 = vld [vmem:[#allocation8 + $0x4b8] ss:$20 sps:$4 sm:$0xff]  }
 0x34f   :  { %v7453_v51 = vadd.f32 %v7452_v48, %v7451_v43  ;;  %v7474_v52 = vpop.f32.mrb[17].mxu0  ;;  %v7454_v53 = vpop.f32.mrb[14].mxu1 }
 0x350   :  { %v7475_v54 = vadd.f32 %v7474_v52, %v7473_v47  ;;  %v7476_v55 = vpop.f32.mrb[18].mxu0  ;;  %v7455_v56 = vpop.f32.mrb[15].mxu1 }
 0x351   :  { %v3697_v57 = vadd.f32 %v7453_v51, %v2358_v44  ;;  %v7456_v58 = vadd.f32 %v7455_v56, %v7454_v53  ;;  %v7477_v5 = vpop.f32.mrb[19].mxu0  ;;  %5163 = vmatpush1.bf16.msra.mxu0 %v8510_v45  ;;  %5292 = vmatpush1.bf16.msra.mxu1 %v8513_v46  ;;  %v8569_v45 = vld [vmem:[#allocation8 + $0x4e4] ss:$20 sps:$4 sm:$0xff]   ;;  %v8570_v56 = vld [vmem:[#allocation8 + $0x500] ss:$20 sps:$4 sm:$0xff]  }
 0x352   :  { %v7478_v2 = vadd.f32 %v7477_v5, %v7476_v55  ;;  %5164 = vmatprep.subr.bf16.mxu0 %v8518_v49  ;;  %5293 = vmatprep.subr.bf16.mxu1 %v8521_v50  ;;  %v8564_v49 = vld [vmem:[#allocation8 + $0x4d8] ss:$20 sps:$4 sm:$0xff]   ;;  %v8567_v50 = vld [vmem:[#allocation8 + $0x4e0] ss:$20 sps:$4 sm:$0xff]  }
 0x353   :  { %v3700_v4 = vadd.f32 %v7456_v58, %v2358_v44  ;;  %v3738_v36 = vadd.f32 %v7475_v54, %v3697_v57  ;;  %v8566_v44 = vld [vmem:[#allocation8 + $0x4dc] ss:$20 sps:$4 sm:$0xff]   ;;  %v8572_v53 = vld [vmem:[#allocation8 + $0x504] ss:$20 sps:$4 sm:$0xff]   ;;  %v8575_v54 = vld [vmem:[#allocation8 + $0x50c] ss:$20 sps:$4 sm:$0xff]  }
 0x354   :  { %v8573_v57 = vld [vmem:[#allocation8 + $0x508] ss:$20 sps:$4 sm:$0xff]   ;;  %v8578_v58 = vld [vmem:[#allocation8 + $0x52c] ss:$20 sps:$4 sm:$0xff]  }
 0x355   :  { %5165 = vmatpush1.bf16.msra.mxu0 %v8516_v42  ;;  %5294 = vmatpush1.bf16.msra.mxu1 %v8519_v12  ;;  %v3741_v7 = vadd.f32 %v7478_v2, %v3700_v4  ;;  %v8581_v5 = vld [vmem:[#allocation8 + $0x534] ss:$20 sps:$4 sm:$0xff]   ;;  %v8579_v12 = vld [vmem:[#allocation8 + $0x530] ss:$20 sps:$4 sm:$0xff]   ;;  %v8585_v4 = vld [vmem:[#allocation8 + $0x558] ss:$20 sps:$4 sm:$0xff]  }
 0x356   :  { %5166 = vmatprep.subr.bf16.mxu0 %v8524_v3  ;;  %5295 = vmatprep.subr.bf16.mxu1 %v8527_v19  ;;  %v8576_v42 = vld [vmem:[#allocation8 + $0x528] ss:$20 sps:$4 sm:$0xff]   ;;  %v8582_v19 = vld [vmem:[#allocation8 + $0x550] ss:$20 sps:$4 sm:$0xff]  }
 0x357   :  { %v8584_v2 = vld [vmem:[#allocation8 + $0x554] ss:$20 sps:$4 sm:$0xff]   ;;  %v8587_v3 = vld [vmem:[#allocation8 + $0x55c] ss:$20 sps:$4 sm:$0xff]  }
 0x359   :  { %5167 = vmatpush1.bf16.msra.mxu0 %v8522_v6  ;;  %5296 = vmatpush1.bf16.msra.mxu1 %v8525_v37  ;;  %v8593_v6 = vld [vmem:[#allocation8 + $0x584] ss:$20 sps:$4 sm:$0xff]  }
 0x35a   :  { %5168 = vmatprep.subr.bf16.mxu0 %v8530_v8  ;;  %5297 = vmatprep.subr.bf16.mxu1 %v8533_v60  ;;  %v8588_v37 = vld [vmem:[#allocation8 + $0x578] ss:$20 sps:$4 sm:$0xff]  }
 0x35b   :  { %v8596_v8 = vld [vmem:[#allocation8 + $0x5a4] ss:$20 sps:$4 sm:$0xff]   ;;  %v8599_v60 = vld [vmem:[#allocation8 + $0x5ac] ss:$20 sps:$4 sm:$0xff]  }
 0x35d   :  { %5169 = vmatpush1.bf16.msra.mxu0 %v8528_v15  ;;  %5298 = vmatpush1.bf16.msra.mxu1 %v8531_v16  ;;  %v8594_v15 = vld [vmem:[#allocation8 + $0x5a0] ss:$20 sps:$4 sm:$0xff]   ;;  %v8597_v16 = vld [vmem:[#allocation8 + $0x5a8] ss:$20 sps:$4 sm:$0xff]  }
 0x35e   :  { %5170 = vmatprep.subr.bf16.mxu0 %v8536_v17  ;;  %5299 = vmatprep.subr.bf16.mxu1 %v8539_v18  ;;  %v8602_v17 = vld [vmem:[#allocation8 + $0x5cc] ss:$20 sps:$4 sm:$0xff]   ;;  %v8605_v18 = vld [vmem:[#allocation8 + $0x5d4] ss:$20 sps:$4 sm:$0xff]  }
 0x361   :  { %5171 = vmatpush1.bf16.msra.mxu0 %v8534_v20  ;;  %5300 = vmatpush1.bf16.msra.mxu1 %v8537_v21  ;;  %v8600_v20 = vld [vmem:[#allocation8 + $0x5c8] ss:$20 sps:$4 sm:$0xff]   ;;  %v8603_v21 = vld [vmem:[#allocation8 + $0x5d0] ss:$20 sps:$4 sm:$0xff]  }
 0x362   :  { %5172 = vmatprep.subr.bf16.mxu0 %v8542_v22  ;;  %5301 = vmatprep.subr.bf16.mxu1 %v8545_v61  ;;  %v8608_v22 = vld [vmem:[#allocation8 + $0x5f4] ss:$20 sps:$4 sm:$0xff]   ;;  %v8611_v61 = vld [vmem:[#allocation8 + $0x5fc] ss:$20 sps:$4 sm:$0xff]  }
 0x365   :  { %5173 = vmatpush1.bf16.msra.mxu0 %v8540_v24  ;;  %5302 = vmatpush1.bf16.msra.mxu1 %v8543_v26  ;;  %v8606_v24 = vld [vmem:[#allocation8 + $0x5f0] ss:$20 sps:$4 sm:$0xff]   ;;  %v8609_v26 = vld [vmem:[#allocation8 + $0x5f8] ss:$20 sps:$4 sm:$0xff]  }
 0x366   :  { %5174 = vmatprep.subr.bf16.mxu0 %v8548_v27  ;;  %5303 = vmatprep.subr.bf16.mxu1 %v8551_v28  ;;  %v8614_v27 = vld [vmem:[#allocation8 + $0x61c] ss:$20 sps:$4 sm:$0xff]   ;;  %v8617_v28 = vld [vmem:[#allocation8 + $0x624] ss:$20 sps:$4 sm:$0xff]  }
 0x369   :  { %5175 = vmatpush1.bf16.msra.mxu0 %v8546_v9  ;;  %5304 = vmatpush1.bf16.msra.mxu1 %v8549_v29  ;;  %v8612_v9 = vld [vmem:[#allocation8 + $0x618] ss:$20 sps:$4 sm:$0xff]   ;;  %v8615_v29 = vld [vmem:[#allocation8 + $0x620] ss:$20 sps:$4 sm:$0xff]  }
 0x36a   :  { %5176 = vmatprep.subr.bf16.mxu0 %v8554_v30  ;;  %5305 = vmatprep.subr.bf16.mxu1 %v8557_v33  ;;  %v8618_v30 = vld [vmem:[#allocation8 + $0x150] ss:$20 sps:$4 sm:$0xff]  }
 0x36b   :  { %v8619_v33 = vld [vmem:[#allocation8 + $0x3d0] ss:$20 sps:$4 sm:$0xff]  }
 0x36d   :  { %5177 = vmatpush1.bf16.msra.mxu0 %v8552_v34  ;;  %5306 = vmatpush1.bf16.msra.mxu1 %v8555_v31  ;;  %v3778_v38 = vpop.f32.mrb[16].mxu1  ;;  %v8620_v34 = vld [vmem:[#allocation8 + $0x10] ss:$20 sps:$4 sm:$0xff]  }
 0x36e   :  { %v3779_v41 = vadd.f32 %v3778_v38, %v3738_v36  ;;  %v7612_v43 = vpop.f32.mrb[17].mxu1  ;;  %5178 = vmatprep.subr.bf16.mxu0 %v8560_v32  ;;  %5307 = vmatprep.subr.bf16.mxu1 %v8563_v35  ;;  %v8590_v36 = vld [vmem:[#allocation8 + $0x57c] ss:$20 sps:$4 sm:$0xff]   ;;  %v8622_v32 = vld [vmem:[#allocation8 + $0x178] ss:$20 sps:$4 sm:$0xff]  }
 0x36f   :  { %v3781_v46 = vpop.f32.mrb[18].mxu1  ;;  %v8621_v31 = vld [vmem:[#allocation8 + $0x290] ss:$20 sps:$4 sm:$0xff]   ;;  %v8623_v35 = vld [vmem:[#allocation8 + $0x3f8] ss:$20 sps:$4 sm:$0xff]  }
 0x370   :  { %v3782_v47 = vadd.f32 %v3781_v46, %v3741_v7  ;;  %v7613_v48 = vpop.f32.mrb[19].mxu1  ;;  %v3789_v51 = vmax.f32 %v3779_v41, 0.0  ;;  %v8591_v7 = vld [vmem:[#allocation8 + $0x580] ss:$20 sps:$4 sm:$0xff]   ;;  %v8624_v38 = vld [vmem:[#allocation8 + $0x38] ss:$20 sps:$4 sm:$0xff]  }
 0x371   :  { %5179 = vmatpush1.bf16.msra.mxu0 %v8558_v39  ;;  %5308 = vmatpush1.bf16.msra.mxu1 %v8561_v40  ;;  %v8625_v39 = vld [vmem:[#allocation8 + $0x2b8] ss:$20 sps:$4 sm:$0xff]   ;;  %v8626_v40 = vld [vmem:[#allocation8 + $0x1a0] ss:$20 sps:$4 sm:$0xff]   ;;  %v8631_v46 = vld [vmem:[#allocation8 + $0x448] ss:$20 sps:$4 sm:$0xff]  }
 0x372   :  { %v3794_v52 = vmax.f32 %v3782_v47, 0.0  ;;  %5180 = vmatprep.subr.bf16.mxu0 %v8566_v44  ;;  %5309 = vmatprep.subr.bf16.mxu1 %v8569_v45  ;;  %v8627_v41 = vld [vmem:[#allocation8 + $0x420] ss:$20 sps:$4 sm:$0xff]   ;;  %v8630_v45 = vld [vmem:[#allocation8 + $0x1c8] ss:$20 sps:$4 sm:$0xff]  }
 0x373   :  { %v8628_v43 = vld [vmem:[#allocation8 + $0x60] ss:$20 sps:$4 sm:$0xff]   ;;  %v8632_v47 = vld [vmem:[#allocation8 + $0x88] ss:$20 sps:$4 sm:$0xff]   ;;  %v8634_v48 = vld [vmem:[#allocation8 + $0x1f0] ss:$20 sps:$4 sm:$0xff]  }
 0x374   :  { %v9218_v55 = vpack.c.bf16 %v3794_v52, %v3789_v51  ;;  %v8629_v44 = vld [vmem:[#allocation8 + $0x2e0] ss:$20 sps:$4 sm:$0xff]   ;;  %v8638_v51 = vld [vmem:[#allocation8 + $0x218] ss:$20 sps:$4 sm:$0xff]  }
 0x375   :  { %5181 = vmatpush1.bf16.msra.mxu0 %v8564_v49  ;;  %5310 = vmatpush1.bf16.msra.mxu1 %v8567_v50  ;;  %v8636_v49 = vld [vmem:[#allocation8 + $0xb0] ss:$20 sps:$4 sm:$0xff]   ;;  %v8639_v52 = vld [vmem:[#allocation8 + $0x498] ss:$20 sps:$4 sm:$0xff]  }
 0x376   :  { %5193 = vmatprep.subr.bf16.mxu0 %v8572_v53  ;;  %5322 = vmatprep.subr.bf16.mxu1 %v8575_v54  ;;  %v8637_v50 = vld [vmem:[#allocation8 + $0x330] ss:$20 sps:$4 sm:$0xff]   ;;  %v8640_v53 = vld [vmem:[#allocation8 + $0xd8] ss:$20 sps:$4 sm:$0xff]  }
 0x377   :  { %v8641_v54 = vld [vmem:[#allocation8 + $0x358] ss:$20 sps:$4 sm:$0xff]  }
 0x378   :  { %5183 = vmatmul.mubr.bf16.vlgmr.msra.gmra.mrb[20].mxu0 %v9204_v11  ;;  %5312 = vmatmul.mubr.bf16.vlgmr.msra.gmra.mrb[20].mxu1 %v9204_v11 }
 0x379   :  { %5194 = vmatpush1.bf16.msra.mxu0 %v8570_v56  ;;  %5323 = vmatpush1.bf16.msra.mxu1 %v8573_v57  ;;  %v8642_v56 = vld [vmem:[#allocation8 + $0x240] ss:$20 sps:$4 sm:$0xff]  }
 0x37a   :  { %5195 = vmatprep.subr.bf16.mxu0 %v8578_v58  ;;  %5324 = vmatprep.subr.bf16.mxu1 %v8581_v5  ;;  %v8643_v57 = vld [vmem:[#allocation8 + $0x4c0] ss:$20 sps:$4 sm:$0xff]  }
 0x37b   :  { %5225 = vmatprep.mubr.bf16.mxu0 %v8971_v23  ;;  %5354 = vmatprep.mubr.bf16.mxu1 %v8971_v23  ;;  %v8644_v58 = vld [vmem:[#allocation8 + $0x100] ss:$20 sps:$4 sm:$0xff]  }
 0x37c   :  { %v8645_v5 = vld [vmem:[#allocation8 + $0x380] ss:$20 sps:$4 sm:$0xff]  }
 0x37d   :  { %5196 = vmatpush1.bf16.msra.mxu0 %v8576_v42  ;;  %5325 = vmatpush1.bf16.msra.mxu1 %v8579_v12  ;;  %v8646_v42 = vld [vmem:[#allocation8 + $0x268] ss:$20 sps:$4 sm:$0xff]  }
 0x37e   :  { %5197 = vmatprep.subr.bf16.mxu0 %v8584_v2  ;;  %5326 = vmatprep.subr.bf16.mxu1 %v8587_v3  ;;  %v8647_v12 = vld [vmem:[#allocation8 + $0x4e8] ss:$20 sps:$4 sm:$0xff]  }
 0x37f   :  { %v8648_v2 = vld [vmem:[#allocation8 + $0x128] ss:$20 sps:$4 sm:$0xff]  }
 0x380   :  { %v8649_v3 = vld [vmem:[#allocation8 + $0x3a8] ss:$20 sps:$4 sm:$0xff]  }
 0x381   :  { %5198 = vmatpush1.bf16.msra.mxu0 %v8582_v19  ;;  %5327 = vmatpush1.bf16.msra.mxu1 %v8585_v4  ;;  %v8660_v19 = vld [vmem:[#allocation10 + $0x4] ss:$12 sps:$4 sm:$0xff]  }
 0x382   :  { %5199 = vmatprep.subr.bf16.mxu0 %v8590_v36  ;;  %5328 = vmatprep.subr.bf16.mxu1 %v8593_v6  ;;  %v8650_v4 = vld [vmem:[#allocation8 + $0x510] ss:$20 sps:$4 sm:$0xff]   ;;  %v8658_v36 = vld [vmem:[#allocation10] ss:$12 sps:$4 sm:$0xff]   ;;  %v8663_v6 = vld [vmem:[#allocation10 + $0x1c] ss:$12 sps:$4 sm:$0xff]  }
 0x385   :  { %5200 = vmatpush1.bf16.msra.mxu0 %v8588_v37  ;;  %5329 = vmatpush1.bf16.msra.mxu1 %v8591_v7  ;;  %v8651_v37 = vld [vmem:[#allocation8 + $0x538] ss:$20 sps:$4 sm:$0xff]  }
 0x386   :  { %5201 = vmatprep.subr.bf16.mxu0 %v8596_v8  ;;  %5330 = vmatprep.subr.bf16.mxu1 %v8599_v60  ;;  %v8661_v7 = vld [vmem:[#allocation10 + $0x18] ss:$12 sps:$4 sm:$0xff]   ;;  %v8666_v8 = vld [vmem:[#allocation10 + $0x34] ss:$12 sps:$4 sm:$0xff]  }
 0x387   :  { %v8652_v60 = vld [vmem:[#allocation8 + $0x560] ss:$20 sps:$4 sm:$0xff]  }
 0x389   :  { %5202 = vmatpush1.bf16.msra.mxu0 %v8594_v15  ;;  %5331 = vmatpush1.bf16.msra.mxu1 %v8597_v16  ;;  %v8669_v15 = vld [vmem:[#allocation10 + $0x4c] ss:$12 sps:$4 sm:$0xff]   ;;  %v8667_v16 = vld [vmem:[#allocation10 + $0x48] ss:$12 sps:$4 sm:$0xff]  }
 0x38a   :  { %5203 = vmatprep.subr.bf16.mxu0 %v8602_v17  ;;  %5332 = vmatprep.subr.bf16.mxu1 %v8605_v18  ;;  %v8672_v17 = vld [vmem:[#allocation10 + $0x64] ss:$12 sps:$4 sm:$0xff]  }
 0x38b   :  { %v8654_v18 = vld [vmem:[#allocation8 + $0x5b0] ss:$20 sps:$4 sm:$0xff]  }
 0x38d   :  { %5204 = vmatpush1.bf16.msra.mxu0 %v8600_v20  ;;  %5333 = vmatpush1.bf16.msra.mxu1 %v8603_v21  ;;  %v8670_v20 = vld [vmem:[#allocation10 + $0x60] ss:$12 sps:$4 sm:$0xff]   ;;  %v8675_v21 = vld [vmem:[#allocation10 + $0x7c] ss:$12 sps:$4 sm:$0xff]  }
 0x38e   :  { %5205 = vmatprep.subr.bf16.mxu0 %v8608_v22  ;;  %5334 = vmatprep.subr.bf16.mxu1 %v8611_v61  ;;  %v8655_v22 = vld [vmem:[#allocation8 + $0x5d8] ss:$20 sps:$4 sm:$0xff]  }
 0x38f   :  { %v8673_v61 = vld [vmem:[#allocation10 + $0x78] ss:$12 sps:$4 sm:$0xff]  }
 0x391   :  { %5206 = vmatpush1.bf16.msra.mxu0 %v8606_v24  ;;  %5335 = vmatpush1.bf16.msra.mxu1 %v8609_v26  ;;  %v8678_v24 = vld [vmem:[#allocation10 + $0x94] ss:$12 sps:$4 sm:$0xff]  }
 0x392   :  { %5207 = vmatprep.subr.bf16.mxu0 %v8614_v27  ;;  %5336 = vmatprep.subr.bf16.mxu1 %v8617_v28  ;;  %v8656_v26 = vld [vmem:[#allocation8 + $0x600] ss:$20 sps:$4 sm:$0xff]   ;;  %v8676_v27 = vld [vmem:[#allocation10 + $0x90] ss:$12 sps:$4 sm:$0xff]   ;;  %v8681_v28 = vld [vmem:[#allocation10 + $0xac] ss:$12 sps:$4 sm:$0xff]  }
 0x395   :  { %5208 = vmatpush1.bf16.msra.mxu0 %v8612_v9  ;;  %5337 = vmatpush1.bf16.msra.mxu1 %v8615_v29  ;;  %v8657_v9 = vld [vmem:[#allocation8 + $0x628] ss:$20 sps:$4 sm:$0xff]  }
 0x396   :  { %7488 = vmatprep.subr.bf16.mxu0 %v8618_v30  ;;  %7510 = vmatprep.subr.bf16.mxu1 %v8619_v33  ;;  %v8685_v29 = vld [vmem:[#allocation10 + $0xc8] ss:$12 sps:$4 sm:$0xff]   ;;  %v8684_v33 = vld [vmem:[#allocation10 + $0xc4] ss:$12 sps:$4 sm:$0xff]  }
 0x397   :  { %v8679_v30 = vld [vmem:[#allocation10 + $0xa8] ss:$12 sps:$4 sm:$0xff]  }
 0x398   :  { %5226 = vmatmul.mubr.bf16.vlgmr.msra.gmra.mrb[20].mxu0 %v9218_v55  ;;  %5355 = vmatmul.mubr.bf16.vlgmr.msra.gmra.mrb[20].mxu1 %v9218_v55 }
 0x399   :  { %7489 = vmatpush3.bf16.msra.mxu0 %v8620_v34  ;;  %5397 = vmatprep.mubr.bf16.mxu0 %v9206_v13  ;;  %v8633_v13 = vld [vmem:[#allocation8 + $0x308] ss:$20 sps:$4 sm:$0xff]  }
 0x39a   :  { %7511 = vmatpush3.bf16.msra.mxu1 %v8621_v31  ;;  %5438 = vmatprep.mubr.bf16.mxu1 %v9208_v14  ;;  %v8635_v14 = vld [vmem:[#allocation8 + $0x470] ss:$20 sps:$4 sm:$0xff]   ;;  %v8686_v34 = vld [vmem:[#allocation10 + $0x8] ss:$12 sps:$4 sm:$0xff]   ;;  %v8690_v31 = vld [vmem:[#allocation10 + $0xe0] ss:$12 sps:$4 sm:$0xff]  }
 0x39b   :  { %7490 = vmatprep.subr.bf16.mxu0 %v8622_v32  ;;  %7512 = vmatprep.subr.bf16.mxu1 %v8623_v35  ;;  %v8682_v32 = vld [vmem:[#allocation10 + $0xc0] ss:$12 sps:$4 sm:$0xff]   ;;  %v8689_v35 = vld [vmem:[#allocation10 + $0xdc] ss:$12 sps:$4 sm:$0xff]  }
 0x39d   :  { %7491 = vmatpush3.bf16.msra.mxu0 %v8624_v38  ;;  %v8691_v38 = vld [vmem:[#allocation10 + $0x20] ss:$12 sps:$4 sm:$0xff]  }
 0x39e   :  { %7513 = vmatpush3.bf16.msra.mxu1 %v8625_v39  ;;  %7492 = vmatprep.subr.bf16.mxu0 %v8626_v40  ;;  %v8695_v39 = vld [vmem:[#allocation10 + $0xf8] ss:$12 sps:$4 sm:$0xff]  }
 0x39f   :  { %7514 = vmatprep.subr.bf16.mxu1 %v8627_v41  ;;  %v8687_v40 = vld [vmem:[#allocation10 + $0xd8] ss:$12 sps:$4 sm:$0xff]   ;;  %v8694_v41 = vld [vmem:[#allocation10 + $0xf4] ss:$12 sps:$4 sm:$0xff]  }
 0x3a1   :  { %7493 = vmatpush3.bf16.msra.mxu0 %v8628_v43  ;;  %v8696_v43 = vld [vmem:[#allocation10 + $0x38] ss:$12 sps:$4 sm:$0xff]  }
 0x3a2   :  { %7515 = vmatpush3.bf16.msra.mxu1 %v8629_v44  ;;  %7494 = vmatprep.subr.bf16.mxu0 %v8630_v45  ;;  %v8700_v44 = vld [vmem:[#allocation10 + $0x110] ss:$12 sps:$4 sm:$0xff]  }
 0x3a3   :  { %7516 = vmatprep.subr.bf16.mxu1 %v8631_v46  ;;  %v8692_v45 = vld [vmem:[#allocation10 + $0xf0] ss:$12 sps:$4 sm:$0xff]   ;;  %v8699_v46 = vld [vmem:[#allocation10 + $0x10c] ss:$12 sps:$4 sm:$0xff]  }
 0x3a5   :  { %7495 = vmatpush3.bf16.msra.mxu0 %v8632_v47  ;;  %v8705_v47 = vld [vmem:[#allocation10 + $0x128] ss:$12 sps:$4 sm:$0xff]  }
 0x3a6   :  { %7517 = vmatpush3.bf16.msra.mxu1 %v8633_v13  ;;  %7496 = vmatprep.subr.bf16.mxu0 %v8634_v48  ;;  %v8697_v13 = vld [vmem:[#allocation10 + $0x108] ss:$12 sps:$4 sm:$0xff]   ;;  %v8704_v48 = vld [vmem:[#allocation10 + $0x124] ss:$12 sps:$4 sm:$0xff]  }
 0x3a7   :  { %7518 = vmatprep.subr.bf16.mxu1 %v8635_v14  ;;  %v8706_v14 = vld [vmem:[#allocation10 + $0x68] ss:$12 sps:$4 sm:$0xff]  }
 0x3a9   :  { %7497 = vmatpush3.bf16.msra.mxu0 %v8636_v49  ;;  %v8710_v49 = vld [vmem:[#allocation10 + $0x140] ss:$12 sps:$4 sm:$0xff]  }
 0x3aa   :  { %7519 = vmatpush3.bf16.msra.mxu1 %v8637_v50  ;;  %7498 = vmatprep.subr.bf16.mxu0 %v8638_v51  ;;  %v8702_v50 = vld [vmem:[#allocation10 + $0x120] ss:$12 sps:$4 sm:$0xff]   ;;  %v8709_v51 = vld [vmem:[#allocation10 + $0x13c] ss:$12 sps:$4 sm:$0xff]  }
 0x3ab   :  { %7520 = vmatprep.subr.bf16.mxu1 %v8639_v52  ;;  %v8711_v52 = vld [vmem:[#allocation10 + $0x80] ss:$12 sps:$4 sm:$0xff]  }
 0x3ad   :  { %7499 = vmatpush3.bf16.msra.mxu0 %v8640_v53  ;;  %v8707_v53 = vld [vmem:[#allocation10 + $0x138] ss:$12 sps:$4 sm:$0xff]  }
 0x3ae   :  { %7521 = vmatpush3.bf16.msra.mxu1 %v8641_v54  ;;  %7500 = vmatprep.subr.bf16.mxu0 %v8642_v56  ;;  %v8714_v54 = vld [vmem:[#allocation10 + $0x154] ss:$12 sps:$4 sm:$0xff]   ;;  %v8715_v56 = vld [vmem:[#allocation10 + $0x158] ss:$12 sps:$4 sm:$0xff]  }
 0x3af   :  { %7522 = vmatprep.subr.bf16.mxu1 %v8643_v57  ;;  %v8716_v57 = vld [vmem:[#allocation10 + $0x98] ss:$12 sps:$4 sm:$0xff]  }
 0x3b1   :  { %7501 = vmatpush3.bf16.msra.mxu0 %v8644_v58  ;;  %v8712_v58 = vld [vmem:[#allocation10 + $0x150] ss:$12 sps:$4 sm:$0xff]  }
 0x3b2   :  { %7523 = vmatpush3.bf16.msra.mxu1 %v8645_v5  ;;  %7502 = vmatprep.subr.bf16.mxu0 %v8646_v42  ;;  %v8719_v5 = vld [vmem:[#allocation10 + $0x16c] ss:$12 sps:$4 sm:$0xff]   ;;  %v8720_v42 = vld [vmem:[#allocation10 + $0x170] ss:$12 sps:$4 sm:$0xff]  }
 0x3b3   :  { %7524 = vmatprep.subr.bf16.mxu1 %v8647_v12  ;;  %v8721_v12 = vld [vmem:[#allocation10 + $0xb0] ss:$12 sps:$4 sm:$0xff]  }
 0x3b5   :  { %7503 = vmatpush3.bf16.msra.mxu0 %v8648_v2  ;;  %v8717_v2 = vld [vmem:[#allocation10 + $0x168] ss:$12 sps:$4 sm:$0xff]  }
 0x3b6   :  { %7525 = vmatpush3.bf16.msra.mxu1 %v8649_v3  ;;  %7614 = vmatprep.subr.bf16.mxu0 %v8972_v25  ;;  %v8724_v3 = vld [vmem:[#allocation10 + $0x184] ss:$12 sps:$4 sm:$0xff]  }
 0x3b7   :  { %6320 = vmatprep.subr.bf16.mxu1 %v8660_v19  ;;  %v8725_v19 = vld [vmem:[#allocation10 + $0x248] ss:$12 sps:$4 sm:$0xff]  }
 0x3b8   :  { %5398 = vmatmul.mubr.bf16.vlgmr.msra.gmra.mrb[24].mxu0 %v9202_v10  ;;  %v8664_v10 = vld [vmem:[#allocation10 + $0x30] ss:$12 sps:$4 sm:$0xff]  }
 0x3b9   :  { %5439 = vmatmul.mubr.bf16.vlgmr.msra.gmra.mrb[24].mxu1 %v9204_v11  ;;  %7615 = vmatpush3.bf16.msra.mxu0 %v8650_v4  ;;  %v8653_v11 = vld [vmem:[#allocation8 + $0x588] ss:$20 sps:$4 sm:$0xff]   ;;  %v9244_v4 = vld [vmem:[%s9299_s7] sm:$0x1f] }
 0x3ba   :  { %7616 = vmatprep.subr.bf16.mxu0 %v8972_v25  ;;  %7630 = vmatprep.mubr.msk.bf16.mxu0 %vm8973_vm0, %v8972_v25 }
 0x3bb   :  { %6321 = vmatpush1.bf16.msra.mxu1 %v8658_v36  ;;  %v4045_v36 = vrot.slane %v9244_v4, %v9125_v62 }
 0x3bc   :  { %6322 = vmatprep.subr.bf16.mxu1 %v8663_v6  ;;  %v4053_v6 = vrot.slane %v9244_v4, %v9128_v63 }
 0x3bd   :  { %7617 = vmatpush3.bf16.msra.mxu0 %v8651_v37  ;;  %v4049_v37 = vrot.slane %v9244_v4, %v9131_v0 }
 0x3be   :  { %7618 = vmatprep.subr.bf16.mxu0 %v8972_v25 }
 0x3bf   :  { %6323 = vmatpush1.bf16.msra.mxu1 %v8661_v7  ;;  %v4057_v7 = vrot.slane %v9244_v4, %v9134_v1 }
 0x3c0   :  { %6324 = vmatprep.subr.bf16.mxu1 %v8666_v8 }
 0x3c1   :  { %7619 = vmatpush3.bf16.msra.mxu0 %v8652_v60 }
 0x3c2   :  { %7620 = vmatprep.subr.bf16.mxu0 %v8972_v25 }
 0x3c3   :  { %6325 = vmatpush1.bf16.msra.mxu1 %v8664_v10 }
 0x3c4   :  { %6326 = vmatprep.subr.bf16.mxu1 %v8669_v15 }
 0x3c5   :  { %7621 = vmatpush3.bf16.msra.mxu0 %v8653_v11 }
 0x3c6   :  { %7622 = vmatprep.subr.bf16.mxu0 %v8972_v25 }
 0x3c7   :  { %6327 = vmatpush1.bf16.msra.mxu1 %v8667_v16 }
 0x3c8   :  { %6328 = vmatprep.subr.bf16.mxu1 %v8672_v17 }
 0x3c9   :  { %7623 = vmatpush3.bf16.msra.mxu0 %v8654_v18 }
 0x3ca   :  { %7624 = vmatprep.subr.bf16.mxu0 %v8972_v25 }
 0x3cb   :  { %6329 = vmatpush1.bf16.msra.mxu1 %v8670_v20 }
 0x3cc   :  { %6330 = vmatprep.subr.bf16.mxu1 %v8675_v21 }
 0x3cd   :  { %7625 = vmatpush3.bf16.msra.mxu0 %v8655_v22 }
 0x3ce   :  { %7626 = vmatprep.subr.bf16.mxu0 %v8972_v25 }
 0x3cf   :  { %6331 = vmatpush1.bf16.msra.mxu1 %v8673_v61 }
 0x3d0   :  { %6332 = vmatprep.subr.bf16.mxu1 %v8678_v24 }
 0x3d1   :  { %7627 = vmatpush3.bf16.msra.mxu0 %v8656_v26 }
 0x3d2   :  { %7628 = vmatprep.subr.bf16.mxu0 %v8972_v25 }
 0x3d3   :  { %6333 = vmatpush1.bf16.msra.mxu1 %v8676_v27 }
 0x3d4   :  { %6334 = vmatprep.subr.bf16.mxu1 %v8681_v28 }
 0x3d5   :  { %7629 = vmatpush3.bf16.msra.mxu0 %v8657_v9 }
 0x3d6   :  { %7541 = vmatprep.subr.bf16.mxu0 %v8685_v29 }
 0x3d7   :  { %6335 = vmatpush1.bf16.msra.mxu1 %v8679_v30 }
 0x3d8   :  { %7631 = vmatmul.mubr.bf16.vlgmr.msra.gmra.mrb[28].mxu0 %v9218_v55  ;;  %6336 = vmatprep.subr.bf16.mxu1 %v8684_v33  ;;  %v8701_v55 = vld [vmem:[#allocation10 + $0x50] ss:$12 sps:$4 sm:$0xff]  }
 0x3d9   :  { %7542 = vmatpush3.bf16.msra.mxu0 %v8686_v34 }
 0x3da   :  { %7543 = vmatprep.subr.bf16.mxu0 %v8690_v31 }
 0x3db   :  { %6337 = vmatpush1.bf16.msra.mxu1 %v8682_v32 }
 0x3dc   :  { %6338 = vmatprep.subr.bf16.mxu1 %v8689_v35 }
 0x3dd   :  { %7544 = vmatpush3.bf16.msra.mxu0 %v8691_v38 }
 0x3de   :  { %7545 = vmatprep.subr.bf16.mxu0 %v8695_v39 }
 0x3df   :  { %6339 = vmatpush1.bf16.msra.mxu1 %v8687_v40 }
 0x3e0   :  { %6340 = vmatprep.subr.bf16.mxu1 %v8694_v41  ;;  %v8722_v41 = vld [vmem:[#allocation10 + $0x180] ss:$12 sps:$4 sm:$0xff]  }
 0x3e1   :  { %7546 = vmatpush3.bf16.msra.mxu0 %v8696_v43  ;;  %v8726_v43 = vld [vmem:[#allocation10 + $0x188] ss:$12 sps:$4 sm:$0xff]  }
 0x3e2   :  { %7547 = vmatprep.subr.bf16.mxu0 %v8700_v44  ;;  %v8729_v44 = vld [vmem:[#allocation10 + $0x19c] ss:$12 sps:$4 sm:$0xff]  }
 0x3e3   :  { %6341 = vmatpush1.bf16.msra.mxu1 %v8692_v45  ;;  %v8730_v45 = vld [vmem:[#allocation10 + $0x260] ss:$12 sps:$4 sm:$0xff]  }
 0x3e4   :  { %6342 = vmatprep.subr.bf16.mxu1 %v8699_v46  ;;  %v8727_v46 = vld [vmem:[#allocation10 + $0x198] ss:$12 sps:$4 sm:$0xff]  }
 0x3e5   :  { %7548 = vmatpush3.bf16.msra.mxu0 %v8701_v55  ;;  %v8731_v55 = vld [vmem:[#allocation10 + $0x1a0] ss:$12 sps:$4 sm:$0xff]  }
 0x3e6   :  { %7549 = vmatprep.subr.bf16.mxu0 %v8705_v47  ;;  %v8734_v47 = vld [vmem:[#allocation10 + $0x1b4] ss:$12 sps:$4 sm:$0xff]  }
 0x3e7   :  { %6343 = vmatpush1.bf16.msra.mxu1 %v8697_v13  ;;  %v8735_v13 = vld [vmem:[#allocation10 + $0x278] ss:$12 sps:$4 sm:$0xff]  }
 0x3e8   :  { %6344 = vmatprep.subr.bf16.mxu1 %v8704_v48  ;;  %v8732_v48 = vld [vmem:[#allocation10 + $0x1b0] ss:$12 sps:$4 sm:$0xff]  }
 0x3e9   :  { %7550 = vmatpush3.bf16.msra.mxu0 %v8706_v14  ;;  %v8736_v14 = vld [vmem:[#allocation10 + $0x1b8] ss:$12 sps:$4 sm:$0xff]  }
 0x3ea   :  { %7551 = vmatprep.subr.bf16.mxu0 %v8710_v49  ;;  %v8739_v49 = vld [vmem:[#allocation10 + $0x1cc] ss:$12 sps:$4 sm:$0xff]  }
 0x3eb   :  { %6345 = vmatpush1.bf16.msra.mxu1 %v8702_v50  ;;  %v8740_v50 = vld [vmem:[#allocation10 + $0x290] ss:$12 sps:$4 sm:$0xff]  }
 0x3ec   :  { %6346 = vmatprep.subr.bf16.mxu1 %v8709_v51  ;;  %v8737_v51 = vld [vmem:[#allocation10 + $0x1c8] ss:$12 sps:$4 sm:$0xff]  }
 0x3ed   :  { %7552 = vmatpush3.bf16.msra.mxu0 %v8711_v52  ;;  %v8741_v52 = vld [vmem:[#allocation10 + $0x1d0] ss:$12 sps:$4 sm:$0xff]  }
 0x3ee   :  { %7553 = vmatprep.subr.bf16.mxu0 %v8715_v56  ;;  %v8742_v56 = vld [vmem:[#allocation10 + $0x1e0] ss:$12 sps:$4 sm:$0xff]  }
 0x3ef   :  { %6347 = vmatpush1.bf16.msra.mxu1 %v8707_v53  ;;  %v8744_v53 = vld [vmem:[#allocation10 + $0x1e4] ss:$12 sps:$4 sm:$0xff]  }
 0x3f0   :  { %6348 = vmatprep.subr.bf16.mxu1 %v8714_v54  ;;  %v8745_v54 = vld [vmem:[#allocation10 + $0x2a8] ss:$12 sps:$4 sm:$0xff]  }
 0x3f1   :  { %7554 = vmatpush3.bf16.msra.mxu0 %v8716_v57  ;;  %v8746_v57 = vld [vmem:[#allocation10 + $0x1e8] ss:$12 sps:$4 sm:$0xff]  }
 0x3f2   :  { %7555 = vmatprep.subr.bf16.mxu0 %v8720_v42  ;;  %v8747_v42 = vld [vmem:[#allocation10 + $0x1f8] ss:$12 sps:$4 sm:$0xff]  }
 0x3f3   :  { %6349 = vmatpush1.bf16.msra.mxu1 %v8712_v58  ;;  %v8749_v58 = vld [vmem:[#allocation10 + $0x1fc] ss:$12 sps:$4 sm:$0xff]  }
 0x3f4   :  { %6350 = vmatprep.subr.bf16.mxu1 %v8719_v5  ;;  %v8750_v5 = vld [vmem:[#allocation10 + $0x2c0] ss:$12 sps:$4 sm:$0xff]  }
 0x3f5   :  { %7556 = vmatpush3.bf16.msra.mxu0 %v8721_v12  ;;  %v8751_v12 = vld [vmem:[#allocation10 + $0x200] ss:$12 sps:$4 sm:$0xff]  }
 0x3f6   :  { %7563 = vmatprep.subr.bf16.mxu0 %v8725_v19 }
 0x3f7   :  { %6351 = vmatpush1.bf16.msra.mxu1 %v8717_v2  ;;  %v8754_v2 = vld [vmem:[#allocation10 + $0x214] ss:$12 sps:$4 sm:$0xff]  }
 0x3f8   :  { %6363 = vmatprep.subr.bf16.mxu1 %v8724_v3  ;;  %v8755_v3 = vld [vmem:[#allocation10 + $0x2d8] ss:$12 sps:$4 sm:$0xff]  }
 0x46b   :  { %v5227_v8 = vpop.f32.mrb[20].mxu0  ;;  %v5356_v60 = vpop.f32.mrb[20].mxu1 }
 0x46c   :  { %v7670_v10 = vadd.f32 %v5227_v8, %v4045_v36  ;;  %v7674_v15 = vadd.f32 %v5356_v60, %v4053_v6  ;;  %v5229_v11 = vpop.f32.mrb[21].mxu0  ;;  %v5358_v16 = vpop.f32.mrb[21].mxu1  ;;  %v8759_v60 = vld [vmem:[#allocation10 + $0x22c] ss:$12 sps:$4 sm:$0xff]  }
 0x46d   :  { %v7671_v17 = vadd.f32 %v5229_v11, %v4049_v37  ;;  %v7675_v18 = vadd.f32 %v5358_v16, %v4057_v7  ;;  %v5231_v20 = vpop.f32.mrb[22].mxu0  ;;  %v5360_v21 = vpop.f32.mrb[22].mxu1 }
 0x46e   :  { %v7672_v22 = vadd.f32 %v5231_v20, %v4045_v36  ;;  %v7676_v61 = vadd.f32 %v5360_v21, %v4053_v6  ;;  %v5233_v24 = vpop.f32.mrb[23].mxu0  ;;  %v5362_v26 = vpop.f32.mrb[23].mxu1  ;;  %v5488_v9 = vmax.f32 %v7670_v10, 0.0  ;;  %v5490_v29 = vmax.f32 %v7674_v15, 0.0  ;;  %v8752_v6 = vld [vmem:[#allocation10 + $0x210] ss:$12 sps:$4 sm:$0xff]  }
 0x46f   :  { %v7673_v27 = vadd.f32 %v5233_v24, %v4049_v37  ;;  %v7677_v28 = vadd.f32 %v5362_v26, %v4057_v7  ;;  %v5489_v33 = vmax.f32 %v7671_v17, 0.0  ;;  %v5491_v34 = vmax.f32 %v7675_v18, 0.0  ;;  %v8756_v37 = vld [vmem:[#allocation10 + $0x218] ss:$12 sps:$4 sm:$0xff]   ;;  %v8760_v10 = vld [vmem:[#allocation10 + $0x2f0] ss:$12 sps:$4 sm:$0xff]  }
 0x470   :  { %v5493_v30 = vmax.f32 %v7672_v22, 0.0  ;;  %v5495_v1 = vmax.f32 %v7676_v61, 0.0  ;;  %v4061_v36 = vrot.slane %v9244_v4, %v9159_v59  ;;  %v8757_v59 = vld [vmem:[#allocation10 + $0x228] ss:$12 sps:$4 sm:$0xff]   ;;  %v8761_v4 = vld [vmem:[#allocation10 + $0x230] ss:$12 sps:$4 sm:$0xff]  }
 0x471   :  { %v5494_v31 = vmax.f32 %v7673_v27, 0.0  ;;  %v5496_v32 = vmax.f32 %v7677_v28, 0.0  ;;  %v8764_v26 = vld [vmem:[#allocation10 + $0x244] ss:$12 sps:$4 sm:$0xff]  }
 0x472   :  { %v5498_v35 = vpack.c.bf16 %v5493_v30, %v5488_v9  ;;  %v9254_v38 = vpack.c.bf16 %v5495_v1, %v5490_v29  ;;  %v8762_v9 = vld [vmem:[#allocation10 + $0x240] ss:$12 sps:$4 sm:$0xff]   ;;  %v8765_v29 = vld [vmem:[#allocation10 + $0x308] ss:$12 sps:$4 sm:$0xff]  }
 0x473   :  { %v5499_v39 = vpack.c.bf16 %v5494_v31, %v5489_v33  ;;  %v5501_v40 = vpack.c.bf16 %v5496_v32, %v5491_v34  ;;  %v8768_v1 = vld [vmem:[#allocation10 + $0x25c] ss:$12 sps:$4 sm:$0xff]   ;;  %v8766_v33 = vld [vmem:[#allocation10 + $0x258] ss:$12 sps:$4 sm:$0xff]   ;;  %v8769_v34 = vld [vmem:[#allocation10 + $0x320] ss:$12 sps:$4 sm:$0xff]  }
 0x474   :  { %v8772_v31 = vld [vmem:[#allocation10 + $0x274] ss:$12 sps:$4 sm:$0xff]   ;;  %v8770_v32 = vld [vmem:[#allocation10 + $0x270] ss:$12 sps:$4 sm:$0xff]  }
 0x475   :  { %6352 = vmatprep.mubr.bf16.mxu1 %v5499_v39  ;;  %6481 = vmatprep.mubr.bf16.mxu0 %v5499_v39  ;;  %v8776_v39 = vld [vmem:[#allocation10 + $0x28c] ss:$12 sps:$4 sm:$0xff]  }
 0x476   :  { %6353 = vmatmul.mubr.bf16.vlgmr.msra.gmra.mrb[28].mxu1 %v5498_v35  ;;  %6482 = vmatmul.mubr.bf16.vlgmr.msra.gmra.mrb[32].mxu0 %v5498_v35  ;;  %v8773_v35 = vld [vmem:[#allocation10 + $0x338] ss:$12 sps:$4 sm:$0xff]  }
 0x477   :  { %6364 = vmatpush1.bf16.msra.mxu1 %v8722_v41  ;;  %7564 = vmatpush3.bf16.msra.mxu0 %v8726_v43  ;;  %v8777_v41 = vld [vmem:[#allocation10 + $0x350] ss:$12 sps:$4 sm:$0xff]  }
 0x478   :  { %6395 = vmatprep.mubr.bf16.mxu1 %v5501_v40  ;;  %6522 = vmatprep.mubr.bf16.mxu0 %v5501_v40  ;;  %v8774_v40 = vld [vmem:[#allocation10 + $0x288] ss:$12 sps:$4 sm:$0xff]   ;;  %v8780_v43 = vld [vmem:[#allocation10 + $0x2a4] ss:$12 sps:$4 sm:$0xff]  }
 0x479   :  { %6365 = vmatprep.subr.bf16.mxu1 %v8729_v44  ;;  %7565 = vmatprep.subr.bf16.mxu0 %v8730_v45  ;;  %v8778_v44 = vld [vmem:[#allocation10 + $0x2a0] ss:$12 sps:$4 sm:$0xff]   ;;  %v8781_v45 = vld [vmem:[#allocation10 + $0x368] ss:$12 sps:$4 sm:$0xff]  }
 0x47b   :  { %6366 = vmatpush1.bf16.msra.mxu1 %v8727_v46  ;;  %7566 = vmatpush3.bf16.msra.mxu0 %v8731_v55  ;;  %v8784_v46 = vld [vmem:[#allocation10 + $0x2bc] ss:$12 sps:$4 sm:$0xff]   ;;  %v8782_v55 = vld [vmem:[#allocation10 + $0x2b8] ss:$12 sps:$4 sm:$0xff]  }
 0x47c   :  { %6367 = vmatprep.subr.bf16.mxu1 %v8734_v47  ;;  %7567 = vmatprep.subr.bf16.mxu0 %v8735_v13  ;;  %v8785_v47 = vld [vmem:[#allocation10 + $0x380] ss:$12 sps:$4 sm:$0xff]  }
 0x47d   :  { %v8788_v13 = vld [vmem:[#allocation10 + $0x2d4] ss:$12 sps:$4 sm:$0xff]  }
 0x47f   :  { %6368 = vmatpush1.bf16.msra.mxu1 %v8732_v48  ;;  %7568 = vmatpush3.bf16.msra.mxu0 %v8736_v14  ;;  %v8786_v14 = vld [vmem:[#allocation10 + $0x2d0] ss:$12 sps:$4 sm:$0xff]  }
 0x480   :  { %6369 = vmatprep.subr.bf16.mxu1 %v8739_v49  ;;  %7569 = vmatprep.subr.bf16.mxu0 %v8740_v50  ;;  %v8789_v49 = vld [vmem:[#allocation10 + $0x398] ss:$12 sps:$4 sm:$0xff]  }
 0x483   :  { %6370 = vmatpush1.bf16.msra.mxu1 %v8737_v51  ;;  %7570 = vmatpush3.bf16.msra.mxu0 %v8741_v52  ;;  %v8792_v52 = vld [vmem:[#allocation10 + $0x2ec] ss:$12 sps:$4 sm:$0xff]  }
 0x484   :  { %6371 = vmatprep.subr.bf16.mxu1 %v8744_v53  ;;  %7571 = vmatprep.subr.bf16.mxu0 %v8745_v54 }
 0x487   :  { %6372 = vmatpush1.bf16.msra.mxu1 %v8742_v56  ;;  %7572 = vmatpush3.bf16.msra.mxu0 %v8746_v57  ;;  %v8790_v57 = vld [vmem:[#allocation10 + $0x2e8] ss:$12 sps:$4 sm:$0xff]  }
 0x488   :  { %6373 = vmatprep.subr.bf16.mxu1 %v8749_v58  ;;  %7573 = vmatprep.subr.bf16.mxu0 %v8750_v5  ;;  %v8793_v58 = vld [vmem:[#allocation10 + $0x3b0] ss:$12 sps:$4 sm:$0xff]  }
 0x48b   :  { %6374 = vmatpush1.bf16.msra.mxu1 %v8747_v42  ;;  %7574 = vmatpush3.bf16.msra.mxu0 %v8751_v12  ;;  %v7504_v19 = vpop.f32.mrb[24].mxu0  ;;  %v8796_v12 = vld [vmem:[#allocation10 + $0x304] ss:$12 sps:$4 sm:$0xff]  }
 0x48c   :  { %v7526_v7 = vpop.f32.mrb[24].mxu1  ;;  %v7505_v8 = vpop.f32.mrb[25].mxu0  ;;  %6375 = vmatprep.subr.bf16.mxu1 %v8754_v2  ;;  %7575 = vmatprep.subr.bf16.mxu0 %v8755_v3  ;;  %v8794_v3 = vld [vmem:[#allocation10 + $0x300] ss:$12 sps:$4 sm:$0xff]  }
 0x48d   :  { %v7506_v15 = vadd.f32 %v7505_v8, %v7504_v19  ;;  %v7527_v11 = vpop.f32.mrb[25].mxu1  ;;  %v7507_v16 = vpop.f32.mrb[26].mxu0  ;;  %v8799_v19 = vld [vmem:[#allocation10 + $0x31c] ss:$12 sps:$4 sm:$0xff]   ;;  %v8808_v8 = vld [vmem:[#allocation10 + $0x364] ss:$12 sps:$4 sm:$0xff]  }
 0x48e   :  { %v7528_v17 = vadd.f32 %v7527_v11, %v7526_v7  ;;  %v7529_v18 = vpop.f32.mrb[26].mxu1  ;;  %v7508_v20 = vpop.f32.mrb[27].mxu0  ;;  %v8803_v7 = vld [vmem:[#allocation10 + $0x348] ss:$12 sps:$4 sm:$0xff]   ;;  %v8817_v11 = vld [vmem:[#allocation10 + $0x3ac] ss:$12 sps:$4 sm:$0xff]  }
 0x48f   :  { %v5400_v21 = vadd.f32 %v7506_v15, %v4061_v36  ;;  %v7509_v22 = vadd.f32 %v7508_v20, %v7507_v16  ;;  %v7530_v61 = vpop.f32.mrb[27].mxu1  ;;  %6376 = vmatpush1.bf16.msra.mxu1 %v8752_v6  ;;  %7576 = vmatpush3.bf16.msra.mxu0 %v8756_v37  ;;  %v8802_v6 = vld [vmem:[#allocation10 + $0x334] ss:$12 sps:$4 sm:$0xff]   ;;  %v8800_v37 = vld [vmem:[#allocation10 + $0x330] ss:$12 sps:$4 sm:$0xff]  }
 0x490   :  { %v7531_v24 = vadd.f32 %v7530_v61, %v7529_v18  ;;  %6377 = vmatprep.subr.bf16.mxu1 %v8759_v60  ;;  %7577 = vmatprep.subr.bf16.mxu0 %v8760_v10  ;;  %v8806_v60 = vld [vmem:[#allocation10 + $0x360] ss:$12 sps:$4 sm:$0xff]   ;;  %v8811_v10 = vld [vmem:[#allocation10 + $0x37c] ss:$12 sps:$4 sm:$0xff]  }
 0x491   :  { %v5403_v27 = vadd.f32 %v7509_v22, %v4061_v36  ;;  %v5441_v28 = vadd.f32 %v7528_v17, %v5400_v21  ;;  %v8797_v36 = vld [vmem:[#allocation10 + $0x318] ss:$12 sps:$4 sm:$0xff]   ;;  %v8814_v15 = vld [vmem:[#allocation10 + $0x394] ss:$12 sps:$4 sm:$0xff]  }
 0x492   :  { %v8815_v16 = vld [vmem:[#allocation10 + $0x3a8] ss:$12 sps:$4 sm:$0xff]  }
 0x493   :  { %6378 = vmatpush1.bf16.msra.mxu1 %v8757_v59  ;;  %7578 = vmatpush3.bf16.msra.mxu0 %v8761_v4  ;;  %v5444_v30 = vadd.f32 %v7531_v24, %v5403_v27  ;;  %v5663_v59 = vld [vmem:[%s9300_s8] sm:$0x7]  ;;  %s8974_s8 = smov [#allocation11]  }
 0x494   :  { %6379 = vmatprep.subr.bf16.mxu1 %v8764_v26  ;;  %7634 = vmatprep.subr.bf16.mxu0 %v8972_v25  ;;  %v5676_v4 = vrot.slane %v5663_v59, %v9128_v63  ;;  %v5668_v63 = vrot.slane %v5663_v59, %v9125_v62  ;;  %s6589_s14 = sshll.u32 %s8974_s8, 4  ;;  %s6590_s14 = int_to_ptr.vmem [resolvable:$true] %s6589_s14 }
 0x495   :  { %s8930_s15 = scalar_lea.vmem %s6590_s14, 768  ;;  %p8935_p13 = scmp.lt.s32.totalorder %s6590_s14, %s6590_s14 }
 0x496   :  { %6523 = vmatmul.mubr.bf16.vlgmr.msra.gmra.mrb[36].mxu0 %v9254_v38  ;;  %p8931_p12 = scmp.ne.s32.totalorder %s6590_s14, %s8930_s15  ;;  %p8936_p0 = scmp.lt.s32.totalorder %s8930_s15, %s8930_s15 }
 0x497   :  { %6380 = vmatpush1.bf16.msra.mxu1 %v8762_v9  ;;  %7635 = vmatpush3.bf16.msra.mxu0 %v8765_v29 }
 0x498   :  { %6381 = vmatprep.subr.bf16.mxu1 %v8768_v1  ;;  %7636 = vmatprep.subr.bf16.mxu0 %v8972_v25  ;;  %p8937_p1 = por %p8936_p0, %p8935_p13 }
 0x499   :  { %7650 = vmatprep.mubr.msk.bf16.mxu0 %vm8973_vm0, %v8972_v25 }
 0x49a   :  { %p8938_p2 = pnand %p8937_p1, %p8931_p12 }
 0x49b   :  { %6382 = vmatpush1.bf16.msra.mxu1 %v8766_v33  ;;  %7637 = vmatpush3.bf16.msra.mxu0 %v8769_v34 }
 0x49c   :  { %6383 = vmatprep.subr.bf16.mxu1 %v8772_v31  ;;  %7638 = vmatprep.subr.bf16.mxu0 %v8972_v25 }
 0x49f   :  { %6384 = vmatpush1.bf16.msra.mxu1 %v8770_v32  ;;  %7639 = vmatpush3.bf16.msra.mxu0 %v8773_v35 }
 0x4a0   :  { %6385 = vmatprep.subr.bf16.mxu1 %v8776_v39  ;;  %7640 = vmatprep.subr.bf16.mxu0 %v8972_v25 }
 0x4a3   :  { %6386 = vmatpush1.bf16.msra.mxu1 %v8774_v40  ;;  %7641 = vmatpush3.bf16.msra.mxu0 %v8777_v41 }
 0x4a4   :  { %6387 = vmatprep.subr.bf16.mxu1 %v8780_v43  ;;  %7642 = vmatprep.subr.bf16.mxu0 %v8972_v25 }
 0x4a7   :  { %6388 = vmatpush1.bf16.msra.mxu1 %v8778_v44  ;;  %7643 = vmatpush3.bf16.msra.mxu0 %v8781_v45  ;;  %v5672_v45 = vrot.slane %v5663_v59, %v9131_v0 }
 0x4a8   :  { %6389 = vmatprep.subr.bf16.mxu1 %v8784_v46  ;;  %7644 = vmatprep.subr.bf16.mxu0 %v8972_v25 }
 0x4ab   :  { %6390 = vmatpush1.bf16.msra.mxu1 %v8782_v55  ;;  %7645 = vmatpush3.bf16.msra.mxu0 %v8785_v47  ;;  %v5481_v48 = vpop.f32.mrb[28].mxu0 }
 0x4ac   :  { %v5482_v50 = vadd.f32 %v5481_v48, %v5441_v28  ;;  %v7632_v51 = vpop.f32.mrb[29].mxu0  ;;  %6391 = vmatprep.subr.bf16.mxu1 %v8788_v13  ;;  %7646 = vmatprep.subr.bf16.mxu0 %v8972_v25 }
 0x4ad   :  { %v5484_v53 = vpop.f32.mrb[30].mxu0 }
 0x4ae   :  { %v5485_v54 = vadd.f32 %v5484_v53, %v5444_v30  ;;  %v7633_v56 = vpop.f32.mrb[31].mxu0  ;;  %v5492_v5 = vmax.f32 %v5482_v50, 0.0 }
 0x4af   :  { %6392 = vmatpush1.bf16.msra.mxu1 %v8786_v14  ;;  %7647 = vmatpush3.bf16.msra.mxu0 %v8789_v49 }
 0x4b0   :  { %v5497_v42 = vmax.f32 %v5485_v54, 0.0  ;;  %6393 = vmatprep.subr.bf16.mxu1 %v8792_v52  ;;  %7648 = vmatprep.subr.bf16.mxu0 %v8972_v25  ;;  %v8805_v25 = vld [vmem:[#allocation10 + $0x34c] ss:$12 sps:$4 sm:$0xff]  }
 0x4b2   :  { %v5502_v2 = vpack.c.bf16 %v5497_v42, %v5492_v5 }
 0x4b3   :  { %6394 = vmatpush1.bf16.msra.mxu1 %v8790_v57  ;;  %7649 = vmatpush3.bf16.msra.mxu0 %v8793_v58 }
 0x4b4   :  { %6406 = vmatprep.subr.bf16.mxu1 %v8796_v12 }
 0x4b6   :  { %6396 = vmatmul.mubr.bf16.vlgmr.msra.gmra.mrb[28].mxu1 %v9254_v38  ;;  %7651 = vmatmul.mubr.bf16.vlgmr.msra.gmra.mrb[40].mxu0 %v5502_v2  ;;  %v8809_v38 = vld [vmem:[#allocation10 + $0x378] ss:$12 sps:$4 sm:$0xff]  }
 0x4b7   :  { %6407 = vmatpush1.bf16.msra.mxu1 %v8794_v3  ;;  %6438 = vmatprep.mubr.bf16.mxu1 %v8971_v23  ;;  %v8812_v23 = vld [vmem:[#allocation10 + $0x390] ss:$12 sps:$4 sm:$0xff]  }
 0x4b8   :  { %6408 = vmatprep.subr.bf16.mxu1 %v8799_v19 }
 0x4bb   :  { %6409 = vmatpush1.bf16.msra.mxu1 %v8797_v36 }
 0x4bc   :  { %6410 = vmatprep.subr.bf16.mxu1 %v8802_v6 }
 0x4bf   :  { %6411 = vmatpush1.bf16.msra.mxu1 %v8800_v37 }
 0x4c0   :  { %6412 = vmatprep.subr.bf16.mxu1 %v8805_v25 }
 0x4c3   :  { %6413 = vmatpush1.bf16.msra.mxu1 %v8803_v7 }
 0x4c4   :  { %6414 = vmatprep.subr.bf16.mxu1 %v8808_v8 }
 0x4c7   :  { %6415 = vmatpush1.bf16.msra.mxu1 %v8806_v60 }
 0x4c8   :  { %6416 = vmatprep.subr.bf16.mxu1 %v8811_v10 }
 0x4cb   :  { %6417 = vmatpush1.bf16.msra.mxu1 %v8809_v38 }
 0x4cc   :  { %6418 = vmatprep.subr.bf16.mxu1 %v8814_v15 }
 0x4cf   :  { %6419 = vmatpush1.bf16.msra.mxu1 %v8812_v23 }
 0x4d0   :  { %6420 = vmatprep.subr.bf16.mxu1 %v8817_v11 }
 0x4d3   :  { %6421 = vmatpush1.bf16.msra.mxu1 %v8815_v16 }
 0x4d6   :  { %6439 = vmatmul.mubr.bf16.vlgmr.msra.gmra.mrb[28].mxu1 %v5502_v2 }
 0x549   :  { %v7557_v17 = vpop.f32.mrb[32].mxu0 }
 0x54a   :  { %v7558_v18 = vpop.f32.mrb[33].mxu0 }
 0x54b   :  { %v7559_v20 = vadd.f32 %v7558_v18, %v7557_v17  ;;  %v7560_v21 = vpop.f32.mrb[34].mxu0 }
 0x54c   :  { %v7561_v22 = vpop.f32.mrb[35].mxu0 }
 0x54d   :  { %v7562_v61 = vadd.f32 %v7561_v22, %v7560_v21  ;;  %v6484_v27 = vadd.f32 %v7559_v20, %v5676_v4 }
 0x54f   :  { %v6487_v30 = vadd.f32 %v7562_v61, %v5676_v4 }
 0x569   :  { %v7579_v24 = vpop.f32.mrb[36].mxu0 }
 0x56a   :  { %v7580_v26 = vpop.f32.mrb[37].mxu0 }
 0x56b   :  { %v7581_v28 = vadd.f32 %v7580_v26, %v7579_v24  ;;  %v7582_v9 = vpop.f32.mrb[38].mxu0 }
 0x56c   :  { %v7583_v29 = vpop.f32.mrb[39].mxu0 }
 0x56d   :  { %v7584_v1 = vadd.f32 %v7583_v29, %v7582_v9  ;;  %v6525_v33 = vadd.f32 %v7581_v28, %v6484_v27 }
 0x56f   :  { %v6528_v34 = vadd.f32 %v7584_v1, %v6487_v30 }
 0x589   :  { %v6565_v31 = vpop.f32.mrb[40].mxu0 }
 0x58a   :  { %v6566_v32 = vadd.f32 %v6565_v31, %v6525_v33  ;;  %v7652_v35 = vpop.f32.mrb[41].mxu0 }
 0x58b   :  { %v6568_v39 = vpop.f32.mrb[42].mxu0 }
 0x58c   :  { %v6574_v40 = vmax.f32 %v6566_v32, 0.0  ;;  %v6569_v41 = vadd.f32 %v6568_v39, %v6528_v34  ;;  %v7653_v43 = vpop.f32.mrb[43].mxu0 }
 0x58e   :  { %6580 = vst [vmem:[#allocation11 + $0x10] sm:$0xff] %v6574_v40  ;;  %v6577_v44 = vmax.f32 %v6569_v41, 0.0 }
 0x590   :  { %6583 = vst [vmem:[#allocation11 + $0x28] sm:$0xff] %v6577_v44 }
 0x5a9   :  { %v6440_v46 = vpop.f32.mrb[28].mxu1 }
 0x5aa   :  { %v7678_v55 = vadd.f32 %v6440_v46, %v5668_v63  ;;  %v6442_v47 = vpop.f32.mrb[29].mxu1 }
 0x5ab   :  { %v7679_v13 = vadd.f32 %v6442_v47, %v5672_v45  ;;  %v6444_v48 = vpop.f32.mrb[30].mxu1 }
 0x5ac   :  { %v6572_v14 = vmax.f32 %v7678_v55, 0.0  ;;  %v7680_v49 = vadd.f32 %v6444_v48, %v5668_v63  ;;  %v6446_v50 = vpop.f32.mrb[31].mxu1 }
 0x5ad   :  { %v6573_v51 = vmax.f32 %v7679_v13, 0.0  ;;  %v7681_v52 = vadd.f32 %v6446_v50, %v5672_v45 }
 0x5ae   :  { %6578 = vst [vmem:[#allocation11] sm:$0xff] %v6572_v14  ;;  %v6575_v53 = vmax.f32 %v7680_v49, 0.0 }
 0x5af   :  { %6579 = vst [vmem:[#allocation11 + $0x8] sm:$0xff] %v6573_v51  ;;  %v6576_v54 = vmax.f32 %v7681_v52, 0.0 }
 0x5b0   :  { %6581 = vst [vmem:[#allocation11 + $0x18] sm:$0xff] %v6575_v53 }
 0x5b1   :  { %6582 = vst [vmem:[#allocation11 + $0x20] sm:$0xff] %v6576_v54 }
 0x5b2   :  { %8941 = shalt.err (!%p8938_p2)
}
 0x5b3   :  { %s8942_s0 = scalar_lea.hbm %s9301_s9, 768 }
 0x5b4   :  { %p8943_p3 = scmp.ne.s32.totalorder %s9301_s9, %s8942_s0  ;;  %p8946_p4 = scmp.lt.u32.totalorder %s8942_s0, %s9301_s9 }
 0x5b6   :  { %p8948_p5 = pnand %p8946_p4, %p8943_p3 }
 0x5b8   :  { %8951 = shalt.err (!%p8948_p5)
}
 0x5b9   :  { %6595 = dma.vmem_to_hbm [thread:$0]  %s6590_s14, 768, %s9301_s9, [#allocation4], %s8965_s3, %s8965_s3, %s8966_s24  }
 0x5ba   :  { %8958 = dma.done.wait [#allocation4], 768  }
 0x5bb   :  { %8959 = vsyncadd [#allocation4], 4294966528 }
 0x5bc   :  { %6599 = vsyncpa [#allocation3], 1 }
 0x5bd   :  { %6600 = vsyncpa [#allocation6], 1 }
 0x5be   :  { %6601 = vsyncpa [#allocation9], 1 }
 0x5bf   :  { %6602 = vsyncpa [#allocation4], 1 }

// kernel: tpu_custom_call.1
= control target key start
LH: loop header
LB: loop body
LE: loop exit
PB: predicated region body
PF: predicated region fallthrough
CT: control target
= control target key end

     0   :  { %14 = vsyncpa [#allocation3], 0  ;;  %s9292_s0 = inlined_call_operand.hbm [shape: bf16[16,768], index: 0, kind: input, shape index: {}]   ;;  %s9293_s1 = inlined_call_operand.hbm [shape: bf16[768,640], index: 1, kind: input, shape index: {}]   ;;  %s9294_s2 = inlined_call_operand.hbm [shape: bf16[640,640], index: 2, kind: input, shape index: {}]   ;;  %s9295_s3 = inlined_call_operand.hbm [shape: bf16[640,640], index: 3, kind: input, shape index: {}]   ;;  %s9296_s4 = inlined_call_operand.hbm [shape: bf16[640,384], index: 4, kind: input, shape index: {}]   ;;  %s9297_s5 = inlined_call_operand.vmem [shape: f32[1,640], index: 5, kind: input, shape index: {}]   ;;  %s9298_s6 = inlined_call_operand.vmem [shape: f32[1,640], index: 6, kind: input, shape index: {}]   ;;  %s9299_s7 = inlined_call_operand.vmem [shape: f32[1,640], index: 7, kind: input, shape index: {}]   ;;  %s9300_s8 = inlined_call_operand.vmem [shape: f32[1,384], index: 8, kind: input, shape index: {}]   ;;  %s9301_s9 = inlined_call_operand.hbm [shape: f32[16,384], index: 9, kind: output, shape index: {}]  }
   0x1   :  { %15 = vsyncpa [#allocation6], 0 }
   0x2   :  { %16 = vsyncpa [#allocation9], 0 }
   0x3   :  { %17 = vsyncpa [#allocation4], 0  ;;  %s8960_s30 = smov [#allocation5]   ;;  %s8820_s13 = scalar_lea.hbm %s9293_s1, 30720 }
   0x4   :  { %s35_s10 = sshll.u32 %s8960_s30, 4  ;;  %p8821_p0 = scmp.ne.s32.totalorder %s9293_s1, %s8820_s13  ;;  %s36_s10 = int_to_ptr.vmem [resolvable:$true] %s35_s10 }
   0x5   :  { %p8824_p1 = scmp.lt.u32.totalorder %s8820_s13, %s9293_s1 }
   0x7   :  { %p8826_p2 = pnand %p8824_p1, %p8821_p0 }
   0x9   :  { %8829 = shalt.err (!%p8826_p2)
}
   0xa   :  { %s8830_s18 = scalar_lea.vmem %s36_s10, 30720  ;;  %p8835_p4 = scmp.lt.s32.totalorder %s36_s10, %s36_s10 }
   0xb   :  { %p8831_p3 = scmp.ne.s32.totalorder %s36_s10, %s8830_s18  ;;  %p8836_p5 = scmp.lt.s32.totalorder %s8830_s18, %s8830_s18 }
   0xd   :  { %p8837_p6 = por %p8836_p5, %p8835_p4 }
   0xf   :  { %p8838_p7 = pnand %p8837_p6, %p8831_p3 }
  0x11   :  { %8841 = shalt.err (!%p8838_p7)
}
  0x12   :  { %s8961_s19 = smov 320   ;;  %s8962_s20 = smov 20  }
  0x13   :  { %41 = dma.hbm_to_vmem [thread:$0]  %s9293_s1, 30720, %s36_s10, [#allocation6], %s8961_s19, %s8961_s19, %s8962_s20  }
  0x14   :  { %s8963_s23 = smov [#allocation8]   ;;  %s8964_s25 = smov [#allocation2]  }
  0x15   :  { %s59_s24 = sshll.u32 %s8963_s23, 4  ;;  %s23_s26 = sshll.u32 %s8964_s25, 4  ;;  %s60_s24 = int_to_ptr.vmem [resolvable:$true] %s59_s24  ;;  %s24_s26 = int_to_ptr.vmem [resolvable:$true] %s23_s26 }
  0x16   :  { %s8842_s29 = scalar_lea.hbm %s9295_s3, 25600 }
  0x17   :  { %p8843_p8 = scmp.ne.s32.totalorder %s9295_s3, %s8842_s29  ;;  %p8846_p9 = scmp.lt.u32.totalorder %s8842_s29, %s9295_s3 }
  0x19   :  { %p8848_p10 = pnand %p8846_p9, %p8843_p8 }
  0x1b   :  { %8851 = shalt.err (!%p8848_p10)
}
  0x1c   :  { %s8852_s1 = scalar_lea.vmem %s60_s24, 25600  ;;  %p8857_p12 = scmp.lt.s32.totalorder %s60_s24, %s60_s24 }
  0x1d   :  { %p8853_p11 = scmp.ne.s32.totalorder %s60_s24, %s8852_s1  ;;  %p8858_p13 = scmp.lt.s32.totalorder %s8852_s1, %s8852_s1 }
  0x1f   :  { %p8859_p0 = por %p8858_p13, %p8857_p12 }
  0x21   :  { %p8860_p1 = pnand %p8859_p0, %p8853_p11 }
  0x23   :  { %8863 = shalt.err (!%p8860_p1)
}
  0x24   :  { %65 = dma.hbm_to_vmem [thread:$0]  %s9295_s3, 25600, %s60_s24, [#allocation9], %s8961_s19, %s8961_s19, %s8962_s20  }
  0x25   :  { %s8864_s17 = scalar_lea.hbm %s9292_s0, 768 }
  0x26   :  { %p8865_p2 = scmp.ne.s32.totalorder %s9292_s0, %s8864_s17  ;;  %p8868_p3 = scmp.lt.u32.totalorder %s8864_s17, %s9292_s0 }
  0x28   :  { %p8870_p4 = pnand %p8868_p3, %p8865_p2 }
  0x2a   :  { %8873 = shalt.err (!%p8870_p4)
}
  0x2b   :  { %s8874_s25 = scalar_lea.vmem %s24_s26, 768  ;;  %p8879_p6 = scmp.lt.s32.totalorder %s24_s26, %s24_s26 }
  0x2c   :  { %p8875_p5 = scmp.ne.s32.totalorder %s24_s26, %s8874_s25  ;;  %p8880_p7 = scmp.lt.s32.totalorder %s8874_s25, %s8874_s25 }
  0x2e   :  { %p8881_p8 = por %p8880_p7, %p8879_p6 }
  0x30   :  { %p8882_p9 = pnand %p8881_p8, %p8875_p5 }
  0x32   :  { %8885 = shalt.err (!%p8882_p9)
}
  0x33   :  { %s8965_s3 = smov 384   ;;  %s8966_s24 = smov 24  }
  0x34   :  { %29 = dma.hbm_to_vmem [thread:$0]  %s9292_s0, 768, %s24_s26, [#allocation3], %s8965_s3, %s8965_s3, %s8966_s24  }
  0x35   :  { %s8967_s29 = smov [#allocation7]   ;;  %s8968_s11 = smov [#allocation10]  }
  0x36   :  { %s47_s30 = sshll.u32 %s8967_s29, 4  ;;  %s71_s12 = sshll.u32 %s8968_s11, 4  ;;  %s48_s30 = int_to_ptr.vmem [resolvable:$true] %s47_s30  ;;  %s72_s12 = int_to_ptr.vmem [resolvable:$true] %s71_s12 }
  0x37   :  { %s8886_s10 = scalar_lea.hbm %s9294_s2, 25600 }
  0x38   :  { %p8887_p10 = scmp.ne.s32.totalorder %s9294_s2, %s8886_s10  ;;  %p8890_p11 = scmp.lt.u32.totalorder %s8886_s10, %s9294_s2 }
  0x3a   :  { %p8892_p12 = pnand %p8890_p11, %p8887_p10 }
  0x3c   :  { %8895 = shalt.err (!%p8892_p12)
}
  0x3d   :  { %s8896_s0 = scalar_lea.vmem %s48_s30, 25600  ;;  %p8901_p0 = scmp.lt.s32.totalorder %s48_s30, %s48_s30 }
  0x3e   :  { %p8897_p13 = scmp.ne.s32.totalorder %s48_s30, %s8896_s0  ;;  %p8902_p1 = scmp.lt.s32.totalorder %s8896_s0, %s8896_s0 }
  0x40   :  { %p8903_p2 = por %p8902_p1, %p8901_p0 }
  0x42   :  { %p8904_p3 = pnand %p8903_p2, %p8897_p13 }
  0x44   :  { %8907 = shalt.err (!%p8904_p3)
}
  0x45   :  { %53 = dma.hbm_to_vmem [thread:$0]  %s9294_s2, 25600, %s48_s30, [#allocation6], %s8961_s19, %s8961_s19, %s8962_s20  }
  0x46   :  { %s8908_s23 = scalar_lea.hbm %s9296_s4, 15360 }
  0x47   :  { %p8909_p4 = scmp.ne.s32.totalorder %s9296_s4, %s8908_s23  ;;  %p8912_p5 = scmp.lt.u32.totalorder %s8908_s23, %s9296_s4 }
  0x49   :  { %p8914_p6 = pnand %p8912_p5, %p8909_p4 }
  0x4b   :  { %8917 = shalt.err (!%p8914_p6)
}
  0x4c   :  { %s8918_s11 = scalar_lea.vmem %s72_s12, 15360  ;;  %p8923_p8 = scmp.lt.s32.totalorder %s72_s12, %s72_s12 }
  0x4d   :  { %p8919_p7 = scmp.ne.s32.totalorder %s72_s12, %s8918_s11  ;;  %p8924_p9 = scmp.lt.s32.totalorder %s8918_s11, %s8918_s11 }
  0x4f   :  { %p8925_p10 = por %p8924_p9, %p8923_p8 }
  0x51   :  { %p8926_p11 = pnand %p8925_p10, %p8919_p7 }
  0x53   :  { %8929 = shalt.err (!%p8926_p11)
}
  0x54   :  { %s8969_s2 = smov 192   ;;  %s8970_s19 = smov 12  }
  0x55   :  { %77 = dma.hbm_to_vmem [thread:$0]  %s9296_s4, 15360, %s72_s12, [#allocation9], %s8969_s2, %s8969_s2, %s8970_s19  }
  0x56   :  { %8952 = dma.done.wait [#allocation3], 768  }
  0x57   :  { %8953 = vsyncadd [#allocation3], 4294966528 }
  0x58   :  { %8954 = dma.done.wait [#allocation6], 56320  }
  0x59   :  { %8955 = vsyncadd [#allocation6], 4294910976 }
  0x5a   :  { %8956 = dma.done.wait [#allocation9], 40960  }
  0x5b   :  { %8957 = vsyncadd [#allocation9], 4294926336  ;;  %v7753_v0 = vld [vmem:[#allocation5 + $0x4] ss:$20 sps:$4 sm:$0xff]   ;;  %v7755_v1 = vld [vmem:[#allocation5 + $0xc] ss:$20 sps:$4 sm:$0xff]  }
  0x5c   :  { %1701 = vmatprep.subr.bf16.mxu0 %v7753_v0  ;;  %v7757_v2 = vld [vmem:[#allocation5] ss:$20 sps:$4 sm:$0xff]   ;;  %v7758_v3 = vld [vmem:[#allocation5 + $0x8] ss:$20 sps:$4 sm:$0xff]   ;;  %1830 = vmatprep.subr.bf16.mxu1 %v7755_v1  ;;  %v7764_v7 = vld [vmem:[#allocation5 + $0x30] ss:$20 sps:$4 sm:$0xff]  }
  0x5d   :  { %v7759_v4 = vld [vmem:[#allocation5 + $0x2c] ss:$20 sps:$4 sm:$0xff]   ;;  %1702 = vmatpush1.bf16.msra.mxu0 %v7757_v2  ;;  %1831 = vmatpush1.bf16.msra.mxu1 %v7758_v3  ;;  %v7761_v5 = vld [vmem:[#allocation5 + $0x34] ss:$20 sps:$4 sm:$0xff]   ;;  %v7767_v9 = vld [vmem:[#allocation5 + $0x5c] ss:$20 sps:$4 sm:$0xff]  }
  0x5e   :  { %v7763_v6 = vld [vmem:[#allocation5 + $0x28] ss:$20 sps:$4 sm:$0xff]   ;;  %1703 = vmatprep.subr.bf16.mxu0 %v7759_v4  ;;  %1832 = vmatprep.subr.bf16.mxu1 %v7761_v5  ;;  %v7769_v10 = vld [vmem:[#allocation5 + $0x50] ss:$20 sps:$4 sm:$0xff]   ;;  %v7770_v11 = vld [vmem:[#allocation5 + $0x58] ss:$20 sps:$4 sm:$0xff]  }
  0x5f   :  { %v7765_v8 = vld [vmem:[#allocation5 + $0x54] ss:$20 sps:$4 sm:$0xff]   ;;  %v7771_v12 = vld [vmem:[#allocation5 + $0x7c] ss:$20 sps:$4 sm:$0xff]   ;;  %v7773_v13 = vld [vmem:[#allocation5 + $0x84] ss:$20 sps:$4 sm:$0xff]  }
  0x60   :  { %v7775_v14 = vld [vmem:[#allocation5 + $0x78] ss:$20 sps:$4 sm:$0xff]   ;;  %v7776_v15 = vld [vmem:[#allocation5 + $0x80] ss:$20 sps:$4 sm:$0xff]   ;;  %v7782_v19 = vld [vmem:[#allocation5 + $0xa8] ss:$20 sps:$4 sm:$0xff]  }
  0x61   :  { %1704 = vmatpush1.bf16.msra.mxu0 %v7763_v6  ;;  %1833 = vmatpush1.bf16.msra.mxu1 %v7764_v7  ;;  %v7777_v16 = vld [vmem:[#allocation5 + $0xa4] ss:$20 sps:$4 sm:$0xff]   ;;  %v7779_v17 = vld [vmem:[#allocation5 + $0xac] ss:$20 sps:$4 sm:$0xff]   ;;  %v7785_v21 = vld [vmem:[#allocation5 + $0xd4] ss:$20 sps:$4 sm:$0xff]  }
  0x62   :  { %1705 = vmatprep.subr.bf16.mxu0 %v7765_v8  ;;  %1834 = vmatprep.subr.bf16.mxu1 %v7767_v9  ;;  %v7781_v18 = vld [vmem:[#allocation5 + $0xa0] ss:$20 sps:$4 sm:$0xff]   ;;  %v7787_v22 = vld [vmem:[#allocation5 + $0xc8] ss:$20 sps:$4 sm:$0xff]   ;;  %v7788_v23 = vld [vmem:[#allocation5 + $0xd0] ss:$20 sps:$4 sm:$0xff]  }
  0x63   :  { %v7783_v20 = vld [vmem:[#allocation5 + $0xcc] ss:$20 sps:$4 sm:$0xff]   ;;  %v7789_v24 = vld [vmem:[#allocation5 + $0xf4] ss:$20 sps:$4 sm:$0xff]   ;;  %v7791_v25 = vld [vmem:[#allocation5 + $0xfc] ss:$20 sps:$4 sm:$0xff]  }
  0x64   :  { %v7793_v26 = vld [vmem:[#allocation5 + $0xf0] ss:$20 sps:$4 sm:$0xff]   ;;  %v7794_v27 = vld [vmem:[#allocation5 + $0xf8] ss:$20 sps:$4 sm:$0xff]   ;;  %v7800_v31 = vld [vmem:[#allocation5 + $0x120] ss:$20 sps:$4 sm:$0xff]  }
  0x65   :  { %1706 = vmatpush1.bf16.msra.mxu0 %v7769_v10  ;;  %1835 = vmatpush1.bf16.msra.mxu1 %v7770_v11  ;;  %v7795_v28 = vld [vmem:[#allocation5 + $0x11c] ss:$20 sps:$4 sm:$0xff]   ;;  %v7797_v29 = vld [vmem:[#allocation5 + $0x124] ss:$20 sps:$4 sm:$0xff]   ;;  %v7803_v33 = vld [vmem:[#allocation5 + $0x14c] ss:$20 sps:$4 sm:$0xff]  }
  0x66   :  { %1707 = vmatprep.subr.bf16.mxu0 %v7771_v12  ;;  %1836 = vmatprep.subr.bf16.mxu1 %v7773_v13  ;;  %v7799_v30 = vld [vmem:[#allocation5 + $0x118] ss:$20 sps:$4 sm:$0xff]   ;;  %v7805_v34 = vld [vmem:[#allocation5 + $0x140] ss:$20 sps:$4 sm:$0xff]   ;;  %v7806_v35 = vld [vmem:[#allocation5 + $0x148] ss:$20 sps:$4 sm:$0xff]  }
  0x67   :  { %v7801_v32 = vld [vmem:[#allocation5 + $0x144] ss:$20 sps:$4 sm:$0xff]   ;;  %v7807_v36 = vld [vmem:[#allocation5 + $0x16c] ss:$20 sps:$4 sm:$0xff]   ;;  %v7809_v37 = vld [vmem:[#allocation5 + $0x174] ss:$20 sps:$4 sm:$0xff]  }
  0x68   :  { %v7811_v38 = vld [vmem:[#allocation5 + $0x168] ss:$20 sps:$4 sm:$0xff]   ;;  %v7812_v39 = vld [vmem:[#allocation5 + $0x170] ss:$20 sps:$4 sm:$0xff]   ;;  %v7818_v43 = vld [vmem:[#allocation5 + $0x198] ss:$20 sps:$4 sm:$0xff]  }
  0x69   :  { %1708 = vmatpush1.bf16.msra.mxu0 %v7775_v14  ;;  %1837 = vmatpush1.bf16.msra.mxu1 %v7776_v15  ;;  %v7813_v40 = vld [vmem:[#allocation5 + $0x194] ss:$20 sps:$4 sm:$0xff]   ;;  %v7815_v41 = vld [vmem:[#allocation5 + $0x19c] ss:$20 sps:$4 sm:$0xff]   ;;  %v7821_v45 = vld [vmem:[#allocation5 + $0x1c4] ss:$20 sps:$4 sm:$0xff]  }
  0x6a   :  { %1709 = vmatprep.subr.bf16.mxu0 %v7777_v16  ;;  %1838 = vmatprep.subr.bf16.mxu1 %v7779_v17  ;;  %v7817_v42 = vld [vmem:[#allocation5 + $0x190] ss:$20 sps:$4 sm:$0xff]   ;;  %v7823_v46 = vld [vmem:[#allocation5 + $0x1b8] ss:$20 sps:$4 sm:$0xff]   ;;  %v7824_v48 = vld [vmem:[#allocation5 + $0x1c0] ss:$20 sps:$4 sm:$0xff]  }
  0x6b   :  { %v7819_v44 = vld [vmem:[#allocation5 + $0x1bc] ss:$20 sps:$4 sm:$0xff]   ;;  %v7849_v47 = vld [vmem:[#allocation2 + $0x4] ss:$24 sps:$4 sm:$0xff]   ;;  %v7825_v49 = vld [vmem:[#allocation5 + $0x1e4] ss:$20 sps:$4 sm:$0xff]  }
  0x6c   :  { %v7827_v50 = vld [vmem:[#allocation5 + $0x1ec] ss:$20 sps:$4 sm:$0xff]   ;;  %1733 = vmatprep.mubr.bf16.mxu0 %v7849_v47  ;;  %1862 = vmatprep.mubr.bf16.mxu1 %v7849_v47  ;;  %v7830_v52 = vld [vmem:[#allocation5 + $0x1e8] ss:$20 sps:$4 sm:$0xff]   ;;  %v7836_v56 = vld [vmem:[#allocation5 + $0x210] ss:$20 sps:$4 sm:$0xff]  }
  0x6d   :  { %1710 = vmatpush1.bf16.msra.mxu0 %v7781_v18  ;;  %1839 = vmatpush1.bf16.msra.mxu1 %v7782_v19  ;;  %v7829_v51 = vld [vmem:[#allocation5 + $0x1e0] ss:$20 sps:$4 sm:$0xff]   ;;  %v7835_v55 = vld [vmem:[#allocation5 + $0x208] ss:$20 sps:$4 sm:$0xff]   ;;  %v7841_v59 = vld [vmem:[#allocation5 + $0x230] ss:$20 sps:$4 sm:$0xff]  }
  0x6e   :  { %1711 = vmatprep.subr.bf16.mxu0 %v7783_v20  ;;  %1840 = vmatprep.subr.bf16.mxu1 %v7785_v21  ;;  %v7831_v53 = vld [vmem:[#allocation5 + $0x20c] ss:$20 sps:$4 sm:$0xff]   ;;  %v7833_v54 = vld [vmem:[#allocation5 + $0x214] ss:$20 sps:$4 sm:$0xff]   ;;  %v7839_v58 = vld [vmem:[#allocation5 + $0x23c] ss:$20 sps:$4 sm:$0xff]  }
  0x6f   :  { %v7837_v57 = vld [vmem:[#allocation5 + $0x234] ss:$20 sps:$4 sm:$0xff]   ;;  %v7842_v60 = vld [vmem:[#allocation5 + $0x238] ss:$20 sps:$4 sm:$0xff]   ;;  %v7843_v61 = vld [vmem:[#allocation5 + $0x25c] ss:$20 sps:$4 sm:$0xff]  }
  0x70   :  { %v7845_v62 = vld [vmem:[#allocation5 + $0x264] ss:$20 sps:$4 sm:$0xff]   ;;  %v7848_v0 = vld [vmem:[#allocation5 + $0x260] ss:$20 sps:$4 sm:$0xff]   ;;  %v7854_v4 = vld [vmem:[#allocation5 + $0x288] ss:$20 sps:$4 sm:$0xff]  }
  0x71   :  { %1712 = vmatpush1.bf16.msra.mxu0 %v7787_v22  ;;  %1841 = vmatpush1.bf16.msra.mxu1 %v7788_v23  ;;  %v7847_v63 = vld [vmem:[#allocation5 + $0x258] ss:$20 sps:$4 sm:$0xff]   ;;  %v7851_v3 = vld [vmem:[#allocation5 + $0x280] ss:$20 sps:$4 sm:$0xff]   ;;  %v7857_v5 = vld [vmem:[#allocation2] ss:$24 sps:$4 sm:$0xff]  }
  0x72   :  { %1713 = vmatprep.subr.bf16.mxu0 %v7789_v24  ;;  %1842 = vmatprep.subr.bf16.mxu1 %v7791_v25  ;;  %v7853_v1 = vld [vmem:[#allocation5 + $0x284] ss:$20 sps:$4 sm:$0xff]   ;;  %v7856_v2 = vld [vmem:[#allocation5 + $0x28c] ss:$20 sps:$4 sm:$0xff]   ;;  %v7863_v7 = vld [vmem:[#allocation5 + $0x2b4] ss:$20 sps:$4 sm:$0xff]  }
  0x73   :  { %v7860_v6 = vld [vmem:[#allocation5 + $0x2ac] ss:$20 sps:$4 sm:$0xff]   ;;  %v7858_v8 = vld [vmem:[#allocation5 + $0x2a8] ss:$20 sps:$4 sm:$0xff]   ;;  %v7861_v9 = vld [vmem:[#allocation5 + $0x2b0] ss:$20 sps:$4 sm:$0xff]  }
  0x74   :  { %v7866_v10 = vld [vmem:[#allocation5 + $0x2d4] ss:$20 sps:$4 sm:$0xff]   ;;  %v7869_v11 = vld [vmem:[#allocation5 + $0x2dc] ss:$20 sps:$4 sm:$0xff]   ;;  %v7867_v13 = vld [vmem:[#allocation5 + $0x2d8] ss:$20 sps:$4 sm:$0xff]  }
  0x75   :  { %1714 = vmatpush1.bf16.msra.mxu0 %v7793_v26  ;;  %1843 = vmatpush1.bf16.msra.mxu1 %v7794_v27  ;;  %v7864_v12 = vld [vmem:[#allocation5 + $0x2d0] ss:$20 sps:$4 sm:$0xff]   ;;  %v7870_v16 = vld [vmem:[#allocation5 + $0x2f8] ss:$20 sps:$4 sm:$0xff]   ;;  %v7873_v17 = vld [vmem:[#allocation5 + $0x300] ss:$20 sps:$4 sm:$0xff]  }
  0x76   :  { %1715 = vmatprep.subr.bf16.mxu0 %v7795_v28  ;;  %1844 = vmatprep.subr.bf16.mxu1 %v7797_v29  ;;  %v7872_v14 = vld [vmem:[#allocation5 + $0x2fc] ss:$20 sps:$4 sm:$0xff]   ;;  %v7875_v15 = vld [vmem:[#allocation5 + $0x304] ss:$20 sps:$4 sm:$0xff]   ;;  %v7881_v19 = vld [vmem:[#allocation5 + $0x32c] ss:$20 sps:$4 sm:$0xff]  }
  0x77   :  { %v7878_v18 = vld [vmem:[#allocation5 + $0x324] ss:$20 sps:$4 sm:$0xff]   ;;  %v7876_v20 = vld [vmem:[#allocation5 + $0x320] ss:$20 sps:$4 sm:$0xff]   ;;  %v7879_v21 = vld [vmem:[#allocation5 + $0x328] ss:$20 sps:$4 sm:$0xff]  }
  0x78   :  { %v7884_v22 = vld [vmem:[#allocation5 + $0x34c] ss:$20 sps:$4 sm:$0xff]   ;;  %v7887_v23 = vld [vmem:[#allocation5 + $0x354] ss:$20 sps:$4 sm:$0xff]   ;;  %v7885_v25 = vld [vmem:[#allocation5 + $0x350] ss:$20 sps:$4 sm:$0xff]  }
  0x79   :  { %1716 = vmatpush1.bf16.msra.mxu0 %v7799_v30  ;;  %1845 = vmatpush1.bf16.msra.mxu1 %v7800_v31  ;;  %v7882_v24 = vld [vmem:[#allocation5 + $0x348] ss:$20 sps:$4 sm:$0xff]   ;;  %v7888_v28 = vld [vmem:[#allocation5 + $0x370] ss:$20 sps:$4 sm:$0xff]   ;;  %v7891_v29 = vld [vmem:[#allocation5 + $0x378] ss:$20 sps:$4 sm:$0xff]  }
  0x7a   :  { %1717 = vmatprep.subr.bf16.mxu0 %v7801_v32  ;;  %1846 = vmatprep.subr.bf16.mxu1 %v7803_v33  ;;  %v7890_v26 = vld [vmem:[#allocation5 + $0x374] ss:$20 sps:$4 sm:$0xff]   ;;  %v7893_v27 = vld [vmem:[#allocation5 + $0x37c] ss:$20 sps:$4 sm:$0xff]   ;;  %v7899_v32 = vld [vmem:[#allocation5 + $0x3a4] ss:$20 sps:$4 sm:$0xff]  }
  0x7b   :  { %v9097_v30 = vld [vmem:[#allocation2 + $0xc] ss:$24 sps:$4 sm:$0xff]   ;;  %v7894_v33 = vld [vmem:[#allocation5 + $0x398] ss:$20 sps:$4 sm:$0xff]   ;;  %vm8973_vm0 = vmmov 0  }
  0x7c   :  { %v7896_v31 = vld [vmem:[#allocation5 + $0x39c] ss:$20 sps:$4 sm:$0xff]  }
  0x7d   :  { %1718 = vmatpush1.bf16.msra.mxu0 %v7805_v34  ;;  %1847 = vmatpush1.bf16.msra.mxu1 %v7806_v35  ;;  %v7897_v34 = vld [vmem:[#allocation5 + $0x3a0] ss:$20 sps:$4 sm:$0xff]   ;;  %v7902_v35 = vld [vmem:[#allocation5 + $0x3c4] ss:$20 sps:$4 sm:$0xff]   ;;  %v7920_v47 = vld [vmem:[#allocation5 + $0x43c] ss:$20 sps:$4 sm:$0xff]  }
  0x7e   :  { %1719 = vmatprep.subr.bf16.mxu0 %v7807_v36  ;;  %1848 = vmatprep.subr.bf16.mxu1 %v7809_v37  ;;  %v7905_v36 = vld [vmem:[#allocation5 + $0x3cc] ss:$20 sps:$4 sm:$0xff]  }
  0x7f   :  { %v7900_v37 = vld [vmem:[#allocation5 + $0x3c0] ss:$20 sps:$4 sm:$0xff]  }
  0x81   :  { %1720 = vmatpush1.bf16.msra.mxu0 %v7811_v38  ;;  %1849 = vmatpush1.bf16.msra.mxu1 %v7812_v39  ;;  %v7903_v38 = vld [vmem:[#allocation5 + $0x3c8] ss:$20 sps:$4 sm:$0xff]   ;;  %v7908_v39 = vld [vmem:[#allocation5 + $0x3ec] ss:$20 sps:$4 sm:$0xff]  }
  0x82   :  { %1721 = vmatprep.subr.bf16.mxu0 %v7813_v40  ;;  %1850 = vmatprep.subr.bf16.mxu1 %v7815_v41  ;;  %v7911_v40 = vld [vmem:[#allocation5 + $0x3f4] ss:$20 sps:$4 sm:$0xff]  }
  0x83   :  { %v7906_v41 = vld [vmem:[#allocation5 + $0x3e8] ss:$20 sps:$4 sm:$0xff]  }
  0x85   :  { %1722 = vmatpush1.bf16.msra.mxu0 %v7817_v42  ;;  %1851 = vmatpush1.bf16.msra.mxu1 %v7818_v43  ;;  %v7909_v42 = vld [vmem:[#allocation5 + $0x3f0] ss:$20 sps:$4 sm:$0xff]   ;;  %v7914_v43 = vld [vmem:[#allocation5 + $0x414] ss:$20 sps:$4 sm:$0xff]  }
  0x86   :  { %1723 = vmatprep.subr.bf16.mxu0 %v7819_v44  ;;  %1852 = vmatprep.subr.bf16.mxu1 %v7821_v45  ;;  %v7917_v44 = vld [vmem:[#allocation5 + $0x41c] ss:$20 sps:$4 sm:$0xff]  }
  0x87   :  { %v7912_v45 = vld [vmem:[#allocation5 + $0x410] ss:$20 sps:$4 sm:$0xff]  }
  0x89   :  { %1724 = vmatpush1.bf16.msra.mxu0 %v7823_v46  ;;  %1853 = vmatpush1.bf16.msra.mxu1 %v7824_v48  ;;  %v7915_v46 = vld [vmem:[#allocation5 + $0x418] ss:$20 sps:$4 sm:$0xff]  }
  0x8a   :  { %1725 = vmatprep.subr.bf16.mxu0 %v7825_v49  ;;  %1854 = vmatprep.subr.bf16.mxu1 %v7827_v50  ;;  %v7923_v48 = vld [vmem:[#allocation5 + $0x444] ss:$20 sps:$4 sm:$0xff]   ;;  %v7921_v50 = vld [vmem:[#allocation5 + $0x440] ss:$20 sps:$4 sm:$0xff]  }
  0x8b   :  { %v7918_v49 = vld [vmem:[#allocation5 + $0x438] ss:$20 sps:$4 sm:$0xff]  }
  0x8d   :  { %1726 = vmatpush1.bf16.msra.mxu0 %v7829_v51  ;;  %1855 = vmatpush1.bf16.msra.mxu1 %v7830_v52  ;;  %v7926_v51 = vld [vmem:[#allocation5 + $0x464] ss:$20 sps:$4 sm:$0xff]   ;;  %v7929_v52 = vld [vmem:[#allocation5 + $0x46c] ss:$20 sps:$4 sm:$0xff]  }
  0x8e   :  { %1727 = vmatprep.subr.bf16.mxu0 %v7831_v53  ;;  %1856 = vmatprep.subr.bf16.mxu1 %v7833_v54  ;;  %v7924_v53 = vld [vmem:[#allocation5 + $0x460] ss:$20 sps:$4 sm:$0xff]   ;;  %v7927_v54 = vld [vmem:[#allocation5 + $0x468] ss:$20 sps:$4 sm:$0xff]  }
  0x91   :  { %1728 = vmatpush1.bf16.msra.mxu0 %v7835_v55  ;;  %1857 = vmatpush1.bf16.msra.mxu1 %v7836_v56  ;;  %v7932_v55 = vld [vmem:[#allocation5 + $0x48c] ss:$20 sps:$4 sm:$0xff]   ;;  %v7935_v56 = vld [vmem:[#allocation5 + $0x494] ss:$20 sps:$4 sm:$0xff]  }
  0x92   :  { %1729 = vmatprep.subr.bf16.mxu0 %v7837_v57  ;;  %1858 = vmatprep.subr.bf16.mxu1 %v7839_v58  ;;  %v7930_v57 = vld [vmem:[#allocation5 + $0x488] ss:$20 sps:$4 sm:$0xff]   ;;  %v7933_v58 = vld [vmem:[#allocation5 + $0x490] ss:$20 sps:$4 sm:$0xff]  }
  0x95   :  { %1730 = vmatpush1.bf16.msra.mxu0 %v7841_v59  ;;  %1859 = vmatpush1.bf16.msra.mxu1 %v7842_v60  ;;  %v7938_v59 = vld [vmem:[#allocation5 + $0x4b4] ss:$20 sps:$4 sm:$0xff]   ;;  %v7941_v60 = vld [vmem:[#allocation5 + $0x4bc] ss:$20 sps:$4 sm:$0xff]  }
  0x96   :  { %1731 = vmatprep.subr.bf16.mxu0 %v7843_v61  ;;  %1860 = vmatprep.subr.bf16.mxu1 %v7845_v62  ;;  %v7936_v61 = vld [vmem:[#allocation5 + $0x4b0] ss:$20 sps:$4 sm:$0xff]   ;;  %v7939_v62 = vld [vmem:[#allocation5 + $0x4b8] ss:$20 sps:$4 sm:$0xff]  }
  0x99   :  { %1732 = vmatpush1.bf16.msra.mxu0 %v7847_v63  ;;  %1861 = vmatpush1.bf16.msra.mxu1 %v7848_v0  ;;  %v7944_v63 = vld [vmem:[#allocation5 + $0x4dc] ss:$20 sps:$4 sm:$0xff]   ;;  %v7947_v0 = vld [vmem:[#allocation5 + $0x4e4] ss:$20 sps:$4 sm:$0xff]  }
  0x9a   :  { %1744 = vmatprep.subr.bf16.mxu0 %v7853_v1  ;;  %1873 = vmatprep.subr.bf16.mxu1 %v7856_v2  ;;  %v7942_v1 = vld [vmem:[#allocation5 + $0x4d8] ss:$20 sps:$4 sm:$0xff]   ;;  %v7945_v2 = vld [vmem:[#allocation5 + $0x4e0] ss:$20 sps:$4 sm:$0xff]  }
  0x9c   :  { %1734 = vmatmul.mubr.bf16.vlgmr.msra.gmra.mrb[0].mxu0 %v7857_v5  ;;  %1863 = vmatmul.mubr.bf16.vlgmr.msra.gmra.mrb[0].mxu1 %v7857_v5  ;;  %v9101_v5 = vld [vmem:[#allocation2 + $0x8] ss:$24 sps:$4 sm:$0xff]  }
  0x9d   :  { %1745 = vmatpush1.bf16.msra.mxu0 %v7851_v3  ;;  %1874 = vmatpush1.bf16.msra.mxu1 %v7854_v4  ;;  %v7953_v3 = vld [vmem:[#allocation5 + $0x504] ss:$20 sps:$4 sm:$0xff]   ;;  %v7956_v4 = vld [vmem:[#allocation5 + $0x50c] ss:$20 sps:$4 sm:$0xff]  }
  0x9e   :  { %1746 = vmatprep.subr.bf16.mxu0 %v7860_v6  ;;  %1875 = vmatprep.subr.bf16.mxu1 %v7863_v7  ;;  %v7951_v6 = vld [vmem:[#allocation5 + $0x500] ss:$20 sps:$4 sm:$0xff]   ;;  %v7954_v7 = vld [vmem:[#allocation5 + $0x508] ss:$20 sps:$4 sm:$0xff]  }
  0x9f   :  { %1776 = vmatprep.mubr.bf16.mxu0 %v9097_v30  ;;  %1905 = vmatprep.mubr.bf16.mxu1 %v9097_v30 }
  0xa1   :  { %1747 = vmatpush1.bf16.msra.mxu0 %v7858_v8  ;;  %1876 = vmatpush1.bf16.msra.mxu1 %v7861_v9  ;;  %v7959_v8 = vld [vmem:[#allocation5 + $0x52c] ss:$20 sps:$4 sm:$0xff]   ;;  %v7962_v9 = vld [vmem:[#allocation5 + $0x534] ss:$20 sps:$4 sm:$0xff]  }
  0xa2   :  { %1748 = vmatprep.subr.bf16.mxu0 %v7866_v10  ;;  %1877 = vmatprep.subr.bf16.mxu1 %v7869_v11  ;;  %v7957_v10 = vld [vmem:[#allocation5 + $0x528] ss:$20 sps:$4 sm:$0xff]   ;;  %v7960_v11 = vld [vmem:[#allocation5 + $0x530] ss:$20 sps:$4 sm:$0xff]  }
  0xa5   :  { %1749 = vmatpush1.bf16.msra.mxu0 %v7864_v12  ;;  %1878 = vmatpush1.bf16.msra.mxu1 %v7867_v13  ;;  %v9105_v12 = vld [vmem:[#allocation2 + $0x14] ss:$24 sps:$4 sm:$0xff]   ;;  %v7965_v13 = vld [vmem:[#allocation5 + $0x554] ss:$20 sps:$4 sm:$0xff]  }
  0xa6   :  { %1750 = vmatprep.subr.bf16.mxu0 %v7872_v14  ;;  %1879 = vmatprep.subr.bf16.mxu1 %v7875_v15  ;;  %v7968_v14 = vld [vmem:[#allocation5 + $0x55c] ss:$20 sps:$4 sm:$0xff]  }
  0xa7   :  { %v7963_v15 = vld [vmem:[#allocation5 + $0x550] ss:$20 sps:$4 sm:$0xff]  }
  0xa9   :  { %1751 = vmatpush1.bf16.msra.mxu0 %v7870_v16  ;;  %1880 = vmatpush1.bf16.msra.mxu1 %v7873_v17  ;;  %v7966_v16 = vld [vmem:[#allocation5 + $0x558] ss:$20 sps:$4 sm:$0xff]   ;;  %v7971_v17 = vld [vmem:[#allocation5 + $0x57c] ss:$20 sps:$4 sm:$0xff]  }
  0xaa   :  { %1752 = vmatprep.subr.bf16.mxu0 %v7878_v18  ;;  %1881 = vmatprep.subr.bf16.mxu1 %v7881_v19  ;;  %v7974_v18 = vld [vmem:[#allocation5 + $0x584] ss:$20 sps:$4 sm:$0xff]  }
  0xab   :  { %v7969_v19 = vld [vmem:[#allocation5 + $0x578] ss:$20 sps:$4 sm:$0xff]  }
  0xad   :  { %1753 = vmatpush1.bf16.msra.mxu0 %v7876_v20  ;;  %1882 = vmatpush1.bf16.msra.mxu1 %v7879_v21  ;;  %v7972_v20 = vld [vmem:[#allocation5 + $0x580] ss:$20 sps:$4 sm:$0xff]   ;;  %v7977_v21 = vld [vmem:[#allocation5 + $0x5a4] ss:$20 sps:$4 sm:$0xff]  }
  0xae   :  { %1754 = vmatprep.subr.bf16.mxu0 %v7884_v22  ;;  %1883 = vmatprep.subr.bf16.mxu1 %v7887_v23  ;;  %v7980_v22 = vld [vmem:[#allocation5 + $0x5ac] ss:$20 sps:$4 sm:$0xff]  }
  0xaf   :  { %v7975_v23 = vld [vmem:[#allocation5 + $0x5a0] ss:$20 sps:$4 sm:$0xff]  }
  0xb1   :  { %1755 = vmatpush1.bf16.msra.mxu0 %v7882_v24  ;;  %1884 = vmatpush1.bf16.msra.mxu1 %v7885_v25  ;;  %v7978_v24 = vld [vmem:[#allocation5 + $0x5a8] ss:$20 sps:$4 sm:$0xff]   ;;  %v7983_v25 = vld [vmem:[#allocation5 + $0x5cc] ss:$20 sps:$4 sm:$0xff]  }
  0xb2   :  { %1756 = vmatprep.subr.bf16.mxu0 %v7890_v26  ;;  %1885 = vmatprep.subr.bf16.mxu1 %v7893_v27  ;;  %v7986_v26 = vld [vmem:[#allocation5 + $0x5d4] ss:$20 sps:$4 sm:$0xff]  }
  0xb3   :  { %v7981_v27 = vld [vmem:[#allocation5 + $0x5c8] ss:$20 sps:$4 sm:$0xff]  }
  0xb5   :  { %1757 = vmatpush1.bf16.msra.mxu0 %v7888_v28  ;;  %1886 = vmatpush1.bf16.msra.mxu1 %v7891_v29  ;;  %v7984_v28 = vld [vmem:[#allocation5 + $0x5d0] ss:$20 sps:$4 sm:$0xff]   ;;  %v7989_v29 = vld [vmem:[#allocation5 + $0x5f4] ss:$20 sps:$4 sm:$0xff]  }
  0xb6   :  { %1758 = vmatprep.subr.bf16.mxu0 %v7896_v31  ;;  %1887 = vmatprep.subr.bf16.mxu1 %v7899_v32  ;;  %v7992_v31 = vld [vmem:[#allocation5 + $0x5fc] ss:$20 sps:$4 sm:$0xff]  }
  0xb7   :  { %v7987_v32 = vld [vmem:[#allocation5 + $0x5f0] ss:$20 sps:$4 sm:$0xff]  }
  0xb9   :  { %1759 = vmatpush1.bf16.msra.mxu0 %v7894_v33  ;;  %1888 = vmatpush1.bf16.msra.mxu1 %v7897_v34  ;;  %v7990_v33 = vld [vmem:[#allocation5 + $0x5f8] ss:$20 sps:$4 sm:$0xff]   ;;  %v7995_v34 = vld [vmem:[#allocation5 + $0x61c] ss:$20 sps:$4 sm:$0xff]  }
  0xba   :  { %1760 = vmatprep.subr.bf16.mxu0 %v7902_v35  ;;  %1889 = vmatprep.subr.bf16.mxu1 %v7905_v36  ;;  %v7998_v35 = vld [vmem:[#allocation5 + $0x624] ss:$20 sps:$4 sm:$0xff]  }
  0xbb   :  { %v7993_v36 = vld [vmem:[#allocation5 + $0x618] ss:$20 sps:$4 sm:$0xff]  }
  0xbd   :  { %1761 = vmatpush1.bf16.msra.mxu0 %v7900_v37  ;;  %1890 = vmatpush1.bf16.msra.mxu1 %v7903_v38  ;;  %v7996_v37 = vld [vmem:[#allocation5 + $0x620] ss:$20 sps:$4 sm:$0xff]   ;;  %v8001_v38 = vld [vmem:[#allocation5 + $0x644] ss:$20 sps:$4 sm:$0xff]  }
  0xbe   :  { %1762 = vmatprep.subr.bf16.mxu0 %v7908_v39  ;;  %1891 = vmatprep.subr.bf16.mxu1 %v7911_v40  ;;  %v8004_v39 = vld [vmem:[#allocation5 + $0x64c] ss:$20 sps:$4 sm:$0xff]  }
  0xbf   :  { %v7999_v40 = vld [vmem:[#allocation5 + $0x640] ss:$20 sps:$4 sm:$0xff]  }
  0xc1   :  { %1763 = vmatpush1.bf16.msra.mxu0 %v7906_v41  ;;  %1892 = vmatpush1.bf16.msra.mxu1 %v7909_v42  ;;  %v8002_v41 = vld [vmem:[#allocation5 + $0x648] ss:$20 sps:$4 sm:$0xff]   ;;  %v8007_v42 = vld [vmem:[#allocation5 + $0x66c] ss:$20 sps:$4 sm:$0xff]  }
  0xc2   :  { %1764 = vmatprep.subr.bf16.mxu0 %v7914_v43  ;;  %1893 = vmatprep.subr.bf16.mxu1 %v7917_v44  ;;  %v8010_v43 = vld [vmem:[#allocation5 + $0x674] ss:$20 sps:$4 sm:$0xff]  }
  0xc3   :  { %v8005_v44 = vld [vmem:[#allocation5 + $0x668] ss:$20 sps:$4 sm:$0xff]  }
  0xc5   :  { %1765 = vmatpush1.bf16.msra.mxu0 %v7912_v45  ;;  %1894 = vmatpush1.bf16.msra.mxu1 %v7915_v46  ;;  %v8008_v45 = vld [vmem:[#allocation5 + $0x670] ss:$20 sps:$4 sm:$0xff]   ;;  %v8013_v46 = vld [vmem:[#allocation5 + $0x694] ss:$20 sps:$4 sm:$0xff]  }
  0xc6   :  { %1766 = vmatprep.subr.bf16.mxu0 %v7920_v47  ;;  %1895 = vmatprep.subr.bf16.mxu1 %v7923_v48  ;;  %v8016_v47 = vld [vmem:[#allocation5 + $0x69c] ss:$20 sps:$4 sm:$0xff]  }
  0xc7   :  { %v8011_v48 = vld [vmem:[#allocation5 + $0x690] ss:$20 sps:$4 sm:$0xff]  }
  0xc9   :  { %1767 = vmatpush1.bf16.msra.mxu0 %v7918_v49  ;;  %1896 = vmatpush1.bf16.msra.mxu1 %v7921_v50  ;;  %v8014_v49 = vld [vmem:[#allocation5 + $0x698] ss:$20 sps:$4 sm:$0xff]   ;;  %v8019_v50 = vld [vmem:[#allocation5 + $0x6bc] ss:$20 sps:$4 sm:$0xff]  }
  0xca   :  { %1768 = vmatprep.subr.bf16.mxu0 %v7926_v51  ;;  %1897 = vmatprep.subr.bf16.mxu1 %v7929_v52  ;;  %v8022_v51 = vld [vmem:[#allocation5 + $0x6c4] ss:$20 sps:$4 sm:$0xff]  }
  0xcb   :  { %v8017_v52 = vld [vmem:[#allocation5 + $0x6b8] ss:$20 sps:$4 sm:$0xff]  }
  0xcd   :  { %1769 = vmatpush1.bf16.msra.mxu0 %v7924_v53  ;;  %1898 = vmatpush1.bf16.msra.mxu1 %v7927_v54  ;;  %v8020_v53 = vld [vmem:[#allocation5 + $0x6c0] ss:$20 sps:$4 sm:$0xff]   ;;  %v8025_v54 = vld [vmem:[#allocation5 + $0x6e4] ss:$20 sps:$4 sm:$0xff]  }
  0xce   :  { %1770 = vmatprep.subr.bf16.mxu0 %v7932_v55  ;;  %1899 = vmatprep.subr.bf16.mxu1 %v7935_v56  ;;  %v8028_v55 = vld [vmem:[#allocation5 + $0x6ec] ss:$20 sps:$4 sm:$0xff]  }
  0xcf   :  { %v8023_v56 = vld [vmem:[#allocation5 + $0x6e0] ss:$20 sps:$4 sm:$0xff]  }
  0xd1   :  { %1771 = vmatpush1.bf16.msra.mxu0 %v7930_v57  ;;  %1900 = vmatpush1.bf16.msra.mxu1 %v7933_v58  ;;  %v8026_v57 = vld [vmem:[#allocation5 + $0x6e8] ss:$20 sps:$4 sm:$0xff]   ;;  %v8031_v58 = vld [vmem:[#allocation5 + $0x70c] ss:$20 sps:$4 sm:$0xff]  }
  0xd2   :  { %1772 = vmatprep.subr.bf16.mxu0 %v7938_v59  ;;  %1901 = vmatprep.subr.bf16.mxu1 %v7941_v60  ;;  %v8034_v59 = vld [vmem:[#allocation5 + $0x714] ss:$20 sps:$4 sm:$0xff]  }
  0xd3   :  { %v8029_v60 = vld [vmem:[#allocation5 + $0x708] ss:$20 sps:$4 sm:$0xff]  }
  0xd5   :  { %1773 = vmatpush1.bf16.msra.mxu0 %v7936_v61  ;;  %1902 = vmatpush1.bf16.msra.mxu1 %v7939_v62  ;;  %v8032_v61 = vld [vmem:[#allocation5 + $0x710] ss:$20 sps:$4 sm:$0xff]   ;;  %v8037_v62 = vld [vmem:[#allocation5 + $0x734] ss:$20 sps:$4 sm:$0xff]  }
  0xd6   :  { %1774 = vmatprep.subr.bf16.mxu0 %v7944_v63  ;;  %1903 = vmatprep.subr.bf16.mxu1 %v7947_v0  ;;  %v8040_v63 = vld [vmem:[#allocation5 + $0x73c] ss:$20 sps:$4 sm:$0xff]  }
  0xd7   :  { %v8035_v0 = vld [vmem:[#allocation5 + $0x730] ss:$20 sps:$4 sm:$0xff]  }
  0xd9   :  { %1775 = vmatpush1.bf16.msra.mxu0 %v7942_v1  ;;  %1904 = vmatpush1.bf16.msra.mxu1 %v7945_v2  ;;  %v8038_v1 = vld [vmem:[#allocation5 + $0x738] ss:$20 sps:$4 sm:$0xff]   ;;  %v8043_v2 = vld [vmem:[#allocation5 + $0x75c] ss:$20 sps:$4 sm:$0xff]  }
  0xda   :  { %1787 = vmatprep.subr.bf16.mxu0 %v7953_v3  ;;  %1916 = vmatprep.subr.bf16.mxu1 %v7956_v4  ;;  %v8046_v3 = vld [vmem:[#allocation5 + $0x764] ss:$20 sps:$4 sm:$0xff]  }
  0xdb   :  { %v8041_v4 = vld [vmem:[#allocation5 + $0x758] ss:$20 sps:$4 sm:$0xff]  }
  0xdc   :  { %1777 = vmatmul.mubr.bf16.vlgmr.msra.gmra.mrb[0].mxu0 %v9101_v5  ;;  %1906 = vmatmul.mubr.bf16.vlgmr.msra.gmra.mrb[0].mxu1 %v9101_v5 }
  0xdd   :  { %1788 = vmatpush1.bf16.msra.mxu0 %v7951_v6  ;;  %1917 = vmatpush1.bf16.msra.mxu1 %v7954_v7  ;;  %v8044_v6 = vld [vmem:[#allocation5 + $0x760] ss:$20 sps:$4 sm:$0xff]   ;;  %v8050_v7 = vld [vmem:[#allocation5 + $0x150] ss:$20 sps:$4 sm:$0xff]  }
  0xde   :  { %1789 = vmatprep.subr.bf16.mxu0 %v7959_v8  ;;  %1918 = vmatprep.subr.bf16.mxu1 %v7962_v9  ;;  %v8066_v8 = vld [vmem:[#allocation5 + $0x3d0] ss:$20 sps:$4 sm:$0xff]   ;;  %v9109_v9 = vld [vmem:[#allocation2 + $0x10] ss:$24 sps:$4 sm:$0xff]  }
  0xdf   :  { %1819 = vmatprep.mubr.bf16.mxu0 %v9105_v12  ;;  %1948 = vmatprep.mubr.bf16.mxu1 %v9105_v12 }
  0xe1   :  { %1790 = vmatpush1.bf16.msra.mxu0 %v7957_v10  ;;  %1919 = vmatpush1.bf16.msra.mxu1 %v7960_v11  ;;  %v8051_v10 = vld [vmem:[#allocation5 + $0x10] ss:$20 sps:$4 sm:$0xff]  }
  0xe2   :  { %1791 = vmatprep.subr.bf16.mxu0 %v7965_v13  ;;  %1920 = vmatprep.subr.bf16.mxu1 %v7968_v14  ;;  %v8067_v11 = vld [vmem:[#allocation5 + $0x290] ss:$20 sps:$4 sm:$0xff]   ;;  %v8052_v13 = vld [vmem:[#allocation5 + $0x178] ss:$20 sps:$4 sm:$0xff]  }
  0xe3   :  { %v8070_v14 = vld [vmem:[#allocation5 + $0x3f8] ss:$20 sps:$4 sm:$0xff]  }
  0xe5   :  { %1792 = vmatpush1.bf16.msra.mxu0 %v7963_v15  ;;  %1921 = vmatpush1.bf16.msra.mxu1 %v7966_v16  ;;  %v8053_v15 = vld [vmem:[#allocation5 + $0x38] ss:$20 sps:$4 sm:$0xff]   ;;  %v8054_v16 = vld [vmem:[#allocation5 + $0x1a0] ss:$20 sps:$4 sm:$0xff]  }
  0xe6   :  { %1793 = vmatprep.subr.bf16.mxu0 %v7971_v17  ;;  %1922 = vmatprep.subr.bf16.mxu1 %v7974_v18  ;;  %v8071_v17 = vld [vmem:[#allocation5 + $0x2b8] ss:$20 sps:$4 sm:$0xff]  }
  0xe7   :  { %v8818_v18 = vld [vmem:[#allocation2 + $0x4] ss:$24 sps:$4 sm:$0xff]  }
  0xe9   :  { %1794 = vmatpush1.bf16.msra.mxu0 %v7969_v19  ;;  %1923 = vmatpush1.bf16.msra.mxu1 %v7972_v20  ;;  %v8074_v19 = vld [vmem:[#allocation5 + $0x420] ss:$20 sps:$4 sm:$0xff]  }
  0xea   :  { %1795 = vmatprep.subr.bf16.mxu0 %v7977_v21  ;;  %1924 = vmatprep.subr.bf16.mxu1 %v7980_v22  ;;  %v8055_v20 = vld [vmem:[#allocation5 + $0x60] ss:$20 sps:$4 sm:$0xff]   ;;  %v8056_v21 = vld [vmem:[#allocation5 + $0x1c8] ss:$20 sps:$4 sm:$0xff]  }
  0xeb   :  { %v8075_v22 = vld [vmem:[#allocation5 + $0x2e0] ss:$20 sps:$4 sm:$0xff]  }
  0xed   :  { %1796 = vmatpush1.bf16.msra.mxu0 %v7975_v23  ;;  %1925 = vmatpush1.bf16.msra.mxu1 %v7978_v24  ;;  %v8078_v23 = vld [vmem:[#allocation5 + $0x448] ss:$20 sps:$4 sm:$0xff]  }
  0xee   :  { %1797 = vmatprep.subr.bf16.mxu0 %v7983_v25  ;;  %1926 = vmatprep.subr.bf16.mxu1 %v7986_v26  ;;  %v8057_v24 = vld [vmem:[#allocation5 + $0x88] ss:$20 sps:$4 sm:$0xff]   ;;  %v8058_v25 = vld [vmem:[#allocation5 + $0x1f0] ss:$20 sps:$4 sm:$0xff]  }
  0xef   :  { %v8079_v26 = vld [vmem:[#allocation5 + $0x308] ss:$20 sps:$4 sm:$0xff]  }
  0xf1   :  { %1798 = vmatpush1.bf16.msra.mxu0 %v7981_v27  ;;  %1927 = vmatpush1.bf16.msra.mxu1 %v7984_v28  ;;  %v8082_v27 = vld [vmem:[#allocation5 + $0x470] ss:$20 sps:$4 sm:$0xff]  }
  0xf2   :  { %1799 = vmatprep.subr.bf16.mxu0 %v7989_v29  ;;  %1928 = vmatprep.subr.bf16.mxu1 %v7992_v31  ;;  %v8059_v28 = vld [vmem:[#allocation5 + $0xb0] ss:$20 sps:$4 sm:$0xff]   ;;  %v8060_v29 = vld [vmem:[#allocation5 + $0x218] ss:$20 sps:$4 sm:$0xff]  }
  0xf3   :  { %v8086_v31 = vld [vmem:[#allocation5 + $0x498] ss:$20 sps:$4 sm:$0xff]  }
  0xf5   :  { %1800 = vmatpush1.bf16.msra.mxu0 %v7987_v32  ;;  %1929 = vmatpush1.bf16.msra.mxu1 %v7990_v33  ;;  %v8061_v32 = vld [vmem:[#allocation5 + $0xd8] ss:$20 sps:$4 sm:$0xff]   ;;  %v8062_v33 = vld [vmem:[#allocation5 + $0x240] ss:$20 sps:$4 sm:$0xff]  }
  0xf6   :  { %1801 = vmatprep.subr.bf16.mxu0 %v7995_v34  ;;  %1930 = vmatprep.subr.bf16.mxu1 %v7998_v35  ;;  %v8087_v34 = vld [vmem:[#allocation5 + $0x358] ss:$20 sps:$4 sm:$0xff]   ;;  %v8090_v35 = vld [vmem:[#allocation5 + $0x4c0] ss:$20 sps:$4 sm:$0xff]  }
  0xf9   :  { %1802 = vmatpush1.bf16.msra.mxu0 %v7993_v36  ;;  %1931 = vmatpush1.bf16.msra.mxu1 %v7996_v37  ;;  %v8063_v36 = vld [vmem:[#allocation5 + $0x100] ss:$20 sps:$4 sm:$0xff]  }
  0xfa   :  { %1803 = vmatprep.subr.bf16.mxu0 %v8001_v38  ;;  %1932 = vmatprep.subr.bf16.mxu1 %v8004_v39  ;;  %v8091_v37 = vld [vmem:[#allocation5 + $0x380] ss:$20 sps:$4 sm:$0xff]   ;;  %v8064_v38 = vld [vmem:[#allocation5 + $0x268] ss:$20 sps:$4 sm:$0xff]  }
  0xfb   :  { %v8094_v39 = vld [vmem:[#allocation5 + $0x4e8] ss:$20 sps:$4 sm:$0xff]  }
  0xfd   :  { %1804 = vmatpush1.bf16.msra.mxu0 %v7999_v40  ;;  %1933 = vmatpush1.bf16.msra.mxu1 %v8002_v41  ;;  %v8065_v40 = vld [vmem:[#allocation5 + $0x128] ss:$20 sps:$4 sm:$0xff]  }
  0xfe   :  { %1805 = vmatprep.subr.bf16.mxu0 %v8007_v42  ;;  %1934 = vmatprep.subr.bf16.mxu1 %v8010_v43  ;;  %v8095_v41 = vld [vmem:[#allocation5 + $0x3a8] ss:$20 sps:$4 sm:$0xff]   ;;  %v8068_v42 = vld [vmem:[#allocation5 + $0x650] ss:$20 sps:$4 sm:$0xff]  }
  0xff   :  { %v8100_v43 = vld [vmem:[#allocation7 + $0x4] ss:$20 sps:$4 sm:$0xff]  }
 0x101   :  { %1806 = vmatpush1.bf16.msra.mxu0 %v8005_v44  ;;  %1935 = vmatpush1.bf16.msra.mxu1 %v8008_v45  ;;  %v8069_v44 = vld [vmem:[#allocation5 + $0x510] ss:$20 sps:$4 sm:$0xff]   ;;  %v8072_v45 = vld [vmem:[#allocation5 + $0x678] ss:$20 sps:$4 sm:$0xff]  }
 0x102   :  { %1807 = vmatprep.subr.bf16.mxu0 %v8013_v46  ;;  %1936 = vmatprep.subr.bf16.mxu1 %v8016_v47  ;;  %v8098_v46 = vld [vmem:[#allocation7] ss:$20 sps:$4 sm:$0xff]  }
 0x103   :  { %v8106_v47 = vld [vmem:[#allocation7 + $0x2c] ss:$20 sps:$4 sm:$0xff]  }
 0x105   :  { %1808 = vmatpush1.bf16.msra.mxu0 %v8011_v48  ;;  %1937 = vmatpush1.bf16.msra.mxu1 %v8014_v49  ;;  %v8073_v48 = vld [vmem:[#allocation5 + $0x538] ss:$20 sps:$4 sm:$0xff]   ;;  %v8819_v49 = vld [vmem:[#allocation2] ss:$24 sps:$4 sm:$0xff]  }
 0x106   :  { %1809 = vmatprep.subr.bf16.mxu0 %v8019_v50  ;;  %1938 = vmatprep.subr.bf16.mxu1 %v8022_v51  ;;  %v8076_v50 = vld [vmem:[#allocation5 + $0x6a0] ss:$20 sps:$4 sm:$0xff]   ;;  %v8104_v51 = vld [vmem:[#allocation7 + $0x28] ss:$20 sps:$4 sm:$0xff]  }
 0x109   :  { %1810 = vmatpush1.bf16.msra.mxu0 %v8017_v52  ;;  %1939 = vmatpush1.bf16.msra.mxu1 %v8020_v53  ;;  %v8112_v52 = vld [vmem:[#allocation7 + $0x54] ss:$20 sps:$4 sm:$0xff]  }
 0x10a   :  { %1811 = vmatprep.subr.bf16.mxu0 %v8025_v54  ;;  %1940 = vmatprep.subr.bf16.mxu1 %v8028_v55  ;;  %v8077_v53 = vld [vmem:[#allocation5 + $0x560] ss:$20 sps:$4 sm:$0xff]   ;;  %v8080_v54 = vld [vmem:[#allocation5 + $0x6c8] ss:$20 sps:$4 sm:$0xff]   ;;  %v8110_v55 = vld [vmem:[#allocation7 + $0x50] ss:$20 sps:$4 sm:$0xff]  }
 0x10d   :  { %1812 = vmatpush1.bf16.msra.mxu0 %v8023_v56  ;;  %1941 = vmatpush1.bf16.msra.mxu1 %v8026_v57  ;;  %v8118_v56 = vld [vmem:[#allocation7 + $0x7c] ss:$20 sps:$4 sm:$0xff]  }
 0x10e   :  { %1813 = vmatprep.subr.bf16.mxu0 %v8031_v58  ;;  %1942 = vmatprep.subr.bf16.mxu1 %v8034_v59  ;;  %v8081_v57 = vld [vmem:[#allocation5 + $0x588] ss:$20 sps:$4 sm:$0xff]   ;;  %v8084_v58 = vld [vmem:[#allocation5 + $0x6f0] ss:$20 sps:$4 sm:$0xff]   ;;  %v8116_v59 = vld [vmem:[#allocation7 + $0x78] ss:$20 sps:$4 sm:$0xff]  }
 0x111   :  { %1814 = vmatpush1.bf16.msra.mxu0 %v8029_v60  ;;  %1943 = vmatpush1.bf16.msra.mxu1 %v8032_v61  ;;  %v8088_v60 = vld [vmem:[#allocation5 + $0x718] ss:$20 sps:$4 sm:$0xff]   ;;  %v8122_v61 = vld [vmem:[#allocation7 + $0xa0] ss:$20 sps:$4 sm:$0xff]  }
 0x112   :  { %1815 = vmatprep.subr.bf16.mxu0 %v8037_v62  ;;  %1944 = vmatprep.subr.bf16.mxu1 %v8040_v63  ;;  %v8130_v62 = vld [vmem:[#allocation7 + $0xcc] ss:$20 sps:$4 sm:$0xff]  }
 0x113   :  { %v8089_v63 = vld [vmem:[#allocation5 + $0x5d8] ss:$20 sps:$4 sm:$0xff]  }
 0x115   :  { %1816 = vmatpush1.bf16.msra.mxu0 %v8035_v0  ;;  %1945 = vmatpush1.bf16.msra.mxu1 %v8038_v1  ;;  %v8092_v0 = vld [vmem:[#allocation5 + $0x740] ss:$20 sps:$4 sm:$0xff]   ;;  %v8128_v1 = vld [vmem:[#allocation7 + $0xc8] ss:$20 sps:$4 sm:$0xff]  }
 0x116   :  { %1817 = vmatprep.subr.bf16.mxu0 %v8043_v2  ;;  %1946 = vmatprep.subr.bf16.mxu1 %v8046_v3  ;;  %v8136_v2 = vld [vmem:[#allocation7 + $0xf4] ss:$20 sps:$4 sm:$0xff]  }
 0x117   :  { %v8093_v3 = vld [vmem:[#allocation5 + $0x600] ss:$20 sps:$4 sm:$0xff]  }
 0x119   :  { %1818 = vmatpush1.bf16.msra.mxu0 %v8041_v4  ;;  %1947 = vmatpush1.bf16.msra.mxu1 %v8044_v6  ;;  %v8096_v4 = vld [vmem:[#allocation5 + $0x768] ss:$20 sps:$4 sm:$0xff]   ;;  %v8134_v6 = vld [vmem:[#allocation7 + $0xf0] ss:$20 sps:$4 sm:$0xff]  }
 0x11a   :  { %7369 = vmatprep.subr.bf16.mxu0 %v8050_v7  ;;  %7391 = vmatprep.subr.bf16.mxu1 %v8066_v8  ;;  %v8142_v7 = vld [vmem:[#allocation7 + $0x11c] ss:$20 sps:$4 sm:$0xff]  }
 0x11b   :  { %v8097_v8 = vld [vmem:[#allocation5 + $0x628] ss:$20 sps:$4 sm:$0xff]  }
 0x11c   :  { %1820 = vmatmul.mubr.bf16.vlgmr.msra.gmra.mrb[0].mxu0 %v9109_v9  ;;  %1949 = vmatmul.mubr.bf16.vlgmr.msra.gmra.mrb[0].mxu1 %v9109_v9 }
 0x11d   :  { %7370 = vmatpush3.bf16.msra.mxu0 %v8051_v10  ;;  %7392 = vmatpush3.bf16.msra.mxu1 %v8067_v11  ;;  %v8103_v10 = vld [vmem:[#allocation7 + $0xc] ss:$20 sps:$4 sm:$0xff]  }
 0x11e   :  { %7371 = vmatprep.subr.bf16.mxu0 %v8052_v13  ;;  %1991 = vmatprep.mubr.bf16.mxu0 %v8818_v18  ;;  %v8140_v11 = vld [vmem:[#allocation7 + $0x118] ss:$20 sps:$4 sm:$0xff]   ;;  %v8107_v18 = vld [vmem:[#allocation7 + $0x30] ss:$20 sps:$4 sm:$0xff]  }
 0x11f   :  { %7393 = vmatprep.subr.bf16.mxu1 %v8070_v14  ;;  %2032 = vmatprep.mubr.bf16.mxu1 %v9097_v30  ;;  %v8083_v30 = vld [vmem:[#allocation5 + $0x330] ss:$20 sps:$4 sm:$0xff]   ;;  %v8101_v14 = vld [vmem:[#allocation7 + $0x8] ss:$20 sps:$4 sm:$0xff]  }
 0x120   :  { %v8148_v13 = vld [vmem:[#allocation7 + $0x144] ss:$20 sps:$4 sm:$0xff]  }
 0x121   :  { %7372 = vmatpush3.bf16.msra.mxu0 %v8053_v15  ;;  %7394 = vmatpush3.bf16.msra.mxu1 %v8071_v17  ;;  %v8109_v15 = vld [vmem:[#allocation7 + $0x34] ss:$20 sps:$4 sm:$0xff]   ;;  %v8154_v17 = vld [vmem:[#allocation7 + $0x16c] ss:$20 sps:$4 sm:$0xff]  }
 0x122   :  { %7373 = vmatprep.subr.bf16.mxu0 %v8054_v16  ;;  %7395 = vmatprep.subr.bf16.mxu1 %v8074_v19  ;;  %v8146_v16 = vld [vmem:[#allocation7 + $0x140] ss:$20 sps:$4 sm:$0xff]   ;;  %v8115_v19 = vld [vmem:[#allocation7 + $0x5c] ss:$20 sps:$4 sm:$0xff]  }
 0x125   :  { %7374 = vmatpush3.bf16.msra.mxu0 %v8055_v20  ;;  %7396 = vmatpush3.bf16.msra.mxu1 %v8075_v22  ;;  %v8152_v20 = vld [vmem:[#allocation7 + $0x168] ss:$20 sps:$4 sm:$0xff]   ;;  %v8113_v22 = vld [vmem:[#allocation7 + $0x58] ss:$20 sps:$4 sm:$0xff]  }
 0x126   :  { %7375 = vmatprep.subr.bf16.mxu0 %v8056_v21  ;;  %7397 = vmatprep.subr.bf16.mxu1 %v8078_v23  ;;  %v8160_v21 = vld [vmem:[#allocation7 + $0x194] ss:$20 sps:$4 sm:$0xff]   ;;  %v8121_v23 = vld [vmem:[#allocation7 + $0x84] ss:$20 sps:$4 sm:$0xff]  }
 0x129   :  { %7376 = vmatpush3.bf16.msra.mxu0 %v8057_v24  ;;  %7398 = vmatpush3.bf16.msra.mxu1 %v8079_v26  ;;  %v8158_v24 = vld [vmem:[#allocation7 + $0x190] ss:$20 sps:$4 sm:$0xff]   ;;  %v8119_v26 = vld [vmem:[#allocation7 + $0x80] ss:$20 sps:$4 sm:$0xff]  }
 0x12a   :  { %7377 = vmatprep.subr.bf16.mxu0 %v8058_v25  ;;  %7399 = vmatprep.subr.bf16.mxu1 %v8082_v27  ;;  %v8166_v25 = vld [vmem:[#allocation7 + $0x1bc] ss:$20 sps:$4 sm:$0xff]   ;;  %v8127_v27 = vld [vmem:[#allocation7 + $0xac] ss:$20 sps:$4 sm:$0xff]  }
 0x12d   :  { %7378 = vmatpush3.bf16.msra.mxu0 %v8059_v28  ;;  %7400 = vmatpush3.bf16.msra.mxu1 %v8083_v30  ;;  %v8164_v28 = vld [vmem:[#allocation7 + $0x1b8] ss:$20 sps:$4 sm:$0xff]   ;;  %v8133_v30 = vld [vmem:[#allocation7 + $0xd4] ss:$20 sps:$4 sm:$0xff]  }
 0x12e   :  { %7379 = vmatprep.subr.bf16.mxu0 %v8060_v29  ;;  %7401 = vmatprep.subr.bf16.mxu1 %v8086_v31  ;;  %v8125_v29 = vld [vmem:[#allocation7 + $0xa8] ss:$20 sps:$4 sm:$0xff]   ;;  %v8170_v31 = vld [vmem:[#allocation7 + $0x1e0] ss:$20 sps:$4 sm:$0xff]  }
 0x131   :  { %7380 = vmatpush3.bf16.msra.mxu0 %v8061_v32  ;;  %7402 = vmatpush3.bf16.msra.mxu1 %v8087_v34  ;;  %v8178_v32 = vld [vmem:[#allocation7 + $0x20c] ss:$20 sps:$4 sm:$0xff]   ;;  %v8139_v34 = vld [vmem:[#allocation7 + $0xfc] ss:$20 sps:$4 sm:$0xff]  }
 0x132   :  { %7381 = vmatprep.subr.bf16.mxu0 %v8062_v33  ;;  %7403 = vmatprep.subr.bf16.mxu1 %v8090_v35  ;;  %v8131_v33 = vld [vmem:[#allocation7 + $0xd0] ss:$20 sps:$4 sm:$0xff]   ;;  %v8176_v35 = vld [vmem:[#allocation7 + $0x208] ss:$20 sps:$4 sm:$0xff]  }
 0x135   :  { %7382 = vmatpush3.bf16.msra.mxu0 %v8063_v36  ;;  %7404 = vmatpush3.bf16.msra.mxu1 %v8091_v37  ;;  %v8137_v36 = vld [vmem:[#allocation7 + $0xf8] ss:$20 sps:$4 sm:$0xff]   ;;  %v8184_v37 = vld [vmem:[#allocation7 + $0x234] ss:$20 sps:$4 sm:$0xff]  }
 0x136   :  { %7383 = vmatprep.subr.bf16.mxu0 %v8064_v38  ;;  %7405 = vmatprep.subr.bf16.mxu1 %v8094_v39  ;;  %v8145_v38 = vld [vmem:[#allocation7 + $0x124] ss:$20 sps:$4 sm:$0xff]  }
 0x137   :  { %v8182_v39 = vld [vmem:[#allocation7 + $0x230] ss:$20 sps:$4 sm:$0xff]  }
 0x139   :  { %7384 = vmatpush3.bf16.msra.mxu0 %v8065_v40  ;;  %7406 = vmatpush3.bf16.msra.mxu1 %v8095_v41  ;;  %v8143_v40 = vld [vmem:[#allocation7 + $0x120] ss:$20 sps:$4 sm:$0xff]   ;;  %v8190_v41 = vld [vmem:[#allocation7 + $0x25c] ss:$20 sps:$4 sm:$0xff]  }
 0x13a   :  { %7413 = vmatprep.subr.bf16.mxu0 %v8068_v42  ;;  %3404 = vmatprep.subr.bf16.mxu1 %v8100_v43  ;;  %v8151_v42 = vld [vmem:[#allocation7 + $0x14c] ss:$20 sps:$4 sm:$0xff]  }
 0x13b   :  { %v8188_v43 = vld [vmem:[#allocation7 + $0x258] ss:$20 sps:$4 sm:$0xff]  }
 0x13c   :  { %1992 = vmatmul.mubr.bf16.vlgmr.msra.gmra.mrb[4].mxu0 %v8819_v49  ;;  %2033 = vmatmul.mubr.bf16.vlgmr.msra.gmra.mrb[4].mxu1 %v9101_v5  ;;  %v8124_v5 = vld [vmem:[#allocation7 + $0xa4] ss:$20 sps:$4 sm:$0xff]  }
 0x13d   :  { %7414 = vmatpush3.bf16.msra.mxu0 %v8069_v44  ;;  %2073 = vmatprep.mubr.bf16.mxu0 %v9105_v12  ;;  %v8085_v12 = vld [vmem:[#allocation5 + $0x5b0] ss:$20 sps:$4 sm:$0xff]   ;;  %v8161_v49 = vld [vmem:[#allocation7 + $0x198] ss:$20 sps:$4 sm:$0xff]  }
 0x13e   :  { %7415 = vmatprep.subr.bf16.mxu0 %v8072_v45  ;;  %3405 = vmatpush1.bf16.msra.mxu1 %v8098_v46  ;;  %v8196_v44 = vld [vmem:[#allocation7 + $0x284] ss:$20 sps:$4 sm:$0xff]   ;;  %v8149_v45 = vld [vmem:[#allocation7 + $0x148] ss:$20 sps:$4 sm:$0xff]  }
 0x13f   :  { %3406 = vmatprep.subr.bf16.mxu1 %v8106_v47  ;;  %v8157_v46 = vld [vmem:[#allocation7 + $0x174] ss:$20 sps:$4 sm:$0xff]   ;;  %v8155_v47 = vld [vmem:[#allocation7 + $0x170] ss:$20 sps:$4 sm:$0xff]  }
 0x141   :  { %7416 = vmatpush3.bf16.msra.mxu0 %v8073_v48  ;;  %v8163_v48 = vld [vmem:[#allocation7 + $0x19c] ss:$20 sps:$4 sm:$0xff]  }
 0x142   :  { %7417 = vmatprep.subr.bf16.mxu0 %v8076_v50  ;;  %3407 = vmatpush1.bf16.msra.mxu1 %v8104_v51  ;;  %v8169_v50 = vld [vmem:[#allocation7 + $0x1c4] ss:$20 sps:$4 sm:$0xff]   ;;  %v8167_v51 = vld [vmem:[#allocation7 + $0x1c0] ss:$20 sps:$4 sm:$0xff]  }
 0x143   :  { %3408 = vmatprep.subr.bf16.mxu1 %v8112_v52  ;;  %v8175_v52 = vld [vmem:[#allocation7 + $0x1ec] ss:$20 sps:$4 sm:$0xff]  }
 0x145   :  { %7418 = vmatpush3.bf16.msra.mxu0 %v8077_v53  ;;  %v8173_v53 = vld [vmem:[#allocation7 + $0x1e8] ss:$20 sps:$4 sm:$0xff]  }
 0x146   :  { %7419 = vmatprep.subr.bf16.mxu0 %v8080_v54  ;;  %3409 = vmatpush1.bf16.msra.mxu1 %v8110_v55  ;;  %v8181_v54 = vld [vmem:[#allocation7 + $0x214] ss:$20 sps:$4 sm:$0xff]   ;;  %v8179_v55 = vld [vmem:[#allocation7 + $0x210] ss:$20 sps:$4 sm:$0xff]  }
 0x147   :  { %3410 = vmatprep.subr.bf16.mxu1 %v8118_v56  ;;  %v8187_v56 = vld [vmem:[#allocation7 + $0x23c] ss:$20 sps:$4 sm:$0xff]  }
 0x149   :  { %7420 = vmatpush3.bf16.msra.mxu0 %v8081_v57  ;;  %v8185_v57 = vld [vmem:[#allocation7 + $0x238] ss:$20 sps:$4 sm:$0xff]  }
 0x14a   :  { %7421 = vmatprep.subr.bf16.mxu0 %v8084_v58  ;;  %3411 = vmatpush1.bf16.msra.mxu1 %v8116_v59  ;;  %v8193_v58 = vld [vmem:[#allocation7 + $0x264] ss:$20 sps:$4 sm:$0xff]   ;;  %v8191_v59 = vld [vmem:[#allocation7 + $0x260] ss:$20 sps:$4 sm:$0xff]  }
 0x14b   :  { %3412 = vmatprep.subr.bf16.mxu1 %v8124_v5  ;;  %v8199_v5 = vld [vmem:[#allocation7 + $0x28c] ss:$20 sps:$4 sm:$0xff]  }
 0x14d   :  { %7422 = vmatpush3.bf16.msra.mxu0 %v8085_v12  ;;  %v398_v12 = vlaneseq }
 0x14e   :  { %7423 = vmatprep.subr.bf16.mxu0 %v8088_v60  ;;  %3413 = vmatpush1.bf16.msra.mxu1 %v8122_v61  ;;  %v9122_v61 = vld [vmem:[%s9297_s5] sm:$0x1f] }
 0x14f   :  { %3414 = vmatprep.subr.bf16.mxu1 %v8130_v62  ;;  %v9117_v60 = vshrl.u32 %v398_v12, 7  ;;  %v8230_v12 = vld [vmem:[#allocation7 + $0x370] ss:$20 sps:$4 sm:$0xff]  }
 0x151   :  { %7424 = vmatpush3.bf16.msra.mxu0 %v8089_v63  ;;  %v9125_v62 = vsub.s32 0, %v9117_v60  ;;  %v9128_v63 = vsub.s32 2, %v9117_v60 }
 0x152   :  { %7425 = vmatprep.subr.bf16.mxu0 %v8092_v0  ;;  %3415 = vmatpush1.bf16.msra.mxu1 %v8128_v1  ;;  %v9131_v0 = vsub.s32 1, %v9117_v60  ;;  %v9134_v1 = vsub.s32 3, %v9117_v60 }
 0x153   :  { %3416 = vmatprep.subr.bf16.mxu1 %v8136_v2  ;;  %v401_v2 = vrot.slane %v9122_v61, %v9125_v62 }
 0x155   :  { %7426 = vmatpush3.bf16.msra.mxu0 %v8093_v3  ;;  %v409_v3 = vrot.slane %v9122_v61, %v9128_v63 }
 0x156   :  { %7427 = vmatprep.subr.bf16.mxu0 %v8096_v4  ;;  %3417 = vmatpush1.bf16.msra.mxu1 %v8134_v6  ;;  %v405_v4 = vrot.slane %v9122_v61, %v9131_v0  ;;  %v413_v6 = vrot.slane %v9122_v61, %v9134_v1 }
 0x157   :  { %3418 = vmatprep.subr.bf16.mxu1 %v8142_v7 }
 0x159   :  { %7428 = vmatpush3.bf16.msra.mxu0 %v8097_v8 }
 0x15a   :  { %3533 = vmatprep.subr.bf16.mxu0 %v8103_v10  ;;  %3419 = vmatpush1.bf16.msra.mxu1 %v8140_v11 }
 0x15b   :  { %3420 = vmatprep.subr.bf16.mxu1 %v8148_v13 }
 0x15c   :  { %2074 = vmatmul.mubr.bf16.vlgmr.msra.gmra.mrb[8].mxu0 %v9109_v9  ;;  %v8172_v9 = vld [vmem:[#allocation7 + $0x1e4] ss:$20 sps:$4 sm:$0xff]  }
 0x15d   :  { %3534 = vmatpush1.bf16.msra.mxu0 %v8101_v14 }
 0x15e   :  { %3535 = vmatprep.subr.bf16.mxu0 %v8109_v15  ;;  %3421 = vmatpush1.bf16.msra.mxu1 %v8146_v16 }
 0x15f   :  { %3422 = vmatprep.subr.bf16.mxu1 %v8154_v17 }
 0x161   :  { %3536 = vmatpush1.bf16.msra.mxu0 %v8107_v18 }
 0x162   :  { %3537 = vmatprep.subr.bf16.mxu0 %v8115_v19  ;;  %3423 = vmatpush1.bf16.msra.mxu1 %v8152_v20 }
 0x163   :  { %3424 = vmatprep.subr.bf16.mxu1 %v8160_v21 }
 0x165   :  { %3538 = vmatpush1.bf16.msra.mxu0 %v8113_v22 }
 0x166   :  { %3539 = vmatprep.subr.bf16.mxu0 %v8121_v23  ;;  %3425 = vmatpush1.bf16.msra.mxu1 %v8158_v24 }
 0x167   :  { %3426 = vmatprep.subr.bf16.mxu1 %v8166_v25 }
 0x169   :  { %3540 = vmatpush1.bf16.msra.mxu0 %v8119_v26 }
 0x16a   :  { %3541 = vmatprep.subr.bf16.mxu0 %v8127_v27  ;;  %3427 = vmatpush1.bf16.msra.mxu1 %v8164_v28 }
 0x16b   :  { %3428 = vmatprep.subr.bf16.mxu1 %v8172_v9 }
 0x16d   :  { %3542 = vmatpush1.bf16.msra.mxu0 %v8125_v29 }
 0x16e   :  { %3543 = vmatprep.subr.bf16.mxu0 %v8133_v30  ;;  %3429 = vmatpush1.bf16.msra.mxu1 %v8170_v31 }
 0x16f   :  { %3430 = vmatprep.subr.bf16.mxu1 %v8178_v32  ;;  %v8194_v32 = vld [vmem:[#allocation7 + $0x280] ss:$20 sps:$4 sm:$0xff]  }
 0x171   :  { %3544 = vmatpush1.bf16.msra.mxu0 %v8131_v33 }
 0x172   :  { %3545 = vmatprep.subr.bf16.mxu0 %v8139_v34  ;;  %3431 = vmatpush1.bf16.msra.mxu1 %v8176_v35  ;;  %v8197_v35 = vld [vmem:[#allocation7 + $0x288] ss:$20 sps:$4 sm:$0xff]  }
 0x173   :  { %3432 = vmatprep.subr.bf16.mxu1 %v8184_v37 }
 0x175   :  { %3546 = vmatpush1.bf16.msra.mxu0 %v8137_v36 }
 0x176   :  { %3547 = vmatprep.subr.bf16.mxu0 %v8145_v38  ;;  %3433 = vmatpush1.bf16.msra.mxu1 %v8182_v39  ;;  %v8202_v38 = vld [vmem:[#allocation7 + $0x2ac] ss:$20 sps:$4 sm:$0xff]   ;;  %v8205_v39 = vld [vmem:[#allocation7 + $0x2b4] ss:$20 sps:$4 sm:$0xff]  }
 0x177   :  { %3434 = vmatprep.subr.bf16.mxu1 %v8190_v41  ;;  %v8203_v41 = vld [vmem:[#allocation7 + $0x2b0] ss:$20 sps:$4 sm:$0xff]  }
 0x179   :  { %3548 = vmatpush1.bf16.msra.mxu0 %v8143_v40  ;;  %v8200_v40 = vld [vmem:[#allocation7 + $0x2a8] ss:$20 sps:$4 sm:$0xff]  }
 0x17a   :  { %3549 = vmatprep.subr.bf16.mxu0 %v8151_v42  ;;  %3435 = vmatpush1.bf16.msra.mxu1 %v8188_v43  ;;  %v8208_v42 = vld [vmem:[#allocation7 + $0x2d4] ss:$20 sps:$4 sm:$0xff]   ;;  %v8211_v43 = vld [vmem:[#allocation7 + $0x2dc] ss:$20 sps:$4 sm:$0xff]  }
 0x17b   :  { %3447 = vmatprep.subr.bf16.mxu1 %v8196_v44  ;;  %v8206_v44 = vld [vmem:[#allocation7 + $0x2d0] ss:$20 sps:$4 sm:$0xff]  }
 0x17d   :  { %3550 = vmatpush1.bf16.msra.mxu0 %v8149_v45  ;;  %v8209_v45 = vld [vmem:[#allocation7 + $0x2d8] ss:$20 sps:$4 sm:$0xff]  }
 0x17e   :  { %3551 = vmatprep.subr.bf16.mxu0 %v8157_v46  ;;  %v8214_v46 = vld [vmem:[#allocation7 + $0x2fc] ss:$20 sps:$4 sm:$0xff]  }
 0x181   :  { %3552 = vmatpush1.bf16.msra.mxu0 %v8155_v47  ;;  %v8217_v47 = vld [vmem:[#allocation7 + $0x304] ss:$20 sps:$4 sm:$0xff]  }
 0x182   :  { %3553 = vmatprep.subr.bf16.mxu0 %v8163_v48  ;;  %v8212_v48 = vld [vmem:[#allocation7 + $0x2f8] ss:$20 sps:$4 sm:$0xff]  }
 0x185   :  { %3554 = vmatpush1.bf16.msra.mxu0 %v8161_v49  ;;  %v8215_v49 = vld [vmem:[#allocation7 + $0x300] ss:$20 sps:$4 sm:$0xff]  }
 0x186   :  { %3555 = vmatprep.subr.bf16.mxu0 %v8169_v50  ;;  %v8220_v50 = vld [vmem:[#allocation7 + $0x324] ss:$20 sps:$4 sm:$0xff]  }
 0x189   :  { %3556 = vmatpush1.bf16.msra.mxu0 %v8167_v51  ;;  %v8223_v51 = vld [vmem:[#allocation7 + $0x32c] ss:$20 sps:$4 sm:$0xff]  }
 0x18a   :  { %3557 = vmatprep.subr.bf16.mxu0 %v8175_v52  ;;  %v8218_v52 = vld [vmem:[#allocation7 + $0x320] ss:$20 sps:$4 sm:$0xff]  }
 0x18d   :  { %3558 = vmatpush1.bf16.msra.mxu0 %v8173_v53  ;;  %v8221_v53 = vld [vmem:[#allocation7 + $0x328] ss:$20 sps:$4 sm:$0xff]  }
 0x18e   :  { %3559 = vmatprep.subr.bf16.mxu0 %v8181_v54  ;;  %v8226_v54 = vld [vmem:[#allocation7 + $0x34c] ss:$20 sps:$4 sm:$0xff]  }
 0x191   :  { %3560 = vmatpush1.bf16.msra.mxu0 %v8179_v55  ;;  %v8229_v55 = vld [vmem:[#allocation7 + $0x354] ss:$20 sps:$4 sm:$0xff]  }
 0x192   :  { %3561 = vmatprep.subr.bf16.mxu0 %v8187_v56  ;;  %v8224_v56 = vld [vmem:[#allocation7 + $0x348] ss:$20 sps:$4 sm:$0xff]  }
 0x195   :  { %3562 = vmatpush1.bf16.msra.mxu0 %v8185_v57  ;;  %v8227_v57 = vld [vmem:[#allocation7 + $0x350] ss:$20 sps:$4 sm:$0xff]  }
 0x196   :  { %3563 = vmatprep.subr.bf16.mxu0 %v8193_v58  ;;  %v8232_v58 = vld [vmem:[#allocation7 + $0x374] ss:$20 sps:$4 sm:$0xff]  }
 0x199   :  { %3564 = vmatpush1.bf16.msra.mxu0 %v8191_v59  ;;  %v9159_v59 = vsub.s32 4, %v9117_v60 }
 0x19a   :  { %3576 = vmatprep.subr.bf16.mxu0 %v8199_v5  ;;  %v8235_v5 = vld [vmem:[#allocation7 + $0x37c] ss:$20 sps:$4 sm:$0xff]  }
 0x1ef   :  { %v1821_v7 = vpop.f32.mrb[0].mxu0  ;;  %v1950_v8 = vpop.f32.mrb[0].mxu1 }
 0x1f0   :  { %v7654_v10 = vadd.f32 %v1821_v7, %v401_v2  ;;  %v7658_v11 = vadd.f32 %v1950_v8, %v409_v3  ;;  %v1823_v13 = vpop.f32.mrb[1].mxu0  ;;  %v1952_v14 = vpop.f32.mrb[1].mxu1  ;;  %v8241_v8 = vld [vmem:[#allocation7 + $0x3a4] ss:$20 sps:$4 sm:$0xff]  }
 0x1f1   :  { %v7655_v15 = vadd.f32 %v1823_v13, %v405_v4  ;;  %v7659_v16 = vadd.f32 %v1952_v14, %v413_v6  ;;  %v1825_v17 = vpop.f32.mrb[2].mxu0  ;;  %v1954_v18 = vpop.f32.mrb[2].mxu1  ;;  %v8239_v13 = vld [vmem:[#allocation7 + $0x3a0] ss:$20 sps:$4 sm:$0xff]  }
 0x1f2   :  { %v7656_v19 = vadd.f32 %v1825_v17, %v401_v2  ;;  %v7660_v20 = vadd.f32 %v1954_v18, %v409_v3  ;;  %v1827_v21 = vpop.f32.mrb[3].mxu0  ;;  %v1956_v22 = vpop.f32.mrb[3].mxu1  ;;  %v2082_v25 = vmax.f32 %v7654_v10, 0.0  ;;  %v2084_v26 = vmax.f32 %v7658_v11, 0.0  ;;  %v8233_v2 = vld [vmem:[#allocation7 + $0x378] ss:$20 sps:$4 sm:$0xff]  }
 0x1f3   :  { %v7657_v23 = vadd.f32 %v1827_v21, %v405_v4  ;;  %v7661_v24 = vadd.f32 %v1956_v22, %v413_v6  ;;  %v2083_v9 = vmax.f32 %v7655_v15, 0.0  ;;  %v2085_v29 = vmax.f32 %v7659_v16, 0.0  ;;  %v8238_v3 = vld [vmem:[#allocation7 + $0x39c] ss:$20 sps:$4 sm:$0xff]   ;;  %v8236_v11 = vld [vmem:[#allocation7 + $0x398] ss:$20 sps:$4 sm:$0xff]  }
 0x1f4   :  { %v2087_v27 = vmax.f32 %v7656_v19, 0.0  ;;  %v2089_v28 = vmax.f32 %v7660_v20, 0.0  ;;  %v417_v6 = vrot.slane %v9122_v61, %v9159_v59  ;;  %v8244_v18 = vld [vmem:[#allocation7 + $0x3c4] ss:$20 sps:$4 sm:$0xff]  }
 0x1f5   :  { %v2088_v30 = vmax.f32 %v7657_v23, 0.0  ;;  %v2090_v31 = vmax.f32 %v7661_v24, 0.0  ;;  %v8247_v23 = vld [vmem:[#allocation7 + $0x3cc] ss:$20 sps:$4 sm:$0xff]  }
 0x1f6   :  { %v9144_v33 = vpack.c.bf16 %v2087_v27, %v2082_v25  ;;  %v9146_v34 = vpack.c.bf16 %v2089_v28, %v2084_v26  ;;  %v8242_v24 = vld [vmem:[#allocation7 + $0x3c0] ss:$20 sps:$4 sm:$0xff]   ;;  %v8245_v25 = vld [vmem:[#allocation7 + $0x3c8] ss:$20 sps:$4 sm:$0xff]  }
 0x1f7   :  { %v9148_v36 = vpack.c.bf16 %v2088_v30, %v2083_v9  ;;  %v9150_v37 = vpack.c.bf16 %v2090_v31, %v2085_v29  ;;  %v8250_v28 = vld [vmem:[#allocation7 + $0x3ec] ss:$20 sps:$4 sm:$0xff]   ;;  %v8253_v9 = vld [vmem:[#allocation7 + $0x3f4] ss:$20 sps:$4 sm:$0xff]   ;;  %v8251_v31 = vld [vmem:[#allocation7 + $0x3f0] ss:$20 sps:$4 sm:$0xff]  }
 0x1f8   :  { %v8248_v30 = vld [vmem:[#allocation7 + $0x3e8] ss:$20 sps:$4 sm:$0xff]  }
 0x1f9   :  { %3436 = vmatprep.mubr.bf16.mxu1 %v9148_v36  ;;  %3565 = vmatprep.mubr.bf16.mxu0 %v9148_v36 }
 0x1fa   :  { %3437 = vmatmul.mubr.bf16.vlgmr.msra.gmra.mrb[8].mxu1 %v9144_v33  ;;  %3566 = vmatmul.mubr.bf16.vlgmr.msra.gmra.mrb[12].mxu0 %v9144_v33 }
 0x1fb   :  { %3448 = vmatpush1.bf16.msra.mxu1 %v8194_v32  ;;  %3577 = vmatpush1.bf16.msra.mxu0 %v8197_v35  ;;  %v8256_v32 = vld [vmem:[#allocation7 + $0x414] ss:$20 sps:$4 sm:$0xff]   ;;  %v8259_v35 = vld [vmem:[#allocation7 + $0x41c] ss:$20 sps:$4 sm:$0xff]  }
 0x1fc   :  { %3479 = vmatprep.mubr.bf16.mxu1 %v9150_v37  ;;  %3608 = vmatprep.mubr.bf16.mxu0 %v9150_v37 }
 0x1fd   :  { %3449 = vmatprep.subr.bf16.mxu1 %v8202_v38  ;;  %3578 = vmatprep.subr.bf16.mxu0 %v8205_v39  ;;  %v8254_v38 = vld [vmem:[#allocation7 + $0x410] ss:$20 sps:$4 sm:$0xff]   ;;  %v8257_v39 = vld [vmem:[#allocation7 + $0x418] ss:$20 sps:$4 sm:$0xff]  }
 0x1ff   :  { %3450 = vmatpush1.bf16.msra.mxu1 %v8200_v40  ;;  %3579 = vmatpush1.bf16.msra.mxu0 %v8203_v41  ;;  %v8262_v40 = vld [vmem:[#allocation7 + $0x43c] ss:$20 sps:$4 sm:$0xff]   ;;  %v8265_v41 = vld [vmem:[#allocation7 + $0x444] ss:$20 sps:$4 sm:$0xff]  }
 0x200   :  { %3451 = vmatprep.subr.bf16.mxu1 %v8208_v42  ;;  %3580 = vmatprep.subr.bf16.mxu0 %v8211_v43  ;;  %v8260_v42 = vld [vmem:[#allocation7 + $0x438] ss:$20 sps:$4 sm:$0xff]   ;;  %v8263_v43 = vld [vmem:[#allocation7 + $0x440] ss:$20 sps:$4 sm:$0xff]  }
 0x203   :  { %3452 = vmatpush1.bf16.msra.mxu1 %v8206_v44  ;;  %3581 = vmatpush1.bf16.msra.mxu0 %v8209_v45  ;;  %v8268_v44 = vld [vmem:[#allocation7 + $0x464] ss:$20 sps:$4 sm:$0xff]   ;;  %v8271_v45 = vld [vmem:[#allocation7 + $0x46c] ss:$20 sps:$4 sm:$0xff]  }
 0x204   :  { %3453 = vmatprep.subr.bf16.mxu1 %v8214_v46  ;;  %3582 = vmatprep.subr.bf16.mxu0 %v8217_v47  ;;  %v8266_v46 = vld [vmem:[#allocation7 + $0x460] ss:$20 sps:$4 sm:$0xff]   ;;  %v8269_v47 = vld [vmem:[#allocation7 + $0x468] ss:$20 sps:$4 sm:$0xff]  }
 0x207   :  { %3454 = vmatpush1.bf16.msra.mxu1 %v8212_v48  ;;  %3583 = vmatpush1.bf16.msra.mxu0 %v8215_v49  ;;  %v8274_v48 = vld [vmem:[#allocation7 + $0x48c] ss:$20 sps:$4 sm:$0xff]   ;;  %v8277_v49 = vld [vmem:[#allocation7 + $0x494] ss:$20 sps:$4 sm:$0xff]  }
 0x208   :  { %3455 = vmatprep.subr.bf16.mxu1 %v8220_v50  ;;  %3584 = vmatprep.subr.bf16.mxu0 %v8223_v51  ;;  %v8272_v50 = vld [vmem:[#allocation7 + $0x488] ss:$20 sps:$4 sm:$0xff]   ;;  %v8275_v51 = vld [vmem:[#allocation7 + $0x490] ss:$20 sps:$4 sm:$0xff]  }
 0x20b   :  { %3456 = vmatpush1.bf16.msra.mxu1 %v8218_v52  ;;  %3585 = vmatpush1.bf16.msra.mxu0 %v8221_v53  ;;  %v8280_v52 = vld [vmem:[#allocation7 + $0x4b4] ss:$20 sps:$4 sm:$0xff]   ;;  %v8283_v53 = vld [vmem:[#allocation7 + $0x4bc] ss:$20 sps:$4 sm:$0xff]  }
 0x20c   :  { %3457 = vmatprep.subr.bf16.mxu1 %v8226_v54  ;;  %3586 = vmatprep.subr.bf16.mxu0 %v8229_v55  ;;  %v8278_v55 = vld [vmem:[#allocation7 + $0x4b0] ss:$20 sps:$4 sm:$0xff]  }
 0x20f   :  { %3458 = vmatpush1.bf16.msra.mxu1 %v8224_v56  ;;  %3587 = vmatpush1.bf16.msra.mxu0 %v8227_v57  ;;  %v7385_v4 = vpop.f32.mrb[4].mxu0  ;;  %v7407_v7 = vpop.f32.mrb[4].mxu1  ;;  %v8281_v56 = vld [vmem:[#allocation7 + $0x4b8] ss:$20 sps:$4 sm:$0xff]  }
 0x210   :  { %3459 = vmatprep.subr.bf16.mxu1 %v8232_v58  ;;  %3588 = vmatprep.subr.bf16.mxu0 %v8235_v5  ;;  %v7386_v60 = vpop.f32.mrb[5].mxu0  ;;  %v7408_v10 = vpop.f32.mrb[5].mxu1  ;;  %v8286_v58 = vld [vmem:[#allocation7 + $0x4dc] ss:$20 sps:$4 sm:$0xff]   ;;  %v8289_v5 = vld [vmem:[#allocation7 + $0x4e4] ss:$20 sps:$4 sm:$0xff]  }
 0x211   :  { %v7387_v14 = vadd.f32 %v7386_v60, %v7385_v4  ;;  %v7388_v15 = vpop.f32.mrb[6].mxu0  ;;  %v7409_v16 = vadd.f32 %v7408_v10, %v7407_v7  ;;  %v7410_v17 = vpop.f32.mrb[6].mxu1  ;;  %v8284_v7 = vld [vmem:[#allocation7 + $0x4d8] ss:$20 sps:$4 sm:$0xff]  }
 0x212   :  { %v7389_v19 = vpop.f32.mrb[7].mxu0  ;;  %v7411_v20 = vpop.f32.mrb[7].mxu1  ;;  %v8292_v60 = vld [vmem:[#allocation7 + $0x504] ss:$20 sps:$4 sm:$0xff]   ;;  %v8295_v10 = vld [vmem:[#allocation7 + $0x50c] ss:$20 sps:$4 sm:$0xff]  }
 0x213   :  { %3460 = vmatpush1.bf16.msra.mxu1 %v8230_v12  ;;  %3589 = vmatpush1.bf16.msra.mxu0 %v8233_v2  ;;  %v1994_v21 = vadd.f32 %v7387_v14, %v417_v6  ;;  %v7390_v22 = vadd.f32 %v7389_v19, %v7388_v15  ;;  %v7412_v61 = vadd.f32 %v7411_v20, %v7410_v17  ;;  %v8290_v15 = vld [vmem:[#allocation7 + $0x500] ss:$20 sps:$4 sm:$0xff]   ;;  %v8296_v20 = vld [vmem:[#allocation7 + $0x528] ss:$20 sps:$4 sm:$0xff]  }
 0x214   :  { %3461 = vmatprep.subr.bf16.mxu1 %v8238_v3  ;;  %3590 = vmatprep.subr.bf16.mxu0 %v8241_v8  ;;  %v8287_v8 = vld [vmem:[#allocation7 + $0x4e0] ss:$20 sps:$4 sm:$0xff]  }
 0x215   :  { %v1997_v26 = vadd.f32 %v7390_v22, %v417_v6  ;;  %v2035_v27 = vadd.f32 %v7409_v16, %v1994_v21  ;;  %v8293_v16 = vld [vmem:[#allocation7 + $0x508] ss:$20 sps:$4 sm:$0xff]   ;;  %v8298_v17 = vld [vmem:[#allocation7 + $0x52c] ss:$20 sps:$4 sm:$0xff]   ;;  %v8299_v21 = vld [vmem:[#allocation7 + $0x530] ss:$20 sps:$4 sm:$0xff]  }
 0x216   :  { %v8304_v22 = vld [vmem:[#allocation7 + $0x554] ss:$20 sps:$4 sm:$0xff]  }
 0x217   :  { %3462 = vmatpush1.bf16.msra.mxu1 %v8236_v11  ;;  %3591 = vmatpush1.bf16.msra.mxu0 %v8239_v13  ;;  %v9163_v29 = vadd.f32 %v7412_v61, %v1997_v26  ;;  %v8307_v61 = vld [vmem:[#allocation7 + $0x55c] ss:$20 sps:$4 sm:$0xff]  }
 0x218   :  { %3463 = vmatprep.subr.bf16.mxu1 %v8244_v18  ;;  %3592 = vmatprep.subr.bf16.mxu0 %v8247_v23  ;;  %v8301_v18 = vld [vmem:[#allocation7 + $0x534] ss:$20 sps:$4 sm:$0xff]   ;;  %v8971_v23 = vmov 0   ;;  %v8310_v26 = vld [vmem:[#allocation7 + $0x57c] ss:$20 sps:$4 sm:$0xff]  }
 0x21b   :  { %3464 = vmatpush1.bf16.msra.mxu1 %v8242_v24  ;;  %3593 = vmatpush1.bf16.msra.mxu0 %v8245_v25  ;;  %v8302_v24 = vld [vmem:[#allocation7 + $0x550] ss:$20 sps:$4 sm:$0xff]   ;;  %v8305_v25 = vld [vmem:[#allocation7 + $0x558] ss:$20 sps:$4 sm:$0xff]  }
 0x21c   :  { %3465 = vmatprep.subr.bf16.mxu1 %v8250_v28  ;;  %3594 = vmatprep.subr.bf16.mxu0 %v8253_v9  ;;  %v8308_v28 = vld [vmem:[#allocation7 + $0x578] ss:$20 sps:$4 sm:$0xff]   ;;  %v8311_v9 = vld [vmem:[#allocation7 + $0x580] ss:$20 sps:$4 sm:$0xff]  }
 0x21f   :  { %3466 = vmatpush1.bf16.msra.mxu1 %v8248_v30  ;;  %3595 = vmatpush1.bf16.msra.mxu0 %v8251_v31  ;;  %v8319_v30 = vld [vmem:[#allocation7 + $0x5ac] ss:$20 sps:$4 sm:$0xff]  }
 0x220   :  { %3467 = vmatprep.subr.bf16.mxu1 %v8256_v32  ;;  %3596 = vmatprep.subr.bf16.mxu0 %v8259_v35  ;;  %v8314_v31 = vld [vmem:[#allocation7 + $0x5a0] ss:$20 sps:$4 sm:$0xff]   ;;  %v8317_v32 = vld [vmem:[#allocation7 + $0x5a8] ss:$20 sps:$4 sm:$0xff]  }
 0x221   :  { %v8322_v35 = vld [vmem:[#allocation7 + $0x5cc] ss:$20 sps:$4 sm:$0xff]  }
 0x223   :  { %3468 = vmatpush1.bf16.msra.mxu1 %v8254_v38  ;;  %3597 = vmatpush1.bf16.msra.mxu0 %v8257_v39  ;;  %v8325_v38 = vld [vmem:[#allocation7 + $0x5d4] ss:$20 sps:$4 sm:$0xff]  }
 0x224   :  { %3469 = vmatprep.subr.bf16.mxu1 %v8262_v40  ;;  %3598 = vmatprep.subr.bf16.mxu0 %v8265_v41  ;;  %v8320_v39 = vld [vmem:[#allocation7 + $0x5c8] ss:$20 sps:$4 sm:$0xff]   ;;  %v8323_v40 = vld [vmem:[#allocation7 + $0x5d0] ss:$20 sps:$4 sm:$0xff]  }
 0x225   :  { %v8328_v41 = vld [vmem:[#allocation7 + $0x5f4] ss:$20 sps:$4 sm:$0xff]  }
 0x227   :  { %3470 = vmatpush1.bf16.msra.mxu1 %v8260_v42  ;;  %3599 = vmatpush1.bf16.msra.mxu0 %v8263_v43  ;;  %v8331_v42 = vld [vmem:[#allocation7 + $0x5fc] ss:$20 sps:$4 sm:$0xff]  }
 0x228   :  { %3471 = vmatprep.subr.bf16.mxu1 %v8268_v44  ;;  %3600 = vmatprep.subr.bf16.mxu0 %v8271_v45  ;;  %v8326_v43 = vld [vmem:[#allocation7 + $0x5f0] ss:$20 sps:$4 sm:$0xff]   ;;  %v8329_v44 = vld [vmem:[#allocation7 + $0x5f8] ss:$20 sps:$4 sm:$0xff]  }
 0x229   :  { %v8334_v45 = vld [vmem:[#allocation7 + $0x61c] ss:$20 sps:$4 sm:$0xff]  }
 0x22b   :  { %3472 = vmatpush1.bf16.msra.mxu1 %v8266_v46  ;;  %3601 = vmatpush1.bf16.msra.mxu0 %v8269_v47  ;;  %v8337_v46 = vld [vmem:[#allocation7 + $0x624] ss:$20 sps:$4 sm:$0xff]  }
 0x22c   :  { %3473 = vmatprep.subr.bf16.mxu1 %v8274_v48  ;;  %3602 = vmatprep.subr.bf16.mxu0 %v8277_v49  ;;  %v8332_v47 = vld [vmem:[#allocation7 + $0x618] ss:$20 sps:$4 sm:$0xff]   ;;  %v8335_v48 = vld [vmem:[#allocation7 + $0x620] ss:$20 sps:$4 sm:$0xff]   ;;  %v8338_v49 = vld [vmem:[#allocation7 + $0x150] ss:$20 sps:$4 sm:$0xff]  }
 0x22f   :  { %3474 = vmatpush1.bf16.msra.mxu1 %v8272_v50  ;;  %3603 = vmatpush1.bf16.msra.mxu0 %v8275_v51  ;;  %v7429_v54 = vpop.f32.mrb[8].mxu0  ;;  %v8339_v50 = vld [vmem:[#allocation7 + $0x3d0] ss:$20 sps:$4 sm:$0xff]  }
 0x230   :  { %v7430_v57 = vpop.f32.mrb[9].mxu0  ;;  %3475 = vmatprep.subr.bf16.mxu1 %v8280_v52  ;;  %3604 = vmatprep.subr.bf16.mxu0 %v8283_v53  ;;  %v8340_v51 = vld [vmem:[#allocation7 + $0x10] ss:$20 sps:$4 sm:$0xff]   ;;  %v8342_v53 = vld [vmem:[#allocation7 + $0x178] ss:$20 sps:$4 sm:$0xff]  }
 0x231   :  { %v7431_v12 = vadd.f32 %v7430_v57, %v7429_v54  ;;  %v7432_v2 = vpop.f32.mrb[10].mxu0  ;;  %v8341_v52 = vld [vmem:[#allocation7 + $0x290] ss:$20 sps:$4 sm:$0xff]   ;;  %v8343_v54 = vld [vmem:[#allocation7 + $0x3f8] ss:$20 sps:$4 sm:$0xff]  }
 0x232   :  { %v7433_v3 = vpop.f32.mrb[11].mxu0  ;;  %v8346_v57 = vld [vmem:[#allocation7 + $0x1a0] ss:$20 sps:$4 sm:$0xff]  }
 0x233   :  { %v2076_v4 = vadd.f32 %v7431_v12, %v2035_v27  ;;  %v7434_v6 = vadd.f32 %v7433_v3, %v7432_v2  ;;  %3476 = vmatpush1.bf16.msra.mxu1 %v8278_v55  ;;  %3605 = vmatpush1.bf16.msra.mxu0 %v8281_v56  ;;  %v8313_v27 = vld [vmem:[#allocation7 + $0x584] ss:$20 sps:$4 sm:$0xff]   ;;  %v8349_v12 = vld [vmem:[#allocation7 + $0x2e0] ss:$20 sps:$4 sm:$0xff]   ;;  %v8350_v2 = vld [vmem:[#allocation7 + $0x1c8] ss:$20 sps:$4 sm:$0xff]  }
 0x234   :  { %3477 = vmatprep.subr.bf16.mxu1 %v8286_v58  ;;  %3606 = vmatprep.subr.bf16.mxu0 %v8289_v5  ;;  %v8344_v55 = vld [vmem:[#allocation7 + $0x38] ss:$20 sps:$4 sm:$0xff]   ;;  %v8347_v58 = vld [vmem:[#allocation7 + $0x420] ss:$20 sps:$4 sm:$0xff]   ;;  %v8351_v3 = vld [vmem:[#allocation7 + $0x448] ss:$20 sps:$4 sm:$0xff]  }
 0x235   :  { %v2086_v11 = vmax.f32 %v2076_v4, 0.0  ;;  %v2079_v13 = vadd.f32 %v7434_v6, %v9163_v29  ;;  %v8316_v29 = vld [vmem:[#allocation7 + $0x5a4] ss:$20 sps:$4 sm:$0xff]   ;;  %v8348_v5 = vld [vmem:[#allocation7 + $0x60] ss:$20 sps:$4 sm:$0xff]  }
 0x236   :  { %v8345_v56 = vld [vmem:[#allocation7 + $0x2b8] ss:$20 sps:$4 sm:$0xff]   ;;  %v8352_v4 = vld [vmem:[#allocation7 + $0x88] ss:$20 sps:$4 sm:$0xff]   ;;  %v8354_v6 = vld [vmem:[#allocation7 + $0x1f0] ss:$20 sps:$4 sm:$0xff]  }
 0x237   :  { %v2091_v14 = vmax.f32 %v2079_v13, 0.0  ;;  %3478 = vmatpush1.bf16.msra.mxu1 %v8284_v7  ;;  %3607 = vmatpush1.bf16.msra.mxu0 %v8287_v8  ;;  %v8356_v7 = vld [vmem:[#allocation7 + $0xb0] ss:$20 sps:$4 sm:$0xff]   ;;  %v8361_v13 = vld [vmem:[#allocation7 + $0x358] ss:$20 sps:$4 sm:$0xff]  }
 0x238   :  { %3490 = vmatprep.subr.bf16.mxu1 %v8292_v60  ;;  %3619 = vmatprep.subr.bf16.mxu0 %v8295_v10  ;;  %v8357_v8 = vld [vmem:[#allocation7 + $0x330] ss:$20 sps:$4 sm:$0xff]   ;;  %v8358_v60 = vld [vmem:[#allocation7 + $0x218] ss:$20 sps:$4 sm:$0xff]  }
 0x239   :  { %v9166_v19 = vpack.c.bf16 %v2091_v14, %v2086_v11  ;;  %v8359_v10 = vld [vmem:[#allocation7 + $0x498] ss:$20 sps:$4 sm:$0xff]   ;;  %v8362_v14 = vld [vmem:[#allocation7 + $0x240] ss:$20 sps:$4 sm:$0xff]  }
 0x23a   :  { %3480 = vmatmul.mubr.bf16.vlgmr.msra.gmra.mrb[8].mxu1 %v9146_v34  ;;  %3609 = vmatmul.mubr.bf16.vlgmr.msra.gmra.mrb[12].mxu0 %v9146_v34  ;;  %v8360_v11 = vld [vmem:[#allocation7 + $0xd8] ss:$20 sps:$4 sm:$0xff]  }
 0x23b   :  { %3491 = vmatpush1.bf16.msra.mxu1 %v8290_v15  ;;  %3620 = vmatpush1.bf16.msra.mxu0 %v8293_v16  ;;  %v8363_v15 = vld [vmem:[#allocation7 + $0x4c0] ss:$20 sps:$4 sm:$0xff]  }
 0x23c   :  { %3492 = vmatprep.subr.bf16.mxu1 %v8298_v17  ;;  %3621 = vmatprep.subr.bf16.mxu0 %v8301_v18  ;;  %v8364_v16 = vld [vmem:[#allocation7 + $0x100] ss:$20 sps:$4 sm:$0xff]   ;;  %v8366_v18 = vld [vmem:[#allocation7 + $0x268] ss:$20 sps:$4 sm:$0xff]  }
 0x23d   :  { %3522 = vmatprep.mubr.bf16.mxu1 %v8971_v23  ;;  %3651 = vmatprep.mubr.bf16.mxu0 %v8971_v23  ;;  %v8365_v17 = vld [vmem:[#allocation7 + $0x380] ss:$20 sps:$4 sm:$0xff]  }
 0x23f   :  { %3493 = vmatpush1.bf16.msra.mxu1 %v8296_v20  ;;  %3622 = vmatpush1.bf16.msra.mxu0 %v8299_v21  ;;  %v8367_v20 = vld [vmem:[#allocation7 + $0x4e8] ss:$20 sps:$4 sm:$0xff]  }
 0x240   :  { %3494 = vmatprep.subr.bf16.mxu1 %v8304_v22  ;;  %3623 = vmatprep.subr.bf16.mxu0 %v8307_v61  ;;  %v8368_v21 = vld [vmem:[#allocation7 + $0x128] ss:$20 sps:$4 sm:$0xff]   ;;  %v8380_v61 = vld [vmem:[#allocation8 + $0x4] ss:$20 sps:$4 sm:$0xff]  }
 0x241   :  { %v8369_v22 = vld [vmem:[#allocation7 + $0x3a8] ss:$20 sps:$4 sm:$0xff]  }
 0x243   :  { %3495 = vmatpush1.bf16.msra.mxu1 %v8302_v24  ;;  %3624 = vmatpush1.bf16.msra.mxu0 %v8305_v25  ;;  %v8370_v24 = vld [vmem:[#allocation7 + $0x510] ss:$20 sps:$4 sm:$0xff]   ;;  %v8972_v25 = vmov 0.0  }
 0x244   :  { %3496 = vmatprep.subr.bf16.mxu1 %v8310_v26  ;;  %3625 = vmatprep.subr.bf16.mxu0 %v8313_v27  ;;  %v8378_v26 = vld [vmem:[#allocation8] ss:$20 sps:$4 sm:$0xff]  }
 0x245   :  { %v8386_v27 = vld [vmem:[#allocation8 + $0x2c] ss:$20 sps:$4 sm:$0xff]  }
 0x247   :  { %3497 = vmatpush1.bf16.msra.mxu1 %v8308_v28  ;;  %3626 = vmatpush1.bf16.msra.mxu0 %v8311_v9  ;;  %v8371_v28 = vld [vmem:[#allocation7 + $0x538] ss:$20 sps:$4 sm:$0xff]   ;;  %v8384_v9 = vld [vmem:[#allocation8 + $0x28] ss:$20 sps:$4 sm:$0xff]  }
 0x248   :  { %3498 = vmatprep.subr.bf16.mxu1 %v8316_v29  ;;  %3627 = vmatprep.subr.bf16.mxu0 %v8319_v30  ;;  %v8392_v29 = vld [vmem:[#allocation8 + $0x54] ss:$20 sps:$4 sm:$0xff]  }
 0x249   :  { %v8372_v30 = vld [vmem:[#allocation7 + $0x560] ss:$20 sps:$4 sm:$0xff]  }
 0x24b   :  { %3499 = vmatpush1.bf16.msra.mxu1 %v8314_v31  ;;  %3628 = vmatpush1.bf16.msra.mxu0 %v8317_v32  ;;  %v8373_v31 = vld [vmem:[#allocation7 + $0x588] ss:$20 sps:$4 sm:$0xff]   ;;  %v8396_v32 = vld [vmem:[#allocation8 + $0x78] ss:$20 sps:$4 sm:$0xff]  }
 0x24c   :  { %3500 = vmatprep.subr.bf16.mxu1 %v8322_v35  ;;  %3629 = vmatprep.subr.bf16.mxu0 %v8325_v38  ;;  %v8404_v35 = vld [vmem:[#allocation8 + $0xa4] ss:$20 sps:$4 sm:$0xff]  }
 0x24d   :  { %v8374_v38 = vld [vmem:[#allocation7 + $0x5b0] ss:$20 sps:$4 sm:$0xff]  }
 0x24f   :  { %3501 = vmatpush1.bf16.msra.mxu1 %v8320_v39  ;;  %3630 = vmatpush1.bf16.msra.mxu0 %v8323_v40  ;;  %v8402_v39 = vld [vmem:[#allocation8 + $0xa0] ss:$20 sps:$4 sm:$0xff]  }
 0x250   :  { %3502 = vmatprep.subr.bf16.mxu1 %v8328_v41  ;;  %3631 = vmatprep.subr.bf16.mxu0 %v8331_v42  ;;  %v8410_v40 = vld [vmem:[#allocation8 + $0xcc] ss:$20 sps:$4 sm:$0xff]   ;;  %v8408_v42 = vld [vmem:[#allocation8 + $0xc8] ss:$20 sps:$4 sm:$0xff]  }
 0x251   :  { %v8375_v41 = vld [vmem:[#allocation7 + $0x5d8] ss:$20 sps:$4 sm:$0xff]  }
 0x253   :  { %3503 = vmatpush1.bf16.msra.mxu1 %v8326_v43  ;;  %3632 = vmatpush1.bf16.msra.mxu0 %v8329_v44  ;;  %v8416_v43 = vld [vmem:[#allocation8 + $0xf4] ss:$20 sps:$4 sm:$0xff]  }
 0x254   :  { %3504 = vmatprep.subr.bf16.mxu1 %v8334_v45  ;;  %3633 = vmatprep.subr.bf16.mxu0 %v8337_v46  ;;  %v8376_v44 = vld [vmem:[#allocation7 + $0x600] ss:$20 sps:$4 sm:$0xff]   ;;  %v8414_v45 = vld [vmem:[#allocation8 + $0xf0] ss:$20 sps:$4 sm:$0xff]  }
 0x255   :  { %v8422_v46 = vld [vmem:[#allocation8 + $0x11c] ss:$20 sps:$4 sm:$0xff]  }
 0x257   :  { %3505 = vmatpush1.bf16.msra.mxu1 %v8332_v47  ;;  %3634 = vmatpush1.bf16.msra.mxu0 %v8335_v48  ;;  %v8377_v47 = vld [vmem:[#allocation7 + $0x628] ss:$20 sps:$4 sm:$0xff]   ;;  %v8383_v48 = vld [vmem:[#allocation8 + $0xc] ss:$20 sps:$4 sm:$0xff]  }
 0x258   :  { %7435 = vmatprep.subr.bf16.mxu1 %v8338_v49  ;;  %7457 = vmatprep.subr.bf16.mxu0 %v8339_v50  ;;  %v8420_v49 = vld [vmem:[#allocation8 + $0x118] ss:$20 sps:$4 sm:$0xff]  }
 0x259   :  { %v8428_v50 = vld [vmem:[#allocation8 + $0x144] ss:$20 sps:$4 sm:$0xff]  }
 0x25a   :  { %3523 = vmatmul.mubr.bf16.vlgmr.msra.gmra.mrb[8].mxu1 %v9166_v19  ;;  %3652 = vmatmul.mubr.bf16.vlgmr.msra.gmra.mrb[12].mxu0 %v9166_v19 }
 0x25b   :  { %7436 = vmatpush3.bf16.msra.mxu1 %v8340_v51  ;;  %3694 = vmatprep.mubr.bf16.mxu1 %v9148_v36  ;;  %v8353_v36 = vld [vmem:[#allocation7 + $0x308] ss:$20 sps:$4 sm:$0xff]  }
 0x25c   :  { %7458 = vmatpush3.bf16.msra.mxu0 %v8341_v52  ;;  %3735 = vmatprep.mubr.bf16.mxu0 %v9150_v37  ;;  %v8355_v37 = vld [vmem:[#allocation7 + $0x470] ss:$20 sps:$4 sm:$0xff]   ;;  %v8381_v51 = vld [vmem:[#allocation8 + $0x8] ss:$20 sps:$4 sm:$0xff]  }
 0x25d   :  { %7437 = vmatprep.subr.bf16.mxu1 %v8342_v53  ;;  %7459 = vmatprep.subr.bf16.mxu0 %v8343_v54  ;;  %v8389_v52 = vld [vmem:[#allocation8 + $0x34] ss:$20 sps:$4 sm:$0xff]   ;;  %v8434_v54 = vld [vmem:[#allocation8 + $0x16c] ss:$20 sps:$4 sm:$0xff]  }
 0x25e   :  { %v8426_v53 = vld [vmem:[#allocation8 + $0x140] ss:$20 sps:$4 sm:$0xff]  }
 0x25f   :  { %7438 = vmatpush3.bf16.msra.mxu1 %v8344_v55  ;;  %v8387_v55 = vld [vmem:[#allocation8 + $0x30] ss:$20 sps:$4 sm:$0xff]  }
 0x260   :  { %7460 = vmatpush3.bf16.msra.mxu0 %v8345_v56  ;;  %7439 = vmatprep.subr.bf16.mxu1 %v8346_v57  ;;  %v8395_v56 = vld [vmem:[#allocation8 + $0x5c] ss:$20 sps:$4 sm:$0xff]  }
 0x261   :  { %7461 = vmatprep.subr.bf16.mxu0 %v8347_v58  ;;  %v8432_v57 = vld [vmem:[#allocation8 + $0x168] ss:$20 sps:$4 sm:$0xff]  }
 0x262   :  { %v8440_v58 = vld [vmem:[#allocation8 + $0x194] ss:$20 sps:$4 sm:$0xff]  }
 0x263   :  { %7440 = vmatpush3.bf16.msra.mxu1 %v8348_v5  ;;  %v8393_v5 = vld [vmem:[#allocation8 + $0x58] ss:$20 sps:$4 sm:$0xff]  }
 0x264   :  { %7462 = vmatpush3.bf16.msra.mxu0 %v8349_v12  ;;  %7441 = vmatprep.subr.bf16.mxu1 %v8350_v2  ;;  %v8401_v12 = vld [vmem:[#allocation8 + $0x84] ss:$20 sps:$4 sm:$0xff]  }
 0x265   :  { %7463 = vmatprep.subr.bf16.mxu0 %v8351_v3  ;;  %v8438_v2 = vld [vmem:[#allocation8 + $0x190] ss:$20 sps:$4 sm:$0xff]  }
 0x266   :  { %v8446_v3 = vld [vmem:[#allocation8 + $0x1bc] ss:$20 sps:$4 sm:$0xff]  }
 0x267   :  { %7442 = vmatpush3.bf16.msra.mxu1 %v8352_v4  ;;  %v8407_v4 = vld [vmem:[#allocation8 + $0xac] ss:$20 sps:$4 sm:$0xff]  }
 0x268   :  { %7464 = vmatpush3.bf16.msra.mxu0 %v8353_v36  ;;  %7443 = vmatprep.subr.bf16.mxu1 %v8354_v6  ;;  %v8444_v36 = vld [vmem:[#allocation8 + $0x1b8] ss:$20 sps:$4 sm:$0xff]  }
 0x269   :  { %7465 = vmatprep.subr.bf16.mxu0 %v8355_v37  ;;  %v8452_v6 = vld [vmem:[#allocation8 + $0x1e4] ss:$20 sps:$4 sm:$0xff]   ;;  %v8405_v37 = vld [vmem:[#allocation8 + $0xa8] ss:$20 sps:$4 sm:$0xff]  }
 0x26b   :  { %7444 = vmatpush3.bf16.msra.mxu1 %v8356_v7  ;;  %v8413_v7 = vld [vmem:[#allocation8 + $0xd4] ss:$20 sps:$4 sm:$0xff]  }
 0x26c   :  { %7466 = vmatpush3.bf16.msra.mxu0 %v8357_v8  ;;  %7445 = vmatprep.subr.bf16.mxu1 %v8358_v60  ;;  %v8450_v8 = vld [vmem:[#allocation8 + $0x1e0] ss:$20 sps:$4 sm:$0xff]  }
 0x26d   :  { %7467 = vmatprep.subr.bf16.mxu0 %v8359_v10  ;;  %v8458_v60 = vld [vmem:[#allocation8 + $0x20c] ss:$20 sps:$4 sm:$0xff]   ;;  %v8411_v10 = vld [vmem:[#allocation8 + $0xd0] ss:$20 sps:$4 sm:$0xff]  }
 0x26f   :  { %7446 = vmatpush3.bf16.msra.mxu1 %v8360_v11  ;;  %v8419_v11 = vld [vmem:[#allocation8 + $0xfc] ss:$20 sps:$4 sm:$0xff]  }
 0x270   :  { %7468 = vmatpush3.bf16.msra.mxu0 %v8361_v13  ;;  %7447 = vmatprep.subr.bf16.mxu1 %v8362_v14  ;;  %v8456_v13 = vld [vmem:[#allocation8 + $0x208] ss:$20 sps:$4 sm:$0xff]  }
 0x271   :  { %7469 = vmatprep.subr.bf16.mxu0 %v8363_v15  ;;  %v8464_v14 = vld [vmem:[#allocation8 + $0x234] ss:$20 sps:$4 sm:$0xff]   ;;  %v8417_v15 = vld [vmem:[#allocation8 + $0xf8] ss:$20 sps:$4 sm:$0xff]  }
 0x273   :  { %7448 = vmatpush3.bf16.msra.mxu1 %v8364_v16  ;;  %v8425_v16 = vld [vmem:[#allocation8 + $0x124] ss:$20 sps:$4 sm:$0xff]  }
 0x274   :  { %7470 = vmatpush3.bf16.msra.mxu0 %v8365_v17  ;;  %7449 = vmatprep.subr.bf16.mxu1 %v8366_v18  ;;  %v8462_v17 = vld [vmem:[#allocation8 + $0x230] ss:$20 sps:$4 sm:$0xff]  }
 0x275   :  { %7471 = vmatprep.subr.bf16.mxu0 %v8367_v20  ;;  %v8470_v18 = vld [vmem:[#allocation8 + $0x25c] ss:$20 sps:$4 sm:$0xff]   ;;  %v8423_v20 = vld [vmem:[#allocation8 + $0x120] ss:$20 sps:$4 sm:$0xff]  }
 0x277   :  { %7450 = vmatpush3.bf16.msra.mxu1 %v8368_v21  ;;  %v8431_v21 = vld [vmem:[#allocation8 + $0x14c] ss:$20 sps:$4 sm:$0xff]  }
 0x278   :  { %7472 = vmatpush3.bf16.msra.mxu0 %v8369_v22  ;;  %7594 = vmatprep.subr.bf16.mxu1 %v8972_v25  ;;  %v8468_v22 = vld [vmem:[#allocation8 + $0x258] ss:$20 sps:$4 sm:$0xff]  }
 0x279   :  { %5107 = vmatprep.subr.bf16.mxu0 %v8380_v61  ;;  %v8476_v61 = vld [vmem:[#allocation8 + $0x284] ss:$20 sps:$4 sm:$0xff]  }
 0x27a   :  { %3695 = vmatmul.mubr.bf16.vlgmr.msra.gmra.mrb[12].mxu1 %v9144_v33  ;;  %v8390_v33 = vld [vmem:[#allocation8 + $0x50] ss:$20 sps:$4 sm:$0xff]  }
 0x27b   :  { %3736 = vmatmul.mubr.bf16.vlgmr.msra.gmra.mrb[16].mxu0 %v9146_v34  ;;  %7595 = vmatpush3.bf16.msra.mxu1 %v8370_v24  ;;  %v8398_v34 = vld [vmem:[#allocation8 + $0x7c] ss:$20 sps:$4 sm:$0xff]  }
 0x27c   :  { %7596 = vmatprep.subr.bf16.mxu1 %v8972_v25  ;;  %7610 = vmatprep.mubr.msk.bf16.mxu1 %vm8973_vm0, %v8972_v25  ;;  %v8429_v24 = vld [vmem:[#allocation8 + $0x148] ss:$20 sps:$4 sm:$0xff]  }
 0x27d   :  { %5108 = vmatpush1.bf16.msra.mxu0 %v8378_v26  ;;  %v8437_v26 = vld [vmem:[#allocation8 + $0x174] ss:$20 sps:$4 sm:$0xff]  }
 0x27e   :  { %5109 = vmatprep.subr.bf16.mxu0 %v8386_v27  ;;  %v8435_v27 = vld [vmem:[#allocation8 + $0x170] ss:$20 sps:$4 sm:$0xff]  }
 0x27f   :  { %7597 = vmatpush3.bf16.msra.mxu1 %v8371_v28  ;;  %v8443_v28 = vld [vmem:[#allocation8 + $0x19c] ss:$20 sps:$4 sm:$0xff]  }
 0x280   :  { %7598 = vmatprep.subr.bf16.mxu1 %v8972_v25 }
 0x281   :  { %5110 = vmatpush1.bf16.msra.mxu0 %v8384_v9  ;;  %v8441_v9 = vld [vmem:[#allocation8 + $0x198] ss:$20 sps:$4 sm:$0xff]  }
 0x282   :  { %5111 = vmatprep.subr.bf16.mxu0 %v8392_v29  ;;  %v8449_v29 = vld [vmem:[#allocation8 + $0x1c4] ss:$20 sps:$4 sm:$0xff]  }
 0x283   :  { %7599 = vmatpush3.bf16.msra.mxu1 %v8372_v30  ;;  %v8447_v30 = vld [vmem:[#allocation8 + $0x1c0] ss:$20 sps:$4 sm:$0xff]  }
 0x284   :  { %7600 = vmatprep.subr.bf16.mxu1 %v8972_v25 }
 0x285   :  { %5112 = vmatpush1.bf16.msra.mxu0 %v8390_v33  ;;  %v8455_v33 = vld [vmem:[#allocation8 + $0x1ec] ss:$20 sps:$4 sm:$0xff]  }
 0x286   :  { %5113 = vmatprep.subr.bf16.mxu0 %v8398_v34  ;;  %v8453_v34 = vld [vmem:[#allocation8 + $0x1e8] ss:$20 sps:$4 sm:$0xff]  }
 0x287   :  { %7601 = vmatpush3.bf16.msra.mxu1 %v8373_v31  ;;  %v8461_v31 = vld [vmem:[#allocation8 + $0x214] ss:$20 sps:$4 sm:$0xff]  }
 0x288   :  { %7602 = vmatprep.subr.bf16.mxu1 %v8972_v25 }
 0x289   :  { %5114 = vmatpush1.bf16.msra.mxu0 %v8396_v32  ;;  %v8459_v32 = vld [vmem:[#allocation8 + $0x210] ss:$20 sps:$4 sm:$0xff]  }
 0x28a   :  { %5115 = vmatprep.subr.bf16.mxu0 %v8404_v35  ;;  %v8467_v35 = vld [vmem:[#allocation8 + $0x23c] ss:$20 sps:$4 sm:$0xff]  }
 0x28b   :  { %7603 = vmatpush3.bf16.msra.mxu1 %v8374_v38  ;;  %v8465_v38 = vld [vmem:[#allocation8 + $0x238] ss:$20 sps:$4 sm:$0xff]  }
 0x28c   :  { %7604 = vmatprep.subr.bf16.mxu1 %v8972_v25 }
 0x28d   :  { %5116 = vmatpush1.bf16.msra.mxu0 %v8402_v39  ;;  %v8473_v39 = vld [vmem:[#allocation8 + $0x264] ss:$20 sps:$4 sm:$0xff]  }
 0x28e   :  { %5117 = vmatprep.subr.bf16.mxu0 %v8410_v40  ;;  %v8471_v40 = vld [vmem:[#allocation8 + $0x260] ss:$20 sps:$4 sm:$0xff]  }
 0x28f   :  { %7605 = vmatpush3.bf16.msra.mxu1 %v8375_v41  ;;  %v8479_v41 = vld [vmem:[#allocation8 + $0x28c] ss:$20 sps:$4 sm:$0xff]  }
 0x290   :  { %7606 = vmatprep.subr.bf16.mxu1 %v8972_v25 }
 0x291   :  { %5118 = vmatpush1.bf16.msra.mxu0 %v8408_v42  ;;  %v9192_v42 = vld [vmem:[%s9298_s6] sm:$0x1f] }
 0x292   :  { %5119 = vmatprep.subr.bf16.mxu0 %v8416_v43  ;;  %v2342_v43 = vrot.slane %v9192_v42, %v9125_v62 }
 0x293   :  { %7607 = vmatpush3.bf16.msra.mxu1 %v8376_v44  ;;  %v2350_v44 = vrot.slane %v9192_v42, %v9128_v63 }
 0x294   :  { %7608 = vmatprep.subr.bf16.mxu1 %v8972_v25 }
 0x295   :  { %5120 = vmatpush1.bf16.msra.mxu0 %v8414_v45  ;;  %v2346_v45 = vrot.slane %v9192_v42, %v9131_v0 }
 0x296   :  { %5121 = vmatprep.subr.bf16.mxu0 %v8422_v46  ;;  %v2354_v46 = vrot.slane %v9192_v42, %v9134_v1 }
 0x297   :  { %7609 = vmatpush3.bf16.msra.mxu1 %v8377_v47 }
 0x298   :  { %5236 = vmatprep.subr.bf16.mxu1 %v8383_v48 }
 0x299   :  { %5122 = vmatpush1.bf16.msra.mxu0 %v8420_v49 }
 0x29a   :  { %7611 = vmatmul.mubr.bf16.vlgmr.msra.gmra.mrb[16].mxu1 %v9166_v19  ;;  %5123 = vmatprep.subr.bf16.mxu0 %v8428_v50  ;;  %v8399_v19 = vld [vmem:[#allocation8 + $0x80] ss:$20 sps:$4 sm:$0xff]  }
 0x29b   :  { %5237 = vmatpush1.bf16.msra.mxu1 %v8381_v51 }
 0x29c   :  { %5238 = vmatprep.subr.bf16.mxu1 %v8389_v52 }
 0x29d   :  { %5124 = vmatpush1.bf16.msra.mxu0 %v8426_v53 }
 0x29e   :  { %5125 = vmatprep.subr.bf16.mxu0 %v8434_v54 }
 0x29f   :  { %5239 = vmatpush1.bf16.msra.mxu1 %v8387_v55 }
 0x2a0   :  { %5240 = vmatprep.subr.bf16.mxu1 %v8395_v56 }
 0x2a1   :  { %5126 = vmatpush1.bf16.msra.mxu0 %v8432_v57 }
 0x2a2   :  { %5127 = vmatprep.subr.bf16.mxu0 %v8440_v58 }
 0x2a3   :  { %5241 = vmatpush1.bf16.msra.mxu1 %v8393_v5 }
 0x2a4   :  { %5242 = vmatprep.subr.bf16.mxu1 %v8401_v12 }
 0x2a5   :  { %5128 = vmatpush1.bf16.msra.mxu0 %v8438_v2 }
 0x2a6   :  { %5129 = vmatprep.subr.bf16.mxu0 %v8446_v3 }
 0x2a7   :  { %5243 = vmatpush1.bf16.msra.mxu1 %v8399_v19 }
 0x2a8   :  { %5244 = vmatprep.subr.bf16.mxu1 %v8407_v4 }
 0x2a9   :  { %5130 = vmatpush1.bf16.msra.mxu0 %v8444_v36 }
 0x2aa   :  { %5131 = vmatprep.subr.bf16.mxu0 %v8452_v6 }
 0x2ab   :  { %5245 = vmatpush1.bf16.msra.mxu1 %v8405_v37 }
 0x2ac   :  { %5246 = vmatprep.subr.bf16.mxu1 %v8413_v7 }
 0x2ad   :  { %5132 = vmatpush1.bf16.msra.mxu0 %v8450_v8 }
 0x2ae   :  { %5133 = vmatprep.subr.bf16.mxu0 %v8458_v60 }
 0x2af   :  { %5247 = vmatpush1.bf16.msra.mxu1 %v8411_v10 }
 0x2b0   :  { %5248 = vmatprep.subr.bf16.mxu1 %v8419_v11 }
 0x2b1   :  { %5134 = vmatpush1.bf16.msra.mxu0 %v8456_v13 }
 0x2b2   :  { %5135 = vmatprep.subr.bf16.mxu0 %v8464_v14 }
 0x2b3   :  { %5249 = vmatpush1.bf16.msra.mxu1 %v8417_v15  ;;  %v8474_v15 = vld [vmem:[#allocation8 + $0x280] ss:$20 sps:$4 sm:$0xff]  }
 0x2b4   :  { %5250 = vmatprep.subr.bf16.mxu1 %v8425_v16  ;;  %v8477_v16 = vld [vmem:[#allocation8 + $0x288] ss:$20 sps:$4 sm:$0xff]  }
 0x2b5   :  { %5136 = vmatpush1.bf16.msra.mxu0 %v8462_v17  ;;  %v8482_v17 = vld [vmem:[#allocation8 + $0x2ac] ss:$20 sps:$4 sm:$0xff]  }
 0x2b6   :  { %5137 = vmatprep.subr.bf16.mxu0 %v8470_v18  ;;  %v8485_v18 = vld [vmem:[#allocation8 + $0x2b4] ss:$20 sps:$4 sm:$0xff]  }
 0x2b7   :  { %5251 = vmatpush1.bf16.msra.mxu1 %v8423_v20  ;;  %v8480_v20 = vld [vmem:[#allocation8 + $0x2a8] ss:$20 sps:$4 sm:$0xff]  }
 0x2b8   :  { %5252 = vmatprep.subr.bf16.mxu1 %v8431_v21  ;;  %v8483_v21 = vld [vmem:[#allocation8 + $0x2b0] ss:$20 sps:$4 sm:$0xff]  }
 0x2b9   :  { %5138 = vmatpush1.bf16.msra.mxu0 %v8468_v22  ;;  %v8488_v22 = vld [vmem:[#allocation8 + $0x2d4] ss:$20 sps:$4 sm:$0xff]  }
 0x2ba   :  { %5150 = vmatprep.subr.bf16.mxu0 %v8476_v61  ;;  %v8491_v61 = vld [vmem:[#allocation8 + $0x2dc] ss:$20 sps:$4 sm:$0xff]  }
 0x2bb   :  { %5253 = vmatpush1.bf16.msra.mxu1 %v8429_v24  ;;  %v8486_v24 = vld [vmem:[#allocation8 + $0x2d0] ss:$20 sps:$4 sm:$0xff]  }
 0x2bc   :  { %5254 = vmatprep.subr.bf16.mxu1 %v8437_v26  ;;  %v8489_v26 = vld [vmem:[#allocation8 + $0x2d8] ss:$20 sps:$4 sm:$0xff]  }
 0x2bf   :  { %5255 = vmatpush1.bf16.msra.mxu1 %v8435_v27  ;;  %v8494_v27 = vld [vmem:[#allocation8 + $0x2fc] ss:$20 sps:$4 sm:$0xff]  }
 0x2c0   :  { %5256 = vmatprep.subr.bf16.mxu1 %v8443_v28  ;;  %v8497_v28 = vld [vmem:[#allocation8 + $0x304] ss:$20 sps:$4 sm:$0xff]  }
 0x2c3   :  { %5257 = vmatpush1.bf16.msra.mxu1 %v8441_v9  ;;  %v8492_v9 = vld [vmem:[#allocation8 + $0x2f8] ss:$20 sps:$4 sm:$0xff]  }
 0x2c4   :  { %5258 = vmatprep.subr.bf16.mxu1 %v8449_v29  ;;  %v8495_v29 = vld [vmem:[#allocation8 + $0x300] ss:$20 sps:$4 sm:$0xff]  }
 0x2c7   :  { %5259 = vmatpush1.bf16.msra.mxu1 %v8447_v30  ;;  %v8500_v30 = vld [vmem:[#allocation8 + $0x324] ss:$20 sps:$4 sm:$0xff]  }
 0x2c8   :  { %5260 = vmatprep.subr.bf16.mxu1 %v8455_v33  ;;  %v8503_v33 = vld [vmem:[#allocation8 + $0x32c] ss:$20 sps:$4 sm:$0xff]  }
 0x2cb   :  { %5261 = vmatpush1.bf16.msra.mxu1 %v8453_v34  ;;  %v8498_v34 = vld [vmem:[#allocation8 + $0x320] ss:$20 sps:$4 sm:$0xff]  }
 0x2cc   :  { %5262 = vmatprep.subr.bf16.mxu1 %v8461_v31  ;;  %v8501_v31 = vld [vmem:[#allocation8 + $0x328] ss:$20 sps:$4 sm:$0xff]  }
 0x2cf   :  { %5263 = vmatpush1.bf16.msra.mxu1 %v8459_v32  ;;  %v8506_v32 = vld [vmem:[#allocation8 + $0x34c] ss:$20 sps:$4 sm:$0xff]  }
 0x2d0   :  { %5264 = vmatprep.subr.bf16.mxu1 %v8467_v35  ;;  %v8509_v35 = vld [vmem:[#allocation8 + $0x354] ss:$20 sps:$4 sm:$0xff]  }
 0x2d3   :  { %5265 = vmatpush1.bf16.msra.mxu1 %v8465_v38  ;;  %v8504_v38 = vld [vmem:[#allocation8 + $0x348] ss:$20 sps:$4 sm:$0xff]  }
 0x2d4   :  { %5266 = vmatprep.subr.bf16.mxu1 %v8473_v39  ;;  %v8507_v39 = vld [vmem:[#allocation8 + $0x350] ss:$20 sps:$4 sm:$0xff]  }
 0x2d7   :  { %5267 = vmatpush1.bf16.msra.mxu1 %v8471_v40  ;;  %v8512_v40 = vld [vmem:[#allocation8 + $0x374] ss:$20 sps:$4 sm:$0xff]  }
 0x2d8   :  { %5279 = vmatprep.subr.bf16.mxu1 %v8479_v41  ;;  %v8515_v41 = vld [vmem:[#allocation8 + $0x37c] ss:$20 sps:$4 sm:$0xff]  }
 0x32d   :  { %v3524_v47 = vpop.f32.mrb[8].mxu1  ;;  %v3653_v48 = vpop.f32.mrb[12].mxu0 }
 0x32e   :  { %v7662_v49 = vadd.f32 %v3524_v47, %v2342_v43  ;;  %v7666_v50 = vadd.f32 %v3653_v48, %v2350_v44  ;;  %v3526_v51 = vpop.f32.mrb[9].mxu1  ;;  %v3655_v52 = vpop.f32.mrb[13].mxu0 }
 0x32f   :  { %v7663_v53 = vadd.f32 %v3526_v51, %v2346_v45  ;;  %v7667_v54 = vadd.f32 %v3655_v52, %v2354_v46  ;;  %v3528_v55 = vpop.f32.mrb[10].mxu1  ;;  %v3657_v56 = vpop.f32.mrb[14].mxu0 }
 0x330   :  { %v7664_v57 = vadd.f32 %v3528_v55, %v2342_v43  ;;  %v7668_v58 = vadd.f32 %v3657_v56, %v2350_v44  ;;  %v3530_v5 = vpop.f32.mrb[11].mxu1  ;;  %v3659_v12 = vpop.f32.mrb[15].mxu0  ;;  %v3785_v19 = vmax.f32 %v7662_v49, 0.0  ;;  %v3787_v4 = vmax.f32 %v7666_v50, 0.0  ;;  %v8518_v49 = vld [vmem:[#allocation8 + $0x39c] ss:$20 sps:$4 sm:$0xff]  }
 0x331   :  { %v7665_v2 = vadd.f32 %v3530_v5, %v2346_v45  ;;  %v7669_v3 = vadd.f32 %v3659_v12, %v2354_v46  ;;  %v3786_v37 = vmax.f32 %v7663_v53, 0.0  ;;  %v3788_v7 = vmax.f32 %v7667_v54, 0.0  ;;  %v8510_v45 = vld [vmem:[#allocation8 + $0x370] ss:$20 sps:$4 sm:$0xff]   ;;  %v8513_v46 = vld [vmem:[#allocation8 + $0x378] ss:$20 sps:$4 sm:$0xff]  }
 0x332   :  { %v3790_v36 = vmax.f32 %v7664_v57, 0.0  ;;  %v3792_v6 = vmax.f32 %v7668_v58, 0.0  ;;  %v2358_v44 = vrot.slane %v9192_v42, %v9159_v59  ;;  %v8521_v50 = vld [vmem:[#allocation8 + $0x3a4] ss:$20 sps:$4 sm:$0xff]   ;;  %v8519_v12 = vld [vmem:[#allocation8 + $0x3a0] ss:$20 sps:$4 sm:$0xff]  }
 0x333   :  { %v3791_v8 = vmax.f32 %v7665_v2, 0.0  ;;  %v3793_v60 = vmax.f32 %v7669_v3, 0.0  ;;  %v8516_v42 = vld [vmem:[#allocation8 + $0x398] ss:$20 sps:$4 sm:$0xff]  }
 0x334   :  { %v9202_v10 = vpack.c.bf16 %v3790_v36, %v3785_v19  ;;  %v9204_v11 = vpack.c.bf16 %v3792_v6, %v3787_v4  ;;  %v8524_v3 = vld [vmem:[#allocation8 + $0x3c4] ss:$20 sps:$4 sm:$0xff]   ;;  %v8527_v19 = vld [vmem:[#allocation8 + $0x3cc] ss:$20 sps:$4 sm:$0xff]  }
 0x335   :  { %v9206_v13 = vpack.c.bf16 %v3791_v8, %v3786_v37  ;;  %v9208_v14 = vpack.c.bf16 %v3793_v60, %v3788_v7  ;;  %v8522_v6 = vld [vmem:[#allocation8 + $0x3c0] ss:$20 sps:$4 sm:$0xff]   ;;  %v8525_v37 = vld [vmem:[#allocation8 + $0x3c8] ss:$20 sps:$4 sm:$0xff]  }
 0x336   :  { %v8530_v8 = vld [vmem:[#allocation8 + $0x3ec] ss:$20 sps:$4 sm:$0xff]   ;;  %v8533_v60 = vld [vmem:[#allocation8 + $0x3f4] ss:$20 sps:$4 sm:$0xff]  }
 0x337   :  { %5139 = vmatprep.mubr.bf16.mxu0 %v9206_v13  ;;  %5268 = vmatprep.mubr.bf16.mxu1 %v9206_v13 }
 0x338   :  { %5140 = vmatmul.mubr.bf16.vlgmr.msra.gmra.mrb[20].mxu0 %v9202_v10  ;;  %5269 = vmatmul.mubr.bf16.vlgmr.msra.gmra.mrb[20].mxu1 %v9202_v10 }
 0x339   :  { %5151 = vmatpush1.bf16.msra.mxu0 %v8474_v15  ;;  %5280 = vmatpush1.bf16.msra.mxu1 %v8477_v16  ;;  %v8528_v15 = vld [vmem:[#allocation8 + $0x3e8] ss:$20 sps:$4 sm:$0xff]   ;;  %v8531_v16 = vld [vmem:[#allocation8 + $0x3f0] ss:$20 sps:$4 sm:$0xff]  }
 0x33a   :  { %5182 = vmatprep.mubr.bf16.mxu0 %v9208_v14  ;;  %5311 = vmatprep.mubr.bf16.mxu1 %v9208_v14 }
 0x33b   :  { %5152 = vmatprep.subr.bf16.mxu0 %v8482_v17  ;;  %5281 = vmatprep.subr.bf16.mxu1 %v8485_v18  ;;  %v8536_v17 = vld [vmem:[#allocation8 + $0x414] ss:$20 sps:$4 sm:$0xff]   ;;  %v8539_v18 = vld [vmem:[#allocation8 + $0x41c] ss:$20 sps:$4 sm:$0xff]  }
 0x33d   :  { %5153 = vmatpush1.bf16.msra.mxu0 %v8480_v20  ;;  %5282 = vmatpush1.bf16.msra.mxu1 %v8483_v21  ;;  %v8534_v20 = vld [vmem:[#allocation8 + $0x410] ss:$20 sps:$4 sm:$0xff]   ;;  %v8537_v21 = vld [vmem:[#allocation8 + $0x418] ss:$20 sps:$4 sm:$0xff]  }
 0x33e   :  { %5154 = vmatprep.subr.bf16.mxu0 %v8488_v22  ;;  %5283 = vmatprep.subr.bf16.mxu1 %v8491_v61  ;;  %v8542_v22 = vld [vmem:[#allocation8 + $0x43c] ss:$20 sps:$4 sm:$0xff]   ;;  %v8545_v61 = vld [vmem:[#allocation8 + $0x444] ss:$20 sps:$4 sm:$0xff]  }
 0x341   :  { %5155 = vmatpush1.bf16.msra.mxu0 %v8486_v24  ;;  %5284 = vmatpush1.bf16.msra.mxu1 %v8489_v26  ;;  %v8540_v24 = vld [vmem:[#allocation8 + $0x438] ss:$20 sps:$4 sm:$0xff]   ;;  %v8543_v26 = vld [vmem:[#allocation8 + $0x440] ss:$20 sps:$4 sm:$0xff]  }
 0x342   :  { %5156 = vmatprep.subr.bf16.mxu0 %v8494_v27  ;;  %5285 = vmatprep.subr.bf16.mxu1 %v8497_v28  ;;  %v8548_v27 = vld [vmem:[#allocation8 + $0x464] ss:$20 sps:$4 sm:$0xff]   ;;  %v8551_v28 = vld [vmem:[#allocation8 + $0x46c] ss:$20 sps:$4 sm:$0xff]  }
 0x345   :  { %5157 = vmatpush1.bf16.msra.mxu0 %v8492_v9  ;;  %5286 = vmatpush1.bf16.msra.mxu1 %v8495_v29  ;;  %v8546_v9 = vld [vmem:[#allocation8 + $0x460] ss:$20 sps:$4 sm:$0xff]   ;;  %v8549_v29 = vld [vmem:[#allocation8 + $0x468] ss:$20 sps:$4 sm:$0xff]  }
 0x346   :  { %5158 = vmatprep.subr.bf16.mxu0 %v8500_v30  ;;  %5287 = vmatprep.subr.bf16.mxu1 %v8503_v33  ;;  %v8554_v30 = vld [vmem:[#allocation8 + $0x48c] ss:$20 sps:$4 sm:$0xff]   ;;  %v8557_v33 = vld [vmem:[#allocation8 + $0x494] ss:$20 sps:$4 sm:$0xff]  }
 0x349   :  { %5159 = vmatpush1.bf16.msra.mxu0 %v8498_v34  ;;  %5288 = vmatpush1.bf16.msra.mxu1 %v8501_v31  ;;  %v8552_v34 = vld [vmem:[#allocation8 + $0x488] ss:$20 sps:$4 sm:$0xff]   ;;  %v8555_v31 = vld [vmem:[#allocation8 + $0x490] ss:$20 sps:$4 sm:$0xff]  }
 0x34a   :  { %5160 = vmatprep.subr.bf16.mxu0 %v8506_v32  ;;  %5289 = vmatprep.subr.bf16.mxu1 %v8509_v35  ;;  %v8560_v32 = vld [vmem:[#allocation8 + $0x4b4] ss:$20 sps:$4 sm:$0xff]   ;;  %v8563_v35 = vld [vmem:[#allocation8 + $0x4bc] ss:$20 sps:$4 sm:$0xff]  }
 0x34d   :  { %5161 = vmatpush1.bf16.msra.mxu0 %v8504_v38  ;;  %5290 = vmatpush1.bf16.msra.mxu1 %v8507_v39  ;;  %v7451_v43 = vpop.f32.mrb[12].mxu1  ;;  %v8558_v39 = vld [vmem:[#allocation8 + $0x4b0] ss:$20 sps:$4 sm:$0xff]  }
 0x34e   :  { %v7473_v47 = vpop.f32.mrb[16].mxu0  ;;  %v7452_v48 = vpop.f32.mrb[13].mxu1  ;;  %5162 = vmatprep.subr.bf16.mxu0 %v8512_v40  ;;  %5291 = vmatprep.subr.bf16.mxu1 %v8515_v41  ;;  %v8561_v40 = vld [vmem:[#allocation8 + $0x4b8] ss:$20 sps:$4 sm:$0xff]  }
 0x34f   :  { %v7453_v51 = vadd.f32 %v7452_v48, %v7451_v43  ;;  %v7474_v52 = vpop.f32.mrb[17].mxu0  ;;  %v7454_v53 = vpop.f32.mrb[14].mxu1 }
 0x350   :  { %v7475_v54 = vadd.f32 %v7474_v52, %v7473_v47  ;;  %v7476_v55 = vpop.f32.mrb[18].mxu0  ;;  %v7455_v56 = vpop.f32.mrb[15].mxu1 }
 0x351   :  { %v3697_v57 = vadd.f32 %v7453_v51, %v2358_v44  ;;  %v7456_v58 = vadd.f32 %v7455_v56, %v7454_v53  ;;  %v7477_v5 = vpop.f32.mrb[19].mxu0  ;;  %5163 = vmatpush1.bf16.msra.mxu0 %v8510_v45  ;;  %5292 = vmatpush1.bf16.msra.mxu1 %v8513_v46  ;;  %v8569_v45 = vld [vmem:[#allocation8 + $0x4e4] ss:$20 sps:$4 sm:$0xff]   ;;  %v8570_v56 = vld [vmem:[#allocation8 + $0x500] ss:$20 sps:$4 sm:$0xff]  }
 0x352   :  { %v7478_v2 = vadd.f32 %v7477_v5, %v7476_v55  ;;  %5164 = vmatprep.subr.bf16.mxu0 %v8518_v49  ;;  %5293 = vmatprep.subr.bf16.mxu1 %v8521_v50  ;;  %v8564_v49 = vld [vmem:[#allocation8 + $0x4d8] ss:$20 sps:$4 sm:$0xff]   ;;  %v8567_v50 = vld [vmem:[#allocation8 + $0x4e0] ss:$20 sps:$4 sm:$0xff]  }
 0x353   :  { %v3700_v4 = vadd.f32 %v7456_v58, %v2358_v44  ;;  %v3738_v36 = vadd.f32 %v7475_v54, %v3697_v57  ;;  %v8566_v44 = vld [vmem:[#allocation8 + $0x4dc] ss:$20 sps:$4 sm:$0xff]   ;;  %v8572_v53 = vld [vmem:[#allocation8 + $0x504] ss:$20 sps:$4 sm:$0xff]   ;;  %v8575_v54 = vld [vmem:[#allocation8 + $0x50c] ss:$20 sps:$4 sm:$0xff]  }
 0x354   :  { %v8573_v57 = vld [vmem:[#allocation8 + $0x508] ss:$20 sps:$4 sm:$0xff]   ;;  %v8578_v58 = vld [vmem:[#allocation8 + $0x52c] ss:$20 sps:$4 sm:$0xff]  }
 0x355   :  { %5165 = vmatpush1.bf16.msra.mxu0 %v8516_v42  ;;  %5294 = vmatpush1.bf16.msra.mxu1 %v8519_v12  ;;  %v3741_v7 = vadd.f32 %v7478_v2, %v3700_v4  ;;  %v8581_v5 = vld [vmem:[#allocation8 + $0x534] ss:$20 sps:$4 sm:$0xff]   ;;  %v8579_v12 = vld [vmem:[#allocation8 + $0x530] ss:$20 sps:$4 sm:$0xff]   ;;  %v8585_v4 = vld [vmem:[#allocation8 + $0x558] ss:$20 sps:$4 sm:$0xff]  }
 0x356   :  { %5166 = vmatprep.subr.bf16.mxu0 %v8524_v3  ;;  %5295 = vmatprep.subr.bf16.mxu1 %v8527_v19  ;;  %v8576_v42 = vld [vmem:[#allocation8 + $0x528] ss:$20 sps:$4 sm:$0xff]   ;;  %v8582_v19 = vld [vmem:[#allocation8 + $0x550] ss:$20 sps:$4 sm:$0xff]  }
 0x357   :  { %v8584_v2 = vld [vmem:[#allocation8 + $0x554] ss:$20 sps:$4 sm:$0xff]   ;;  %v8587_v3 = vld [vmem:[#allocation8 + $0x55c] ss:$20 sps:$4 sm:$0xff]  }
 0x359   :  { %5167 = vmatpush1.bf16.msra.mxu0 %v8522_v6  ;;  %5296 = vmatpush1.bf16.msra.mxu1 %v8525_v37  ;;  %v8593_v6 = vld [vmem:[#allocation8 + $0x584] ss:$20 sps:$4 sm:$0xff]  }
 0x35a   :  { %5168 = vmatprep.subr.bf16.mxu0 %v8530_v8  ;;  %5297 = vmatprep.subr.bf16.mxu1 %v8533_v60  ;;  %v8588_v37 = vld [vmem:[#allocation8 + $0x578] ss:$20 sps:$4 sm:$0xff]  }
 0x35b   :  { %v8596_v8 = vld [vmem:[#allocation8 + $0x5a4] ss:$20 sps:$4 sm:$0xff]   ;;  %v8599_v60 = vld [vmem:[#allocation8 + $0x5ac] ss:$20 sps:$4 sm:$0xff]  }
 0x35d   :  { %5169 = vmatpush1.bf16.msra.mxu0 %v8528_v15  ;;  %5298 = vmatpush1.bf16.msra.mxu1 %v8531_v16  ;;  %v8594_v15 = vld [vmem:[#allocation8 + $0x5a0] ss:$20 sps:$4 sm:$0xff]   ;;  %v8597_v16 = vld [vmem:[#allocation8 + $0x5a8] ss:$20 sps:$4 sm:$0xff]  }
 0x35e   :  { %5170 = vmatprep.subr.bf16.mxu0 %v8536_v17  ;;  %5299 = vmatprep.subr.bf16.mxu1 %v8539_v18  ;;  %v8602_v17 = vld [vmem:[#allocation8 + $0x5cc] ss:$20 sps:$4 sm:$0xff]   ;;  %v8605_v18 = vld [vmem:[#allocation8 + $0x5d4] ss:$20 sps:$4 sm:$0xff]  }
 0x361   :  { %5171 = vmatpush1.bf16.msra.mxu0 %v8534_v20  ;;  %5300 = vmatpush1.bf16.msra.mxu1 %v8537_v21  ;;  %v8600_v20 = vld [vmem:[#allocation8 + $0x5c8] ss:$20 sps:$4 sm:$0xff]   ;;  %v8603_v21 = vld [vmem:[#allocation8 + $0x5d0] ss:$20 sps:$4 sm:$0xff]  }
 0x362   :  { %5172 = vmatprep.subr.bf16.mxu0 %v8542_v22  ;;  %5301 = vmatprep.subr.bf16.mxu1 %v8545_v61  ;;  %v8608_v22 = vld [vmem:[#allocation8 + $0x5f4] ss:$20 sps:$4 sm:$0xff]   ;;  %v8611_v61 = vld [vmem:[#allocation8 + $0x5fc] ss:$20 sps:$4 sm:$0xff]  }
 0x365   :  { %5173 = vmatpush1.bf16.msra.mxu0 %v8540_v24  ;;  %5302 = vmatpush1.bf16.msra.mxu1 %v8543_v26  ;;  %v8606_v24 = vld [vmem:[#allocation8 + $0x5f0] ss:$20 sps:$4 sm:$0xff]   ;;  %v8609_v26 = vld [vmem:[#allocation8 + $0x5f8] ss:$20 sps:$4 sm:$0xff]  }
 0x366   :  { %5174 = vmatprep.subr.bf16.mxu0 %v8548_v27  ;;  %5303 = vmatprep.subr.bf16.mxu1 %v8551_v28  ;;  %v8614_v27 = vld [vmem:[#allocation8 + $0x61c] ss:$20 sps:$4 sm:$0xff]   ;;  %v8617_v28 = vld [vmem:[#allocation8 + $0x624] ss:$20 sps:$4 sm:$0xff]  }
 0x369   :  { %5175 = vmatpush1.bf16.msra.mxu0 %v8546_v9  ;;  %5304 = vmatpush1.bf16.msra.mxu1 %v8549_v29  ;;  %v8612_v9 = vld [vmem:[#allocation8 + $0x618] ss:$20 sps:$4 sm:$0xff]   ;;  %v8615_v29 = vld [vmem:[#allocation8 + $0x620] ss:$20 sps:$4 sm:$0xff]  }
 0x36a   :  { %5176 = vmatprep.subr.bf16.mxu0 %v8554_v30  ;;  %5305 = vmatprep.subr.bf16.mxu1 %v8557_v33  ;;  %v8618_v30 = vld [vmem:[#allocation8 + $0x150] ss:$20 sps:$4 sm:$0xff]  }
 0x36b   :  { %v8619_v33 = vld [vmem:[#allocation8 + $0x3d0] ss:$20 sps:$4 sm:$0xff]  }
 0x36d   :  { %5177 = vmatpush1.bf16.msra.mxu0 %v8552_v34  ;;  %5306 = vmatpush1.bf16.msra.mxu1 %v8555_v31  ;;  %v3778_v38 = vpop.f32.mrb[16].mxu1  ;;  %v8620_v34 = vld [vmem:[#allocation8 + $0x10] ss:$20 sps:$4 sm:$0xff]  }
 0x36e   :  { %v3779_v41 = vadd.f32 %v3778_v38, %v3738_v36  ;;  %v7612_v43 = vpop.f32.mrb[17].mxu1  ;;  %5178 = vmatprep.subr.bf16.mxu0 %v8560_v32  ;;  %5307 = vmatprep.subr.bf16.mxu1 %v8563_v35  ;;  %v8590_v36 = vld [vmem:[#allocation8 + $0x57c] ss:$20 sps:$4 sm:$0xff]   ;;  %v8622_v32 = vld [vmem:[#allocation8 + $0x178] ss:$20 sps:$4 sm:$0xff]  }
 0x36f   :  { %v3781_v46 = vpop.f32.mrb[18].mxu1  ;;  %v8621_v31 = vld [vmem:[#allocation8 + $0x290] ss:$20 sps:$4 sm:$0xff]   ;;  %v8623_v35 = vld [vmem:[#allocation8 + $0x3f8] ss:$20 sps:$4 sm:$0xff]  }
 0x370   :  { %v3782_v47 = vadd.f32 %v3781_v46, %v3741_v7  ;;  %v7613_v48 = vpop.f32.mrb[19].mxu1  ;;  %v3789_v51 = vmax.f32 %v3779_v41, 0.0  ;;  %v8591_v7 = vld [vmem:[#allocation8 + $0x580] ss:$20 sps:$4 sm:$0xff]   ;;  %v8624_v38 = vld [vmem:[#allocation8 + $0x38] ss:$20 sps:$4 sm:$0xff]  }
 0x371   :  { %5179 = vmatpush1.bf16.msra.mxu0 %v8558_v39  ;;  %5308 = vmatpush1.bf16.msra.mxu1 %v8561_v40  ;;  %v8625_v39 = vld [vmem:[#allocation8 + $0x2b8] ss:$20 sps:$4 sm:$0xff]   ;;  %v8626_v40 = vld [vmem:[#allocation8 + $0x1a0] ss:$20 sps:$4 sm:$0xff]   ;;  %v8631_v46 = vld [vmem:[#allocation8 + $0x448] ss:$20 sps:$4 sm:$0xff]  }
 0x372   :  { %v3794_v52 = vmax.f32 %v3782_v47, 0.0  ;;  %5180 = vmatprep.subr.bf16.mxu0 %v8566_v44  ;;  %5309 = vmatprep.subr.bf16.mxu1 %v8569_v45  ;;  %v8627_v41 = vld [vmem:[#allocation8 + $0x420] ss:$20 sps:$4 sm:$0xff]   ;;  %v8630_v45 = vld [vmem:[#allocation8 + $0x1c8] ss:$20 sps:$4 sm:$0xff]  }
 0x373   :  { %v8628_v43 = vld [vmem:[#allocation8 + $0x60] ss:$20 sps:$4 sm:$0xff]   ;;  %v8632_v47 = vld [vmem:[#allocation8 + $0x88] ss:$20 sps:$4 sm:$0xff]   ;;  %v8634_v48 = vld [vmem:[#allocation8 + $0x1f0] ss:$20 sps:$4 sm:$0xff]  }
 0x374   :  { %v9218_v55 = vpack.c.bf16 %v3794_v52, %v3789_v51  ;;  %v8629_v44 = vld [vmem:[#allocation8 + $0x2e0] ss:$20 sps:$4 sm:$0xff]   ;;  %v8638_v51 = vld [vmem:[#allocation8 + $0x218] ss:$20 sps:$4 sm:$0xff]  }
 0x375   :  { %5181 = vmatpush1.bf16.msra.mxu0 %v8564_v49  ;;  %5310 = vmatpush1.bf16.msra.mxu1 %v8567_v50  ;;  %v8636_v49 = vld [vmem:[#allocation8 + $0xb0] ss:$20 sps:$4 sm:$0xff]   ;;  %v8639_v52 = vld [vmem:[#allocation8 + $0x498] ss:$20 sps:$4 sm:$0xff]  }
 0x376   :  { %5193 = vmatprep.subr.bf16.mxu0 %v8572_v53  ;;  %5322 = vmatprep.subr.bf16.mxu1 %v8575_v54  ;;  %v8637_v50 = vld [vmem:[#allocation8 + $0x330] ss:$20 sps:$4 sm:$0xff]   ;;  %v8640_v53 = vld [vmem:[#allocation8 + $0xd8] ss:$20 sps:$4 sm:$0xff]  }
 0x377   :  { %v8641_v54 = vld [vmem:[#allocation8 + $0x358] ss:$20 sps:$4 sm:$0xff]  }
 0x378   :  { %5183 = vmatmul.mubr.bf16.vlgmr.msra.gmra.mrb[20].mxu0 %v9204_v11  ;;  %5312 = vmatmul.mubr.bf16.vlgmr.msra.gmra.mrb[20].mxu1 %v9204_v11 }
 0x379   :  { %5194 = vmatpush1.bf16.msra.mxu0 %v8570_v56  ;;  %5323 = vmatpush1.bf16.msra.mxu1 %v8573_v57  ;;  %v8642_v56 = vld [vmem:[#allocation8 + $0x240] ss:$20 sps:$4 sm:$0xff]  }
 0x37a   :  { %5195 = vmatprep.subr.bf16.mxu0 %v8578_v58  ;;  %5324 = vmatprep.subr.bf16.mxu1 %v8581_v5  ;;  %v8643_v57 = vld [vmem:[#allocation8 + $0x4c0] ss:$20 sps:$4 sm:$0xff]  }
 0x37b   :  { %5225 = vmatprep.mubr.bf16.mxu0 %v8971_v23  ;;  %5354 = vmatprep.mubr.bf16.mxu1 %v8971_v23  ;;  %v8644_v58 = vld [vmem:[#allocation8 + $0x100] ss:$20 sps:$4 sm:$0xff]  }
 0x37c   :  { %v8645_v5 = vld [vmem:[#allocation8 + $0x380] ss:$20 sps:$4 sm:$0xff]  }
 0x37d   :  { %5196 = vmatpush1.bf16.msra.mxu0 %v8576_v42  ;;  %5325 = vmatpush1.bf16.msra.mxu1 %v8579_v12  ;;  %v8646_v42 = vld [vmem:[#allocation8 + $0x268] ss:$20 sps:$4 sm:$0xff]  }
 0x37e   :  { %5197 = vmatprep.subr.bf16.mxu0 %v8584_v2  ;;  %5326 = vmatprep.subr.bf16.mxu1 %v8587_v3  ;;  %v8647_v12 = vld [vmem:[#allocation8 + $0x4e8] ss:$20 sps:$4 sm:$0xff]  }
 0x37f   :  { %v8648_v2 = vld [vmem:[#allocation8 + $0x128] ss:$20 sps:$4 sm:$0xff]  }
 0x380   :  { %v8649_v3 = vld [vmem:[#allocation8 + $0x3a8] ss:$20 sps:$4 sm:$0xff]  }
 0x381   :  { %5198 = vmatpush1.bf16.msra.mxu0 %v8582_v19  ;;  %5327 = vmatpush1.bf16.msra.mxu1 %v8585_v4  ;;  %v8660_v19 = vld [vmem:[#allocation10 + $0x4] ss:$12 sps:$4 sm:$0xff]  }
 0x382   :  { %5199 = vmatprep.subr.bf16.mxu0 %v8590_v36  ;;  %5328 = vmatprep.subr.bf16.mxu1 %v8593_v6  ;;  %v8650_v4 = vld [vmem:[#allocation8 + $0x510] ss:$20 sps:$4 sm:$0xff]   ;;  %v8658_v36 = vld [vmem:[#allocation10] ss:$12 sps:$4 sm:$0xff]   ;;  %v8663_v6 = vld [vmem:[#allocation10 + $0x1c] ss:$12 sps:$4 sm:$0xff]  }
 0x385   :  { %5200 = vmatpush1.bf16.msra.mxu0 %v8588_v37  ;;  %5329 = vmatpush1.bf16.msra.mxu1 %v8591_v7  ;;  %v8651_v37 = vld [vmem:[#allocation8 + $0x538] ss:$20 sps:$4 sm:$0xff]  }
 0x386   :  { %5201 = vmatprep.subr.bf16.mxu0 %v8596_v8  ;;  %5330 = vmatprep.subr.bf16.mxu1 %v8599_v60  ;;  %v8661_v7 = vld [vmem:[#allocation10 + $0x18] ss:$12 sps:$4 sm:$0xff]   ;;  %v8666_v8 = vld [vmem:[#allocation10 + $0x34] ss:$12 sps:$4 sm:$0xff]  }
 0x387   :  { %v8652_v60 = vld [vmem:[#allocation8 + $0x560] ss:$20 sps:$4 sm:$0xff]  }
 0x389   :  { %5202 = vmatpush1.bf16.msra.mxu0 %v8594_v15  ;;  %5331 = vmatpush1.bf16.msra.mxu1 %v8597_v16  ;;  %v8669_v15 = vld [vmem:[#allocation10 + $0x4c] ss:$12 sps:$4 sm:$0xff]   ;;  %v8667_v16 = vld [vmem:[#allocation10 + $0x48] ss:$12 sps:$4 sm:$0xff]  }
 0x38a   :  { %5203 = vmatprep.subr.bf16.mxu0 %v8602_v17  ;;  %5332 = vmatprep.subr.bf16.mxu1 %v8605_v18  ;;  %v8672_v17 = vld [vmem:[#allocation10 + $0x64] ss:$12 sps:$4 sm:$0xff]  }
 0x38b   :  { %v8654_v18 = vld [vmem:[#allocation8 + $0x5b0] ss:$20 sps:$4 sm:$0xff]  }
 0x38d   :  { %5204 = vmatpush1.bf16.msra.mxu0 %v8600_v20  ;;  %5333 = vmatpush1.bf16.msra.mxu1 %v8603_v21  ;;  %v8670_v20 = vld [vmem:[#allocation10 + $0x60] ss:$12 sps:$4 sm:$0xff]   ;;  %v8675_v21 = vld [vmem:[#allocation10 + $0x7c] ss:$12 sps:$4 sm:$0xff]  }
 0x38e   :  { %5205 = vmatprep.subr.bf16.mxu0 %v8608_v22  ;;  %5334 = vmatprep.subr.bf16.mxu1 %v8611_v61  ;;  %v8655_v22 = vld [vmem:[#allocation8 + $0x5d8] ss:$20 sps:$4 sm:$0xff]  }
 0x38f   :  { %v8673_v61 = vld [vmem:[#allocation10 + $0x78] ss:$12 sps:$4 sm:$0xff]  }
 0x391   :  { %5206 = vmatpush1.bf16.msra.mxu0 %v8606_v24  ;;  %5335 = vmatpush1.bf16.msra.mxu1 %v8609_v26  ;;  %v8678_v24 = vld [vmem:[#allocation10 + $0x94] ss:$12 sps:$4 sm:$0xff]  }
 0x392   :  { %5207 = vmatprep.subr.bf16.mxu0 %v8614_v27  ;;  %5336 = vmatprep.subr.bf16.mxu1 %v8617_v28  ;;  %v8656_v26 = vld [vmem:[#allocation8 + $0x600] ss:$20 sps:$4 sm:$0xff]   ;;  %v8676_v27 = vld [vmem:[#allocation10 + $0x90] ss:$12 sps:$4 sm:$0xff]   ;;  %v8681_v28 = vld [vmem:[#allocation10 + $0xac] ss:$12 sps:$4 sm:$0xff]  }
 0x395   :  { %5208 = vmatpush1.bf16.msra.mxu0 %v8612_v9  ;;  %5337 = vmatpush1.bf16.msra.mxu1 %v8615_v29  ;;  %v8657_v9 = vld [vmem:[#allocation8 + $0x628] ss:$20 sps:$4 sm:$0xff]  }
 0x396   :  { %7488 = vmatprep.subr.bf16.mxu0 %v8618_v30  ;;  %7510 = vmatprep.subr.bf16.mxu1 %v8619_v33  ;;  %v8685_v29 = vld [vmem:[#allocation10 + $0xc8] ss:$12 sps:$4 sm:$0xff]   ;;  %v8684_v33 = vld [vmem:[#allocation10 + $0xc4] ss:$12 sps:$4 sm:$0xff]  }
 0x397   :  { %v8679_v30 = vld [vmem:[#allocation10 + $0xa8] ss:$12 sps:$4 sm:$0xff]  }
 0x398   :  { %5226 = vmatmul.mubr.bf16.vlgmr.msra.gmra.mrb[20].mxu0 %v9218_v55  ;;  %5355 = vmatmul.mubr.bf16.vlgmr.msra.gmra.mrb[20].mxu1 %v9218_v55 }
 0x399   :  { %7489 = vmatpush3.bf16.msra.mxu0 %v8620_v34  ;;  %5397 = vmatprep.mubr.bf16.mxu0 %v9206_v13  ;;  %v8633_v13 = vld [vmem:[#allocation8 + $0x308] ss:$20 sps:$4 sm:$0xff]  }
 0x39a   :  { %7511 = vmatpush3.bf16.msra.mxu1 %v8621_v31  ;;  %5438 = vmatprep.mubr.bf16.mxu1 %v9208_v14  ;;  %v8635_v14 = vld [vmem:[#allocation8 + $0x470] ss:$20 sps:$4 sm:$0xff]   ;;  %v8686_v34 = vld [vmem:[#allocation10 + $0x8] ss:$12 sps:$4 sm:$0xff]   ;;  %v8690_v31 = vld [vmem:[#allocation10 + $0xe0] ss:$12 sps:$4 sm:$0xff]  }
 0x39b   :  { %7490 = vmatprep.subr.bf16.mxu0 %v8622_v32  ;;  %7512 = vmatprep.subr.bf16.mxu1 %v8623_v35  ;;  %v8682_v32 = vld [vmem:[#allocation10 + $0xc0] ss:$12 sps:$4 sm:$0xff]   ;;  %v8689_v35 = vld [vmem:[#allocation10 + $0xdc] ss:$12 sps:$4 sm:$0xff]  }
 0x39d   :  { %7491 = vmatpush3.bf16.msra.mxu0 %v8624_v38  ;;  %v8691_v38 = vld [vmem:[#allocation10 + $0x20] ss:$12 sps:$4 sm:$0xff]  }
 0x39e   :  { %7513 = vmatpush3.bf16.msra.mxu1 %v8625_v39  ;;  %7492 = vmatprep.subr.bf16.mxu0 %v8626_v40  ;;  %v8695_v39 = vld [vmem:[#allocation10 + $0xf8] ss:$12 sps:$4 sm:$0xff]  }
 0x39f   :  { %7514 = vmatprep.subr.bf16.mxu1 %v8627_v41  ;;  %v8687_v40 = vld [vmem:[#allocation10 + $0xd8] ss:$12 sps:$4 sm:$0xff]   ;;  %v8694_v41 = vld [vmem:[#allocation10 + $0xf4] ss:$12 sps:$4 sm:$0xff]  }
 0x3a1   :  { %7493 = vmatpush3.bf16.msra.mxu0 %v8628_v43  ;;  %v8696_v43 = vld [vmem:[#allocation10 + $0x38] ss:$12 sps:$4 sm:$0xff]  }
 0x3a2   :  { %7515 = vmatpush3.bf16.msra.mxu1 %v8629_v44  ;;  %7494 = vmatprep.subr.bf16.mxu0 %v8630_v45  ;;  %v8700_v44 = vld [vmem:[#allocation10 + $0x110] ss:$12 sps:$4 sm:$0xff]  }
 0x3a3   :  { %7516 = vmatprep.subr.bf16.mxu1 %v8631_v46  ;;  %v8692_v45 = vld [vmem:[#allocation10 + $0xf0] ss:$12 sps:$4 sm:$0xff]   ;;  %v8699_v46 = vld [vmem:[#allocation10 + $0x10c] ss:$12 sps:$4 sm:$0xff]  }
 0x3a5   :  { %7495 = vmatpush3.bf16.msra.mxu0 %v8632_v47  ;;  %v8705_v47 = vld [vmem:[#allocation10 + $0x128] ss:$12 sps:$4 sm:$0xff]  }
 0x3a6   :  { %7517 = vmatpush3.bf16.msra.mxu1 %v8633_v13  ;;  %7496 = vmatprep.subr.bf16.mxu0 %v8634_v48  ;;  %v8697_v13 = vld [vmem:[#allocation10 + $0x108] ss:$12 sps:$4 sm:$0xff]   ;;  %v8704_v48 = vld [vmem:[#allocation10 + $0x124] ss:$12 sps:$4 sm:$0xff]  }
 0x3a7   :  { %7518 = vmatprep.subr.bf16.mxu1 %v8635_v14  ;;  %v8706_v14 = vld [vmem:[#allocation10 + $0x68] ss:$12 sps:$4 sm:$0xff]  }
 0x3a9   :  { %7497 = vmatpush3.bf16.msra.mxu0 %v8636_v49  ;;  %v8710_v49 = vld [vmem:[#allocation10 + $0x140] ss:$12 sps:$4 sm:$0xff]  }
 0x3aa   :  { %7519 = vmatpush3.bf16.msra.mxu1 %v8637_v50  ;;  %7498 = vmatprep.subr.bf16.mxu0 %v8638_v51  ;;  %v8702_v50 = vld [vmem:[#allocation10 + $0x120] ss:$12 sps:$4 sm:$0xff]   ;;  %v8709_v51 = vld [vmem:[#allocation10 + $0x13c] ss:$12 sps:$4 sm:$0xff]  }
 0x3ab   :  { %7520 = vmatprep.subr.bf16.mxu1 %v8639_v52  ;;  %v8711_v52 = vld [vmem:[#allocation10 + $0x80] ss:$12 sps:$4 sm:$0xff]  }
 0x3ad   :  { %7499 = vmatpush3.bf16.msra.mxu0 %v8640_v53  ;;  %v8707_v53 = vld [vmem:[#allocation10 + $0x138] ss:$12 sps:$4 sm:$0xff]  }
 0x3ae   :  { %7521 = vmatpush3.bf16.msra.mxu1 %v8641_v54  ;;  %7500 = vmatprep.subr.bf16.mxu0 %v8642_v56  ;;  %v8714_v54 = vld [vmem:[#allocation10 + $0x154] ss:$12 sps:$4 sm:$0xff]   ;;  %v8715_v56 = vld [vmem:[#allocation10 + $0x158] ss:$12 sps:$4 sm:$0xff]  }
 0x3af   :  { %7522 = vmatprep.subr.bf16.mxu1 %v8643_v57  ;;  %v8716_v57 = vld [vmem:[#allocation10 + $0x98] ss:$12 sps:$4 sm:$0xff]  }
 0x3b1   :  { %7501 = vmatpush3.bf16.msra.mxu0 %v8644_v58  ;;  %v8712_v58 = vld [vmem:[#allocation10 + $0x150] ss:$12 sps:$4 sm:$0xff]  }
 0x3b2   :  { %7523 = vmatpush3.bf16.msra.mxu1 %v8645_v5  ;;  %7502 = vmatprep.subr.bf16.mxu0 %v8646_v42  ;;  %v8719_v5 = vld [vmem:[#allocation10 + $0x16c] ss:$12 sps:$4 sm:$0xff]   ;;  %v8720_v42 = vld [vmem:[#allocation10 + $0x170] ss:$12 sps:$4 sm:$0xff]  }
 0x3b3   :  { %7524 = vmatprep.subr.bf16.mxu1 %v8647_v12  ;;  %v8721_v12 = vld [vmem:[#allocation10 + $0xb0] ss:$12 sps:$4 sm:$0xff]  }
 0x3b5   :  { %7503 = vmatpush3.bf16.msra.mxu0 %v8648_v2  ;;  %v8717_v2 = vld [vmem:[#allocation10 + $0x168] ss:$12 sps:$4 sm:$0xff]  }
 0x3b6   :  { %7525 = vmatpush3.bf16.msra.mxu1 %v8649_v3  ;;  %7614 = vmatprep.subr.bf16.mxu0 %v8972_v25  ;;  %v8724_v3 = vld [vmem:[#allocation10 + $0x184] ss:$12 sps:$4 sm:$0xff]  }
 0x3b7   :  { %6320 = vmatprep.subr.bf16.mxu1 %v8660_v19  ;;  %v8725_v19 = vld [vmem:[#allocation10 + $0x248] ss:$12 sps:$4 sm:$0xff]  }
 0x3b8   :  { %5398 = vmatmul.mubr.bf16.vlgmr.msra.gmra.mrb[24].mxu0 %v9202_v10  ;;  %v8664_v10 = vld [vmem:[#allocation10 + $0x30] ss:$12 sps:$4 sm:$0xff]  }
 0x3b9   :  { %5439 = vmatmul.mubr.bf16.vlgmr.msra.gmra.mrb[24].mxu1 %v9204_v11  ;;  %7615 = vmatpush3.bf16.msra.mxu0 %v8650_v4  ;;  %v8653_v11 = vld [vmem:[#allocation8 + $0x588] ss:$20 sps:$4 sm:$0xff]   ;;  %v9244_v4 = vld [vmem:[%s9299_s7] sm:$0x1f] }
 0x3ba   :  { %7616 = vmatprep.subr.bf16.mxu0 %v8972_v25  ;;  %7630 = vmatprep.mubr.msk.bf16.mxu0 %vm8973_vm0, %v8972_v25 }
 0x3bb   :  { %6321 = vmatpush1.bf16.msra.mxu1 %v8658_v36  ;;  %v4045_v36 = vrot.slane %v9244_v4, %v9125_v62 }
 0x3bc   :  { %6322 = vmatprep.subr.bf16.mxu1 %v8663_v6  ;;  %v4053_v6 = vrot.slane %v9244_v4, %v9128_v63 }
 0x3bd   :  { %7617 = vmatpush3.bf16.msra.mxu0 %v8651_v37  ;;  %v4049_v37 = vrot.slane %v9244_v4, %v9131_v0 }
 0x3be   :  { %7618 = vmatprep.subr.bf16.mxu0 %v8972_v25 }
 0x3bf   :  { %6323 = vmatpush1.bf16.msra.mxu1 %v8661_v7  ;;  %v4057_v7 = vrot.slane %v9244_v4, %v9134_v1 }
 0x3c0   :  { %6324 = vmatprep.subr.bf16.mxu1 %v8666_v8 }
 0x3c1   :  { %7619 = vmatpush3.bf16.msra.mxu0 %v8652_v60 }
 0x3c2   :  { %7620 = vmatprep.subr.bf16.mxu0 %v8972_v25 }
 0x3c3   :  { %6325 = vmatpush1.bf16.msra.mxu1 %v8664_v10 }
 0x3c4   :  { %6326 = vmatprep.subr.bf16.mxu1 %v8669_v15 }
 0x3c5   :  { %7621 = vmatpush3.bf16.msra.mxu0 %v8653_v11 }
 0x3c6   :  { %7622 = vmatprep.subr.bf16.mxu0 %v8972_v25 }
 0x3c7   :  { %6327 = vmatpush1.bf16.msra.mxu1 %v8667_v16 }
 0x3c8   :  { %6328 = vmatprep.subr.bf16.mxu1 %v8672_v17 }
 0x3c9   :  { %7623 = vmatpush3.bf16.msra.mxu0 %v8654_v18 }
 0x3ca   :  { %7624 = vmatprep.subr.bf16.mxu0 %v8972_v25 }
 0x3cb   :  { %6329 = vmatpush1.bf16.msra.mxu1 %v8670_v20 }
 0x3cc   :  { %6330 = vmatprep.subr.bf16.mxu1 %v8675_v21 }
 0x3cd   :  { %7625 = vmatpush3.bf16.msra.mxu0 %v8655_v22 }
 0x3ce   :  { %7626 = vmatprep.subr.bf16.mxu0 %v8972_v25 }
 0x3cf   :  { %6331 = vmatpush1.bf16.msra.mxu1 %v8673_v61 }
 0x3d0   :  { %6332 = vmatprep.subr.bf16.mxu1 %v8678_v24 }
 0x3d1   :  { %7627 = vmatpush3.bf16.msra.mxu0 %v8656_v26 }
 0x3d2   :  { %7628 = vmatprep.subr.bf16.mxu0 %v8972_v25 }
 0x3d3   :  { %6333 = vmatpush1.bf16.msra.mxu1 %v8676_v27 }
 0x3d4   :  { %6334 = vmatprep.subr.bf16.mxu1 %v8681_v28 }
 0x3d5   :  { %7629 = vmatpush3.bf16.msra.mxu0 %v8657_v9 }
 0x3d6   :  { %7541 = vmatprep.subr.bf16.mxu0 %v8685_v29 }
 0x3d7   :  { %6335 = vmatpush1.bf16.msra.mxu1 %v8679_v30 }
 0x3d8   :  { %7631 = vmatmul.mubr.bf16.vlgmr.msra.gmra.mrb[28].mxu0 %v9218_v55  ;;  %6336 = vmatprep.subr.bf16.mxu1 %v8684_v33  ;;  %v8701_v55 = vld [vmem:[#allocation10 + $0x50] ss:$12 sps:$4 sm:$0xff]  }
 0x3d9   :  { %7542 = vmatpush3.bf16.msra.mxu0 %v8686_v34 }
 0x3da   :  { %7543 = vmatprep.subr.bf16.mxu0 %v8690_v31 }
 0x3db   :  { %6337 = vmatpush1.bf16.msra.mxu1 %v8682_v32 }
 0x3dc   :  { %6338 = vmatprep.subr.bf16.mxu1 %v8689_v35 }
 0x3dd   :  { %7544 = vmatpush3.bf16.msra.mxu0 %v8691_v38 }
 0x3de   :  { %7545 = vmatprep.subr.bf16.mxu0 %v8695_v39 }
 0x3df   :  { %6339 = vmatpush1.bf16.msra.mxu1 %v8687_v40 }
 0x3e0   :  { %6340 = vmatprep.subr.bf16.mxu1 %v8694_v41  ;;  %v8722_v41 = vld [vmem:[#allocation10 + $0x180] ss:$12 sps:$4 sm:$0xff]  }
 0x3e1   :  { %7546 = vmatpush3.bf16.msra.mxu0 %v8696_v43  ;;  %v8726_v43 = vld [vmem:[#allocation10 + $0x188] ss:$12 sps:$4 sm:$0xff]  }
 0x3e2   :  { %7547 = vmatprep.subr.bf16.mxu0 %v8700_v44  ;;  %v8729_v44 = vld [vmem:[#allocation10 + $0x19c] ss:$12 sps:$4 sm:$0xff]  }
 0x3e3   :  { %6341 = vmatpush1.bf16.msra.mxu1 %v8692_v45  ;;  %v8730_v45 = vld [vmem:[#allocation10 + $0x260] ss:$12 sps:$4 sm:$0xff]  }
 0x3e4   :  { %6342 = vmatprep.subr.bf16.mxu1 %v8699_v46  ;;  %v8727_v46 = vld [vmem:[#allocation10 + $0x198] ss:$12 sps:$4 sm:$0xff]  }
 0x3e5   :  { %7548 = vmatpush3.bf16.msra.mxu0 %v8701_v55  ;;  %v8731_v55 = vld [vmem:[#allocation10 + $0x1a0] ss:$12 sps:$4 sm:$0xff]  }
 0x3e6   :  { %7549 = vmatprep.subr.bf16.mxu0 %v8705_v47  ;;  %v8734_v47 = vld [vmem:[#allocation10 + $0x1b4] ss:$12 sps:$4 sm:$0xff]  }
 0x3e7   :  { %6343 = vmatpush1.bf16.msra.mxu1 %v8697_v13  ;;  %v8735_v13 = vld [vmem:[#allocation10 + $0x278] ss:$12 sps:$4 sm:$0xff]  }
 0x3e8   :  { %6344 = vmatprep.subr.bf16.mxu1 %v8704_v48  ;;  %v8732_v48 = vld [vmem:[#allocation10 + $0x1b0] ss:$12 sps:$4 sm:$0xff]  }
 0x3e9   :  { %7550 = vmatpush3.bf16.msra.mxu0 %v8706_v14  ;;  %v8736_v14 = vld [vmem:[#allocation10 + $0x1b8] ss:$12 sps:$4 sm:$0xff]  }
 0x3ea   :  { %7551 = vmatprep.subr.bf16.mxu0 %v8710_v49  ;;  %v8739_v49 = vld [vmem:[#allocation10 + $0x1cc] ss:$12 sps:$4 sm:$0xff]  }
 0x3eb   :  { %6345 = vmatpush1.bf16.msra.mxu1 %v8702_v50  ;;  %v8740_v50 = vld [vmem:[#allocation10 + $0x290] ss:$12 sps:$4 sm:$0xff]  }
 0x3ec   :  { %6346 = vmatprep.subr.bf16.mxu1 %v8709_v51  ;;  %v8737_v51 = vld [vmem:[#allocation10 + $0x1c8] ss:$12 sps:$4 sm:$0xff]  }
 0x3ed   :  { %7552 = vmatpush3.bf16.msra.mxu0 %v8711_v52  ;;  %v8741_v52 = vld [vmem:[#allocation10 + $0x1d0] ss:$12 sps:$4 sm:$0xff]  }
 0x3ee   :  { %7553 = vmatprep.subr.bf16.mxu0 %v8715_v56  ;;  %v8742_v56 = vld [vmem:[#allocation10 + $0x1e0] ss:$12 sps:$4 sm:$0xff]  }
 0x3ef   :  { %6347 = vmatpush1.bf16.msra.mxu1 %v8707_v53  ;;  %v8744_v53 = vld [vmem:[#allocation10 + $0x1e4] ss:$12 sps:$4 sm:$0xff]  }
 0x3f0   :  { %6348 = vmatprep.subr.bf16.mxu1 %v8714_v54  ;;  %v8745_v54 = vld [vmem:[#allocation10 + $0x2a8] ss:$12 sps:$4 sm:$0xff]  }
 0x3f1   :  { %7554 = vmatpush3.bf16.msra.mxu0 %v8716_v57  ;;  %v8746_v57 = vld [vmem:[#allocation10 + $0x1e8] ss:$12 sps:$4 sm:$0xff]  }
 0x3f2   :  { %7555 = vmatprep.subr.bf16.mxu0 %v8720_v42  ;;  %v8747_v42 = vld [vmem:[#allocation10 + $0x1f8] ss:$12 sps:$4 sm:$0xff]  }
 0x3f3   :  { %6349 = vmatpush1.bf16.msra.mxu1 %v8712_v58  ;;  %v8749_v58 = vld [vmem:[#allocation10 + $0x1fc] ss:$12 sps:$4 sm:$0xff]  }
 0x3f4   :  { %6350 = vmatprep.subr.bf16.mxu1 %v8719_v5  ;;  %v8750_v5 = vld [vmem:[#allocation10 + $0x2c0] ss:$12 sps:$4 sm:$0xff]  }
 0x3f5   :  { %7556 = vmatpush3.bf16.msra.mxu0 %v8721_v12  ;;  %v8751_v12 = vld [vmem:[#allocation10 + $0x200] ss:$12 sps:$4 sm:$0xff]  }
 0x3f6   :  { %7563 = vmatprep.subr.bf16.mxu0 %v8725_v19 }
 0x3f7   :  { %6351 = vmatpush1.bf16.msra.mxu1 %v8717_v2  ;;  %v8754_v2 = vld [vmem:[#allocation10 + $0x214] ss:$12 sps:$4 sm:$0xff]  }
 0x3f8   :  { %6363 = vmatprep.subr.bf16.mxu1 %v8724_v3  ;;  %v8755_v3 = vld [vmem:[#allocation10 + $0x2d8] ss:$12 sps:$4 sm:$0xff]  }
 0x46b   :  { %v5227_v8 = vpop.f32.mrb[20].mxu0  ;;  %v5356_v60 = vpop.f32.mrb[20].mxu1 }
 0x46c   :  { %v7670_v10 = vadd.f32 %v5227_v8, %v4045_v36  ;;  %v7674_v15 = vadd.f32 %v5356_v60, %v4053_v6  ;;  %v5229_v11 = vpop.f32.mrb[21].mxu0  ;;  %v5358_v16 = vpop.f32.mrb[21].mxu1  ;;  %v8759_v60 = vld [vmem:[#allocation10 + $0x22c] ss:$12 sps:$4 sm:$0xff]  }
 0x46d   :  { %v7671_v17 = vadd.f32 %v5229_v11, %v4049_v37  ;;  %v7675_v18 = vadd.f32 %v5358_v16, %v4057_v7  ;;  %v5231_v20 = vpop.f32.mrb[22].mxu0  ;;  %v5360_v21 = vpop.f32.mrb[22].mxu1 }
 0x46e   :  { %v7672_v22 = vadd.f32 %v5231_v20, %v4045_v36  ;;  %v7676_v61 = vadd.f32 %v5360_v21, %v4053_v6  ;;  %v5233_v24 = vpop.f32.mrb[23].mxu0  ;;  %v5362_v26 = vpop.f32.mrb[23].mxu1  ;;  %v5488_v9 = vmax.f32 %v7670_v10, 0.0  ;;  %v5490_v29 = vmax.f32 %v7674_v15, 0.0  ;;  %v8752_v6 = vld [vmem:[#allocation10 + $0x210] ss:$12 sps:$4 sm:$0xff]  }
 0x46f   :  { %v7673_v27 = vadd.f32 %v5233_v24, %v4049_v37  ;;  %v7677_v28 = vadd.f32 %v5362_v26, %v4057_v7  ;;  %v5489_v33 = vmax.f32 %v7671_v17, 0.0  ;;  %v5491_v34 = vmax.f32 %v7675_v18, 0.0  ;;  %v8756_v37 = vld [vmem:[#allocation10 + $0x218] ss:$12 sps:$4 sm:$0xff]   ;;  %v8760_v10 = vld [vmem:[#allocation10 + $0x2f0] ss:$12 sps:$4 sm:$0xff]  }
 0x470   :  { %v5493_v30 = vmax.f32 %v7672_v22, 0.0  ;;  %v5495_v1 = vmax.f32 %v7676_v61, 0.0  ;;  %v4061_v36 = vrot.slane %v9244_v4, %v9159_v59  ;;  %v8757_v59 = vld [vmem:[#allocation10 + $0x228] ss:$12 sps:$4 sm:$0xff]   ;;  %v8761_v4 = vld [vmem:[#allocation10 + $0x230] ss:$12 sps:$4 sm:$0xff]  }
 0x471   :  { %v5494_v31 = vmax.f32 %v7673_v27, 0.0  ;;  %v5496_v32 = vmax.f32 %v7677_v28, 0.0  ;;  %v8764_v26 = vld [vmem:[#allocation10 + $0x244] ss:$12 sps:$4 sm:$0xff]  }
 0x472   :  { %v5498_v35 = vpack.c.bf16 %v5493_v30, %v5488_v9  ;;  %v9254_v38 = vpack.c.bf16 %v5495_v1, %v5490_v29  ;;  %v8762_v9 = vld [vmem:[#allocation10 + $0x240] ss:$12 sps:$4 sm:$0xff]   ;;  %v8765_v29 = vld [vmem:[#allocation10 + $0x308] ss:$12 sps:$4 sm:$0xff]  }
 0x473   :  { %v5499_v39 = vpack.c.bf16 %v5494_v31, %v5489_v33  ;;  %v5501_v40 = vpack.c.bf16 %v5496_v32, %v5491_v34  ;;  %v8768_v1 = vld [vmem:[#allocation10 + $0x25c] ss:$12 sps:$4 sm:$0xff]   ;;  %v8766_v33 = vld [vmem:[#allocation10 + $0x258] ss:$12 sps:$4 sm:$0xff]   ;;  %v8769_v34 = vld [vmem:[#allocation10 + $0x320] ss:$12 sps:$4 sm:$0xff]  }
 0x474   :  { %v8772_v31 = vld [vmem:[#allocation10 + $0x274] ss:$12 sps:$4 sm:$0xff]   ;;  %v8770_v32 = vld [vmem:[#allocation10 + $0x270] ss:$12 sps:$4 sm:$0xff]  }
 0x475   :  { %6352 = vmatprep.mubr.bf16.mxu1 %v5499_v39  ;;  %6481 = vmatprep.mubr.bf16.mxu0 %v5499_v39  ;;  %v8776_v39 = vld [vmem:[#allocation10 + $0x28c] ss:$12 sps:$4 sm:$0xff]  }
 0x476   :  { %6353 = vmatmul.mubr.bf16.vlgmr.msra.gmra.mrb[28].mxu1 %v5498_v35  ;;  %6482 = vmatmul.mubr.bf16.vlgmr.msra.gmra.mrb[32].mxu0 %v5498_v35  ;;  %v8773_v35 = vld [vmem:[#allocation10 + $0x338] ss:$12 sps:$4 sm:$0xff]  }
 0x477   :  { %6364 = vmatpush1.bf16.msra.mxu1 %v8722_v41  ;;  %7564 = vmatpush3.bf16.msra.mxu0 %v8726_v43  ;;  %v8777_v41 = vld [vmem:[#allocation10 + $0x350] ss:$12 sps:$4 sm:$0xff]  }
 0x478   :  { %6395 = vmatprep.mubr.bf16.mxu1 %v5501_v40  ;;  %6522 = vmatprep.mubr.bf16.mxu0 %v5501_v40  ;;  %v8774_v40 = vld [vmem:[#allocation10 + $0x288] ss:$12 sps:$4 sm:$0xff]   ;;  %v8780_v43 = vld [vmem:[#allocation10 + $0x2a4] ss:$12 sps:$4 sm:$0xff]  }
 0x479   :  { %6365 = vmatprep.subr.bf16.mxu1 %v8729_v44  ;;  %7565 = vmatprep.subr.bf16.mxu0 %v8730_v45  ;;  %v8778_v44 = vld [vmem:[#allocation10 + $0x2a0] ss:$12 sps:$4 sm:$0xff]   ;;  %v8781_v45 = vld [vmem:[#allocation10 + $0x368] ss:$12 sps:$4 sm:$0xff]  }
 0x47b   :  { %6366 = vmatpush1.bf16.msra.mxu1 %v8727_v46  ;;  %7566 = vmatpush3.bf16.msra.mxu0 %v8731_v55  ;;  %v8784_v46 = vld [vmem:[#allocation10 + $0x2bc] ss:$12 sps:$4 sm:$0xff]   ;;  %v8782_v55 = vld [vmem:[#allocation10 + $0x2b8] ss:$12 sps:$4 sm:$0xff]  }
 0x47c   :  { %6367 = vmatprep.subr.bf16.mxu1 %v8734_v47  ;;  %7567 = vmatprep.subr.bf16.mxu0 %v8735_v13  ;;  %v8785_v47 = vld [vmem:[#allocation10 + $0x380] ss:$12 sps:$4 sm:$0xff]  }
 0x47d   :  { %v8788_v13 = vld [vmem:[#allocation10 + $0x2d4] ss:$12 sps:$4 sm:$0xff]  }
 0x47f   :  { %6368 = vmatpush1.bf16.msra.mxu1 %v8732_v48  ;;  %7568 = vmatpush3.bf16.msra.mxu0 %v8736_v14  ;;  %v8786_v14 = vld [vmem:[#allocation10 + $0x2d0] ss:$12 sps:$4 sm:$0xff]  }
 0x480   :  { %6369 = vmatprep.subr.bf16.mxu1 %v8739_v49  ;;  %7569 = vmatprep.subr.bf16.mxu0 %v8740_v50  ;;  %v8789_v49 = vld [vmem:[#allocation10 + $0x398] ss:$12 sps:$4 sm:$0xff]  }
 0x483   :  { %6370 = vmatpush1.bf16.msra.mxu1 %v8737_v51  ;;  %7570 = vmatpush3.bf16.msra.mxu0 %v8741_v52  ;;  %v8792_v52 = vld [vmem:[#allocation10 + $0x2ec] ss:$12 sps:$4 sm:$0xff]  }
 0x484   :  { %6371 = vmatprep.subr.bf16.mxu1 %v8744_v53  ;;  %7571 = vmatprep.subr.bf16.mxu0 %v8745_v54 }
 0x487   :  { %6372 = vmatpush1.bf16.msra.mxu1 %v8742_v56  ;;  %7572 = vmatpush3.bf16.msra.mxu0 %v8746_v57  ;;  %v8790_v57 = vld [vmem:[#allocation10 + $0x2e8] ss:$12 sps:$4 sm:$0xff]  }
 0x488   :  { %6373 = vmatprep.subr.bf16.mxu1 %v8749_v58  ;;  %7573 = vmatprep.subr.bf16.mxu0 %v8750_v5  ;;  %v8793_v58 = vld [vmem:[#allocation10 + $0x3b0] ss:$12 sps:$4 sm:$0xff]  }
 0x48b   :  { %6374 = vmatpush1.bf16.msra.mxu1 %v8747_v42  ;;  %7574 = vmatpush3.bf16.msra.mxu0 %v8751_v12  ;;  %v7504_v19 = vpop.f32.mrb[24].mxu0  ;;  %v8796_v12 = vld [vmem:[#allocation10 + $0x304] ss:$12 sps:$4 sm:$0xff]  }
 0x48c   :  { %v7526_v7 = vpop.f32.mrb[24].mxu1  ;;  %v7505_v8 = vpop.f32.mrb[25].mxu0  ;;  %6375 = vmatprep.subr.bf16.mxu1 %v8754_v2  ;;  %7575 = vmatprep.subr.bf16.mxu0 %v8755_v3  ;;  %v8794_v3 = vld [vmem:[#allocation10 + $0x300] ss:$12 sps:$4 sm:$0xff]  }
 0x48d   :  { %v7506_v15 = vadd.f32 %v7505_v8, %v7504_v19  ;;  %v7527_v11 = vpop.f32.mrb[25].mxu1  ;;  %v7507_v16 = vpop.f32.mrb[26].mxu0  ;;  %v8799_v19 = vld [vmem:[#allocation10 + $0x31c] ss:$12 sps:$4 sm:$0xff]   ;;  %v8808_v8 = vld [vmem:[#allocation10 + $0x364] ss:$12 sps:$4 sm:$0xff]  }
 0x48e   :  { %v7528_v17 = vadd.f32 %v7527_v11, %v7526_v7  ;;  %v7529_v18 = vpop.f32.mrb[26].mxu1  ;;  %v7508_v20 = vpop.f32.mrb[27].mxu0  ;;  %v8803_v7 = vld [vmem:[#allocation10 + $0x348] ss:$12 sps:$4 sm:$0xff]   ;;  %v8817_v11 = vld [vmem:[#allocation10 + $0x3ac] ss:$12 sps:$4 sm:$0xff]  }
 0x48f   :  { %v5400_v21 = vadd.f32 %v7506_v15, %v4061_v36  ;;  %v7509_v22 = vadd.f32 %v7508_v20, %v7507_v16  ;;  %v7530_v61 = vpop.f32.mrb[27].mxu1  ;;  %6376 = vmatpush1.bf16.msra.mxu1 %v8752_v6  ;;  %7576 = vmatpush3.bf16.msra.mxu0 %v8756_v37  ;;  %v8802_v6 = vld [vmem:[#allocation10 + $0x334] ss:$12 sps:$4 sm:$0xff]   ;;  %v8800_v37 = vld [vmem:[#allocation10 + $0x330] ss:$12 sps:$4 sm:$0xff]  }
 0x490   :  { %v7531_v24 = vadd.f32 %v7530_v61, %v7529_v18  ;;  %6377 = vmatprep.subr.bf16.mxu1 %v8759_v60  ;;  %7577 = vmatprep.subr.bf16.mxu0 %v8760_v10  ;;  %v8806_v60 = vld [vmem:[#allocation10 + $0x360] ss:$12 sps:$4 sm:$0xff]   ;;  %v8811_v10 = vld [vmem:[#allocation10 + $0x37c] ss:$12 sps:$4 sm:$0xff]  }
 0x491   :  { %v5403_v27 = vadd.f32 %v7509_v22, %v4061_v36  ;;  %v5441_v28 = vadd.f32 %v7528_v17, %v5400_v21  ;;  %v8797_v36 = vld [vmem:[#allocation10 + $0x318] ss:$12 sps:$4 sm:$0xff]   ;;  %v8814_v15 = vld [vmem:[#allocation10 + $0x394] ss:$12 sps:$4 sm:$0xff]  }
 0x492   :  { %v8815_v16 = vld [vmem:[#allocation10 + $0x3a8] ss:$12 sps:$4 sm:$0xff]  }
 0x493   :  { %6378 = vmatpush1.bf16.msra.mxu1 %v8757_v59  ;;  %7578 = vmatpush3.bf16.msra.mxu0 %v8761_v4  ;;  %v5444_v30 = vadd.f32 %v7531_v24, %v5403_v27  ;;  %v5663_v59 = vld [vmem:[%s9300_s8] sm:$0x7]  ;;  %s8974_s8 = smov [#allocation11]  }
 0x494   :  { %6379 = vmatprep.subr.bf16.mxu1 %v8764_v26  ;;  %7634 = vmatprep.subr.bf16.mxu0 %v8972_v25  ;;  %v5676_v4 = vrot.slane %v5663_v59, %v9128_v63  ;;  %v5668_v63 = vrot.slane %v5663_v59, %v9125_v62  ;;  %s6589_s14 = sshll.u32 %s8974_s8, 4  ;;  %s6590_s14 = int_to_ptr.vmem [resolvable:$true] %s6589_s14 }
 0x495   :  { %s8930_s15 = scalar_lea.vmem %s6590_s14, 768  ;;  %p8935_p13 = scmp.lt.s32.totalorder %s6590_s14, %s6590_s14 }
 0x496   :  { %6523 = vmatmul.mubr.bf16.vlgmr.msra.gmra.mrb[36].mxu0 %v9254_v38  ;;  %p8931_p12 = scmp.ne.s32.totalorder %s6590_s14, %s8930_s15  ;;  %p8936_p0 = scmp.lt.s32.totalorder %s8930_s15, %s8930_s15 }
 0x497   :  { %6380 = vmatpush1.bf16.msra.mxu1 %v8762_v9  ;;  %7635 = vmatpush3.bf16.msra.mxu0 %v8765_v29 }
 0x498   :  { %6381 = vmatprep.subr.bf16.mxu1 %v8768_v1  ;;  %7636 = vmatprep.subr.bf16.mxu0 %v8972_v25  ;;  %p8937_p1 = por %p8936_p0, %p8935_p13 }
 0x499   :  { %7650 = vmatprep.mubr.msk.bf16.mxu0 %vm8973_vm0, %v8972_v25 }
 0x49a   :  { %p8938_p2 = pnand %p8937_p1, %p8931_p12 }
 0x49b   :  { %6382 = vmatpush1.bf16.msra.mxu1 %v8766_v33  ;;  %7637 = vmatpush3.bf16.msra.mxu0 %v8769_v34 }
 0x49c   :  { %6383 = vmatprep.subr.bf16.mxu1 %v8772_v31  ;;  %7638 = vmatprep.subr.bf16.mxu0 %v8972_v25 }
 0x49f   :  { %6384 = vmatpush1.bf16.msra.mxu1 %v8770_v32  ;;  %7639 = vmatpush3.bf16.msra.mxu0 %v8773_v35 }
 0x4a0   :  { %6385 = vmatprep.subr.bf16.mxu1 %v8776_v39  ;;  %7640 = vmatprep.subr.bf16.mxu0 %v8972_v25 }
 0x4a3   :  { %6386 = vmatpush1.bf16.msra.mxu1 %v8774_v40  ;;  %7641 = vmatpush3.bf16.msra.mxu0 %v8777_v41 }
 0x4a4   :  { %6387 = vmatprep.subr.bf16.mxu1 %v8780_v43  ;;  %7642 = vmatprep.subr.bf16.mxu0 %v8972_v25 }
 0x4a7   :  { %6388 = vmatpush1.bf16.msra.mxu1 %v8778_v44  ;;  %7643 = vmatpush3.bf16.msra.mxu0 %v8781_v45  ;;  %v5672_v45 = vrot.slane %v5663_v59, %v9131_v0 }
 0x4a8   :  { %6389 = vmatprep.subr.bf16.mxu1 %v8784_v46  ;;  %7644 = vmatprep.subr.bf16.mxu0 %v8972_v25 }
 0x4ab   :  { %6390 = vmatpush1.bf16.msra.mxu1 %v8782_v55  ;;  %7645 = vmatpush3.bf16.msra.mxu0 %v8785_v47  ;;  %v5481_v48 = vpop.f32.mrb[28].mxu0 }
 0x4ac   :  { %v5482_v50 = vadd.f32 %v5481_v48, %v5441_v28  ;;  %v7632_v51 = vpop.f32.mrb[29].mxu0  ;;  %6391 = vmatprep.subr.bf16.mxu1 %v8788_v13  ;;  %7646 = vmatprep.subr.bf16.mxu0 %v8972_v25 }
 0x4ad   :  { %v5484_v53 = vpop.f32.mrb[30].mxu0 }
 0x4ae   :  { %v5485_v54 = vadd.f32 %v5484_v53, %v5444_v30  ;;  %v7633_v56 = vpop.f32.mrb[31].mxu0  ;;  %v5492_v5 = vmax.f32 %v5482_v50, 0.0 }
 0x4af   :  { %6392 = vmatpush1.bf16.msra.mxu1 %v8786_v14  ;;  %7647 = vmatpush3.bf16.msra.mxu0 %v8789_v49 }
 0x4b0   :  { %v5497_v42 = vmax.f32 %v5485_v54, 0.0  ;;  %6393 = vmatprep.subr.bf16.mxu1 %v8792_v52  ;;  %7648 = vmatprep.subr.bf16.mxu0 %v8972_v25  ;;  %v8805_v25 = vld [vmem:[#allocation10 + $0x34c] ss:$12 sps:$4 sm:$0xff]  }
 0x4b2   :  { %v5502_v2 = vpack.c.bf16 %v5497_v42, %v5492_v5 }
 0x4b3   :  { %6394 = vmatpush1.bf16.msra.mxu1 %v8790_v57  ;;  %7649 = vmatpush3.bf16.msra.mxu0 %v8793_v58 }
 0x4b4   :  { %6406 = vmatprep.subr.bf16.mxu1 %v8796_v12 }
 0x4b6   :  { %6396 = vmatmul.mubr.bf16.vlgmr.msra.gmra.mrb[28].mxu1 %v9254_v38  ;;  %7651 = vmatmul.mubr.bf16.vlgmr.msra.gmra.mrb[40].mxu0 %v5502_v2  ;;  %v8809_v38 = vld [vmem:[#allocation10 + $0x378] ss:$12 sps:$4 sm:$0xff]  }
 0x4b7   :  { %6407 = vmatpush1.bf16.msra.mxu1 %v8794_v3  ;;  %6438 = vmatprep.mubr.bf16.mxu1 %v8971_v23  ;;  %v8812_v23 = vld [vmem:[#allocation10 + $0x390] ss:$12 sps:$4 sm:$0xff]  }
 0x4b8   :  { %6408 = vmatprep.subr.bf16.mxu1 %v8799_v19 }
 0x4bb   :  { %6409 = vmatpush1.bf16.msra.mxu1 %v8797_v36 }
 0x4bc   :  { %6410 = vmatprep.subr.bf16.mxu1 %v8802_v6 }
 0x4bf   :  { %6411 = vmatpush1.bf16.msra.mxu1 %v8800_v37 }
 0x4c0   :  { %6412 = vmatprep.subr.bf16.mxu1 %v8805_v25 }
 0x4c3   :  { %6413 = vmatpush1.bf16.msra.mxu1 %v8803_v7 }
 0x4c4   :  { %6414 = vmatprep.subr.bf16.mxu1 %v8808_v8 }
 0x4c7   :  { %6415 = vmatpush1.bf16.msra.mxu1 %v8806_v60 }
 0x4c8   :  { %6416 = vmatprep.subr.bf16.mxu1 %v8811_v10 }
 0x4cb   :  { %6417 = vmatpush1.bf16.msra.mxu1 %v8809_v38 }
 0x4cc   :  { %6418 = vmatprep.subr.bf16.mxu1 %v8814_v15 }
 0x4cf   :  { %6419 = vmatpush1.bf16.msra.mxu1 %v8812_v23 }
 0x4d0   :  { %6420 = vmatprep.subr.bf16.mxu1 %v8817_v11 }
 0x4d3   :  { %6421 = vmatpush1.bf16.msra.mxu1 %v8815_v16 }
 0x4d6   :  { %6439 = vmatmul.mubr.bf16.vlgmr.msra.gmra.mrb[28].mxu1 %v5502_v2 }
 0x549   :  { %v7557_v17 = vpop.f32.mrb[32].mxu0 }
 0x54a   :  { %v7558_v18 = vpop.f32.mrb[33].mxu0 }
 0x54b   :  { %v7559_v20 = vadd.f32 %v7558_v18, %v7557_v17  ;;  %v7560_v21 = vpop.f32.mrb[34].mxu0 }
 0x54c   :  { %v7561_v22 = vpop.f32.mrb[35].mxu0 }
 0x54d   :  { %v7562_v61 = vadd.f32 %v7561_v22, %v7560_v21  ;;  %v6484_v27 = vadd.f32 %v7559_v20, %v5676_v4 }
 0x54f   :  { %v6487_v30 = vadd.f32 %v7562_v61, %v5676_v4 }
 0x569   :  { %v7579_v24 = vpop.f32.mrb[36].mxu0 }
 0x56a   :  { %v7580_v26 = vpop.f32.mrb[37].mxu0 }
 0x56b   :  { %v7581_v28 = vadd.f32 %v7580_v26, %v7579_v24  ;;  %v7582_v9 = vpop.f32.mrb[38].mxu0 }
 0x56c   :  { %v7583_v29 = vpop.f32.mrb[39].mxu0 }
 0x56d   :  { %v7584_v1 = vadd.f32 %v7583_v29, %v7582_v9  ;;  %v6525_v33 = vadd.f32 %v7581_v28, %v6484_v27 }
 0x56f   :  { %v6528_v34 = vadd.f32 %v7584_v1, %v6487_v30 }
 0x589   :  { %v6565_v31 = vpop.f32.mrb[40].mxu0 }
 0x58a   :  { %v6566_v32 = vadd.f32 %v6565_v31, %v6525_v33  ;;  %v7652_v35 = vpop.f32.mrb[41].mxu0 }
 0x58b   :  { %v6568_v39 = vpop.f32.mrb[42].mxu0 }
 0x58c   :  { %v6574_v40 = vmax.f32 %v6566_v32, 0.0  ;;  %v6569_v41 = vadd.f32 %v6568_v39, %v6528_v34  ;;  %v7653_v43 = vpop.f32.mrb[43].mxu0 }
 0x58e   :  { %6580 = vst [vmem:[#allocation11 + $0x10] sm:$0xff] %v6574_v40  ;;  %v6577_v44 = vmax.f32 %v6569_v41, 0.0 }
 0x590   :  { %6583 = vst [vmem:[#allocation11 + $0x28] sm:$0xff] %v6577_v44 }
 0x5a9   :  { %v6440_v46 = vpop.f32.mrb[28].mxu1 }
 0x5aa   :  { %v7678_v55 = vadd.f32 %v6440_v46, %v5668_v63  ;;  %v6442_v47 = vpop.f32.mrb[29].mxu1 }
 0x5ab   :  { %v7679_v13 = vadd.f32 %v6442_v47, %v5672_v45  ;;  %v6444_v48 = vpop.f32.mrb[30].mxu1 }
 0x5ac   :  { %v6572_v14 = vmax.f32 %v7678_v55, 0.0  ;;  %v7680_v49 = vadd.f32 %v6444_v48, %v5668_v63  ;;  %v6446_v50 = vpop.f32.mrb[31].mxu1 }
 0x5ad   :  { %v6573_v51 = vmax.f32 %v7679_v13, 0.0  ;;  %v7681_v52 = vadd.f32 %v6446_v50, %v5672_v45 }
 0x5ae   :  { %6578 = vst [vmem:[#allocation11] sm:$0xff] %v6572_v14  ;;  %v6575_v53 = vmax.f32 %v7680_v49, 0.0 }
 0x5af   :  { %6579 = vst [vmem:[#allocation11 + $0x8] sm:$0xff] %v6573_v51  ;;  %v6576_v54 = vmax.f32 %v7681_v52, 0.0 }
 0x5b0   :  { %6581 = vst [vmem:[#allocation11 + $0x18] sm:$0xff] %v6575_v53 }
 0x5b1   :  { %6582 = vst [vmem:[#allocation11 + $0x20] sm:$0xff] %v6576_v54 }
 0x5b2   :  { %8941 = shalt.err (!%p8938_p2)
}
 0x5b3   :  { %s8942_s0 = scalar_lea.hbm %s9301_s9, 768 }
 0x5b4   :  { %p8943_p3 = scmp.ne.s32.totalorder %s9301_s9, %s8942_s0  ;;  %p8946_p4 = scmp.lt.u32.totalorder %s8942_s0, %s9301_s9 }
 0x5b6   :  { %p8948_p5 = pnand %p8946_p4, %p8943_p3 }
 0x5b8   :  { %8951 = shalt.err (!%p8948_p5)
}
 0x5b9   :  { %6595 = dma.vmem_to_hbm [thread:$0]  %s6590_s14, 768, %s9301_s9, [#allocation4], %s8965_s3, %s8965_s3, %s8966_s24  }
 0x5ba   :  { %8958 = dma.done.wait [#allocation4], 768  }
 0x5bb   :  { %8959 = vsyncadd [#allocation4], 4294966528 }
 0x5bc   :  { %6599 = vsyncpa [#allocation3], 1 }
 0x5bd   :  { %6600 = vsyncpa [#allocation6], 1 }
 0x5be   :  { %6601 = vsyncpa [#allocation9], 1 }
 0x5bf   :  { %6602 = vsyncpa [#allocation4], 1 }

</bundles_post_ra>
